<compile_context>
chip_gen: v6e
topology: v6e:2x2x1
jax: 0.10.0
libtpu: 0.0.40
codegen_flags: <defaults>
</compile_context>

<pallas_src>
import math

import jax
import jax.numpy as jnp
from jax.experimental import pallas as pl
from jax.experimental.pallas import tpu as pltpu

N1, N2, N3 = 1024, 512, 256  # out_units of the three hidden Linear layers


def dis_mlp_kernel(x_ref, w1_ref, b1_ref, w2_ref, b2_ref, w3_ref, b3_ref,
                   w4_ref, b4_ref, out_ref, h1_acc):
    k = pl.program_id(0)

    @pl.when(k == 0)
    def _():
        h1_acc[...] = jnp.zeros_like(h1_acc)

    # Partial layer-1 matmul for this K tile (streams the dominant w1 tensor,
    # bf16 operands, f32 accumulation on the MXU).
    h1_acc[...] += jnp.dot(x_ref[...], w1_ref[...],
                           preferred_element_type=jnp.float32)

    @pl.when(k == pl.num_programs(0) - 1)
    def _():
        # Layer 1 epilogue: bias + ReLU (f32).
        h1 = jnp.maximum(h1_acc[...] + b1_ref[...], 0.0)

        # Layer 2: Linear(1024 -> 512) + ReLU.
        h2 = jnp.dot(h1.astype(jnp.bfloat16), w2_ref[...],
                     preferred_element_type=jnp.float32) + b2_ref[...]
        h2 = jnp.maximum(h2, 0.0)

        # Layer 3: Linear(512 -> 256) + ReLU.
        h3 = jnp.dot(h2.astype(jnp.bfloat16), w3_ref[...],
                     preferred_element_type=jnp.float32) + b3_ref[...]
        h3 = jnp.maximum(h3, 0.0)

        # Layer 4: Linear(256 -> 1) as an f32 row-dot (VPU mul + XLU reduce);
        # b4 is a scalar living in SMEM.
        out = jnp.sum(h3 * w4_ref[...], axis=-1, keepdims=True) + b4_ref[0, 0]
        out_ref[...] = out.astype(out_ref.dtype)


def _vmem_capacity_bytes():
    """Physical VMEM of the current chip; conservative default if unqueryable."""
    try:
        return int(pltpu.get_tpu_info().vmem_capacity_bytes)
    except Exception:
        return 64 * 1024 * 1024  # v7x has 64 MiB per TensorCore (smallest of the fleet)


def _pick_tile_k(nin_pad, w1_stream_budget_bytes):
    """Largest K tile dividing the (128-padded) reduction dim whose
    double-buffered bf16 (tile_k, N1) w1 block fits the VMEM budget."""
    for t in (4096, 2048, 1024, 512, 256, 128):
        if nin_pad % t == 0 and 2 * t * N1 * 2 <= w1_stream_budget_bytes:
            return t
    return 128  # nin_pad is always a multiple of 128 after padding


def _build_call(B, nin_pad, tile_k, vmem_limit, flops, bytes_accessed,
                single_buffer_resident):
    if single_buffer_resident:
        def resident(shape):
            # Constant-index operands are DMA'd exactly once; a second pipeline
            # buffer is wasted VMEM -> request single buffering.
            return pl.BlockSpec(shape, lambda k: (0, 0),
                                pipeline_mode=pl.Buffered(1))
    else:
        def resident(shape):
            return pl.BlockSpec(shape, lambda k: (0, 0))

    grid_spec = pltpu.PrefetchScalarGridSpec(
        num_scalar_prefetch=0,
        grid=(nin_pad // tile_k,),
        in_specs=[
            pl.BlockSpec((B, tile_k), lambda k: (0, k)),     # x  (streamed over K)
            pl.BlockSpec((tile_k, N1), lambda k: (k, 0)),    # w1 (streamed, double-buffered)
            resident((1, N1)),                               # b1 (resident)
            resident((N1, N2)),                              # w2 (resident)
            resident((1, N2)),                               # b2
            resident((N2, N3)),                              # w3 (resident)
            resident((1, N3)),                               # b3
            resident((1, N3)),                               # w4 row (1, 256)
            pl.BlockSpec(memory_space=pltpu.MemorySpace.SMEM),   # b4 scalar in SMEM
        ],
        out_specs=pl.BlockSpec((B, 1), lambda k: (0, 0)),
        scratch_shapes=[pltpu.VMEM((B, N1), jnp.float32)],   # layer-1 accumulator
    )

    return pl.pallas_call(
        dis_mlp_kernel,
        out_shape=jax.ShapeDtypeStruct((B, 1), jnp.float32),
        grid_spec=grid_spec,
        compiler_params=pltpu.CompilerParams(
            # Single grid axis is a reduction over K (accumulator in scratch).
            dimension_semantics=("arbitrary",),
            vmem_limit_bytes=vmem_limit,
        ),
        cost_estimate=pl.CostEstimate(flops=flops, transcendentals=0,
                                      bytes_accessed=bytes_accessed),
    )


def dis_mlp_forward(x, params):
    """x: (B, *in_shape) float32. params: dict w1..w4, b1..b4. Returns (B, 1)."""
    B = x.shape[0]
    nin = math.prod(x.shape[1:])
    x_flat = x.reshape(B, nin).astype(jnp.bfloat16)   # nn.Flatten + bf16 stream

    # Pad the reduction dim to a multiple of 128 so w1 is always streamed in
    # lane-aligned blocks; zero rows/columns contribute nothing to the matmul.
    pad = (-nin) % 128
    nin_pad = nin + pad
    w1 = params["w1"]
    if pad:
        x_flat = jnp.pad(x_flat, ((0, 0), (0, pad)))
        w1 = jnp.pad(w1, ((0, pad), (0, 0)))

    vmem_cap = _vmem_capacity_bytes()
    # Spend at most min(16 MiB, VMEM/4) on the double-buffered w1 stream:
    # tile_k = 4096 (16 MiB) when the budget allows, smaller when VMEM is tight.
    w1_stream_budget = min(16 * 1024 * 1024, vmem_cap // 4)
    tile_k = _pick_tile_k(nin_pad, w1_stream_budget)

    # Scoped-VMEM limit: streamed blocks + resident tail weights + headroom,
    # clamped below physical VMEM (v7x only has 64 MiB per TensorCore).
    est = (2 * tile_k * N1 * 2                 # w1 double buffer (bf16)
           + 2 * B * tile_k * 2                # x double buffer (bf16)
           + 2 * 2 * (N1 * N2 + N2 * N3)       # w2/w3 (worst case depth-2, bf16)
           + 8 * 1024 * 1024)                  # biases, accumulator, internal scratch
    vmem_limit = int(min(vmem_cap * 3 // 4, max(32 * 1024 * 1024, est)))

    flops = 2 * B * (nin_pad * N1 + N1 * N2 + N2 * N3 + N3 * 1)
    bytes_accessed = (
        B * nin_pad * 2
        + (nin_pad * N1 + N1 * N2 + N2 * N3) * 2
        + (N1 + N2 + 2 * N3 + 1 + B) * 4)

    args = (x_flat, w1, params["b1"], params["w2"], params["b2"],
            params["w3"], params["b3"], params["w4"], params["b4"])
    try:
        return _build_call(B, nin_pad, tile_k, vmem_limit, flops,
                           bytes_accessed, single_buffer_resident=True)(*args)
    except Exception:
        # pl.Buffered(1) not accepted by this JAX/Mosaic version -> fall back to
        # default depth-2 pipelining for the resident operands (slightly more VMEM).
        return _build_call(B, nin_pad, tile_k, vmem_limit, flops,
                           bytes_accessed, single_buffer_resident=False)(*args)


def init_params(key, nin):
    """PyTorch nn.Linear default init (U(-1/sqrt(fan_in), 1/sqrt(fan_in)))."""
    ks = jax.random.split(key, 8)
    params = {}
    dims = [(nin, N1), (N1, N2), (N2, N3)]
    for i, (fan_in, fan_out) in enumerate(dims, start=1):
        bound = 1.0 / float(fan_in) ** 0.5
        w = jax.random.uniform(ks[2 * (i - 1)], (fan_in, fan_out),
                               jnp.float32, -bound, bound)
        b = jax.random.uniform(ks[2 * (i - 1) + 1], (1, fan_out),
                               jnp.float32, -bound, bound)
        params[f"w{i}"] = w.astype(jnp.bfloat16)   # bf16 weight stream (halved HBM bytes)
        params[f"b{i}"] = b                        # biases stay f32
    bound = 1.0 / float(N3) ** 0.5
    # Final Linear(256 -> 1): store the weight as a (1, 256) row (PyTorch layout).
    params["w4"] = jax.random.uniform(ks[6], (1, N3), jnp.float32, -bound, bound)
    params["b4"] = jax.random.uniform(ks[7], (1, 1), jnp.float32, -bound, bound)
    return params


def reference_forward(x, params):
    """Pure-JAX reference with the same bf16/f32 mixed precision as the kernel."""
    B = x.shape[0]
    h = x.reshape(B, -1).astype(jnp.bfloat16)
    h = jnp.maximum(jnp.dot(h, params["w1"],
                            preferred_element_type=jnp.float32) + params["b1"], 0.0)
    h = jnp.maximum(jnp.dot(h.astype(jnp.bfloat16), params["w2"],
                            preferred_element_type=jnp.float32) + params["b2"], 0.0)
    h = jnp.maximum(jnp.dot(h.astype(jnp.bfloat16), params["w3"],
                            preferred_element_type=jnp.float32) + params["b3"], 0.0)
    return jnp.sum(h * params["w4"], axis=-1, keepdims=True) + params["b4"]


if __name__ == "__main__":
    key = jax.random.PRNGKey(0)
    k_x, k_p, k_x2, k_p2 = jax.random.split(key, 4)

    # Primary test: nin = 4*16*16 = 1024 (multiple of 128, single/few K steps).
    B = 2
    in_shape = (4, 16, 16)
    nin = math.prod(in_shape)
    x = jax.random.normal(k_x, (B,) + in_shape, jnp.float32)
    params = init_params(k_p, nin)

    out = jax.block_until_ready(dis_mlp_forward(x, params))
    ref = reference_forward(x, params)
    assert out.shape == (B, 1)
    err = float(jnp.max(jnp.abs(out - ref)))
    assert err < 1e-3, f"max abs error {err}"

    # Secondary test: nin = 3*10*10 = 300 (NOT a multiple of 128) exercises the
    # zero-padding + multi-step K-streaming/accumulation path.
    in_shape2 = (3, 10, 10)
    nin2 = math.prod(in_shape2)
    x2 = jax.random.normal(k_x2, (B,) + in_shape2, jnp.float32)
    params2 = init_params(k_p2, nin2)
    out2 = jax.block_until_ready(dis_mlp_forward(x2, params2))
    ref2 = reference_forward(x2, params2)
    err2 = float(jnp.max(jnp.abs(out2 - ref2)))
    assert out2.shape == (B, 1) and err2 < 1e-3, f"max abs error {err2}"

    # TODO(synk): spectral_norm (use_spectral_norm=True) is weight preprocessing
    # (power iteration on W), not a forward-pass op; apply it to the weights
    # outside the kernel if needed.
    print("KERNEL_OK")
</pallas_src>

<mosaic_0001>
module attributes {stable_mosaic.version = 11 : i64} {
  func.func @dis_mlp_kernel(%arg0: i32, %arg1: memref<2x1024xbf16, #tpu.memory_space<vmem>>, %arg2: memref<1024x1024xbf16, #tpu.memory_space<vmem>>, %arg3: memref<1x1024xf32, #tpu.memory_space<vmem>>, %arg4: memref<1024x512xbf16, #tpu.memory_space<vmem>>, %arg5: memref<1x512xf32, #tpu.memory_space<vmem>>, %arg6: memref<512x256xbf16, #tpu.memory_space<vmem>>, %arg7: memref<1x256xf32, #tpu.memory_space<vmem>>, %arg8: memref<1x256xf32, #tpu.memory_space<vmem>>, %arg9: memref<1x1xf32, #tpu.memory_space<smem>>, %arg10: memref<2x1xf32, #tpu.memory_space<vmem>>, %arg11: memref<2x1024xf32, #tpu.memory_space<vmem>>) attributes {dimension_semantics = [#tpu.dimension_semantics<arbitrary>], iteration_bounds = array<i64: 1>, scalar_prefetch = 0 : i64, scratch_operands = 1 : i64, tpu.core_type = #tpu.core_type<tc>, window_params = [{transform_indices = @transform_0, window_bounds = array<i64: 2, 1024>}, {transform_indices = @transform_1, window_bounds = array<i64: 1024, 1024>}, {pipeline_mode = #tpu.pipeline_mode<synchronous>, transform_indices = @transform_2, window_bounds = array<i64: 1, 1024>}, {pipeline_mode = #tpu.pipeline_mode<synchronous>, transform_indices = @transform_3, window_bounds = array<i64: 1024, 512>}, {pipeline_mode = #tpu.pipeline_mode<synchronous>, transform_indices = @transform_4, window_bounds = array<i64: 1, 512>}, {pipeline_mode = #tpu.pipeline_mode<synchronous>, transform_indices = @transform_5, window_bounds = array<i64: 512, 256>}, {pipeline_mode = #tpu.pipeline_mode<synchronous>, transform_indices = @transform_6, window_bounds = array<i64: 1, 256>}, {pipeline_mode = #tpu.pipeline_mode<synchronous>, transform_indices = @transform_7, window_bounds = array<i64: 1, 256>}, {transform_indices = @transform_8, window_bounds = array<i64: 1, 1>}, {pipeline_mode = #tpu.pipeline_mode<synchronous>, transform_indices = @transform_9, window_bounds = array<i64: 2, 1>}]} {
    %c0_i32 = arith.constant 0 : i32
    %0 = arith.cmpi eq, %arg0, %c0_i32 : i32
    %1 = arith.extui %0 : i1 to i32
    %c0_i32_0 = arith.constant 0 : i32
    %2 = arith.cmpi ne, %1, %c0_i32_0 : i32
    scf.if %2 {
      %cst_10 = arith.constant 0.000000e+00 : f32
      %12 = vector.broadcast %cst_10 : f32 to vector<2x1024xf32>
      %c0_11 = arith.constant 0 : index
      %c0_12 = arith.constant 0 : index
      %13 = vector.load %arg11[%c0_11, %c0_12] : memref<2x1024xf32, #tpu.memory_space<vmem>>, vector<2x1024xf32>
      tpu.vector_store %arg11[%c0_11, %c0_12], %12 {strides = array<i32>} : memref<2x1024xf32, #tpu.memory_space<vmem>>, vector<2x1024xf32>,
    } else {
    }
    %c0 = arith.constant 0 : index
    %c0_1 = arith.constant 0 : index
    %3 = vector.load %arg11[%c0, %c0_1] : memref<2x1024xf32, #tpu.memory_space<vmem>>, vector<2x1024xf32>
    %c0_2 = arith.constant 0 : index
    %c0_3 = arith.constant 0 : index
    %4 = vector.load %arg1[%c0_2, %c0_3] : memref<2x1024xbf16, #tpu.memory_space<vmem>>, vector<2x1024xbf16>
    %c0_4 = arith.constant 0 : index
    %c0_5 = arith.constant 0 : index
    %5 = vector.load %arg2[%c0_4, %c0_5] : memref<1024x1024xbf16, #tpu.memory_space<vmem>>, vector<1024x1024xbf16>
    %cst = arith.constant dense<0.000000e+00> : vector<2x1024xf32>
    %6 = tpu.matmul %4, %5, %cst {dimension_numbers = #tpu.dot_dimension_numbers<[1], [0], [0], [1], [0, 0, 1, 1], [], []>} : vector<2x1024xbf16>, vector<1024x1024xbf16>, vector<2x1024xf32> -> vector<2x1024xf32>
    %7 = arith.addf %3, %6 : vector<2x1024xf32>
    %c0_6 = arith.constant 0 : index
    %c0_7 = arith.constant 0 : index
    %8 = vector.load %arg11[%c0_6, %c0_7] : memref<2x1024xf32, #tpu.memory_space<vmem>>, vector<2x1024xf32>
    tpu.vector_store %arg11[%c0_6, %c0_7], %7 {strides = array<i32>} : memref<2x1024xf32, #tpu.memory_space<vmem>>, vector<2x1024xf32>,
    %c0_i32_8 = arith.constant 0 : i32
    %9 = arith.cmpi eq, %arg0, %c0_i32_8 : i32
    %10 = arith.extui %9 : i1 to i32
    %c0_i32_9 = arith.constant 0 : i32
    %11 = arith.cmpi ne, %10, %c0_i32_9 : i32
    scf.if %11 {
      %c0_10 = arith.constant 0 : index
      %c0_11 = arith.constant 0 : index
      %12 = vector.load %arg11[%c0_10, %c0_11] : memref<2x1024xf32, #tpu.memory_space<vmem>>, vector<2x1024xf32>
      %c0_12 = arith.constant 0 : index
      %c0_13 = arith.constant 0 : index
      %13 = vector.load %arg3[%c0_12, %c0_13] : memref<1x1024xf32, #tpu.memory_space<vmem>>, vector<1x1024xf32>
      %14 = vector.broadcast %13 : vector<1x1024xf32> to vector<2x1024xf32>
      %15 = arith.addf %12, %14 : vector<2x1024xf32>
      %cst_14 = arith.constant 0.000000e+00 : f32
      %16 = vector.broadcast %cst_14 : f32 to vector<2x1024xf32>
      %17 = arith.maximumf %15, %16 : vector<2x1024xf32>
      %18 = arith.truncf %17 : vector<2x1024xf32> to vector<2x1024xbf16>
      %c0_15 = arith.constant 0 : index
      %c0_16 = arith.constant 0 : index
      %19 = vector.load %arg4[%c0_15, %c0_16] : memref<1024x512xbf16, #tpu.memory_space<vmem>>, vector<1024x512xbf16>
      %cst_17 = arith.constant dense<0.000000e+00> : vector<2x512xf32>
      %20 = tpu.matmul %18, %19, %cst_17 {dimension_numbers = #tpu.dot_dimension_numbers<[1], [0], [0], [1], [0, 0, 1, 1], [], []>} : vector<2x1024xbf16>, vector<1024x512xbf16>, vector<2x512xf32> -> vector<2x512xf32>
      %c0_18 = arith.constant 0 : index
      %c0_19 = arith.constant 0 : index
      %21 = vector.load %arg5[%c0_18, %c0_19] : memref<1x512xf32, #tpu.memory_space<vmem>>, vector<1x512xf32>
      %22 = vector.broadcast %21 : vector<1x512xf32> to vector<2x512xf32>
      %23 = arith.addf %20, %22 : vector<2x512xf32>
      %cst_20 = arith.constant 0.000000e+00 : f32
      %24 = vector.broadcast %cst_20 : f32 to vector<2x512xf32>
      %25 = arith.maximumf %23, %24 : vector<2x512xf32>
      %26 = arith.truncf %25 : vector<2x512xf32> to vector<2x512xbf16>
      %c0_21 = arith.constant 0 : index
      %c0_22 = arith.constant 0 : index
      %27 = vector.load %arg6[%c0_21, %c0_22] : memref<512x256xbf16, #tpu.memory_space<vmem>>, vector<512x256xbf16>
      %cst_23 = arith.constant dense<0.000000e+00> : vector<2x256xf32>
      %28 = tpu.matmul %26, %27, %cst_23 {dimension_numbers = #tpu.dot_dimension_numbers<[1], [0], [0], [1], [0, 0, 1, 1], [], []>} : vector<2x512xbf16>, vector<512x256xbf16>, vector<2x256xf32> -> vector<2x256xf32>
      %c0_24 = arith.constant 0 : index
      %c0_25 = arith.constant 0 : index
      %29 = vector.load %arg7[%c0_24, %c0_25] : memref<1x256xf32, #tpu.memory_space<vmem>>, vector<1x256xf32>
      %30 = vector.broadcast %29 : vector<1x256xf32> to vector<2x256xf32>
      %31 = arith.addf %28, %30 : vector<2x256xf32>
      %cst_26 = arith.constant 0.000000e+00 : f32
      %32 = vector.broadcast %cst_26 : f32 to vector<2x256xf32>
      %33 = arith.maximumf %31, %32 : vector<2x256xf32>
      %c0_27 = arith.constant 0 : index
      %c0_28 = arith.constant 0 : index
      %34 = vector.load %arg8[%c0_27, %c0_28] : memref<1x256xf32, #tpu.memory_space<vmem>>, vector<1x256xf32>
      %35 = vector.broadcast %34 : vector<1x256xf32> to vector<2x256xf32>
      %36 = arith.mulf %33, %35 : vector<2x256xf32>
      %cst_29 = arith.constant dense<0.000000e+00> : vector<2xf32>
      %37 = vector.multi_reduction <add>, %36, %cst_29 [1] : vector<2x256xf32> to vector<2xf32>
      %38 = vector.shape_cast %37 : vector<2xf32> to vector<2x1xf32>
      %c0_30 = arith.constant 0 : index
      %c0_31 = arith.constant 0 : index
      %39 = memref.load %arg9[%c0_30, %c0_31] : memref<1x1xf32, #tpu.memory_space<smem>>
      %40 = vector.broadcast %39 : f32 to vector<2x1xf32>
      %41 = arith.addf %38, %40 : vector<2x1xf32>
      %c0_32 = arith.constant 0 : index
      %c0_33 = arith.constant 0 : index
      %42 = vector.load %arg10[%c0_32, %c0_33] : memref<2x1xf32, #tpu.memory_space<vmem>>, vector<2x1xf32>
      tpu.vector_store %arg10[%c0_32, %c0_33], %41 {strides = array<i32>} : memref<2x1xf32, #tpu.memory_space<vmem>>, vector<2x1xf32>,
    } else {
    }
    return
  }
  func.func @transform_0(%arg0: i32) -> (i32, i32) {
    %c0_i32 = arith.constant 0 : i32
    %c0_i32_0 = arith.constant 0 : i32
    return %c0_i32, %arg0 : i32, i32
  }
  func.func @transform_1(%arg0: i32) -> (i32, i32) {
    %c0_i32 = arith.constant 0 : i32
    %c0_i32_0 = arith.constant 0 : i32
    return %arg0, %c0_i32 : i32, i32
  }
  func.func @transform_2(%arg0: i32) -> (i32, i32) {
    %c0_i32 = arith.constant 0 : i32
    %c0_i32_0 = arith.constant 0 : i32
    %c0_i32_1 = arith.constant 0 : i32
    return %c0_i32, %c0_i32_0 : i32, i32
  }
  func.func @transform_3(%arg0: i32) -> (i32, i32) {
    %c0_i32 = arith.constant 0 : i32
    %c0_i32_0 = arith.constant 0 : i32
    %c0_i32_1 = arith.constant 0 : i32
    return %c0_i32, %c0_i32_0 : i32, i32
  }
  func.func @transform_4(%arg0: i32) -> (i32, i32) {
    %c0_i32 = arith.constant 0 : i32
    %c0_i32_0 = arith.constant 0 : i32
    %c0_i32_1 = arith.constant 0 : i32
    return %c0_i32, %c0_i32_0 : i32, i32
  }
  func.func @transform_5(%arg0: i32) -> (i32, i32) {
    %c0_i32 = arith.constant 0 : i32
    %c0_i32_0 = arith.constant 0 : i32
    %c0_i32_1 = arith.constant 0 : i32
    return %c0_i32, %c0_i32_0 : i32, i32
  }
  func.func @transform_6(%arg0: i32) -> (i32, i32) {
    %c0_i32 = arith.constant 0 : i32
    %c0_i32_0 = arith.constant 0 : i32
    %c0_i32_1 = arith.constant 0 : i32
    return %c0_i32, %c0_i32_0 : i32, i32
  }
  func.func @transform_7(%arg0: i32) -> (i32, i32) {
    %c0_i32 = arith.constant 0 : i32
    %c0_i32_0 = arith.constant 0 : i32
    %c0_i32_1 = arith.constant 0 : i32
    return %c0_i32, %c0_i32_0 : i32, i32
  }
  func.func @transform_8(%arg0: i32) -> (i32, i32) {
    %c0_i32 = arith.constant 0 : i32
    %c0_i32_0 = arith.constant 0 : i32
    %c0_i32_1 = arith.constant 0 : i32
    return %c0_i32, %c0_i32_0 : i32, i32
  }
  func.func @transform_9(%arg0: i32) -> (i32, i32) {
    %c0_i32 = arith.constant 0 : i32
    %c0_i32_0 = arith.constant 0 : i32
    %c0_i32_1 = arith.constant 0 : i32
    return %c0_i32, %c0_i32_0 : i32, i32
  }
}

module attributes {stable_mosaic.version = 11 : i64} {
  func.func @dis_mlp_kernel(%arg0: i32, %arg1: memref<2x1024xbf16, #tpu.memory_space<vmem>>, %arg2: memref<1024x1024xbf16, #tpu.memory_space<vmem>>, %arg3: memref<1x1024xf32, #tpu.memory_space<vmem>>, %arg4: memref<1024x512xbf16, #tpu.memory_space<vmem>>, %arg5: memref<1x512xf32, #tpu.memory_space<vmem>>, %arg6: memref<512x256xbf16, #tpu.memory_space<vmem>>, %arg7: memref<1x256xf32, #tpu.memory_space<vmem>>, %arg8: memref<1x256xf32, #tpu.memory_space<vmem>>, %arg9: memref<1x1xf32, #tpu.memory_space<smem>>, %arg10: memref<2x1xf32, #tpu.memory_space<vmem>>, %arg11: memref<2x1024xf32, #tpu.memory_space<vmem>>) attributes {dimension_semantics = [#tpu.dimension_semantics<arbitrary>], iteration_bounds = array<i64: 1>, scalar_prefetch = 0 : i64, scratch_operands = 1 : i64, tpu.core_type = #tpu.core_type<tc>, window_params = [{transform_indices = @transform_0, window_bounds = array<i64: 2, 1024>}, {transform_indices = @transform_1, window_bounds = array<i64: 1024, 1024>}, {pipeline_mode = #tpu.pipeline_mode<synchronous>, transform_indices = @transform_2, window_bounds = array<i64: 1, 1024>}, {pipeline_mode = #tpu.pipeline_mode<synchronous>, transform_indices = @transform_3, window_bounds = array<i64: 1024, 512>}, {pipeline_mode = #tpu.pipeline_mode<synchronous>, transform_indices = @transform_4, window_bounds = array<i64: 1, 512>}, {pipeline_mode = #tpu.pipeline_mode<synchronous>, transform_indices = @transform_5, window_bounds = array<i64: 512, 256>}, {pipeline_mode = #tpu.pipeline_mode<synchronous>, transform_indices = @transform_6, window_bounds = array<i64: 1, 256>}, {pipeline_mode = #tpu.pipeline_mode<synchronous>, transform_indices = @transform_7, window_bounds = array<i64: 1, 256>}, {transform_indices = @transform_8, window_bounds = array<i64: 1, 1>}, {pipeline_mode = #tpu.pipeline_mode<synchronous>, transform_indices = @transform_9, window_bounds = array<i64: 2, 1>}]} {
    %c0_i32 = arith.constant 0 : i32
    %0 = arith.cmpi eq, %arg0, %c0_i32 : i32
    %1 = arith.extui %0 : i1 to i32
    %c0_i32_0 = arith.constant 0 : i32
    %2 = arith.cmpi ne, %1, %c0_i32_0 : i32
    scf.if %2 {
      %cst_10 = arith.constant 0.000000e+00 : f32
      %12 = vector.broadcast %cst_10 : f32 to vector<2x1024xf32>
      %c0_11 = arith.constant 0 : index
      %c0_12 = arith.constant 0 : index
      %13 = vector.load %arg11[%c0_11, %c0_12] : memref<2x1024xf32, #tpu.memory_space<vmem>>, vector<2x1024xf32>
      tpu.vector_store %arg11[%c0_11, %c0_12], %12 {strides = array<i32>} : memref<2x1024xf32, #tpu.memory_space<vmem>>, vector<2x1024xf32>,
    } else {
    }
    %c0 = arith.constant 0 : index
    %c0_1 = arith.constant 0 : index
    %3 = vector.load %arg11[%c0, %c0_1] : memref<2x1024xf32, #tpu.memory_space<vmem>>, vector<2x1024xf32>
    %c0_2 = arith.constant 0 : index
    %c0_3 = arith.constant 0 : index
    %4 = vector.load %arg1[%c0_2, %c0_3] : memref<2x1024xbf16, #tpu.memory_space<vmem>>, vector<2x1024xbf16>
    %c0_4 = arith.constant 0 : index
    %c0_5 = arith.constant 0 : index
    %5 = vector.load %arg2[%c0_4, %c0_5] : memref<1024x1024xbf16, #tpu.memory_space<vmem>>, vector<1024x1024xbf16>
    %cst = arith.constant dense<0.000000e+00> : vector<2x1024xf32>
    %6 = tpu.matmul %4, %5, %cst {dimension_numbers = #tpu.dot_dimension_numbers<[1], [0], [0], [1], [0, 0, 1, 1], [], []>} : vector<2x1024xbf16>, vector<1024x1024xbf16>, vector<2x1024xf32> -> vector<2x1024xf32>
    %7 = arith.addf %3, %6 : vector<2x1024xf32>
    %c0_6 = arith.constant 0 : index
    %c0_7 = arith.constant 0 : index
    %8 = vector.load %arg11[%c0_6, %c0_7] : memref<2x1024xf32, #tpu.memory_space<vmem>>, vector<2x1024xf32>
    tpu.vector_store %arg11[%c0_6, %c0_7], %7 {strides = array<i32>} : memref<2x1024xf32, #tpu.memory_space<vmem>>, vector<2x1024xf32>,
    %c0_i32_8 = arith.constant 0 : i32
    %9 = arith.cmpi eq, %arg0, %c0_i32_8 : i32
    %10 = arith.extui %9 : i1 to i32
    %c0_i32_9 = arith.constant 0 : i32
    %11 = arith.cmpi ne, %10, %c0_i32_9 : i32
    scf.if %11 {
      %c0_10 = arith.constant 0 : index
      %c0_11 = arith.constant 0 : index
      %12 = vector.load %arg11[%c0_10, %c0_11] : memref<2x1024xf32, #tpu.memory_space<vmem>>, vector<2x1024xf32>
      %c0_12 = arith.constant 0 : index
      %c0_13 = arith.constant 0 : index
      %13 = vector.load %arg3[%c0_12, %c0_13] : memref<1x1024xf32, #tpu.memory_space<vmem>>, vector<1x1024xf32>
      %14 = vector.broadcast %13 : vector<1x1024xf32> to vector<2x1024xf32>
      %15 = arith.addf %12, %14 : vector<2x1024xf32>
      %cst_14 = arith.constant 0.000000e+00 : f32
      %16 = vector.broadcast %cst_14 : f32 to vector<2x1024xf32>
      %17 = arith.maximumf %15, %16 : vector<2x1024xf32>
      %18 = arith.truncf %17 : vector<2x1024xf32> to vector<2x1024xbf16>
      %c0_15 = arith.constant 0 : index
      %c0_16 = arith.constant 0 : index
      %19 = vector.load %arg4[%c0_15, %c0_16] : memref<1024x512xbf16, #tpu.memory_space<vmem>>, vector<1024x512xbf16>
      %cst_17 = arith.constant dense<0.000000e+00> : vector<2x512xf32>
      %20 = tpu.matmul %18, %19, %cst_17 {dimension_numbers = #tpu.dot_dimension_numbers<[1], [0], [0], [1], [0, 0, 1, 1], [], []>} : vector<2x1024xbf16>, vector<1024x512xbf16>, vector<2x512xf32> -> vector<2x512xf32>
      %c0_18 = arith.constant 0 : index
      %c0_19 = arith.constant 0 : index
      %21 = vector.load %arg5[%c0_18, %c0_19] : memref<1x512xf32, #tpu.memory_space<vmem>>, vector<1x512xf32>
      %22 = vector.broadcast %21 : vector<1x512xf32> to vector<2x512xf32>
      %23 = arith.addf %20, %22 : vector<2x512xf32>
      %cst_20 = arith.constant 0.000000e+00 : f32
      %24 = vector.broadcast %cst_20 : f32 to vector<2x512xf32>
      %25 = arith.maximumf %23, %24 : vector<2x512xf32>
      %26 = arith.truncf %25 : vector<2x512xf32> to vector<2x512xbf16>
      %c0_21 = arith.constant 0 : index
      %c0_22 = arith.constant 0 : index
      %27 = vector.load %arg6[%c0_21, %c0_22] : memref<512x256xbf16, #tpu.memory_space<vmem>>, vector<512x256xbf16>
      %cst_23 = arith.constant dense<0.000000e+00> : vector<2x256xf32>
      %28 = tpu.matmul %26, %27, %cst_23 {dimension_numbers = #tpu.dot_dimension_numbers<[1], [0], [0], [1], [0, 0, 1, 1], [], []>} : vector<2x512xbf16>, vector<512x256xbf16>, vector<2x256xf32> -> vector<2x256xf32>
      %c0_24 = arith.constant 0 : index
      %c0_25 = arith.constant 0 : index
      %29 = vector.load %arg7[%c0_24, %c0_25] : memref<1x256xf32, #tpu.memory_space<vmem>>, vector<1x256xf32>
      %30 = vector.broadcast %29 : vector<1x256xf32> to vector<2x256xf32>
      %31 = arith.addf %28, %30 : vector<2x256xf32>
      %cst_26 = arith.constant 0.000000e+00 : f32
      %32 = vector.broadcast %cst_26 : f32 to vector<2x256xf32>
      %33 = arith.maximumf %31, %32 : vector<2x256xf32>
      %c0_27 = arith.constant 0 : index
      %c0_28 = arith.constant 0 : index
      %34 = vector.load %arg8[%c0_27, %c0_28] : memref<1x256xf32, #tpu.memory_space<vmem>>, vector<1x256xf32>
      %35 = vector.broadcast %34 : vector<1x256xf32> to vector<2x256xf32>
      %36 = arith.mulf %33, %35 : vector<2x256xf32>
      %cst_29 = arith.constant dense<0.000000e+00> : vector<2xf32>
      %37 = vector.multi_reduction <add>, %36, %cst_29 [1] : vector<2x256xf32> to vector<2xf32>
      %38 = vector.shape_cast %37 : vector<2xf32> to vector<2x1xf32>
      %c0_30 = arith.constant 0 : index
      %c0_31 = arith.constant 0 : index
      %39 = memref.load %arg9[%c0_30, %c0_31] : memref<1x1xf32, #tpu.memory_space<smem>>
      %40 = vector.broadcast %39 : f32 to vector<2x1xf32>
      %41 = arith.addf %38, %40 : vector<2x1xf32>
      %c0_32 = arith.constant 0 : index
      %c0_33 = arith.constant 0 : index
      %42 = vector.load %arg10[%c0_32, %c0_33] : memref<2x1xf32, #tpu.memory_space<vmem>>, vector<2x1xf32>
      tpu.vector_store %arg10[%c0_32, %c0_33], %41 {strides = array<i32>} : memref<2x1xf32, #tpu.memory_space<vmem>>, vector<2x1xf32>,
    } else {
    }
    return
  }
  func.func @transform_0(%arg0: i32) -> (i32, i32) {
    %c0_i32 = arith.constant 0 : i32
    %c0_i32_0 = arith.constant 0 : i32
    return %c0_i32, %arg0 : i32, i32
  }
  func.func @transform_1(%arg0: i32) -> (i32, i32) {
    %c0_i32 = arith.constant 0 : i32
    %c0_i32_0 = arith.constant 0 : i32
    return %arg0, %c0_i32 : i32, i32
  }
  func.func @transform_2(%arg0: i32) -> (i32, i32) {
    %c0_i32 = arith.constant 0 : i32
    %c0_i32_0 = arith.constant 0 : i32
    %c0_i32_1 = arith.constant 0 : i32
    return %c0_i32, %c0_i32_0 : i32, i32
  }
  func.func @transform_3(%arg0: i32) -> (i32, i32) {
    %c0_i32 = arith.constant 0 : i32
    %c0_i32_0 = arith.constant 0 : i32
    %c0_i32_1 = arith.constant 0 : i32
    return %c0_i32, %c0_i32_0 : i32, i32
  }
  func.func @transform_4(%arg0: i32) -> (i32, i32) {
    %c0_i32 = arith.constant 0 : i32
    %c0_i32_0 = arith.constant 0 : i32
    %c0_i32_1 = arith.constant 0 : i32
    return %c0_i32, %c0_i32_0 : i32, i32
  }
  func.func @transform_5(%arg0: i32) -> (i32, i32) {
    %c0_i32 = arith.constant 0 : i32
    %c0_i32_0 = arith.constant 0 : i32
    %c0_i32_1 = arith.constant 0 : i32
    return %c0_i32, %c0_i32_0 : i32, i32
  }
  func.func @transform_6(%arg0: i32) -> (i32, i32) {
    %c0_i32 = arith.constant 0 : i32
    %c0_i32_0 = arith.constant 0 : i32
    %c0_i32_1 = arith.constant 0 : i32
    return %c0_i32, %c0_i32_0 : i32, i32
  }
  func.func @transform_7(%arg0: i32) -> (i32, i32) {
    %c0_i32 = arith.constant 0 : i32
    %c0_i32_0 = arith.constant 0 : i32
    %c0_i32_1 = arith.constant 0 : i32
    return %c0_i32, %c0_i32_0 : i32, i32
  }
  func.func @transform_8(%arg0: i32) -> (i32, i32) {
    %c0_i32 = arith.constant 0 : i32
    %c0_i32_0 = arith.constant 0 : i32
    %c0_i32_1 = arith.constant 0 : i32
    return %c0_i32, %c0_i32_0 : i32, i32
  }
  func.func @transform_9(%arg0: i32) -> (i32, i32) {
    %c0_i32 = arith.constant 0 : i32
    %c0_i32_0 = arith.constant 0 : i32
    %c0_i32_1 = arith.constant 0 : i32
    return %c0_i32, %c0_i32_0 : i32, i32
  }
}

</mosaic_0001>

<bundles_post_ra>
// kernel: tpu_custom_call.1
= control target key start
LH: loop header
LB: loop body
LE: loop exit
PB: predicated region body
PF: predicated region fallthrough
CT: control target
= control target key end

     0   :  { %15 = vsyncpa [#allocation5], 0  ;;  %s8340_s0 = inlined_call_operand.hbm [shape: bf16[2,1024], index: 0, kind: input, shape index: {}]   ;;  %s8341_s1 = inlined_call_operand.hbm [shape: bf16[1024,1024], index: 1, kind: input, shape index: {}]   ;;  %s8342_s2 = inlined_call_operand.hbm [shape: f32[1,1024], index: 2, kind: input, shape index: {}]   ;;  %s8343_s3 = inlined_call_operand.hbm [shape: bf16[1024,512], index: 3, kind: input, shape index: {}]   ;;  %s8344_s4 = inlined_call_operand.hbm [shape: f32[1,512], index: 4, kind: input, shape index: {}]   ;;  %s8345_s5 = inlined_call_operand.hbm [shape: bf16[512,256], index: 5, kind: input, shape index: {}]   ;;  %s8346_s6 = inlined_call_operand.hbm [shape: f32[1,256], index: 6, kind: input, shape index: {}]   ;;  %s8347_s7 = inlined_call_operand.hbm [shape: f32[1,256], index: 7, kind: input, shape index: {}]   ;;  %s8348_s8 = inlined_call_operand.<no memory space> [shape: f32[1,1], index: 8, kind: input, shape index: {}]   ;;  %s8349_s9 = inlined_call_operand.vmem [shape: f32[2,1], index: 9, kind: output, shape index: {}]  }
   0x1   :  { %16 = vsyncpa [#allocation7], 0 }
   0x2   :  { %17 = vsyncpa [#allocation10], 0 }
   0x3   :  { %18 = vsyncpa [#allocation13], 0 }
   0x4   :  { %19 = vsyncpa [#allocation16], 0  ;;  %s8013_s30 = smov [#allocation6]  }
   0x5   :  { %s35_s10 = sshll.u32 %s8013_s30, 4  ;;  %s36_s10 = int_to_ptr.vmem [resolvable:$true] %s35_s10 }
   0x6   :  { %s7851_s11 = scalar_lea.vmem %s36_s10, 65536  ;;  %p7856_p1 = scmp.lt.s32.totalorder %s36_s10, %s36_s10 }
   0x7   :  { %p7852_p0 = scmp.ne.s32.totalorder %s36_s10, %s7851_s11  ;;  %p7857_p2 = scmp.lt.s32.totalorder %s7851_s11, %s7851_s11 }
   0x9   :  { %p7858_p3 = por %p7857_p2, %p7856_p1 }
   0xb   :  { %p7859_p4 = pnand %p7858_p3, %p7852_p0 }
   0xd   :  { %7862 = shalt.err (!%p7859_p4)
}
   0xe   :  { %s8014_s12 = smov 512   ;;  %s8015_s13 = smov 32  }
   0xf   :  { %41 = dma.hbm_to_vmem [thread:$0]  %s8341_s1, 65536, %s36_s10, [#allocation7], %s8014_s12, %s8014_s12, %s8015_s13  }
  0x10   :  { %s8016_s16 = smov [#allocation9]  }
  0x11   :  { %s57_s17 = sshll.u32 %s8016_s16, 4  ;;  %s58_s17 = int_to_ptr.vmem [resolvable:$true] %s57_s17 }
  0x12   :  { %s7871_s18 = scalar_lea.vmem %s58_s17, 32768  ;;  %p7876_p6 = scmp.lt.s32.totalorder %s58_s17, %s58_s17 }
  0x13   :  { %p7872_p5 = scmp.ne.s32.totalorder %s58_s17, %s7871_s18  ;;  %p7877_p7 = scmp.lt.s32.totalorder %s7871_s18, %s7871_s18 }
  0x15   :  { %p7878_p8 = por %p7877_p7, %p7876_p6 }
  0x17   :  { %p7879_p9 = pnand %p7878_p8, %p7872_p5 }
  0x19   :  { %7882 = shalt.err (!%p7879_p9)
}
  0x1a   :  { %s8017_s19 = smov 256   ;;  %s8018_s20 = smov 16  }
  0x1b   :  { %63 = dma.hbm_to_vmem [thread:$0]  %s8343_s3, 32768, %s58_s17, [#allocation10], %s8017_s19, %s8017_s19, %s8018_s20  }
  0x1c   :  { %s8019_s23 = smov [#allocation12]  }
  0x1d   :  { %s79_s24 = sshll.u32 %s8019_s23, 4  ;;  %s80_s24 = int_to_ptr.vmem [resolvable:$true] %s79_s24 }
  0x1e   :  { %s7891_s1 = scalar_lea.vmem %s80_s24, 8192  ;;  %p7896_p11 = scmp.lt.s32.totalorder %s80_s24, %s80_s24 }
  0x1f   :  { %p7892_p10 = scmp.ne.s32.totalorder %s80_s24, %s7891_s1  ;;  %p7897_p12 = scmp.lt.s32.totalorder %s7891_s1, %s7891_s1 }
  0x21   :  { %p7898_p13 = por %p7897_p12, %p7896_p11 }
  0x23   :  { %p7899_p0 = pnand %p7898_p13, %p7892_p10 }
  0x25   :  { %7902 = shalt.err (!%p7899_p0)
}
  0x26   :  { %s8020_s25 = smov 128   ;;  %s8021_s26 = smov 8  }
  0x27   :  { %85 = dma.hbm_to_vmem [thread:$0]  %s8345_s5, 8192, %s80_s24, [#allocation13], %s8020_s25, %s8020_s25, %s8021_s26  }
  0x28   :  { %s8022_s29 = smov [#allocation4]   ;;  %s8023_s3 = smov [#allocation8]  }
  0x29   :  { %s26_s30 = sshll.u32 %s8022_s29, 4  ;;  %s48_s10 = sshll.u32 %s8023_s3, 4  ;;  %s27_s30 = int_to_ptr.vmem [resolvable:$true] %s26_s30  ;;  %s49_s10 = int_to_ptr.vmem [resolvable:$true] %s48_s10 }
  0x2a   :  { %s7911_s11 = scalar_lea.vmem %s27_s30, 128  ;;  %p7916_p2 = scmp.lt.s32.totalorder %s27_s30, %s27_s30 }
  0x2b   :  { %p7912_p1 = scmp.ne.s32.totalorder %s27_s30, %s7911_s11  ;;  %p7917_p3 = scmp.lt.s32.totalorder %s7911_s11, %s7911_s11 }
  0x2d   :  { %p7918_p4 = por %p7917_p3, %p7916_p2 }
  0x2f   :  { %p7919_p5 = pnand %p7918_p4, %p7912_p1 }
  0x31   :  { %7922 = shalt.err (!%p7919_p5)
}
  0x32   :  { %29 = dma.hbm_to_vmem [thread:$0]  %s8340_s0, 128, %s27_s30, [#allocation5]  }
  0x33   :  { %s7931_s14 = scalar_lea.vmem %s49_s10, 128  ;;  %p7936_p7 = scmp.lt.s32.totalorder %s49_s10, %s49_s10 }
  0x34   :  { %p7932_p6 = scmp.ne.s32.totalorder %s49_s10, %s7931_s14  ;;  %p7937_p8 = scmp.lt.s32.totalorder %s7931_s14, %s7931_s14 }
  0x36   :  { %p7938_p9 = por %p7937_p8, %p7936_p7 }
  0x38   :  { %p7939_p10 = pnand %p7938_p9, %p7932_p6 }
  0x3a   :  { %7942 = shalt.err (!%p7939_p10)
}
  0x3b   :  { %51 = dma.hbm_to_vmem [thread:$0]  %s8342_s2, 128, %s49_s10, [#allocation7]  }
  0x3c   :  { %s8024_s16 = smov [#allocation11]   ;;  %s8025_s18 = smov [#allocation14]  }
  0x3d   :  { %s70_s17 = sshll.u32 %s8024_s16, 4  ;;  %s92_s19 = sshll.u32 %s8025_s18, 4  ;;  %s71_s17 = int_to_ptr.vmem [resolvable:$true] %s70_s17  ;;  %s93_s19 = int_to_ptr.vmem [resolvable:$true] %s92_s19 }
  0x3e   :  { %s7951_s20 = scalar_lea.vmem %s71_s17, 64  ;;  %p7956_p12 = scmp.lt.s32.totalorder %s71_s17, %s71_s17 }
  0x3f   :  { %p7952_p11 = scmp.ne.s32.totalorder %s71_s17, %s7951_s20  ;;  %p7957_p13 = scmp.lt.s32.totalorder %s7951_s20, %s7951_s20 }
  0x41   :  { %p7958_p0 = por %p7957_p13, %p7956_p12 }
  0x43   :  { %p7959_p1 = pnand %p7958_p0, %p7952_p11 }
  0x45   :  { %7962 = shalt.err (!%p7959_p1)
}
  0x46   :  { %73 = dma.hbm_to_vmem [thread:$0]  %s8344_s4, 64, %s71_s17, [#allocation10]  }
  0x47   :  { %s7971_s22 = scalar_lea.vmem %s93_s19, 32  ;;  %p7976_p3 = scmp.lt.s32.totalorder %s93_s19, %s93_s19 }
  0x48   :  { %p7972_p2 = scmp.ne.s32.totalorder %s93_s19, %s7971_s22  ;;  %p7977_p4 = scmp.lt.s32.totalorder %s7971_s22, %s7971_s22 }
  0x4a   :  { %p7978_p5 = por %p7977_p4, %p7976_p3 }
  0x4c   :  { %p7979_p6 = pnand %p7978_p5, %p7972_p2 }
  0x4e   :  { %7982 = shalt.err (!%p7979_p6)
}
  0x4f   :  { %95 = dma.hbm_to_vmem [thread:$0]  %s8346_s6, 32, %s93_s19, [#allocation13]  }
  0x50   :  { %s8026_s24 = smov [#allocation15]  }
  0x51   :  { %s102_s1 = sshll.u32 %s8026_s24, 4  ;;  %s103_s1 = int_to_ptr.vmem [resolvable:$true] %s102_s1 }
  0x52   :  { %s7991_s25 = scalar_lea.vmem %s103_s1, 32  ;;  %p7996_p8 = scmp.lt.s32.totalorder %s103_s1, %s103_s1 }
  0x53   :  { %p7992_p7 = scmp.ne.s32.totalorder %s103_s1, %s7991_s25  ;;  %p7997_p9 = scmp.lt.s32.totalorder %s7991_s25, %s7991_s25 }
  0x55   :  { %p7998_p10 = por %p7997_p9, %p7996_p8 }
  0x57   :  { %p7999_p11 = pnand %p7998_p10, %p7992_p7 }
  0x59   :  { %8002 = shalt.err (!%p7999_p11)
}
  0x5a   :  { %105 = dma.hbm_to_vmem [thread:$0]  %s8347_s7, 32, %s103_s1, [#allocation16]  }
  0x5b   :  { %8003 = dma.done.wait [#allocation5], 128  }
  0x5c   :  { %8004 = vsyncadd [#allocation5], 4294967168 }
  0x5d   :  { %8005 = dma.done.wait [#allocation7], 65664  }
  0x5e   :  { %8006 = vsyncadd [#allocation7], 4294901632 }
  0x5f   :  { %8007 = dma.done.wait [#allocation10], 32832  }
  0x60   :  { %8008 = vsyncadd [#allocation10], 4294934464 }
  0x61   :  { %8009 = dma.done.wait [#allocation13], 8224  }
  0x62   :  { %8010 = vsyncadd [#allocation13], 4294959072 }
  0x63   :  { %8011 = dma.done.wait [#allocation16], 32  }
  0x64   :  { %8012 = vsyncadd [#allocation16], 4294967264  ;;  %v197_v0 = vld [vmem:[#allocation6 + $0x1c0] sm:$0xff]  ;;  %v8027_v32 = vmov 1966171168   ;;  %v658_v34 = vlaneseq  ;;  %v140_v59 = vld [vmem:[#allocation4] sm:$0xff] }
  0x65   :  { %v201_v1 = vld [vmem:[#allocation6 + $0x1e0] sm:$0xff]  ;;  %v656_v33 = vunpack.c.l.s4 %v8027_v32  ;;  %vm6494_vm0 = vcmask 1041408   ;;  %vm6503_vm1 = vcmask 1024  }
  0x66   :  { %v325_v2 = vld [vmem:[#allocation6 + $0x5c0] sm:$0xff]  ;;  %v6571_v3 = vcombine.high %v197_v0, %v201_v1  ;;  %v6570_v5 = vcombine.low %v197_v0, %v201_v1  ;;  %v8103_v44 = vshrl.u32 %v658_v34, 7 }
  0x67   :  { %v329_v4 = vld [vmem:[#allocation6 + $0x5e0] sm:$0xff]  ;;  %v657_v43 = vunpack.c.0.s8 %v656_v33 }
  0x68   :  { %v189_v6 = vld [vmem:[#allocation6 + $0x180] sm:$0xff]  ;;  %v6699_v8 = vcombine.high %v325_v2, %v329_v4  ;;  %v6698_v9 = vcombine.low %v325_v2, %v329_v4  ;;  %3271 = vmatprep.subr.bf16.mxu0 %v6571_v3 }
  0x69   :  { %v193_v7 = vld [vmem:[#allocation6 + $0x1a0] sm:$0xff]  ;;  %3272 = vmatpush1.bf16.msra.mxu0 %v6570_v5  ;;  %v8106_v53 = vsub.s32 %v657_v43, %v8103_v44 }
  0x6a   :  { %v6563_v10 = vcombine.high %v189_v6, %v193_v7  ;;  %v317_v11 = vld [vmem:[#allocation6 + $0x580] sm:$0xff]  ;;  %3312 = vmatprep.subr.bf16.mxu1 %v6699_v8  ;;  %v6562_v18 = vcombine.low %v189_v6, %v193_v7 }
  0x6b   :  { %v321_v12 = vld [vmem:[#allocation6 + $0x5a0] sm:$0xff]  ;;  %3313 = vmatpush1.bf16.msra.mxu1 %v6698_v9  ;;  %v8109_v63 = vrot.slane %v140_v59, %v8106_v53 }
  0x6c   :  { %v181_v13 = vld [vmem:[#allocation6 + $0x140] sm:$0xff]  ;;  %v6691_v14 = vcombine.high %v317_v11, %v321_v12  ;;  %3273 = vmatprep.subr.bf16.mxu0 %v6563_v10  ;;  %v6690_v19 = vcombine.low %v317_v11, %v321_v12 }
  0x6d   :  { %v185_v15 = vld [vmem:[#allocation6 + $0x160] sm:$0xff]  ;;  %3274 = vmatpush1.bf16.msra.mxu0 %v6562_v18  ;;  %v669_v3 = vcombine.high %v8109_v63, %v8109_v63 }
  0x6e   :  { %v309_v16 = vld [vmem:[#allocation6 + $0x540] sm:$0xff]  ;;  %v6555_v20 = vcombine.high %v181_v13, %v185_v15  ;;  %3314 = vmatprep.subr.bf16.mxu1 %v6691_v14  ;;  %v6554_v26 = vcombine.low %v181_v13, %v185_v15 }
  0x6f   :  { %v313_v17 = vld [vmem:[#allocation6 + $0x560] sm:$0xff]  ;;  %3315 = vmatpush1.bf16.msra.mxu1 %v6690_v19  ;;  %v8114_v9 = vrot.slane %v669_v3, %v8106_v53  ;;  %v654_v19 = vcombine.high %v140_v59, %v140_v59 }
  0x70   :  { %v6683_v21 = vcombine.high %v309_v16, %v313_v17  ;;  %v173_v22 = vld [vmem:[#allocation6 + $0x100] sm:$0xff]  ;;  %3275 = vmatprep.subr.bf16.mxu0 %v6555_v20  ;;  %v6682_v27 = vcombine.low %v309_v16, %v313_v17 }
  0x71   :  { %v177_v23 = vld [vmem:[#allocation6 + $0x120] sm:$0xff]  ;;  %3276 = vmatpush1.bf16.msra.mxu0 %v6554_v26  ;;  %3303 = vmatprep.mubr.bf16.mxu0 %v8114_v9  ;;  %v8119_v13 = vcombine.high %v8114_v9, %v8114_v9 }
  0x72   :  { %v301_v24 = vld [vmem:[#allocation6 + $0x500] sm:$0xff]  ;;  %v6547_v28 = vcombine.high %v173_v22, %v177_v23  ;;  %3316 = vmatprep.subr.bf16.mxu1 %v6683_v21  ;;  %v6546_v37 = vcombine.low %v173_v22, %v177_v23 }
  0x73   :  { %v305_v25 = vld [vmem:[#allocation6 + $0x520] sm:$0xff]  ;;  %3317 = vmatpush1.bf16.msra.mxu1 %v6682_v27  ;;  %3344 = vmatprep.mubr.bf16.mxu1 %v8119_v13 }
  0x74   :  { %v6675_v29 = vcombine.high %v301_v24, %v305_v25  ;;  %v165_v30 = vld [vmem:[#allocation6 + $0xc0] sm:$0xff]  ;;  %3277 = vmatprep.subr.bf16.mxu0 %v6547_v28  ;;  %v6674_v38 = vcombine.low %v301_v24, %v305_v25  ;;  %v8123_v28 = vrot.slane %v654_v19, %v8106_v53 }
  0x75   :  { %v169_v31 = vld [vmem:[#allocation6 + $0xe0] sm:$0xff]  ;;  %3278 = vmatpush1.bf16.msra.mxu0 %v6546_v37 }
  0x76   :  { %v293_v35 = vld [vmem:[#allocation6 + $0x4c0] sm:$0xff]  ;;  %v6539_v39 = vcombine.high %v165_v30, %v169_v31  ;;  %3318 = vmatprep.subr.bf16.mxu1 %v6675_v29  ;;  %v6538_v47 = vcombine.low %v165_v30, %v169_v31  ;;  %v8127_v32 = vrot.slane %v8123_v28, %v8106_v53 }
  0x77   :  { %v297_v36 = vld [vmem:[#allocation6 + $0x4e0] sm:$0xff]  ;;  %3319 = vmatpush1.bf16.msra.mxu1 %v6674_v38 }
  0x78   :  { %v6667_v40 = vcombine.high %v293_v35, %v297_v36  ;;  %v157_v41 = vld [vmem:[#allocation6 + $0x80] sm:$0xff]  ;;  %3279 = vmatprep.subr.bf16.mxu0 %v6539_v39  ;;  %v6666_v48 = vcombine.low %v293_v35, %v297_v36 }
  0x79   :  { %v161_v42 = vld [vmem:[#allocation6 + $0xa0] sm:$0xff]  ;;  %3280 = vmatpush1.bf16.msra.mxu0 %v6538_v47 }
  0x7a   :  { %v285_v45 = vld [vmem:[#allocation6 + $0x480] sm:$0xff]  ;;  %v6531_v49 = vcombine.high %v157_v41, %v161_v42  ;;  %3320 = vmatprep.subr.bf16.mxu1 %v6667_v40  ;;  %v6530_v56 = vcombine.low %v157_v41, %v161_v42 }
  0x7b   :  { %v289_v46 = vld [vmem:[#allocation6 + $0x4a0] sm:$0xff]  ;;  %3321 = vmatpush1.bf16.msra.mxu1 %v6666_v48 }
  0x7c   :  { %v6659_v50 = vcombine.high %v285_v45, %v289_v46  ;;  %v149_v51 = vld [vmem:[#allocation6 + $0x40] sm:$0xff]  ;;  %3281 = vmatprep.subr.bf16.mxu0 %v6531_v49  ;;  %v6658_v57 = vcombine.low %v285_v45, %v289_v46 }
  0x7d   :  { %v153_v52 = vld [vmem:[#allocation6 + $0x60] sm:$0xff]  ;;  %3282 = vmatpush1.bf16.msra.mxu0 %v6530_v56 }
  0x7e   :  { %v277_v54 = vld [vmem:[#allocation6 + $0x440] sm:$0xff]  ;;  %v6523_v58 = vcombine.high %v149_v51, %v153_v52  ;;  %3322 = vmatprep.subr.bf16.mxu1 %v6659_v50  ;;  %v6522_v2 = vcombine.low %v149_v51, %v153_v52 }
  0x7f   :  { %v281_v55 = vld [vmem:[#allocation6 + $0x460] sm:$0xff]  ;;  %3323 = vmatpush1.bf16.msra.mxu1 %v6658_v57 }
  0x80   :  { %v6651_v60 = vcombine.high %v277_v54, %v281_v55  ;;  %v141_v61 = vld [vmem:[#allocation6] sm:$0xff]  ;;  %3283 = vmatprep.subr.bf16.mxu0 %v6523_v58  ;;  %v6650_v4 = vcombine.low %v277_v54, %v281_v55 }
  0x81   :  { %v145_v62 = vld [vmem:[#allocation6 + $0x20] sm:$0xff]  ;;  %3284 = vmatpush1.bf16.msra.mxu0 %v6522_v2 }
  0x82   :  { %v269_v0 = vld [vmem:[#allocation6 + $0x400] sm:$0xff]  ;;  %v6515_v5 = vcombine.high %v141_v61, %v145_v62  ;;  %3324 = vmatprep.subr.bf16.mxu1 %v6651_v60  ;;  %v6514_v12 = vcombine.low %v141_v61, %v145_v62 }
  0x83   :  { %v273_v1 = vld [vmem:[#allocation6 + $0x420] sm:$0xff]  ;;  %3325 = vmatpush1.bf16.msra.mxu1 %v6650_v4 }
  0x84   :  { %v6643_v6 = vcombine.high %v269_v0, %v273_v1  ;;  %v261_v7 = vld [vmem:[#allocation6 + $0x3c0] sm:$0xff]  ;;  %3285 = vmatprep.subr.bf16.mxu0 %v6515_v5  ;;  %v6642_v14 = vcombine.low %v269_v0, %v273_v1 }
  0x85   :  { %v265_v8 = vld [vmem:[#allocation6 + $0x3e0] sm:$0xff]  ;;  %3286 = vmatpush1.bf16.msra.mxu0 %v6514_v12 }
  0x86   :  { %v389_v10 = vld [vmem:[#allocation6 + $0x7c0] sm:$0xff]  ;;  %v6635_v15 = vcombine.high %v261_v7, %v265_v8  ;;  %3326 = vmatprep.subr.bf16.mxu1 %v6643_v6  ;;  %v6634_v22 = vcombine.low %v261_v7, %v265_v8 }
  0x87   :  { %v393_v11 = vld [vmem:[#allocation6 + $0x7e0] sm:$0xff]  ;;  %3327 = vmatpush1.bf16.msra.mxu1 %v6642_v14 }
  0x88   :  { %v6763_v16 = vcombine.high %v389_v10, %v393_v11  ;;  %v253_v17 = vld [vmem:[#allocation6 + $0x380] sm:$0xff]  ;;  %3287 = vmatprep.subr.bf16.mxu0 %v6635_v15  ;;  %v6762_v23 = vcombine.low %v389_v10, %v393_v11 }
  0x89   :  { %v257_v18 = vld [vmem:[#allocation6 + $0x3a0] sm:$0xff]  ;;  %3288 = vmatpush2.bf16.msra.mxu0 %v6634_v22 }
  0x8a   :  { %v381_v20 = vld [vmem:[#allocation6 + $0x780] sm:$0xff]  ;;  %v6627_v24 = vcombine.high %v253_v17, %v257_v18  ;;  %3328 = vmatprep.subr.bf16.mxu1 %v6763_v16  ;;  %v6626_v31 = vcombine.low %v253_v17, %v257_v18 }
  0x8b   :  { %v385_v21 = vld [vmem:[#allocation6 + $0x7a0] sm:$0xff]  ;;  %3329 = vmatpush2.bf16.msra.mxu1 %v6762_v23  ;;  %v8133_v23 = vrot.slane %v8109_v63, %v8106_v53 }
  0x8c   :  { %v6755_v25 = vcombine.high %v381_v20, %v385_v21  ;;  %v245_v26 = vld [vmem:[#allocation6 + $0x340] sm:$0xff]  ;;  %3289 = vmatprep.subr.bf16.mxu0 %v6627_v24  ;;  %v6754_v33 = vcombine.low %v381_v20, %v385_v21  ;;  %v670_v21 = vcombine.high %v8123_v28, %v8123_v28 }
  0x8d   :  { %v249_v27 = vld [vmem:[#allocation6 + $0x360] sm:$0xff]  ;;  %3290 = vmatpush2.bf16.msra.mxu0 %v6626_v31  ;;  %v8140_v28 = vcombine.high %v8133_v23, %v8133_v23 }
  0x8e   :  { %v373_v29 = vld [vmem:[#allocation6 + $0x740] sm:$0xff]  ;;  %v6619_v34 = vcombine.high %v245_v26, %v249_v27  ;;  %3330 = vmatprep.subr.bf16.mxu1 %v6755_v25  ;;  %v6618_v40 = vcombine.low %v245_v26, %v249_v27 }
  0x8f   :  { %v377_v30 = vld [vmem:[#allocation6 + $0x760] sm:$0xff]  ;;  %3331 = vmatpush2.bf16.msra.mxu1 %v6754_v33  ;;  %v8136_v33 = vrot.slane %v670_v21, %v8106_v53 }
  0x90   :  { %v6747_v35 = vcombine.high %v373_v29, %v377_v30  ;;  %v237_v36 = vld [vmem:[#allocation6 + $0x300] sm:$0xff]  ;;  %3291 = vmatprep.subr.bf16.mxu0 %v6619_v34  ;;  %v6746_v41 = vcombine.low %v373_v29, %v377_v30 }
  0x91   :  { %v241_v37 = vld [vmem:[#allocation6 + $0x320] sm:$0xff]  ;;  %3292 = vmatpush2.bf16.msra.mxu0 %v6618_v40  ;;  %v8145_v53 = vcombine.high %v8136_v33, %v8136_v33 }
  0x92   :  { %v365_v38 = vld [vmem:[#allocation6 + $0x700] sm:$0xff]  ;;  %v6611_v42 = vcombine.high %v237_v36, %v241_v37  ;;  %3332 = vmatprep.subr.bf16.mxu1 %v6747_v35  ;;  %v6610_v49 = vcombine.low %v237_v36, %v241_v37 }
  0x93   :  { %v369_v39 = vld [vmem:[#allocation6 + $0x720] sm:$0xff]  ;;  %3333 = vmatpush2.bf16.msra.mxu1 %v6746_v41 }
  0x94   :  { %v6739_v43 = vcombine.high %v365_v38, %v369_v39  ;;  %v229_v45 = vld [vmem:[#allocation6 + $0x2c0] sm:$0xff]  ;;  %3293 = vmatprep.subr.bf16.mxu0 %v6611_v42  ;;  %v6738_v50 = vcombine.low %v365_v38, %v369_v39 }
  0x95   :  { %v233_v46 = vld [vmem:[#allocation6 + $0x2e0] sm:$0xff]  ;;  %3294 = vmatpush2.bf16.msra.mxu0 %v6610_v49 }
  0x96   :  { %v357_v47 = vld [vmem:[#allocation6 + $0x6c0] sm:$0xff]  ;;  %v6603_v51 = vcombine.high %v229_v45, %v233_v46  ;;  %3334 = vmatprep.subr.bf16.mxu1 %v6739_v43  ;;  %v6602_v58 = vcombine.low %v229_v45, %v233_v46 }
  0x97   :  { %v361_v48 = vld [vmem:[#allocation6 + $0x6e0] sm:$0xff]  ;;  %3335 = vmatpush2.bf16.msra.mxu1 %v6738_v50 }
  0x98   :  { %v6731_v52 = vcombine.high %v357_v47, %v361_v48  ;;  %v221_v54 = vld [vmem:[#allocation6 + $0x280] sm:$0xff]  ;;  %3295 = vmatprep.subr.bf16.mxu0 %v6603_v51  ;;  %v6730_v59 = vcombine.low %v357_v47, %v361_v48 }
  0x99   :  { %v225_v55 = vld [vmem:[#allocation6 + $0x2a0] sm:$0xff]  ;;  %3296 = vmatpush2.bf16.msra.mxu0 %v6602_v58 }
  0x9a   :  { %v349_v56 = vld [vmem:[#allocation6 + $0x680] sm:$0xff]  ;;  %v6595_v60 = vcombine.high %v221_v54, %v225_v55  ;;  %3336 = vmatprep.subr.bf16.mxu1 %v6731_v52  ;;  %v6594_v3 = vcombine.low %v221_v54, %v225_v55 }
  0x9b   :  { %v353_v57 = vld [vmem:[#allocation6 + $0x6a0] sm:$0xff]  ;;  %3337 = vmatpush2.bf16.msra.mxu1 %v6730_v59 }
  0x9c   :  { %v6723_v61 = vcombine.high %v349_v56, %v353_v57  ;;  %v213_v62 = vld [vmem:[#allocation6 + $0x240] sm:$0xff]  ;;  %3297 = vmatprep.subr.bf16.mxu0 %v6595_v60  ;;  %v6722_v4 = vcombine.low %v349_v56, %v353_v57 }
  0x9d   :  { %v217_v0 = vld [vmem:[#allocation6 + $0x260] sm:$0xff]  ;;  %3298 = vmatpush2.bf16.msra.mxu0 %v6594_v3 }
  0x9e   :  { %v341_v1 = vld [vmem:[#allocation6 + $0x640] sm:$0xff]  ;;  %v6587_v5 = vcombine.high %v213_v62, %v217_v0  ;;  %3338 = vmatprep.subr.bf16.mxu1 %v6723_v61  ;;  %v6586_v12 = vcombine.low %v213_v62, %v217_v0 }
  0x9f   :  { %v345_v2 = vld [vmem:[#allocation6 + $0x660] sm:$0xff]  ;;  %3339 = vmatpush2.bf16.msra.mxu1 %v6722_v4 }
  0xa0   :  { %v6715_v6 = vcombine.high %v341_v1, %v345_v2  ;;  %v205_v7 = vld [vmem:[#allocation6 + $0x200] sm:$0xff]  ;;  %3299 = vmatprep.subr.bf16.mxu0 %v6587_v5  ;;  %v6714_v14 = vcombine.low %v341_v1, %v345_v2 }
  0xa1   :  { %v209_v8 = vld [vmem:[#allocation6 + $0x220] sm:$0xff]  ;;  %3300 = vmatpush2.bf16.msra.mxu0 %v6586_v12 }
  0xa2   :  { %v333_v10 = vld [vmem:[#allocation6 + $0x600] sm:$0xff]  ;;  %v6579_v15 = vcombine.high %v205_v7, %v209_v8  ;;  %3340 = vmatprep.subr.bf16.mxu1 %v6715_v6  ;;  %v6578_v22 = vcombine.low %v205_v7, %v209_v8 }
  0xa3   :  { %v337_v11 = vld [vmem:[#allocation6 + $0x620] sm:$0xff]  ;;  %3341 = vmatpush2.bf16.msra.mxu1 %v6714_v14 }
  0xa4   :  { %v6707_v16 = vcombine.high %v333_v10, %v337_v11  ;;  %v453_v17 = vld [vmem:[#allocation6 + $0x9c0] sm:$0xff]  ;;  %3301 = vmatprep.subr.bf16.mxu0 %v6579_v15  ;;  %v6706_v24 = vcombine.low %v333_v10, %v337_v11 }
  0xa5   :  { %v457_v18 = vld [vmem:[#allocation6 + $0x9e0] sm:$0xff]  ;;  %3302 = vmatpush2.bf16.msra.mxu0 %v6578_v22 }
  0xa6   :  { %v581_v19 = vld [vmem:[#allocation6 + $0xdc0] sm:$0xff]  ;;  %v6827_v25 = vcombine.high %v453_v17, %v457_v18  ;;  %3342 = vmatprep.subr.bf16.mxu1 %v6707_v16  ;;  %v6826_v63 = vcombine.low %v453_v17, %v457_v18 }
  0xa7   :  { %v585_v20 = vld [vmem:[#allocation6 + $0xde0] sm:$0xff]  ;;  %3343 = vmatpush2.bf16.msra.mxu1 %v6706_v24 }
  0xa8   :  { %v6955_v26 = vcombine.high %v581_v19, %v585_v20  ;;  %v445_v27 = vld [vmem:[#allocation6 + $0x980] sm:$0xff]  ;;  %3353 = vmatprep.subr.bf16.mxu0 %v6827_v25  ;;  %v6954_v34 = vcombine.low %v581_v19, %v585_v20  ;;  %3304 = vmatmul.mubr.bf16.vlgmr.msra.gmra.mxu0 %v8133_v23 }
  0xa9   :  { %v449_v29 = vld [vmem:[#allocation6 + $0x9a0] sm:$0xff]  ;;  %3354 = vmatpush1.bf16.msra.mxu0 %v6826_v63  ;;  %3385 = vmatprep.mubr.bf16.mxu0 %v8136_v33 }
  0xaa   :  { %v573_v30 = vld [vmem:[#allocation6 + $0xd80] sm:$0xff]  ;;  %v6819_v35 = vcombine.high %v445_v27, %v449_v29  ;;  %3394 = vmatprep.subr.bf16.mxu1 %v6955_v26  ;;  %3345 = vmatmul.mubr.bf16.vlgmr.msra.gmra.mxu1 %v8140_v28  ;;  %v6818_v41 = vcombine.low %v445_v27, %v449_v29 }
  0xab   :  { %v577_v31 = vld [vmem:[#allocation6 + $0xda0] sm:$0xff]  ;;  %3395 = vmatpush1.bf16.msra.mxu1 %v6954_v34  ;;  %3426 = vmatprep.mubr.bf16.mxu1 %v8145_v53 }
  0xac   :  { %v437_v36 = vld [vmem:[#allocation6 + $0x940] sm:$0xff]  ;;  %v6947_v39 = vcombine.high %v573_v30, %v577_v31  ;;  %3355 = vmatprep.subr.bf16.mxu0 %v6819_v35  ;;  %v6946_v42 = vcombine.low %v573_v30, %v577_v31 }
  0xad   :  { %v441_v37 = vld [vmem:[#allocation6 + $0x960] sm:$0xff]  ;;  %3356 = vmatpush1.bf16.msra.mxu0 %v6818_v41 }
  0xae   :  { %v565_v38 = vld [vmem:[#allocation6 + $0xd40] sm:$0xff]  ;;  %v6811_v43 = vcombine.high %v437_v36, %v441_v37  ;;  %3396 = vmatprep.subr.bf16.mxu1 %v6947_v39  ;;  %v6810_v50 = vcombine.low %v437_v36, %v441_v37 }
  0xaf   :  { %v569_v40 = vld [vmem:[#allocation6 + $0xd60] sm:$0xff]  ;;  %3397 = vmatpush1.bf16.msra.mxu1 %v6946_v42 }
  0xb0   :  { %v429_v45 = vld [vmem:[#allocation6 + $0x900] sm:$0xff]  ;;  %v6939_v48 = vcombine.high %v565_v38, %v569_v40  ;;  %3357 = vmatprep.subr.bf16.mxu0 %v6811_v43  ;;  %v6938_v51 = vcombine.low %v565_v38, %v569_v40 }
  0xb1   :  { %v433_v46 = vld [vmem:[#allocation6 + $0x920] sm:$0xff]  ;;  %3358 = vmatpush1.bf16.msra.mxu0 %v6810_v50 }
  0xb2   :  { %v557_v47 = vld [vmem:[#allocation6 + $0xd00] sm:$0xff]  ;;  %v6803_v52 = vcombine.high %v429_v45, %v433_v46  ;;  %3398 = vmatprep.subr.bf16.mxu1 %v6939_v48  ;;  %v6802_v59 = vcombine.low %v429_v45, %v433_v46 }
  0xb3   :  { %v561_v49 = vld [vmem:[#allocation6 + $0xd20] sm:$0xff]  ;;  %3399 = vmatpush1.bf16.msra.mxu1 %v6938_v51 }
  0xb4   :  { %v421_v54 = vld [vmem:[#allocation6 + $0x8c0] sm:$0xff]  ;;  %v6931_v57 = vcombine.high %v557_v47, %v561_v49  ;;  %3359 = vmatprep.subr.bf16.mxu0 %v6803_v52  ;;  %v6930_v60 = vcombine.low %v557_v47, %v561_v49 }
  0xb5   :  { %v425_v55 = vld [vmem:[#allocation6 + $0x8e0] sm:$0xff]  ;;  %3360 = vmatpush1.bf16.msra.mxu0 %v6802_v59 }
  0xb6   :  { %v549_v56 = vld [vmem:[#allocation6 + $0xcc0] sm:$0xff]  ;;  %v6795_v61 = vcombine.high %v421_v54, %v425_v55  ;;  %3400 = vmatprep.subr.bf16.mxu1 %v6931_v57  ;;  %v6794_v4 = vcombine.low %v421_v54, %v425_v55 }
  0xb7   :  { %v553_v58 = vld [vmem:[#allocation6 + $0xce0] sm:$0xff]  ;;  %3401 = vmatpush1.bf16.msra.mxu1 %v6930_v60 }
  0xb8   :  { %v413_v62 = vld [vmem:[#allocation6 + $0x880] sm:$0xff]  ;;  %v6923_v2 = vcombine.high %v549_v56, %v553_v58  ;;  %3361 = vmatprep.subr.bf16.mxu0 %v6795_v61  ;;  %v6922_v5 = vcombine.low %v549_v56, %v553_v58 }
  0xb9   :  { %v417_v0 = vld [vmem:[#allocation6 + $0x8a0] sm:$0xff]  ;;  %3362 = vmatpush1.bf16.msra.mxu0 %v6794_v4 }
  0xba   :  { %v541_v1 = vld [vmem:[#allocation6 + $0xc80] sm:$0xff]  ;;  %v6787_v6 = vcombine.high %v413_v62, %v417_v0  ;;  %3402 = vmatprep.subr.bf16.mxu1 %v6923_v2  ;;  %v6786_v14 = vcombine.low %v413_v62, %v417_v0 }
  0xbb   :  { %v545_v3 = vld [vmem:[#allocation6 + $0xca0] sm:$0xff]  ;;  %3403 = vmatpush1.bf16.msra.mxu1 %v6922_v5 }
  0xbc   :  { %v405_v7 = vld [vmem:[#allocation6 + $0x840] sm:$0xff]  ;;  %v6915_v11 = vcombine.high %v541_v1, %v545_v3  ;;  %3363 = vmatprep.subr.bf16.mxu0 %v6787_v6  ;;  %v6914_v15 = vcombine.low %v541_v1, %v545_v3 }
  0xbd   :  { %v409_v8 = vld [vmem:[#allocation6 + $0x860] sm:$0xff]  ;;  %3364 = vmatpush1.bf16.msra.mxu0 %v6786_v14 }
  0xbe   :  { %v533_v10 = vld [vmem:[#allocation6 + $0xc40] sm:$0xff]  ;;  %v6779_v16 = vcombine.high %v405_v7, %v409_v8  ;;  %3404 = vmatprep.subr.bf16.mxu1 %v6915_v11  ;;  %v6778_v22 = vcombine.low %v405_v7, %v409_v8 }
  0xbf   :  { %v537_v12 = vld [vmem:[#allocation6 + $0xc60] sm:$0xff]  ;;  %3405 = vmatpush1.bf16.msra.mxu1 %v6914_v15 }
  0xc0   :  { %v397_v17 = vld [vmem:[#allocation6 + $0x800] sm:$0xff]  ;;  %v6907_v20 = vcombine.high %v533_v10, %v537_v12  ;;  %3365 = vmatprep.subr.bf16.mxu0 %v6779_v16  ;;  %v6906_v24 = vcombine.low %v533_v10, %v537_v12 }
  0xc1   :  { %v401_v18 = vld [vmem:[#allocation6 + $0x820] sm:$0xff]  ;;  %3366 = vmatpush1.bf16.msra.mxu0 %v6778_v22 }
  0xc2   :  { %v525_v19 = vld [vmem:[#allocation6 + $0xc00] sm:$0xff]  ;;  %v6771_v25 = vcombine.high %v397_v17, %v401_v18  ;;  %3406 = vmatprep.subr.bf16.mxu1 %v6907_v20  ;;  %v6770_v63 = vcombine.low %v397_v17, %v401_v18 }
  0xc3   :  { %v529_v21 = vld [vmem:[#allocation6 + $0xc20] sm:$0xff]  ;;  %3407 = vmatpush1.bf16.msra.mxu1 %v6906_v24 }
  0xc4   :  { %v517_v26 = vld [vmem:[#allocation6 + $0xbc0] sm:$0xff]  ;;  %v6899_v30 = vcombine.high %v525_v19, %v529_v21  ;;  %3367 = vmatprep.subr.bf16.mxu0 %v6771_v25  ;;  %v6898_v34 = vcombine.low %v525_v19, %v529_v21 }
  0xc5   :  { %v521_v27 = vld [vmem:[#allocation6 + $0xbe0] sm:$0xff]  ;;  %3368 = vmatpush1.bf16.msra.mxu0 %v6770_v63 }
  0xc6   :  { %v645_v29 = vld [vmem:[#allocation6 + $0xfc0] sm:$0xff]  ;;  %v6891_v35 = vcombine.high %v517_v26, %v521_v27  ;;  %3408 = vmatprep.subr.bf16.mxu1 %v6899_v30  ;;  %v6890_v41 = vcombine.low %v517_v26, %v521_v27 }
  0xc7   :  { %v649_v31 = vld [vmem:[#allocation6 + $0xfe0] sm:$0xff]  ;;  %3409 = vmatpush1.bf16.msra.mxu1 %v6898_v34 }
  0xc8   :  { %v509_v36 = vld [vmem:[#allocation6 + $0xb80] sm:$0xff]  ;;  %v7019_v39 = vcombine.high %v645_v29, %v649_v31  ;;  %3369 = vmatprep.subr.bf16.mxu0 %v6891_v35  ;;  %v7018_v42 = vcombine.low %v645_v29, %v649_v31 }
  0xc9   :  { %v513_v37 = vld [vmem:[#allocation6 + $0xba0] sm:$0xff]  ;;  %3370 = vmatpush2.bf16.msra.mxu0 %v6890_v41 }
  0xca   :  { %v637_v38 = vld [vmem:[#allocation6 + $0xf80] sm:$0xff]  ;;  %v6883_v43 = vcombine.high %v509_v36, %v513_v37  ;;  %3410 = vmatprep.subr.bf16.mxu1 %v7019_v39  ;;  %v6882_v50 = vcombine.low %v509_v36, %v513_v37  ;;  %v198_v36 = vld [vmem:[#allocation6 + $0x1c8] sm:$0xff] }
  0xcb   :  { %v641_v40 = vld [vmem:[#allocation6 + $0xfa0] sm:$0xff]  ;;  %3411 = vmatpush2.bf16.msra.mxu1 %v7018_v42  ;;  %v202_v37 = vld [vmem:[#allocation6 + $0x1e8] sm:$0xff] }
  0xcc   :  { %v501_v45 = vld [vmem:[#allocation6 + $0xb40] sm:$0xff]  ;;  %v7011_v48 = vcombine.high %v637_v38, %v641_v40  ;;  %3371 = vmatprep.subr.bf16.mxu0 %v6883_v43  ;;  %v7010_v51 = vcombine.low %v637_v38, %v641_v40  ;;  %v326_v38 = vld [vmem:[#allocation6 + $0x5c8] sm:$0xff]  ;;  %v6573_v43 = vcombine.high %v198_v36, %v202_v37 }
  0xcd   :  { %v505_v46 = vld [vmem:[#allocation6 + $0xb60] sm:$0xff]  ;;  %3372 = vmatpush2.bf16.msra.mxu0 %v6882_v50  ;;  %v330_v40 = vld [vmem:[#allocation6 + $0x5e8] sm:$0xff]  ;;  %v8152_v50 = vcombine.high %v8127_v32, %v8127_v32 }
  0xce   :  { %v629_v47 = vld [vmem:[#allocation6 + $0xf40] sm:$0xff]  ;;  %v6875_v52 = vcombine.high %v501_v45, %v505_v46  ;;  %3412 = vmatprep.subr.bf16.mxu1 %v7011_v48  ;;  %v6874_v59 = vcombine.low %v501_v45, %v505_v46  ;;  %v190_v45 = vld [vmem:[#allocation6 + $0x188] sm:$0xff]  ;;  %v6701_v48 = vcombine.high %v326_v38, %v330_v40 }
  0xcf   :  { %v633_v49 = vld [vmem:[#allocation6 + $0xf60] sm:$0xff]  ;;  %3413 = vmatpush2.bf16.msra.mxu1 %v7010_v51  ;;  %v194_v46 = vld [vmem:[#allocation6 + $0x1a8] sm:$0xff]  ;;  %v6572_v51 = vcombine.low %v198_v36, %v202_v37 }
  0xd0   :  { %v493_v54 = vld [vmem:[#allocation6 + $0xb00] sm:$0xff]  ;;  %v7003_v57 = vcombine.high %v629_v47, %v633_v49  ;;  %3373 = vmatprep.subr.bf16.mxu0 %v6875_v52  ;;  %v7002_v60 = vcombine.low %v629_v47, %v633_v49  ;;  %v318_v47 = vld [vmem:[#allocation6 + $0x588] sm:$0xff]  ;;  %v6700_v52 = vcombine.low %v326_v38, %v330_v40 }
  0xd1   :  { %v497_v55 = vld [vmem:[#allocation6 + $0xb20] sm:$0xff]  ;;  %3374 = vmatpush2.bf16.msra.mxu0 %v6874_v59  ;;  %v322_v49 = vld [vmem:[#allocation6 + $0x5a8] sm:$0xff] }
  0xd2   :  { %v621_v56 = vld [vmem:[#allocation6 + $0xf00] sm:$0xff]  ;;  %v6867_v61 = vcombine.high %v493_v54, %v497_v55  ;;  %3414 = vmatprep.subr.bf16.mxu1 %v7003_v57  ;;  %v6866_v4 = vcombine.low %v493_v54, %v497_v55  ;;  %v6565_v54 = vcombine.high %v190_v45, %v194_v46  ;;  %v182_v55 = vld [vmem:[#allocation6 + $0x148] sm:$0xff] }
  0xd3   :  { %v625_v58 = vld [vmem:[#allocation6 + $0xf20] sm:$0xff]  ;;  %3415 = vmatpush2.bf16.msra.mxu1 %v7002_v60  ;;  %v310_v57 = vld [vmem:[#allocation6 + $0x548] sm:$0xff]  ;;  %v6564_v60 = vcombine.low %v190_v45, %v194_v46 }
  0xd4   :  { %v485_v62 = vld [vmem:[#allocation6 + $0xac0] sm:$0xff]  ;;  %v6995_v2 = vcombine.high %v621_v56, %v625_v58  ;;  %3375 = vmatprep.subr.bf16.mxu0 %v6867_v61  ;;  %v6994_v5 = vcombine.low %v621_v56, %v625_v58  ;;  %v186_v56 = vld [vmem:[#allocation6 + $0x168] sm:$0xff]  ;;  %v6693_v58 = vcombine.high %v318_v47, %v322_v49  ;;  %v6692_v61 = vcombine.low %v318_v47, %v322_v49 }
  0xd5   :  { %v489_v0 = vld [vmem:[#allocation6 + $0xae0] sm:$0xff]  ;;  %3376 = vmatpush2.bf16.msra.mxu0 %v6866_v4  ;;  %v314_v59 = vld [vmem:[#allocation6 + $0x568] sm:$0xff] }
  0xd6   :  { %v613_v1 = vld [vmem:[#allocation6 + $0xec0] sm:$0xff]  ;;  %v6859_v6 = vcombine.high %v485_v62, %v489_v0  ;;  %3416 = vmatprep.subr.bf16.mxu1 %v6995_v2  ;;  %v6858_v14 = vcombine.low %v485_v62, %v489_v0  ;;  %v6557_v62 = vcombine.high %v182_v55, %v186_v56  ;;  %v174_v0 = vld [vmem:[#allocation6 + $0x108] sm:$0xff] }
  0xd7   :  { %v617_v3 = vld [vmem:[#allocation6 + $0xee0] sm:$0xff]  ;;  %3417 = vmatpush2.bf16.msra.mxu1 %v6994_v5  ;;  %v302_v2 = vld [vmem:[#allocation6 + $0x508] sm:$0xff]  ;;  %v6556_v5 = vcombine.low %v182_v55, %v186_v56 }
  0xd8   :  { %v477_v7 = vld [vmem:[#allocation6 + $0xa80] sm:$0xff]  ;;  %v6987_v11 = vcombine.high %v613_v1, %v617_v3  ;;  %3377 = vmatprep.subr.bf16.mxu0 %v6859_v6  ;;  %v6986_v15 = vcombine.low %v613_v1, %v617_v3  ;;  %v178_v1 = vld [vmem:[#allocation6 + $0x128] sm:$0xff]  ;;  %v6685_v3 = vcombine.high %v310_v57, %v314_v59  ;;  %v6684_v6 = vcombine.low %v310_v57, %v314_v59 }
  0xd9   :  { %v481_v8 = vld [vmem:[#allocation6 + $0xaa0] sm:$0xff]  ;;  %3378 = vmatpush2.bf16.msra.mxu0 %v6858_v14  ;;  %v306_v4 = vld [vmem:[#allocation6 + $0x528] sm:$0xff] }
  0xda   :  { %v605_v10 = vld [vmem:[#allocation6 + $0xe80] sm:$0xff]  ;;  %v6851_v16 = vcombine.high %v477_v7, %v481_v8  ;;  %3418 = vmatprep.subr.bf16.mxu1 %v6987_v11  ;;  %v6850_v22 = vcombine.low %v477_v7, %v481_v8  ;;  %v6549_v7 = vcombine.high %v174_v0, %v178_v1  ;;  %v166_v8 = vld [vmem:[#allocation6 + $0xc8] sm:$0xff] }
  0xdb   :  { %v609_v12 = vld [vmem:[#allocation6 + $0xea0] sm:$0xff]  ;;  %3419 = vmatpush2.bf16.msra.mxu1 %v6986_v15  ;;  %v294_v11 = vld [vmem:[#allocation6 + $0x4c8] sm:$0xff]  ;;  %v6548_v15 = vcombine.low %v174_v0, %v178_v1 }
  0xdc   :  { %v469_v17 = vld [vmem:[#allocation6 + $0xa40] sm:$0xff]  ;;  %v6979_v20 = vcombine.high %v605_v10, %v609_v12  ;;  %3379 = vmatprep.subr.bf16.mxu0 %v6851_v16  ;;  %v6978_v24 = vcombine.low %v605_v10, %v609_v12  ;;  %v170_v10 = vld [vmem:[#allocation6 + $0xe8] sm:$0xff]  ;;  %v6677_v12 = vcombine.high %v302_v2, %v306_v4  ;;  %v6676_v16 = vcombine.low %v302_v2, %v306_v4 }
  0xdd   :  { %v473_v18 = vld [vmem:[#allocation6 + $0xa60] sm:$0xff]  ;;  %3380 = vmatpush2.bf16.msra.mxu0 %v6850_v22  ;;  %v298_v14 = vld [vmem:[#allocation6 + $0x4e8] sm:$0xff] }
  0xde   :  { %v597_v19 = vld [vmem:[#allocation6 + $0xe40] sm:$0xff]  ;;  %v6843_v25 = vcombine.high %v469_v17, %v473_v18  ;;  %3420 = vmatprep.subr.bf16.mxu1 %v6979_v20  ;;  %v6842_v63 = vcombine.low %v469_v17, %v473_v18  ;;  %v6541_v17 = vcombine.high %v166_v8, %v170_v10  ;;  %v158_v18 = vld [vmem:[#allocation6 + $0x88] sm:$0xff] }
  0xdf   :  { %v601_v21 = vld [vmem:[#allocation6 + $0xe60] sm:$0xff]  ;;  %3421 = vmatpush2.bf16.msra.mxu1 %v6978_v24  ;;  %v286_v20 = vld [vmem:[#allocation6 + $0x488] sm:$0xff]  ;;  %v6540_v24 = vcombine.low %v166_v8, %v170_v10 }
  0xe0   :  { %v461_v26 = vld [vmem:[#allocation6 + $0xa00] sm:$0xff]  ;;  %v6971_v30 = vcombine.high %v597_v19, %v601_v21  ;;  %3381 = vmatprep.subr.bf16.mxu0 %v6843_v25  ;;  %v6970_v34 = vcombine.low %v597_v19, %v601_v21  ;;  %v162_v19 = vld [vmem:[#allocation6 + $0xa8] sm:$0xff]  ;;  %v6669_v21 = vcombine.high %v294_v11, %v298_v14  ;;  %v6668_v25 = vcombine.low %v294_v11, %v298_v14 }
  0xe1   :  { %v465_v27 = vld [vmem:[#allocation6 + $0xa20] sm:$0xff]  ;;  %3382 = vmatpush2.bf16.msra.mxu0 %v6842_v63  ;;  %v290_v22 = vld [vmem:[#allocation6 + $0x4a8] sm:$0xff] }
  0xe2   :  { %v589_v29 = vld [vmem:[#allocation6 + $0xe00] sm:$0xff]  ;;  %v6835_v35 = vcombine.high %v461_v26, %v465_v27  ;;  %3422 = vmatprep.subr.bf16.mxu1 %v6971_v30  ;;  %v6834_v41 = vcombine.low %v461_v26, %v465_v27  ;;  %v6533_v26 = vcombine.high %v158_v18, %v162_v19  ;;  %v150_v27 = vld [vmem:[#allocation6 + $0x48] sm:$0xff] }
  0xe3   :  { %v593_v31 = vld [vmem:[#allocation6 + $0xe20] sm:$0xff]  ;;  %3423 = vmatpush2.bf16.msra.mxu1 %v6970_v34  ;;  %v278_v30 = vld [vmem:[#allocation6 + $0x448] sm:$0xff]  ;;  %v6532_v34 = vcombine.low %v158_v18, %v162_v19 }
  0xe4   :  { %v6963_v39 = vcombine.high %v589_v29, %v593_v31  ;;  %3383 = vmatprep.subr.bf16.mxu0 %v6835_v35  ;;  %v6962_v42 = vcombine.low %v589_v29, %v593_v31  ;;  %v154_v29 = vld [vmem:[#allocation6 + $0x68] sm:$0xff]  ;;  %v6661_v31 = vcombine.high %v286_v20, %v290_v22  ;;  %v6660_v35 = vcombine.low %v286_v20, %v290_v22 }
  0xe5   :  { %3384 = vmatpush2.bf16.msra.mxu0 %v6834_v41  ;;  %v282_v63 = vld [vmem:[#allocation6 + $0x468] sm:$0xff]  ;;  %v6525_v36 = vcombine.high %v150_v27, %v154_v29 }
  0xe6   :  { %3424 = vmatprep.subr.bf16.mxu1 %v6963_v39  ;;  %3435 = vmatprep.subr.bf16.mxu0 %v6573_v43  ;;  %v142_v37 = vld [vmem:[#allocation6 + $0x8] sm:$0xff]  ;;  %v6653_v40 = vcombine.high %v278_v30, %v282_v63  ;;  %v6652_v43 = vcombine.low %v278_v30, %v282_v63 }
  0xe7   :  { %3425 = vmatpush2.bf16.msra.mxu1 %v6962_v42  ;;  %v146_v38 = vld [vmem:[#allocation6 + $0x28] sm:$0xff]  ;;  %v6524_v42 = vcombine.low %v150_v27, %v154_v29 }
  0xe8   :  { %3476 = vmatprep.subr.bf16.mxu1 %v6701_v48  ;;  %3386 = vmatmul.mubr.bf16.vlgmr.msra.gmra.mxu0 %v8127_v32  ;;  %v270_v39 = vld [vmem:[#allocation6 + $0x408] sm:$0xff]  ;;  %v6517_v45 = vcombine.high %v142_v37, %v146_v38 }
  0xe9   :  { %3436 = vmatpush1.bf16.msra.mxu0 %v6572_v51  ;;  %3467 = vmatprep.mubr.bf16.mxu0 %v8114_v9  ;;  %v274_v41 = vld [vmem:[#allocation6 + $0x428] sm:$0xff] }
  0xea   :  { %3427 = vmatmul.mubr.bf16.vlgmr.msra.gmra.mxu1 %v8152_v50  ;;  %3437 = vmatprep.subr.bf16.mxu0 %v6565_v54  ;;  %v262_v46 = vld [vmem:[#allocation6 + $0x3c8] sm:$0xff]  ;;  %v6645_v49 = vcombine.high %v270_v39, %v274_v41  ;;  %v6644_v54 = vcombine.low %v270_v39, %v274_v41 }
  0xeb   :  { %3477 = vmatpush1.bf16.msra.mxu1 %v6700_v52  ;;  %3508 = vmatprep.mubr.bf16.mxu1 %v8119_v13  ;;  %v266_v47 = vld [vmem:[#allocation6 + $0x3e8] sm:$0xff]  ;;  %v6516_v52 = vcombine.low %v142_v37, %v146_v38 }
  0xec   :  { %3478 = vmatprep.subr.bf16.mxu1 %v6693_v58  ;;  %v390_v48 = vld [vmem:[#allocation6 + $0x7c8] sm:$0xff]  ;;  %v6637_v55 = vcombine.high %v262_v46, %v266_v47 }
  0xed   :  { %3438 = vmatpush1.bf16.msra.mxu0 %v6564_v60  ;;  %v394_v51 = vld [vmem:[#allocation6 + $0x7e8] sm:$0xff] }
  0xee   :  { %3439 = vmatprep.subr.bf16.mxu0 %v6557_v62  ;;  %v254_v56 = vld [vmem:[#allocation6 + $0x388] sm:$0xff]  ;;  %v6765_v59 = vcombine.high %v390_v48, %v394_v51  ;;  %v6764_v62 = vcombine.low %v390_v48, %v394_v51 }
  0xef   :  { %3479 = vmatpush1.bf16.msra.mxu1 %v6692_v61  ;;  %v258_v57 = vld [vmem:[#allocation6 + $0x3a8] sm:$0xff]  ;;  %v6636_v61 = vcombine.low %v262_v46, %v266_v47 }
  0xf0   :  { %3480 = vmatprep.subr.bf16.mxu1 %v6685_v3  ;;  %v382_v58 = vld [vmem:[#allocation6 + $0x788] sm:$0xff]  ;;  %v6629_v0 = vcombine.high %v254_v56, %v258_v57 }
  0xf1   :  { %3440 = vmatpush1.bf16.msra.mxu0 %v6556_v5  ;;  %v386_v60 = vld [vmem:[#allocation6 + $0x7a8] sm:$0xff] }
  0xf2   :  { %3441 = vmatprep.subr.bf16.mxu0 %v6549_v7  ;;  %v246_v1 = vld [vmem:[#allocation6 + $0x348] sm:$0xff]  ;;  %v6757_v4 = vcombine.high %v382_v58, %v386_v60  ;;  %v6756_v7 = vcombine.low %v382_v58, %v386_v60 }
  0xf3   :  { %3481 = vmatpush1.bf16.msra.mxu1 %v6684_v6  ;;  %v250_v2 = vld [vmem:[#allocation6 + $0x368] sm:$0xff]  ;;  %v6628_v6 = vcombine.low %v254_v56, %v258_v57 }
  0xf4   :  { %3482 = vmatprep.subr.bf16.mxu1 %v6677_v12  ;;  %v374_v3 = vld [vmem:[#allocation6 + $0x748] sm:$0xff]  ;;  %v6621_v8 = vcombine.high %v246_v1, %v250_v2 }
  0xf5   :  { %3442 = vmatpush1.bf16.msra.mxu0 %v6548_v15  ;;  %v378_v5 = vld [vmem:[#allocation6 + $0x768] sm:$0xff] }
  0xf6   :  { %3443 = vmatprep.subr.bf16.mxu0 %v6541_v17  ;;  %v238_v10 = vld [vmem:[#allocation6 + $0x308] sm:$0xff]  ;;  %v6749_v14 = vcombine.high %v374_v3, %v378_v5  ;;  %v6748_v17 = vcombine.low %v374_v3, %v378_v5 }
  0xf7   :  { %3483 = vmatpush1.bf16.msra.mxu1 %v6676_v16  ;;  %v242_v11 = vld [vmem:[#allocation6 + $0x328] sm:$0xff]  ;;  %v6620_v16 = vcombine.low %v246_v1, %v250_v2 }
  0xf8   :  { %3484 = vmatprep.subr.bf16.mxu1 %v6669_v21  ;;  %v366_v12 = vld [vmem:[#allocation6 + $0x708] sm:$0xff]  ;;  %v6613_v18 = vcombine.high %v238_v10, %v242_v11 }
  0xf9   :  { %3444 = vmatpush1.bf16.msra.mxu0 %v6540_v24  ;;  %v370_v15 = vld [vmem:[#allocation6 + $0x728] sm:$0xff] }
  0xfa   :  { %3445 = vmatprep.subr.bf16.mxu0 %v6533_v26  ;;  %v230_v19 = vld [vmem:[#allocation6 + $0x2c8] sm:$0xff]  ;;  %v6741_v22 = vcombine.high %v366_v12, %v370_v15  ;;  %v6740_v26 = vcombine.low %v366_v12, %v370_v15 }
  0xfb   :  { %3485 = vmatpush1.bf16.msra.mxu1 %v6668_v25  ;;  %v234_v20 = vld [vmem:[#allocation6 + $0x2e8] sm:$0xff]  ;;  %v6612_v25 = vcombine.low %v238_v10, %v242_v11 }
  0xfc   :  { %3486 = vmatprep.subr.bf16.mxu1 %v6661_v31  ;;  %v358_v21 = vld [vmem:[#allocation6 + $0x6c8] sm:$0xff]  ;;  %v6605_v27 = vcombine.high %v230_v19, %v234_v20 }
  0xfd   :  { %3446 = vmatpush1.bf16.msra.mxu0 %v6532_v34  ;;  %v362_v24 = vld [vmem:[#allocation6 + $0x6e8] sm:$0xff] }
  0xfe   :  { %3447 = vmatprep.subr.bf16.mxu0 %v6525_v36  ;;  %v222_v29 = vld [vmem:[#allocation6 + $0x288] sm:$0xff]  ;;  %v6733_v63 = vcombine.high %v358_v21, %v362_v24  ;;  %v6732_v36 = vcombine.low %v358_v21, %v362_v24 }
  0xff   :  { %3487 = vmatpush1.bf16.msra.mxu1 %v6660_v35  ;;  %v226_v30 = vld [vmem:[#allocation6 + $0x2a8] sm:$0xff]  ;;  %v6604_v35 = vcombine.low %v230_v19, %v234_v20 }
 0x100   :  { %3488 = vmatprep.subr.bf16.mxu1 %v6653_v40  ;;  %v350_v31 = vld [vmem:[#allocation6 + $0x688] sm:$0xff]  ;;  %v6597_v37 = vcombine.high %v222_v29, %v226_v30 }
 0x101   :  { %3448 = vmatpush1.bf16.msra.mxu0 %v6524_v42  ;;  %v354_v34 = vld [vmem:[#allocation6 + $0x6a8] sm:$0xff] }
 0x102   :  { %3449 = vmatprep.subr.bf16.mxu0 %v6517_v45  ;;  %v214_v38 = vld [vmem:[#allocation6 + $0x248] sm:$0xff]  ;;  %v6725_v41 = vcombine.high %v350_v31, %v354_v34  ;;  %v6724_v45 = vcombine.low %v350_v31, %v354_v34 }
 0x103   :  { %3489 = vmatpush1.bf16.msra.mxu1 %v6652_v43  ;;  %v218_v39 = vld [vmem:[#allocation6 + $0x268] sm:$0xff]  ;;  %v6596_v43 = vcombine.low %v222_v29, %v226_v30 }
 0x104   :  { %3490 = vmatprep.subr.bf16.mxu1 %v6645_v49  ;;  %v342_v40 = vld [vmem:[#allocation6 + $0x648] sm:$0xff]  ;;  %v6589_v46 = vcombine.high %v214_v38, %v218_v39 }
 0x105   :  { %3450 = vmatpush1.bf16.msra.mxu0 %v6516_v52  ;;  %v346_v42 = vld [vmem:[#allocation6 + $0x668] sm:$0xff] }
 0x106   :  { %3451 = vmatprep.subr.bf16.mxu0 %v6637_v55  ;;  %v206_v47 = vld [vmem:[#allocation6 + $0x208] sm:$0xff]  ;;  %v6717_v51 = vcombine.high %v342_v40, %v346_v42  ;;  %v6716_v55 = vcombine.low %v342_v40, %v346_v42 }
 0x107   :  { %3491 = vmatpush1.bf16.msra.mxu1 %v6644_v54  ;;  %v210_v48 = vld [vmem:[#allocation6 + $0x228] sm:$0xff]  ;;  %v6588_v54 = vcombine.low %v214_v38, %v218_v39 }
 0x108   :  { %3492 = vmatprep.subr.bf16.mxu1 %v6765_v59  ;;  %v334_v49 = vld [vmem:[#allocation6 + $0x608] sm:$0xff]  ;;  %v6581_v56 = vcombine.high %v206_v47, %v210_v48 }
 0x109   :  { %3452 = vmatpush2.bf16.msra.mxu0 %v6636_v61  ;;  %v338_v52 = vld [vmem:[#allocation6 + $0x628] sm:$0xff] }
 0x10a   :  { %3453 = vmatprep.subr.bf16.mxu0 %v6629_v0  ;;  %v454_v57 = vld [vmem:[#allocation6 + $0x9c8] sm:$0xff]  ;;  %v6709_v60 = vcombine.high %v334_v49, %v338_v52  ;;  %v6708_v0 = vcombine.low %v334_v49, %v338_v52 }
 0x10b   :  { %3493 = vmatpush2.bf16.msra.mxu1 %v6764_v62  ;;  %v458_v58 = vld [vmem:[#allocation6 + $0x9e8] sm:$0xff]  ;;  %v6580_v62 = vcombine.low %v206_v47, %v210_v48 }
 0x10c   :  { %3494 = vmatprep.subr.bf16.mxu1 %v6757_v4  ;;  %v582_v59 = vld [vmem:[#allocation6 + $0xdc8] sm:$0xff]  ;;  %v6829_v1 = vcombine.high %v454_v57, %v458_v58 }
 0x10d   :  { %3454 = vmatpush2.bf16.msra.mxu0 %v6628_v6  ;;  %v586_v61 = vld [vmem:[#allocation6 + $0xde8] sm:$0xff] }
 0x10e   :  { %3455 = vmatprep.subr.bf16.mxu0 %v6621_v8  ;;  %v446_v2 = vld [vmem:[#allocation6 + $0x988] sm:$0xff]  ;;  %v6957_v5 = vcombine.high %v582_v59, %v586_v61  ;;  %v6956_v8 = vcombine.low %v582_v59, %v586_v61 }
 0x10f   :  { %3495 = vmatpush2.bf16.msra.mxu1 %v6756_v7  ;;  %v450_v3 = vld [vmem:[#allocation6 + $0x9a8] sm:$0xff]  ;;  %v6828_v7 = vcombine.low %v454_v57, %v458_v58 }
 0x110   :  { %3496 = vmatprep.subr.bf16.mxu1 %v6749_v14  ;;  %v574_v4 = vld [vmem:[#allocation6 + $0xd88] sm:$0xff]  ;;  %v6821_v10 = vcombine.high %v446_v2, %v450_v3 }
 0x111   :  { %3456 = vmatpush2.bf16.msra.mxu0 %v6620_v16  ;;  %v578_v6 = vld [vmem:[#allocation6 + $0xda8] sm:$0xff] }
 0x112   :  { %3457 = vmatprep.subr.bf16.mxu0 %v6613_v18  ;;  %v438_v11 = vld [vmem:[#allocation6 + $0x948] sm:$0xff]  ;;  %v6949_v15 = vcombine.high %v574_v4, %v578_v6  ;;  %v6948_v18 = vcombine.low %v574_v4, %v578_v6 }
 0x113   :  { %3497 = vmatpush2.bf16.msra.mxu1 %v6748_v17  ;;  %v442_v12 = vld [vmem:[#allocation6 + $0x968] sm:$0xff]  ;;  %v6820_v17 = vcombine.low %v446_v2, %v450_v3 }
 0x114   :  { %3498 = vmatprep.subr.bf16.mxu1 %v6741_v22  ;;  %v566_v14 = vld [vmem:[#allocation6 + $0xd48] sm:$0xff]  ;;  %v6813_v19 = vcombine.high %v438_v11, %v442_v12 }
 0x115   :  { %3458 = vmatpush2.bf16.msra.mxu0 %v6612_v25  ;;  %v570_v16 = vld [vmem:[#allocation6 + $0xd68] sm:$0xff] }
 0x116   :  { %3459 = vmatprep.subr.bf16.mxu0 %v6605_v27  ;;  %v430_v20 = vld [vmem:[#allocation6 + $0x908] sm:$0xff]  ;;  %v6941_v24 = vcombine.high %v566_v14, %v570_v16  ;;  %v6940_v27 = vcombine.low %v566_v14, %v570_v16 }
 0x117   :  { %3499 = vmatpush2.bf16.msra.mxu1 %v6740_v26  ;;  %v434_v21 = vld [vmem:[#allocation6 + $0x928] sm:$0xff]  ;;  %v6812_v26 = vcombine.low %v438_v11, %v442_v12 }
 0x118   :  { %3500 = vmatprep.subr.bf16.mxu1 %v6733_v63  ;;  %v558_v22 = vld [vmem:[#allocation6 + $0xd08] sm:$0xff]  ;;  %v6805_v29 = vcombine.high %v430_v20, %v434_v21 }
 0x119   :  { %3460 = vmatpush2.bf16.msra.mxu0 %v6604_v35  ;;  %v562_v25 = vld [vmem:[#allocation6 + $0xd28] sm:$0xff] }
 0x11a   :  { %3461 = vmatprep.subr.bf16.mxu0 %v6597_v37  ;;  %v422_v30 = vld [vmem:[#allocation6 + $0x8c8] sm:$0xff]  ;;  %v6933_v34 = vcombine.high %v558_v22, %v562_v25  ;;  %v6932_v37 = vcombine.low %v558_v22, %v562_v25 }
 0x11b   :  { %3501 = vmatpush2.bf16.msra.mxu1 %v6732_v36  ;;  %v426_v31 = vld [vmem:[#allocation6 + $0x8e8] sm:$0xff]  ;;  %v6804_v36 = vcombine.low %v430_v20, %v434_v21 }
 0x11c   :  { %3502 = vmatprep.subr.bf16.mxu1 %v6725_v41  ;;  %v550_v63 = vld [vmem:[#allocation6 + $0xcc8] sm:$0xff]  ;;  %v6797_v38 = vcombine.high %v422_v30, %v426_v31 }
 0x11d   :  { %3462 = vmatpush2.bf16.msra.mxu0 %v6596_v43  ;;  %v554_v35 = vld [vmem:[#allocation6 + $0xce8] sm:$0xff] }
 0x11e   :  { %3463 = vmatprep.subr.bf16.mxu0 %v6589_v46  ;;  %v414_v39 = vld [vmem:[#allocation6 + $0x888] sm:$0xff]  ;;  %v6925_v42 = vcombine.high %v550_v63, %v554_v35  ;;  %v6924_v46 = vcombine.low %v550_v63, %v554_v35 }
 0x11f   :  { %3503 = vmatpush2.bf16.msra.mxu1 %v6724_v45  ;;  %v418_v40 = vld [vmem:[#allocation6 + $0x8a8] sm:$0xff]  ;;  %v6796_v45 = vcombine.low %v422_v30, %v426_v31 }
 0x120   :  { %3504 = vmatprep.subr.bf16.mxu1 %v6717_v51  ;;  %v542_v41 = vld [vmem:[#allocation6 + $0xc88] sm:$0xff]  ;;  %v6789_v47 = vcombine.high %v414_v39, %v418_v40 }
 0x121   :  { %3464 = vmatpush2.bf16.msra.mxu0 %v6588_v54  ;;  %v546_v43 = vld [vmem:[#allocation6 + $0xca8] sm:$0xff] }
 0x122   :  { %3465 = vmatprep.subr.bf16.mxu0 %v6581_v56  ;;  %v406_v48 = vld [vmem:[#allocation6 + $0x848] sm:$0xff]  ;;  %v6917_v52 = vcombine.high %v542_v41, %v546_v43  ;;  %v6916_v56 = vcombine.low %v542_v41, %v546_v43 }
 0x123   :  { %3505 = vmatpush2.bf16.msra.mxu1 %v6716_v55  ;;  %v410_v49 = vld [vmem:[#allocation6 + $0x868] sm:$0xff]  ;;  %v6788_v55 = vcombine.low %v414_v39, %v418_v40 }
 0x124   :  { %3506 = vmatprep.subr.bf16.mxu1 %v6709_v60  ;;  %v534_v51 = vld [vmem:[#allocation6 + $0xc48] sm:$0xff]  ;;  %v6781_v57 = vcombine.high %v406_v48, %v410_v49 }
 0x125   :  { %3466 = vmatpush2.bf16.msra.mxu0 %v6580_v62  ;;  %v538_v54 = vld [vmem:[#allocation6 + $0xc68] sm:$0xff] }
 0x126   :  { %3517 = vmatprep.subr.bf16.mxu0 %v6829_v1  ;;  %v398_v58 = vld [vmem:[#allocation6 + $0x808] sm:$0xff]  ;;  %v6909_v61 = vcombine.high %v534_v51, %v538_v54  ;;  %v6908_v1 = vcombine.low %v534_v51, %v538_v54 }
 0x127   :  { %3507 = vmatpush2.bf16.msra.mxu1 %v6708_v0  ;;  %v402_v59 = vld [vmem:[#allocation6 + $0x828] sm:$0xff]  ;;  %v6780_v0 = vcombine.low %v406_v48, %v410_v49 }
 0x128   :  { %3558 = vmatprep.subr.bf16.mxu1 %v6957_v5  ;;  %3468 = vmatmul.mubr.bf16.vlgmr.msra.gmra.mxu0 %v8133_v23  ;;  %v526_v60 = vld [vmem:[#allocation6 + $0xc08] sm:$0xff]  ;;  %v6773_v2 = vcombine.high %v398_v58, %v402_v59 }
 0x129   :  { %3518 = vmatpush1.bf16.msra.mxu0 %v6828_v7  ;;  %3549 = vmatprep.mubr.bf16.mxu0 %v8136_v33  ;;  %v530_v62 = vld [vmem:[#allocation6 + $0xc28] sm:$0xff] }
 0x12a   :  { %3509 = vmatmul.mubr.bf16.vlgmr.msra.gmra.mxu1 %v8140_v28  ;;  %3519 = vmatprep.subr.bf16.mxu0 %v6821_v10  ;;  %v518_v3 = vld [vmem:[#allocation6 + $0xbc8] sm:$0xff]  ;;  %v6901_v6 = vcombine.high %v526_v60, %v530_v62  ;;  %v6900_v10 = vcombine.low %v526_v60, %v530_v62 }
 0x12b   :  { %3559 = vmatpush1.bf16.msra.mxu1 %v6956_v8  ;;  %3590 = vmatprep.mubr.bf16.mxu1 %v8145_v53  ;;  %v522_v4 = vld [vmem:[#allocation6 + $0xbe8] sm:$0xff]  ;;  %v6772_v8 = vcombine.low %v398_v58, %v402_v59 }
 0x12c   :  { %3560 = vmatprep.subr.bf16.mxu1 %v6949_v15  ;;  %v646_v5 = vld [vmem:[#allocation6 + $0xfc8] sm:$0xff]  ;;  %v6893_v11 = vcombine.high %v518_v3, %v522_v4 }
 0x12d   :  { %3520 = vmatpush1.bf16.msra.mxu0 %v6820_v17  ;;  %v650_v7 = vld [vmem:[#allocation6 + $0xfe8] sm:$0xff] }
 0x12e   :  { %3521 = vmatprep.subr.bf16.mxu0 %v6813_v19  ;;  %v510_v12 = vld [vmem:[#allocation6 + $0xb88] sm:$0xff]  ;;  %v7021_v16 = vcombine.high %v646_v5, %v650_v7  ;;  %v7020_v19 = vcombine.low %v646_v5, %v650_v7 }
 0x12f   :  { %3561 = vmatpush1.bf16.msra.mxu1 %v6948_v18  ;;  %v514_v14 = vld [vmem:[#allocation6 + $0xba8] sm:$0xff]  ;;  %v6892_v18 = vcombine.low %v518_v3, %v522_v4 }
 0x130   :  { %3562 = vmatprep.subr.bf16.mxu1 %v6941_v24  ;;  %v638_v15 = vld [vmem:[#allocation6 + $0xf88] sm:$0xff]  ;;  %v6885_v20 = vcombine.high %v510_v12, %v514_v14 }
 0x131   :  { %3522 = vmatpush1.bf16.msra.mxu0 %v6812_v26  ;;  %v642_v17 = vld [vmem:[#allocation6 + $0xfa8] sm:$0xff] }
 0x132   :  { %3523 = vmatprep.subr.bf16.mxu0 %v6805_v29  ;;  %v7013_v21 = vcombine.high %v638_v15, %v642_v17  ;;  %v502_v22 = vld [vmem:[#allocation6 + $0xb48] sm:$0xff]  ;;  %v7012_v29 = vcombine.low %v638_v15, %v642_v17  ;;  %v199_v15 = vld [vmem:[#allocation6 + $0x1d0] sm:$0xff] }
 0x133   :  { %3563 = vmatpush1.bf16.msra.mxu1 %v6940_v27  ;;  %v506_v24 = vld [vmem:[#allocation6 + $0xb68] sm:$0xff]  ;;  %v6884_v27 = vcombine.low %v510_v12, %v514_v14  ;;  %v327_v17 = vld [vmem:[#allocation6 + $0x5d0] sm:$0xff] }
 0x134   :  { %3564 = vmatprep.subr.bf16.mxu1 %v6933_v34  ;;  %v630_v25 = vld [vmem:[#allocation6 + $0xf48] sm:$0xff]  ;;  %v6877_v30 = vcombine.high %v502_v22, %v506_v24 }
 0x135   :  { %3524 = vmatpush1.bf16.msra.mxu0 %v6804_v36  ;;  %v634_v26 = vld [vmem:[#allocation6 + $0xf68] sm:$0xff] }
 0x136   :  { %3525 = vmatprep.subr.bf16.mxu0 %v6797_v38  ;;  %v7005_v31 = vcombine.high %v630_v25, %v634_v26  ;;  %v494_v63 = vld [vmem:[#allocation6 + $0xb08] sm:$0xff]  ;;  %v7004_v38 = vcombine.low %v630_v25, %v634_v26  ;;  %v195_v25 = vld [vmem:[#allocation6 + $0x1b0] sm:$0xff] }
 0x137   :  { %3565 = vmatpush1.bf16.msra.mxu1 %v6932_v37  ;;  %v498_v34 = vld [vmem:[#allocation6 + $0xb28] sm:$0xff]  ;;  %v6876_v37 = vcombine.low %v502_v22, %v506_v24  ;;  %v191_v24 = vld [vmem:[#allocation6 + $0x190] sm:$0xff] }
 0x138   :  { %3566 = vmatprep.subr.bf16.mxu1 %v6925_v42  ;;  %v622_v35 = vld [vmem:[#allocation6 + $0xf08] sm:$0xff]  ;;  %v6869_v39 = vcombine.high %v494_v63, %v498_v34  ;;  %v319_v26 = vld [vmem:[#allocation6 + $0x590] sm:$0xff] }
 0x139   :  { %3526 = vmatpush1.bf16.msra.mxu0 %v6796_v45  ;;  %v626_v36 = vld [vmem:[#allocation6 + $0xf28] sm:$0xff] }
 0x13a   :  { %3527 = vmatprep.subr.bf16.mxu0 %v6789_v47  ;;  %v6997_v40 = vcombine.high %v622_v35, %v626_v36  ;;  %v486_v41 = vld [vmem:[#allocation6 + $0xac8] sm:$0xff]  ;;  %v6996_v47 = vcombine.low %v622_v35, %v626_v36  ;;  %v187_v35 = vld [vmem:[#allocation6 + $0x170] sm:$0xff] }
 0x13b   :  { %3567 = vmatpush1.bf16.msra.mxu1 %v6924_v46  ;;  %v490_v42 = vld [vmem:[#allocation6 + $0xae8] sm:$0xff]  ;;  %v6868_v46 = vcombine.low %v494_v63, %v498_v34  ;;  %v183_v34 = vld [vmem:[#allocation6 + $0x150] sm:$0xff] }
 0x13c   :  { %3568 = vmatprep.subr.bf16.mxu1 %v6917_v52  ;;  %v614_v43 = vld [vmem:[#allocation6 + $0xec8] sm:$0xff]  ;;  %v6861_v48 = vcombine.high %v486_v41, %v490_v42 }
 0x13d   :  { %3528 = vmatpush1.bf16.msra.mxu0 %v6788_v55  ;;  %v618_v45 = vld [vmem:[#allocation6 + $0xee8] sm:$0xff] }
 0x13e   :  { %3529 = vmatprep.subr.bf16.mxu0 %v6781_v57  ;;  %v6989_v49 = vcombine.high %v614_v43, %v618_v45  ;;  %v478_v51 = vld [vmem:[#allocation6 + $0xa88] sm:$0xff]  ;;  %v6988_v57 = vcombine.low %v614_v43, %v618_v45  ;;  %v6559_v45 = vcombine.high %v183_v34, %v187_v35 }
 0x13f   :  { %3569 = vmatpush1.bf16.msra.mxu1 %v6916_v56  ;;  %v482_v52 = vld [vmem:[#allocation6 + $0xaa8] sm:$0xff]  ;;  %v6860_v56 = vcombine.low %v486_v41, %v490_v42 }
 0x140   :  { %3570 = vmatprep.subr.bf16.mxu1 %v6909_v61  ;;  %v606_v54 = vld [vmem:[#allocation6 + $0xe88] sm:$0xff]  ;;  %v6853_v58 = vcombine.high %v478_v51, %v482_v52 }
 0x141   :  { %3530 = vmatpush1.bf16.msra.mxu0 %v6780_v0  ;;  %v610_v55 = vld [vmem:[#allocation6 + $0xea8] sm:$0xff] }
 0x142   :  { %3531 = vmatprep.subr.bf16.mxu0 %v6773_v2  ;;  %v6981_v59 = vcombine.high %v606_v54, %v610_v55  ;;  %v470_v60 = vld [vmem:[#allocation6 + $0xa48] sm:$0xff]  ;;  %v6980_v2 = vcombine.low %v606_v54, %v610_v55  ;;  %v303_v54 = vld [vmem:[#allocation6 + $0x510] sm:$0xff] }
 0x143   :  { %3571 = vmatpush1.bf16.msra.mxu1 %v6908_v1  ;;  %v474_v61 = vld [vmem:[#allocation6 + $0xa68] sm:$0xff]  ;;  %v6852_v1 = vcombine.low %v478_v51, %v482_v52  ;;  %v307_v55 = vld [vmem:[#allocation6 + $0x530] sm:$0xff] }
 0x144   :  { %3572 = vmatprep.subr.bf16.mxu1 %v6901_v6  ;;  %v598_v62 = vld [vmem:[#allocation6 + $0xe48] sm:$0xff]  ;;  %v6845_v3 = vcombine.high %v470_v60, %v474_v61 }
 0x145   :  { %3532 = vmatpush1.bf16.msra.mxu0 %v6772_v8  ;;  %v602_v0 = vld [vmem:[#allocation6 + $0xe68] sm:$0xff] }
 0x146   :  { %3533 = vmatprep.subr.bf16.mxu0 %v6893_v11  ;;  %v6973_v4 = vcombine.high %v598_v62, %v602_v0  ;;  %v462_v5 = vld [vmem:[#allocation6 + $0xa08] sm:$0xff]  ;;  %v6972_v11 = vcombine.low %v598_v62, %v602_v0  ;;  %v6679_v62 = vcombine.high %v303_v54, %v307_v55  ;;  %v167_v0 = vld [vmem:[#allocation6 + $0xd0] sm:$0xff] }
 0x147   :  { %3573 = vmatpush1.bf16.msra.mxu1 %v6900_v10  ;;  %v466_v6 = vld [vmem:[#allocation6 + $0xa28] sm:$0xff]  ;;  %v6844_v10 = vcombine.low %v470_v60, %v474_v61 }
 0x148   :  { %3574 = vmatprep.subr.bf16.mxu1 %v7021_v16  ;;  %v590_v7 = vld [vmem:[#allocation6 + $0xe08] sm:$0xff]  ;;  %v6837_v12 = vcombine.high %v462_v5, %v466_v6  ;;  %v203_v16 = vld [vmem:[#allocation6 + $0x1f0] sm:$0xff] }
 0x149   :  { %3534 = vmatpush2.bf16.msra.mxu0 %v6892_v18  ;;  %v594_v8 = vld [vmem:[#allocation6 + $0xe28] sm:$0xff]  ;;  %v331_v18 = vld [vmem:[#allocation6 + $0x5f0] sm:$0xff] }
 0x14a   :  { %3535 = vmatprep.subr.bf16.mxu0 %v6885_v20  ;;  %v6965_v14 = vcombine.high %v590_v7, %v594_v8  ;;  %v6964_v20 = vcombine.low %v590_v7, %v594_v8  ;;  %v6703_v22 = vcombine.high %v327_v17, %v331_v18  ;;  %v159_v8 = vld [vmem:[#allocation6 + $0x90] sm:$0xff] }
 0x14b   :  { %3575 = vmatpush2.bf16.msra.mxu1 %v7020_v19  ;;  %v6836_v19 = vcombine.low %v462_v5, %v466_v6  ;;  %v6678_v5 = vcombine.low %v303_v54, %v307_v55 }
 0x14c   :  { %3576 = vmatprep.subr.bf16.mxu1 %v7013_v21  ;;  %v6575_v21 = vcombine.high %v199_v15, %v203_v16 }
 0x14d   :  { %3536 = vmatpush2.bf16.msra.mxu0 %v6884_v27  ;;  %v323_v27 = vld [vmem:[#allocation6 + $0x5b0] sm:$0xff] }
 0x14e   :  { %3537 = vmatprep.subr.bf16.mxu0 %v6877_v30  ;;  %v6702_v30 = vcombine.low %v327_v17, %v331_v18  ;;  %v6695_v63 = vcombine.high %v319_v26, %v323_v27  ;;  %v6694_v43 = vcombine.low %v319_v26, %v323_v27  ;;  %v151_v18 = vld [vmem:[#allocation6 + $0x50] sm:$0xff] }
 0x14f   :  { %3577 = vmatpush2.bf16.msra.mxu1 %v7012_v29  ;;  %v6574_v29 = vcombine.low %v199_v15, %v203_v16  ;;  %v143_v27 = vld [vmem:[#allocation6 + $0x10] sm:$0xff] }
 0x150   :  { %3578 = vmatprep.subr.bf16.mxu1 %v7005_v31  ;;  %v6567_v31 = vcombine.high %v191_v24, %v195_v25 }
 0x151   :  { %3538 = vmatpush2.bf16.msra.mxu0 %v6876_v37  ;;  %v311_v37 = vld [vmem:[#allocation6 + $0x550] sm:$0xff] }
 0x152   :  { %3539 = vmatprep.subr.bf16.mxu0 %v6869_v39 }
 0x153   :  { %3579 = vmatpush2.bf16.msra.mxu1 %v7004_v38  ;;  %v315_v38 = vld [vmem:[#allocation6 + $0x570] sm:$0xff] }
 0x154   :  { %3580 = vmatprep.subr.bf16.mxu1 %v6997_v40  ;;  %v6566_v40 = vcombine.low %v191_v24, %v195_v25 }
 0x155   :  { %3540 = vmatpush2.bf16.msra.mxu0 %v6868_v46 }
 0x156   :  { %3541 = vmatprep.subr.bf16.mxu0 %v6861_v48  ;;  %v175_v48 = vld [vmem:[#allocation6 + $0x110] sm:$0xff] }
 0x157   :  { %3581 = vmatpush2.bf16.msra.mxu1 %v6996_v47  ;;  %v6687_v47 = vcombine.high %v311_v37, %v315_v38 }
 0x158   :  { %3582 = vmatprep.subr.bf16.mxu1 %v6989_v49  ;;  %v179_v49 = vld [vmem:[#allocation6 + $0x130] sm:$0xff] }
 0x159   :  { %3542 = vmatpush2.bf16.msra.mxu0 %v6860_v56  ;;  %v6551_v60 = vcombine.high %v175_v48, %v179_v49 }
 0x15a   :  { %3543 = vmatprep.subr.bf16.mxu0 %v6853_v58 }
 0x15b   :  { %3583 = vmatpush2.bf16.msra.mxu1 %v6988_v57  ;;  %v6558_v57 = vcombine.low %v183_v34, %v187_v35 }
 0x15c   :  { %3584 = vmatprep.subr.bf16.mxu1 %v6981_v59  ;;  %v6686_v59 = vcombine.low %v311_v37, %v315_v38  ;;  %v263_v37 = vld [vmem:[#allocation6 + $0x3d0] sm:$0xff] }
 0x15d   :  { %3544 = vmatpush2.bf16.msra.mxu0 %v6852_v1  ;;  %v171_v1 = vld [vmem:[#allocation6 + $0xf0] sm:$0xff] }
 0x15e   :  { %3545 = vmatprep.subr.bf16.mxu0 %v6845_v3  ;;  %v299_v3 = vld [vmem:[#allocation6 + $0x4f0] sm:$0xff]  ;;  %v6543_v6 = vcombine.high %v167_v0, %v171_v1 }
 0x15f   :  { %3585 = vmatpush2.bf16.msra.mxu1 %v6980_v2  ;;  %v295_v2 = vld [vmem:[#allocation6 + $0x4d0] sm:$0xff] }
 0x160   :  { %3586 = vmatprep.subr.bf16.mxu1 %v6973_v4  ;;  %v6550_v4 = vcombine.low %v175_v48, %v179_v49  ;;  %v6671_v7 = vcombine.high %v295_v2, %v299_v3  ;;  %v6670_v15 = vcombine.low %v295_v2, %v299_v3  ;;  %v267_v38 = vld [vmem:[#allocation6 + $0x3f0] sm:$0xff] }
 0x161   :  { %3546 = vmatpush2.bf16.msra.mxu0 %v6844_v10  ;;  %v163_v10 = vld [vmem:[#allocation6 + $0xb0] sm:$0xff]  ;;  %v6638_v54 = vcombine.low %v263_v37, %v267_v38 }
 0x162   :  { %3547 = vmatprep.subr.bf16.mxu0 %v6837_v12  ;;  %v291_v12 = vld [vmem:[#allocation6 + $0x4b0] sm:$0xff]  ;;  %v6535_v16 = vcombine.high %v159_v8, %v163_v10 }
 0x163   :  { %3587 = vmatpush2.bf16.msra.mxu1 %v6972_v11  ;;  %v287_v11 = vld [vmem:[#allocation6 + $0x490] sm:$0xff] }
 0x164   :  { %3588 = vmatprep.subr.bf16.mxu1 %v6965_v14  ;;  %v6542_v14 = vcombine.low %v167_v0, %v171_v1  ;;  %v6663_v17 = vcombine.high %v287_v11, %v291_v12  ;;  %v6662_v24 = vcombine.low %v287_v11, %v291_v12  ;;  %v259_v48 = vld [vmem:[#allocation6 + $0x3b0] sm:$0xff] }
 0x165   :  { %3548 = vmatpush2.bf16.msra.mxu0 %v6836_v19  ;;  %v155_v19 = vld [vmem:[#allocation6 + $0x70] sm:$0xff] }
 0x166   :  { %3599 = vmatprep.subr.bf16.mxu0 %v6575_v21  ;;  %v283_v21 = vld [vmem:[#allocation6 + $0x470] sm:$0xff]  ;;  %v6527_v25 = vcombine.high %v151_v18, %v155_v19 }
 0x167   :  { %3589 = vmatpush2.bf16.msra.mxu1 %v6964_v20  ;;  %v279_v20 = vld [vmem:[#allocation6 + $0x450] sm:$0xff] }
 0x168   :  { %3640 = vmatprep.subr.bf16.mxu1 %v6703_v22  ;;  %v3305_v36 = vpop.f32.mrf.mxu0  ;;  %3550 = vmatmul.mubr.bf16.vlgmr.msra.gmra.mxu0 %v8127_v32  ;;  %v6534_v22 = vcombine.low %v159_v8, %v163_v10  ;;  %v6655_v26 = vcombine.high %v279_v20, %v283_v21  ;;  %v6654_v34 = vcombine.low %v279_v20, %v283_v21  ;;  %v383_v49 = vld [vmem:[#allocation6 + $0x790] sm:$0xff] }
 0x169   :  { %3600 = vmatpush1.bf16.msra.mxu0 %v6574_v29  ;;  %3631 = vmatprep.mubr.bf16.mxu0 %v8114_v9  ;;  %v147_v29 = vld [vmem:[#allocation6 + $0x30] sm:$0xff] }
 0x16a   :  { %v3346_v39 = vpop.f32.mrf.mxu1  ;;  %3591 = vmatmul.mubr.bf16.vlgmr.msra.gmra.mxu1 %v8152_v50  ;;  %v3307_v42 = vpop.f32.mrf.mxu0  ;;  %3601 = vmatprep.subr.bf16.mxu0 %v6567_v31  ;;  %v275_v31 = vld [vmem:[#allocation6 + $0x430] sm:$0xff]  ;;  %v6519_v35 = vcombine.high %v143_v27, %v147_v29 }
 0x16b   :  { %v8164_v41 = vadd.f32 %v3346_v39, %v3305_v36  ;;  %3641 = vmatpush1.bf16.msra.mxu1 %v6702_v30  ;;  %3672 = vmatprep.mubr.bf16.mxu1 %v8119_v13  ;;  %v271_v30 = vld [vmem:[#allocation6 + $0x410] sm:$0xff] }
 0x16c   :  { %v3348_v46 = vpop.f32.mrf.mxu1  ;;  %3642 = vmatprep.subr.bf16.mxu1 %v6695_v63  ;;  %v3309_v52 = vpop.f32.mrf.mxu0  ;;  %v6526_v63 = vcombine.low %v151_v18, %v155_v19  ;;  %v6647_v36 = vcombine.high %v271_v30, %v275_v31  ;;  %v391_v39 = vld [vmem:[#allocation6 + $0x7d0] sm:$0xff] }
 0x16d   :  { %v8167_v51 = vadd.f32 %v3348_v46, %v3307_v42  ;;  %3602 = vmatpush1.bf16.msra.mxu0 %v6566_v40  ;;  %v395_v40 = vld [vmem:[#allocation6 + $0x7f0] sm:$0xff]  ;;  %v6518_v42 = vcombine.low %v143_v27, %v147_v29 }
 0x16e   :  { %v3350_v56 = vpop.f32.mrf.mxu1  ;;  %v3310_v58 = vpop.f32.mrf.mxu0  ;;  %3603 = vmatprep.subr.bf16.mxu0 %v6559_v45  ;;  %v6639_v45 = vcombine.high %v263_v37, %v267_v38  ;;  %v6767_v46 = vcombine.high %v391_v39, %v395_v40  ;;  %v387_v52 = vld [vmem:[#allocation6 + $0x7b0] sm:$0xff]  ;;  %v6766_v55 = vcombine.low %v391_v39, %v395_v40 }
 0x16f   :  { %3643 = vmatpush1.bf16.msra.mxu1 %v6694_v43  ;;  %v6646_v43 = vcombine.low %v271_v30, %v275_v31  ;;  %v247_v58 = vld [vmem:[#allocation6 + $0x350] sm:$0xff]  ;;  %v6758_v0 = vcombine.low %v383_v49, %v387_v52 }
 0x170   :  { %v3351_v61 = vpop.f32.mrf.mxu1  ;;  %3644 = vmatprep.subr.bf16.mxu1 %v6687_v47  ;;  %v255_v47 = vld [vmem:[#allocation6 + $0x390] sm:$0xff] }
 0x171   :  { %3604 = vmatpush1.bf16.msra.mxu0 %v6558_v57  ;;  %v6631_v56 = vcombine.high %v255_v47, %v259_v48  ;;  %v6759_v57 = vcombine.high %v383_v49, %v387_v52  ;;  %v379_v61 = vld [vmem:[#allocation6 + $0x770] sm:$0xff] }
 0x172   :  { %3605 = vmatprep.subr.bf16.mxu0 %v6551_v60  ;;  %v375_v60 = vld [vmem:[#allocation6 + $0x750] sm:$0xff] }
 0x173   :  { %3645 = vmatpush1.bf16.msra.mxu1 %v6686_v59  ;;  %v251_v59 = vld [vmem:[#allocation6 + $0x370] sm:$0xff]  ;;  %v6751_v2 = vcombine.high %v375_v60, %v379_v61  ;;  %v6750_v8 = vcombine.low %v375_v60, %v379_v61 }
 0x174   :  { %3646 = vmatprep.subr.bf16.mxu1 %v6679_v62  ;;  %v6630_v62 = vcombine.low %v255_v47, %v259_v48  ;;  %v6623_v1 = vcombine.high %v247_v58, %v251_v59  ;;  %v239_v3 = vld [vmem:[#allocation6 + $0x310] sm:$0xff] }
 0x175   :  { %3606 = vmatpush1.bf16.msra.mxu0 %v6550_v4  ;;  %v243_v4 = vld [vmem:[#allocation6 + $0x330] sm:$0xff] }
 0x176   :  { %3607 = vmatprep.subr.bf16.mxu0 %v6543_v6  ;;  %v371_v6 = vld [vmem:[#allocation6 + $0x730] sm:$0xff]  ;;  %v6615_v10 = vcombine.high %v239_v3, %v243_v4 }
 0x177   :  { %3647 = vmatpush1.bf16.msra.mxu1 %v6678_v5  ;;  %v367_v5 = vld [vmem:[#allocation6 + $0x710] sm:$0xff] }
 0x178   :  { %3648 = vmatprep.subr.bf16.mxu1 %v6671_v7  ;;  %v6622_v7 = vcombine.low %v247_v58, %v251_v59  ;;  %v6743_v11 = vcombine.high %v367_v5, %v371_v6  ;;  %v231_v12 = vld [vmem:[#allocation6 + $0x2d0] sm:$0xff]  ;;  %v6742_v18 = vcombine.low %v367_v5, %v371_v6 }
 0x179   :  { %3608 = vmatpush1.bf16.msra.mxu0 %v6542_v14  ;;  %v235_v14 = vld [vmem:[#allocation6 + $0x2f0] sm:$0xff] }
 0x17a   :  { %3609 = vmatprep.subr.bf16.mxu0 %v6535_v16  ;;  %v363_v16 = vld [vmem:[#allocation6 + $0x6f0] sm:$0xff]  ;;  %v6607_v19 = vcombine.high %v231_v12, %v235_v14 }
 0x17b   :  { %3649 = vmatpush1.bf16.msra.mxu1 %v6670_v15  ;;  %v359_v15 = vld [vmem:[#allocation6 + $0x6d0] sm:$0xff] }
 0x17c   :  { %3650 = vmatprep.subr.bf16.mxu1 %v6663_v17  ;;  %v6614_v17 = vcombine.low %v239_v3, %v243_v4  ;;  %v6735_v20 = vcombine.high %v359_v15, %v363_v16  ;;  %v223_v21 = vld [vmem:[#allocation6 + $0x290] sm:$0xff]  ;;  %v6734_v27 = vcombine.low %v359_v15, %v363_v16 }
 0x17d   :  { %3610 = vmatpush1.bf16.msra.mxu0 %v6534_v22  ;;  %v227_v22 = vld [vmem:[#allocation6 + $0x2b0] sm:$0xff] }
 0x17e   :  { %3611 = vmatprep.subr.bf16.mxu0 %v6527_v25  ;;  %v355_v25 = vld [vmem:[#allocation6 + $0x6b0] sm:$0xff]  ;;  %v6599_v29 = vcombine.high %v223_v21, %v227_v22 }
 0x17f   :  { %3651 = vmatpush1.bf16.msra.mxu1 %v6662_v24  ;;  %v351_v24 = vld [vmem:[#allocation6 + $0x690] sm:$0xff] }
 0x180   :  { %3652 = vmatprep.subr.bf16.mxu1 %v6655_v26  ;;  %v6606_v26 = vcombine.low %v231_v12, %v235_v14  ;;  %v6727_v30 = vcombine.high %v351_v24, %v355_v25  ;;  %v215_v31 = vld [vmem:[#allocation6 + $0x250] sm:$0xff]  ;;  %v6726_v37 = vcombine.low %v351_v24, %v355_v25 }
 0x181   :  { %3612 = vmatpush1.bf16.msra.mxu0 %v6526_v63  ;;  %v219_v63 = vld [vmem:[#allocation6 + $0x270] sm:$0xff] }
 0x182   :  { %3613 = vmatprep.subr.bf16.mxu0 %v6519_v35  ;;  %v347_v35 = vld [vmem:[#allocation6 + $0x670] sm:$0xff]  ;;  %v6591_v38 = vcombine.high %v215_v31, %v219_v63 }
 0x183   :  { %3653 = vmatpush1.bf16.msra.mxu1 %v6654_v34  ;;  %v343_v34 = vld [vmem:[#allocation6 + $0x650] sm:$0xff] }
 0x184   :  { %3654 = vmatprep.subr.bf16.mxu1 %v6647_v36  ;;  %v6598_v36 = vcombine.low %v223_v21, %v227_v22  ;;  %v6719_v39 = vcombine.high %v343_v34, %v347_v35  ;;  %v207_v40 = vld [vmem:[#allocation6 + $0x210] sm:$0xff]  ;;  %v6718_v47 = vcombine.low %v343_v34, %v347_v35 }
 0x185   :  { %3614 = vmatpush1.bf16.msra.mxu0 %v6518_v42  ;;  %v211_v42 = vld [vmem:[#allocation6 + $0x230] sm:$0xff] }
 0x186   :  { %3615 = vmatprep.subr.bf16.mxu0 %v6639_v45  ;;  %v339_v45 = vld [vmem:[#allocation6 + $0x630] sm:$0xff]  ;;  %v6583_v48 = vcombine.high %v207_v40, %v211_v42 }
 0x187   :  { %3655 = vmatpush1.bf16.msra.mxu1 %v6646_v43  ;;  %v335_v43 = vld [vmem:[#allocation6 + $0x610] sm:$0xff] }
 0x188   :  { %3656 = vmatprep.subr.bf16.mxu1 %v6767_v46  ;;  %v6590_v46 = vcombine.low %v215_v31, %v219_v63  ;;  %v6711_v49 = vcombine.high %v335_v43, %v339_v45  ;;  %v455_v52 = vld [vmem:[#allocation6 + $0x9d0] sm:$0xff]  ;;  %v6710_v58 = vcombine.low %v335_v43, %v339_v45 }
 0x189   :  { %3616 = vmatpush2.bf16.msra.mxu0 %v6638_v54  ;;  %v459_v54 = vld [vmem:[#allocation6 + $0x9f0] sm:$0xff] }
 0x18a   :  { %3617 = vmatprep.subr.bf16.mxu0 %v6631_v56  ;;  %v587_v56 = vld [vmem:[#allocation6 + $0xdf0] sm:$0xff]  ;;  %v6831_v59 = vcombine.high %v455_v52, %v459_v54 }
 0x18b   :  { %3657 = vmatpush2.bf16.msra.mxu1 %v6766_v55  ;;  %v583_v55 = vld [vmem:[#allocation6 + $0xdd0] sm:$0xff] }
 0x18c   :  { %3658 = vmatprep.subr.bf16.mxu1 %v6759_v57  ;;  %v6582_v57 = vcombine.low %v207_v40, %v211_v42  ;;  %v6959_v60 = vcombine.high %v583_v55, %v587_v56  ;;  %v447_v61 = vld [vmem:[#allocation6 + $0x990] sm:$0xff]  ;;  %v6958_v3 = vcombine.low %v583_v55, %v587_v56 }
 0x18d   :  { %3618 = vmatpush2.bf16.msra.mxu0 %v6630_v62  ;;  %v451_v62 = vld [vmem:[#allocation6 + $0x9b0] sm:$0xff] }
 0x18e   :  { %3619 = vmatprep.subr.bf16.mxu0 %v6623_v1  ;;  %v579_v1 = vld [vmem:[#allocation6 + $0xdb0] sm:$0xff]  ;;  %v6823_v4 = vcombine.high %v447_v61, %v451_v62  ;;  %v6822_v15 = vcombine.low %v447_v61, %v451_v62 }
 0x18f   :  { %3659 = vmatpush2.bf16.msra.mxu1 %v6758_v0  ;;  %v575_v0 = vld [vmem:[#allocation6 + $0xd90] sm:$0xff] }
 0x190   :  { %3660 = vmatprep.subr.bf16.mxu1 %v6751_v2  ;;  %v6830_v2 = vcombine.low %v455_v52, %v459_v54  ;;  %v6951_v5 = vcombine.high %v575_v0, %v579_v1  ;;  %v439_v6 = vld [vmem:[#allocation6 + $0x950] sm:$0xff] }
 0x191   :  { %3620 = vmatpush2.bf16.msra.mxu0 %v6622_v7  ;;  %v443_v7 = vld [vmem:[#allocation6 + $0x970] sm:$0xff] }
 0x192   :  { %3621 = vmatprep.subr.bf16.mxu0 %v6615_v10  ;;  %v567_v10 = vld [vmem:[#allocation6 + $0xd50] sm:$0xff]  ;;  %v6814_v31 = vcombine.low %v439_v6, %v443_v7 }
 0x193   :  { %3661 = vmatpush2.bf16.msra.mxu1 %v6750_v8  ;;  %v431_v24 = vld [vmem:[#allocation6 + $0x910] sm:$0xff] }
 0x194   :  { %3662 = vmatprep.subr.bf16.mxu1 %v6743_v11  ;;  %v571_v11 = vld [vmem:[#allocation6 + $0xd70] sm:$0xff] }
 0x195   :  { %3622 = vmatpush2.bf16.msra.mxu0 %v6614_v17  ;;  %v6950_v17 = vcombine.low %v575_v0, %v579_v1  ;;  %v6943_v22 = vcombine.high %v567_v10, %v571_v11  ;;  %v435_v25 = vld [vmem:[#allocation6 + $0x930] sm:$0xff] }
 0x196   :  { %3623 = vmatprep.subr.bf16.mxu0 %v6607_v19  ;;  %v6807_v34 = vcombine.high %v431_v24, %v435_v25  ;;  %v551_v40 = vld [vmem:[#allocation6 + $0xcd0] sm:$0xff]  ;;  %v6806_v43 = vcombine.low %v431_v24, %v435_v25 }
 0x197   :  { %3663 = vmatpush2.bf16.msra.mxu1 %v6742_v18  ;;  %v6815_v18 = vcombine.high %v439_v6, %v443_v7  ;;  %v555_v42 = vld [vmem:[#allocation6 + $0xcf0] sm:$0xff] }
 0x198   :  { %3664 = vmatprep.subr.bf16.mxu1 %v6735_v20  ;;  %v543_v52 = vld [vmem:[#allocation6 + $0xc90] sm:$0xff]  ;;  %v6926_v56 = vcombine.low %v551_v40, %v555_v42 }
 0x199   :  { %3624 = vmatpush2.bf16.msra.mxu0 %v6606_v26  ;;  %v559_v26 = vld [vmem:[#allocation6 + $0xd10] sm:$0xff] }
 0x19a   :  { %3625 = vmatprep.subr.bf16.mxu0 %v6599_v29  ;;  %v547_v54 = vld [vmem:[#allocation6 + $0xcb0] sm:$0xff] }
 0x19b   :  { %3665 = vmatpush2.bf16.msra.mxu1 %v6734_v27  ;;  %v563_v27 = vld [vmem:[#allocation6 + $0xd30] sm:$0xff]  ;;  %v6918_v1 = vcombine.low %v543_v52, %v547_v54 }
 0x19c   :  { %3666 = vmatprep.subr.bf16.mxu1 %v6727_v30  ;;  %v6934_v45 = vcombine.low %v559_v26, %v563_v27  ;;  %v535_v61 = vld [vmem:[#allocation6 + $0xc50] sm:$0xff] }
 0x19d   :  { %3626 = vmatpush2.bf16.msra.mxu0 %v6598_v36  ;;  %v539_v62 = vld [vmem:[#allocation6 + $0xc70] sm:$0xff] }
 0x19e   :  { %3627 = vmatprep.subr.bf16.mxu0 %v6591_v38  ;;  %v423_v38 = vld [vmem:[#allocation6 + $0x8d0] sm:$0xff] }
 0x19f   :  { %3667 = vmatpush2.bf16.msra.mxu1 %v6726_v37  ;;  %v6935_v37 = vcombine.high %v559_v26, %v563_v27  ;;  %v527_v6 = vld [vmem:[#allocation6 + $0xc10] sm:$0xff] }
 0x1a0   :  { %3668 = vmatprep.subr.bf16.mxu1 %v6719_v39  ;;  %v427_v39 = vld [vmem:[#allocation6 + $0x8f0] sm:$0xff] }
 0x1a1   :  { %3628 = vmatpush2.bf16.msra.mxu0 %v6590_v46  ;;  %v6799_v46 = vcombine.high %v423_v38, %v427_v39  ;;  %v6798_v55 = vcombine.low %v423_v38, %v427_v39  ;;  %v531_v7 = vld [vmem:[#allocation6 + $0xc30] sm:$0xff] }
 0x1a2   :  { %3629 = vmatprep.subr.bf16.mxu0 %v6583_v48  ;;  %v415_v48 = vld [vmem:[#allocation6 + $0x890] sm:$0xff] }
 0x1a3   :  { %3669 = vmatpush2.bf16.msra.mxu1 %v6718_v47  ;;  %v6927_v47 = vcombine.high %v551_v40, %v555_v42  ;;  %v511_v24 = vld [vmem:[#allocation6 + $0xb90] sm:$0xff] }
 0x1a4   :  { %3670 = vmatprep.subr.bf16.mxu1 %v6711_v49  ;;  %v419_v49 = vld [vmem:[#allocation6 + $0x8b0] sm:$0xff] }
 0x1a5   :  { %3630 = vmatpush2.bf16.msra.mxu0 %v6582_v57  ;;  %v6791_v57 = vcombine.high %v415_v48, %v419_v49  ;;  %v6790_v0 = vcombine.low %v415_v48, %v419_v49  ;;  %v515_v25 = vld [vmem:[#allocation6 + $0xbb0] sm:$0xff] }
 0x1a6   :  { %3681 = vmatprep.subr.bf16.mxu0 %v6831_v59  ;;  %v407_v59 = vld [vmem:[#allocation6 + $0x850] sm:$0xff]  ;;  %v6886_v38 = vcombine.low %v511_v24, %v515_v25 }
 0x1a7   :  { %3671 = vmatpush2.bf16.msra.mxu1 %v6710_v58  ;;  %v6919_v58 = vcombine.high %v543_v52, %v547_v54  ;;  %v643_v26 = vld [vmem:[#allocation6 + $0xfb0] sm:$0xff] }
 0x1a8   :  { %3722 = vmatprep.subr.bf16.mxu1 %v6959_v60  ;;  %v3387_v8 = vpop.f32.mrf.mxu0  ;;  %3632 = vmatmul.mubr.bf16.vlgmr.msra.gmra.mxu0 %v8133_v23  ;;  %v411_v60 = vld [vmem:[#allocation6 + $0x870] sm:$0xff] }
 0x1a9   :  { %v3388_v12 = vadd.f32 %v3387_v8, %v8164_v41  ;;  %3682 = vmatpush1.bf16.msra.mxu0 %v6830_v2  ;;  %3713 = vmatprep.mubr.bf16.mxu0 %v8136_v33  ;;  %v6783_v2 = vcombine.high %v407_v59, %v411_v60  ;;  %v6782_v8 = vcombine.low %v407_v59, %v411_v60 }
 0x1aa   :  { %v3428_v14 = vpop.f32.mrf.mxu1  ;;  %3673 = vmatmul.mubr.bf16.vlgmr.msra.gmra.mxu1 %v8140_v28  ;;  %v3389_v16 = vpop.f32.mrf.mxu0  ;;  %3683 = vmatprep.subr.bf16.mxu0 %v6823_v4  ;;  %v399_v4 = vld [vmem:[#allocation6 + $0x810] sm:$0xff] }
 0x1ab   :  { %3723 = vmatpush1.bf16.msra.mxu1 %v6958_v3  ;;  %v8173_v19 = vadd.f32 %v3428_v14, %v3388_v12  ;;  %v3390_v20 = vadd.f32 %v3389_v16, %v8167_v51  ;;  %3754 = vmatprep.mubr.bf16.mxu1 %v8145_v53  ;;  %v6942_v51 = vcombine.low %v567_v10, %v571_v11  ;;  %v519_v14 = vld [vmem:[#allocation6 + $0xbd0] sm:$0xff] }
 0x1ac   :  { %v3430_v21 = vpop.f32.mrf.mxu1  ;;  %3724 = vmatprep.subr.bf16.mxu1 %v6951_v5  ;;  %v3391_v41 = vpop.f32.mrf.mxu0  ;;  %v6911_v3 = vcombine.high %v535_v61, %v539_v62  ;;  %v403_v5 = vld [vmem:[#allocation6 + $0x830] sm:$0xff]  ;;  %v6910_v10 = vcombine.low %v535_v61, %v539_v62  ;;  %v6903_v12 = vcombine.high %v527_v6, %v531_v7 }
 0x1ad   :  { %v8178_v29 = vadd.f32 %v3430_v21, %v3390_v20  ;;  %3684 = vmatpush1.bf16.msra.mxu0 %v6822_v15  ;;  %v6775_v11 = vcombine.high %v399_v4, %v403_v5  ;;  %v523_v15 = vld [vmem:[#allocation6 + $0xbf0] sm:$0xff]  ;;  %v6902_v20 = vcombine.low %v527_v6, %v531_v7 }
 0x1ae   :  { %v3432_v30 = vpop.f32.mrf.mxu1  ;;  %v3392_v63 = vpop.f32.mrf.mxu0  ;;  %3685 = vmatprep.subr.bf16.mxu0 %v6815_v18  ;;  %v647_v16 = vld [vmem:[#allocation6 + $0xfd0] sm:$0xff]  ;;  %v6774_v18 = vcombine.low %v399_v4, %v403_v5  ;;  %v6895_v21 = vcombine.high %v519_v14, %v523_v15  ;;  %v6894_v27 = vcombine.low %v519_v14, %v523_v15 }
 0x1af   :  { %3725 = vmatpush1.bf16.msra.mxu1 %v6950_v17  ;;  %v3935_v35 = vcombine.low %v8173_v19, %v8178_v29  ;;  %v651_v17 = vld [vmem:[#allocation6 + $0xff0] sm:$0xff]  ;;  %v548_v19 = vld [vmem:[#allocation6 + $0xcb8] sm:$0xff] }
 0x1b0   :  { %v3433_v36 = vpop.f32.mrf.mxu1  ;;  %3726 = vmatprep.subr.bf16.mxu1 %v6943_v22  ;;  %v7023_v22 = vcombine.high %v647_v16, %v651_v17  ;;  %v639_v41 = vld [vmem:[#allocation6 + $0xf90] sm:$0xff]  ;;  %v7022_v30 = vcombine.low %v647_v16, %v651_v17 }
 0x1b1   :  { %3686 = vmatpush1.bf16.msra.mxu0 %v6814_v31  ;;  %v6887_v31 = vcombine.high %v511_v24, %v515_v25  ;;  %v7015_v63 = vcombine.high %v639_v41, %v643_v26  ;;  %v631_v36 = vld [vmem:[#allocation6 + $0xf50] sm:$0xff]  ;;  %v7014_v39 = vcombine.low %v639_v41, %v643_v26 }
 0x1b2   :  { %3687 = vmatprep.subr.bf16.mxu0 %v6807_v34  ;;  %v507_v34 = vld [vmem:[#allocation6 + $0xb70] sm:$0xff] }
 0x1b3   :  { %3727 = vmatpush1.bf16.msra.mxu1 %v6942_v51  ;;  %v503_v51 = vld [vmem:[#allocation6 + $0xb50] sm:$0xff] }
 0x1b4   :  { %3728 = vmatprep.subr.bf16.mxu1 %v6935_v37  ;;  %v635_v37 = vld [vmem:[#allocation6 + $0xf70] sm:$0xff]  ;;  %v6879_v40 = vcombine.high %v503_v51, %v507_v34  ;;  %v6878_v48 = vcombine.low %v503_v51, %v507_v34 }
 0x1b5   :  { %3688 = vmatpush1.bf16.msra.mxu0 %v6806_v43  ;;  %v7007_v42 = vcombine.high %v631_v36, %v635_v37  ;;  %v495_v43 = vld [vmem:[#allocation6 + $0xb10] sm:$0xff]  ;;  %v7006_v49 = vcombine.low %v631_v36, %v635_v37 }
 0x1b6   :  { %3689 = vmatprep.subr.bf16.mxu0 %v6799_v46  ;;  %v623_v46 = vld [vmem:[#allocation6 + $0xf10] sm:$0xff] }
 0x1b7   :  { %3729 = vmatpush1.bf16.msra.mxu1 %v6934_v45  ;;  %v499_v45 = vld [vmem:[#allocation6 + $0xb30] sm:$0xff] }
 0x1b8   :  { %3730 = vmatprep.subr.bf16.mxu1 %v6927_v47  ;;  %v627_v47 = vld [vmem:[#allocation6 + $0xf30] sm:$0xff]  ;;  %v6871_v52 = vcombine.high %v495_v43, %v499_v45  ;;  %v6870_v59 = vcombine.low %v495_v43, %v499_v45 }
 0x1b9   :  { %3690 = vmatpush1.bf16.msra.mxu0 %v6798_v55  ;;  %v6999_v54 = vcombine.high %v623_v46, %v627_v47  ;;  %v487_v55 = vld [vmem:[#allocation6 + $0xad0] sm:$0xff]  ;;  %v6998_v60 = vcombine.low %v623_v46, %v627_v47 }
 0x1ba   :  { %3691 = vmatprep.subr.bf16.mxu0 %v6791_v57  ;;  %v615_v57 = vld [vmem:[#allocation6 + $0xed0] sm:$0xff] }
 0x1bb   :  { %3731 = vmatpush1.bf16.msra.mxu1 %v6926_v56  ;;  %v491_v56 = vld [vmem:[#allocation6 + $0xaf0] sm:$0xff] }
 0x1bc   :  { %3732 = vmatprep.subr.bf16.mxu1 %v6919_v58  ;;  %v619_v58 = vld [vmem:[#allocation6 + $0xef0] sm:$0xff]  ;;  %v6863_v61 = vcombine.high %v487_v55, %v491_v56  ;;  %v6862_v4 = vcombine.low %v487_v55, %v491_v56  ;;  %v316_v55 = vld [vmem:[#allocation6 + $0x578] sm:$0xff] }
 0x1bd   :  { %3692 = vmatpush1.bf16.msra.mxu0 %v6790_v0  ;;  %v6991_v62 = vcombine.high %v615_v57, %v619_v58  ;;  %v479_v0 = vld [vmem:[#allocation6 + $0xa90] sm:$0xff]  ;;  %v6990_v5 = vcombine.low %v615_v57, %v619_v58 }
 0x1be   :  { %3693 = vmatprep.subr.bf16.mxu0 %v6783_v2  ;;  %v607_v2 = vld [vmem:[#allocation6 + $0xe90] sm:$0xff] }
 0x1bf   :  { %3733 = vmatpush1.bf16.msra.mxu1 %v6918_v1  ;;  %v483_v1 = vld [vmem:[#allocation6 + $0xab0] sm:$0xff] }
 0x1c0   :  { %3734 = vmatprep.subr.bf16.mxu1 %v6911_v3  ;;  %v611_v3 = vld [vmem:[#allocation6 + $0xeb0] sm:$0xff]  ;;  %v6855_v6 = vcombine.high %v479_v0, %v483_v1  ;;  %v6854_v14 = vcombine.low %v479_v0, %v483_v1  ;;  %v176_v1 = vld [vmem:[#allocation6 + $0x118] sm:$0xff] }
 0x1c1   :  { %3694 = vmatpush1.bf16.msra.mxu0 %v6782_v8  ;;  %v6983_v7 = vcombine.high %v607_v2, %v611_v3  ;;  %v471_v8 = vld [vmem:[#allocation6 + $0xa50] sm:$0xff]  ;;  %v6982_v15 = vcombine.low %v607_v2, %v611_v3  ;;  %v180_v2 = vld [vmem:[#allocation6 + $0x138] sm:$0xff] }
 0x1c2   :  { %3695 = vmatprep.subr.bf16.mxu0 %v6775_v11  ;;  %v599_v11 = vld [vmem:[#allocation6 + $0xe50] sm:$0xff] }
 0x1c3   :  { %3735 = vmatpush1.bf16.msra.mxu1 %v6910_v10  ;;  %v475_v10 = vld [vmem:[#allocation6 + $0xa70] sm:$0xff] }
 0x1c4   :  { %3736 = vmatprep.subr.bf16.mxu1 %v6903_v12  ;;  %v603_v12 = vld [vmem:[#allocation6 + $0xe70] sm:$0xff]  ;;  %v6847_v16 = vcombine.high %v471_v8, %v475_v10  ;;  %v6846_v24 = vcombine.low %v471_v8, %v475_v10 }
 0x1c5   :  { %3696 = vmatpush1.bf16.msra.mxu0 %v6774_v18  ;;  %v6975_v17 = vcombine.high %v599_v11, %v603_v12  ;;  %v463_v18 = vld [vmem:[#allocation6 + $0xa10] sm:$0xff]  ;;  %v6974_v25 = vcombine.low %v599_v11, %v603_v12  ;;  %v6553_v12 = vcombine.high %v176_v1, %v180_v2 }
 0x1c6   :  { %3697 = vmatprep.subr.bf16.mxu0 %v6895_v21  ;;  %v591_v21 = vld [vmem:[#allocation6 + $0xe10] sm:$0xff] }
 0x1c7   :  { %3737 = vmatpush1.bf16.msra.mxu1 %v6902_v20  ;;  %v467_v20 = vld [vmem:[#allocation6 + $0xa30] sm:$0xff] }
 0x1c8   :  { %3738 = vmatprep.subr.bf16.mxu1 %v7023_v22  ;;  %v595_v22 = vld [vmem:[#allocation6 + $0xe30] sm:$0xff]  ;;  %v6839_v41 = vcombine.high %v463_v18, %v467_v20  ;;  %v6838_v51 = vcombine.low %v463_v18, %v467_v20  ;;  %v300_v18 = vld [vmem:[#allocation6 + $0x4f8] sm:$0xff]  ;;  %v6552_v20 = vcombine.low %v176_v1, %v180_v2 }
 0x1c9   :  { %3698 = vmatpush2.bf16.msra.mxu0 %v6894_v27  ;;  %v6967_v26 = vcombine.high %v591_v21, %v595_v22  ;;  %v200_v27 = vld [vmem:[#allocation6 + $0x1d8] sm:$0xff]  ;;  %v6966_v34 = vcombine.low %v591_v21, %v595_v22 }
 0x1ca   :  { %3699 = vmatprep.subr.bf16.mxu0 %v6887_v31  ;;  %v328_v31 = vld [vmem:[#allocation6 + $0x5d8] sm:$0xff] }
 0x1cb   :  { %3739 = vmatpush2.bf16.msra.mxu1 %v7022_v30  ;;  %v204_v30 = vld [vmem:[#allocation6 + $0x1f8] sm:$0xff] }
 0x1cc   :  { %3740 = vmatprep.subr.bf16.mxu1 %v7015_v63  ;;  %v332_v63 = vld [vmem:[#allocation6 + $0x5f8] sm:$0xff]  ;;  %v6577_v36 = vcombine.high %v200_v27, %v204_v30  ;;  %v6576_v43 = vcombine.low %v200_v27, %v204_v30 }
 0x1cd   :  { %3700 = vmatpush2.bf16.msra.mxu0 %v6886_v38  ;;  %v6705_v37 = vcombine.high %v328_v31, %v332_v63  ;;  %v192_v38 = vld [vmem:[#allocation6 + $0x198] sm:$0xff]  ;;  %v6704_v45 = vcombine.low %v328_v31, %v332_v63 }
 0x1ce   :  { %3701 = vmatprep.subr.bf16.mxu0 %v6879_v40  ;;  %v320_v40 = vld [vmem:[#allocation6 + $0x598] sm:$0xff] }
 0x1cf   :  { %3741 = vmatpush2.bf16.msra.mxu1 %v7014_v39  ;;  %v196_v39 = vld [vmem:[#allocation6 + $0x1b8] sm:$0xff] }
 0x1d0   :  { %3742 = vmatprep.subr.bf16.mxu1 %v7007_v42  ;;  %v324_v42 = vld [vmem:[#allocation6 + $0x5b8] sm:$0xff]  ;;  %v6569_v46 = vcombine.high %v192_v38, %v196_v39  ;;  %v6568_v57 = vcombine.low %v192_v38, %v196_v39 }
 0x1d1   :  { %3702 = vmatpush2.bf16.msra.mxu0 %v6878_v48  ;;  %v6697_v47 = vcombine.high %v320_v40, %v324_v42  ;;  %v184_v48 = vld [vmem:[#allocation6 + $0x158] sm:$0xff] }
 0x1d2   :  { %3703 = vmatprep.subr.bf16.mxu0 %v6871_v52  ;;  %v256_v1 = vld [vmem:[#allocation6 + $0x398] sm:$0xff] }
 0x1d3   :  { %3743 = vmatpush2.bf16.msra.mxu1 %v7006_v49  ;;  %v188_v49 = vld [vmem:[#allocation6 + $0x178] sm:$0xff] }
 0x1d4   :  { %3744 = vmatprep.subr.bf16.mxu1 %v6999_v54  ;;  %v312_v54 = vld [vmem:[#allocation6 + $0x558] sm:$0xff]  ;;  %v6560_v8 = vcombine.low %v184_v48, %v188_v49 }
 0x1d5   :  { %3704 = vmatpush2.bf16.msra.mxu0 %v6870_v59  ;;  %v6689_v0 = vcombine.high %v312_v54, %v316_v55  ;;  %v6688_v11 = vcombine.low %v312_v54, %v316_v55  ;;  %v264_v55 = vld [vmem:[#allocation6 + $0x3d8] sm:$0xff] }
 0x1d6   :  { %3705 = vmatprep.subr.bf16.mxu0 %v6863_v61  ;;  %v6561_v61 = vcombine.high %v184_v48, %v188_v49  ;;  %v260_v2 = vld [vmem:[#allocation6 + $0x3b8] sm:$0xff] }
 0x1d7   :  { %3745 = vmatpush2.bf16.msra.mxu1 %v6998_v60  ;;  %v6696_v60 = vcombine.low %v320_v40, %v324_v42 }
 0x1d8   :  { %3746 = vmatprep.subr.bf16.mxu1 %v6991_v62 }
 0x1d9   :  { %3706 = vmatpush2.bf16.msra.mxu0 %v6862_v4 }
 0x1da   :  { %3707 = vmatprep.subr.bf16.mxu0 %v6855_v6  ;;  %v308_v6 = vld [vmem:[#allocation6 + $0x538] sm:$0xff] }
 0x1db   :  { %3747 = vmatpush2.bf16.msra.mxu1 %v6990_v5  ;;  %v304_v5 = vld [vmem:[#allocation6 + $0x518] sm:$0xff] }
 0x1dc   :  { %3748 = vmatprep.subr.bf16.mxu1 %v6983_v7 }
 0x1dd   :  { %3708 = vmatpush2.bf16.msra.mxu0 %v6854_v14 }
 0x1de   :  { %3709 = vmatprep.subr.bf16.mxu0 %v6847_v16  ;;  %v168_v16 = vld [vmem:[#allocation6 + $0xd8] sm:$0xff] }
 0x1df   :  { %3749 = vmatpush2.bf16.msra.mxu1 %v6982_v15  ;;  %v6681_v15 = vcombine.high %v304_v5, %v308_v6 }
 0x1e0   :  { %3750 = vmatprep.subr.bf16.mxu1 %v6975_v17  ;;  %v296_v17 = vld [vmem:[#allocation6 + $0x4d8] sm:$0xff] }
 0x1e1   :  { %3710 = vmatpush2.bf16.msra.mxu0 %v6846_v24  ;;  %v6673_v22 = vcombine.high %v296_v17, %v300_v18  ;;  %v160_v24 = vld [vmem:[#allocation6 + $0x98] sm:$0xff]  ;;  %v6672_v30 = vcombine.low %v296_v17, %v300_v18 }
 0x1e2   :  { %3711 = vmatprep.subr.bf16.mxu0 %v6839_v41  ;;  %v288_v41 = vld [vmem:[#allocation6 + $0x498] sm:$0xff] }
 0x1e3   :  { %3751 = vmatpush2.bf16.msra.mxu1 %v6974_v25  ;;  %v164_v25 = vld [vmem:[#allocation6 + $0xb8] sm:$0xff] }
 0x1e4   :  { %3752 = vmatprep.subr.bf16.mxu1 %v6967_v26  ;;  %v292_v26 = vld [vmem:[#allocation6 + $0x4b8] sm:$0xff]  ;;  %v6537_v31 = vcombine.high %v160_v24, %v164_v25  ;;  %v6536_v38 = vcombine.low %v160_v24, %v164_v25 }
 0x1e5   :  { %3712 = vmatpush2.bf16.msra.mxu0 %v6838_v51  ;;  %v6665_v63 = vcombine.high %v288_v41, %v292_v26  ;;  %v152_v51 = vld [vmem:[#allocation6 + $0x58] sm:$0xff]  ;;  %v6664_v39 = vcombine.low %v288_v41, %v292_v26 }
 0x1e6   :  { %3763 = vmatprep.subr.bf16.mxu0 %v6577_v36  ;;  %v280_v36 = vld [vmem:[#allocation6 + $0x458] sm:$0xff] }
 0x1e7   :  { %3753 = vmatpush2.bf16.msra.mxu1 %v6966_v34  ;;  %v156_v34 = vld [vmem:[#allocation6 + $0x78] sm:$0xff] }
 0x1e8   :  { %3804 = vmatprep.subr.bf16.mxu1 %v6705_v37  ;;  %v3469_v52 = vpop.f32.mrf.mxu0  ;;  %3714 = vmatmul.mubr.bf16.vlgmr.msra.gmra.mxu0 %v8127_v32  ;;  %v284_v37 = vld [vmem:[#allocation6 + $0x478] sm:$0xff]  ;;  %v6529_v40 = vcombine.high %v152_v51, %v156_v34  ;;  %v6528_v48 = vcombine.low %v152_v51, %v156_v34 }
 0x1e9   :  { %3764 = vmatpush1.bf16.msra.mxu0 %v6576_v43  ;;  %3795 = vmatprep.mubr.bf16.mxu0 %v8114_v9  ;;  %v172_v9 = vld [vmem:[#allocation6 + $0xf8] sm:$0xff]  ;;  %v6657_v42 = vcombine.high %v280_v36, %v284_v37  ;;  %v6656_v49 = vcombine.low %v280_v36, %v284_v37 }
 0x1ea   :  { %v3510_v56 = vpop.f32.mrf.mxu1  ;;  %3755 = vmatmul.mubr.bf16.vlgmr.msra.gmra.mxu1 %v8152_v50  ;;  %v3471_v59 = vpop.f32.mrf.mxu0  ;;  %3765 = vmatprep.subr.bf16.mxu0 %v6569_v46  ;;  %v6545_v21 = vcombine.high %v168_v16, %v172_v9  ;;  %v6544_v27 = vcombine.low %v168_v16, %v172_v9  ;;  %v144_v43 = vld [vmem:[#allocation6 + $0x18] sm:$0xff]  ;;  %v6632_v16 = vcombine.low %v256_v1, %v260_v2 }
 0x1eb   :  { %v8184_v58 = vadd.f32 %v3510_v56, %v3469_v52  ;;  %3805 = vmatpush1.bf16.msra.mxu1 %v6704_v45  ;;  %3836 = vmatprep.mubr.bf16.mxu1 %v8119_v13  ;;  %v6680_v13 = vcombine.low %v304_v5, %v308_v6  ;;  %v148_v45 = vld [vmem:[#allocation6 + $0x38] sm:$0xff] }
 0x1ec   :  { %v3512_v62 = vpop.f32.mrf.mxu1  ;;  %3806 = vmatprep.subr.bf16.mxu1 %v6697_v47  ;;  %v3473_v4 = vpop.f32.mrf.mxu0  ;;  %v272_v46 = vld [vmem:[#allocation6 + $0x418] sm:$0xff]  ;;  %v6521_v52 = vcombine.high %v144_v43, %v148_v45 }
 0x1ed   :  { %v8187_v3 = vadd.f32 %v3512_v62, %v3471_v59  ;;  %3766 = vmatpush1.bf16.msra.mxu0 %v6568_v57  ;;  %v276_v47 = vld [vmem:[#allocation6 + $0x438] sm:$0xff] }
 0x1ee   :  { %v3514_v7 = vpop.f32.mrf.mxu1  ;;  %v3474_v10 = vpop.f32.mrf.mxu0  ;;  %3767 = vmatprep.subr.bf16.mxu0 %v6561_v61  ;;  %v6649_v54 = vcombine.high %v272_v46, %v276_v47  ;;  %v268_v56 = vld [vmem:[#allocation6 + $0x3f8] sm:$0xff]  ;;  %v6648_v61 = vcombine.low %v272_v46, %v276_v47 }
 0x1ef   :  { %3807 = vmatpush1.bf16.msra.mxu1 %v6696_v60  ;;  %v392_v57 = vld [vmem:[#allocation6 + $0x7d8] sm:$0xff]  ;;  %v6520_v60 = vcombine.low %v144_v43, %v148_v45  ;;  %v6641_v62 = vcombine.high %v264_v55, %v268_v56  ;;  %v6640_v6 = vcombine.low %v264_v55, %v268_v56 }
 0x1f0   :  { %v3515_v14 = vpop.f32.mrf.mxu1  ;;  %3808 = vmatprep.subr.bf16.mxu1 %v6689_v0  ;;  %v396_v59 = vld [vmem:[#allocation6 + $0x7f8] sm:$0xff] }
 0x1f1   :  { %3768 = vmatpush1.bf16.msra.mxu0 %v6560_v8  ;;  %v6769_v0 = vcombine.high %v392_v57, %v396_v59  ;;  %v384_v4 = vld [vmem:[#allocation6 + $0x798] sm:$0xff]  ;;  %v6768_v7 = vcombine.low %v392_v57, %v396_v59  ;;  %v6633_v8 = vcombine.high %v256_v1, %v260_v2 }
 0x1f2   :  { %3769 = vmatprep.subr.bf16.mxu0 %v6553_v12  ;;  %v388_v5 = vld [vmem:[#allocation6 + $0x7b8] sm:$0xff] }
 0x1f3   :  { %3809 = vmatpush1.bf16.msra.mxu1 %v6688_v11  ;;  %v6761_v10 = vcombine.high %v384_v4, %v388_v5  ;;  %v248_v11 = vld [vmem:[#allocation6 + $0x358] sm:$0xff]  ;;  %v6760_v9 = vcombine.low %v384_v4, %v388_v5 }
 0x1f4   :  { %3810 = vmatprep.subr.bf16.mxu1 %v6681_v15  ;;  %v252_v12 = vld [vmem:[#allocation6 + $0x378] sm:$0xff] }
 0x1f5   :  { %3770 = vmatpush1.bf16.msra.mxu0 %v6552_v20  ;;  %v376_v14 = vld [vmem:[#allocation6 + $0x758] sm:$0xff]  ;;  %v6625_v17 = vcombine.high %v248_v11, %v252_v12  ;;  %v6624_v24 = vcombine.low %v248_v11, %v252_v12 }
 0x1f6   :  { %3771 = vmatprep.subr.bf16.mxu0 %v6545_v21  ;;  %v380_v15 = vld [vmem:[#allocation6 + $0x778] sm:$0xff] }
 0x1f7   :  { %3811 = vmatpush1.bf16.msra.mxu1 %v6680_v13  ;;  %v6753_v18 = vcombine.high %v376_v14, %v380_v15  ;;  %v240_v20 = vld [vmem:[#allocation6 + $0x318] sm:$0xff]  ;;  %v6752_v25 = vcombine.low %v376_v14, %v380_v15 }
 0x1f8   :  { %3812 = vmatprep.subr.bf16.mxu1 %v6673_v22  ;;  %v244_v13 = vld [vmem:[#allocation6 + $0x338] sm:$0xff] }
 0x1f9   :  { %3772 = vmatpush1.bf16.msra.mxu0 %v6544_v27  ;;  %v368_v21 = vld [vmem:[#allocation6 + $0x718] sm:$0xff]  ;;  %v6617_v41 = vcombine.high %v240_v20, %v244_v13  ;;  %v6616_v51 = vcombine.low %v240_v20, %v244_v13  ;;  %v8028_v20 = vmov 1983009808  }
 0x1fa   :  { %3773 = vmatprep.subr.bf16.mxu0 %v6537_v31  ;;  %v372_v22 = vld [vmem:[#allocation6 + $0x738] sm:$0xff]  ;;  %v3938_v13 = vunpack.c.l.s4 %v8028_v20 }
 0x1fb   :  { %3813 = vmatpush1.bf16.msra.mxu1 %v6672_v30  ;;  %v6745_v26 = vcombine.high %v368_v21, %v372_v22  ;;  %v232_v27 = vld [vmem:[#allocation6 + $0x2d8] sm:$0xff]  ;;  %v6744_v34 = vcombine.low %v368_v21, %v372_v22 }
 0x1fc   :  { %3814 = vmatprep.subr.bf16.mxu1 %v6665_v63  ;;  %v236_v30 = vld [vmem:[#allocation6 + $0x2f8] sm:$0xff] }
 0x1fd   :  { %3774 = vmatpush1.bf16.msra.mxu0 %v6536_v38  ;;  %v360_v31 = vld [vmem:[#allocation6 + $0x6d8] sm:$0xff]  ;;  %v6609_v36 = vcombine.high %v232_v27, %v236_v30  ;;  %v6608_v43 = vcombine.low %v232_v27, %v236_v30 }
 0x1fe   :  { %3775 = vmatprep.subr.bf16.mxu0 %v6529_v40  ;;  %v364_v63 = vld [vmem:[#allocation6 + $0x6f8] sm:$0xff] }
 0x1ff   :  { %3815 = vmatpush1.bf16.msra.mxu1 %v6664_v39  ;;  %v6737_v37 = vcombine.high %v360_v31, %v364_v63  ;;  %v224_v38 = vld [vmem:[#allocation6 + $0x298] sm:$0xff]  ;;  %v6736_v45 = vcombine.low %v360_v31, %v364_v63  ;;  %v3939_v63 = vunpack.c.0.s8 %v3938_v13 }
 0x200   :  { %3816 = vmatprep.subr.bf16.mxu1 %v6657_v42  ;;  %v228_v39 = vld [vmem:[#allocation6 + $0x2b8] sm:$0xff] }
 0x201   :  { %3776 = vmatpush1.bf16.msra.mxu0 %v6528_v48  ;;  %v352_v40 = vld [vmem:[#allocation6 + $0x698] sm:$0xff]  ;;  %v6601_v46 = vcombine.high %v224_v38, %v228_v39  ;;  %v6600_v55 = vcombine.low %v224_v38, %v228_v39 }
 0x202   :  { %3777 = vmatprep.subr.bf16.mxu0 %v6521_v52  ;;  %v356_v42 = vld [vmem:[#allocation6 + $0x6b8] sm:$0xff] }
 0x203   :  { %3817 = vmatpush1.bf16.msra.mxu1 %v6656_v49  ;;  %v6729_v47 = vcombine.high %v352_v40, %v356_v42  ;;  %v216_v48 = vld [vmem:[#allocation6 + $0x258] sm:$0xff]  ;;  %v6728_v56 = vcombine.low %v352_v40, %v356_v42 }
 0x204   :  { %3818 = vmatprep.subr.bf16.mxu1 %v6649_v54  ;;  %v220_v49 = vld [vmem:[#allocation6 + $0x278] sm:$0xff] }
 0x205   :  { %3778 = vmatpush1.bf16.msra.mxu0 %v6520_v60  ;;  %v344_v52 = vld [vmem:[#allocation6 + $0x658] sm:$0xff]  ;;  %v6593_v57 = vcombine.high %v216_v48, %v220_v49  ;;  %v6592_v1 = vcombine.low %v216_v48, %v220_v49 }
 0x206   :  { %3779 = vmatprep.subr.bf16.mxu0 %v6641_v62  ;;  %v348_v54 = vld [vmem:[#allocation6 + $0x678] sm:$0xff] }
 0x207   :  { %3819 = vmatpush1.bf16.msra.mxu1 %v6648_v61  ;;  %v6721_v59 = vcombine.high %v344_v52, %v348_v54  ;;  %v208_v60 = vld [vmem:[#allocation6 + $0x218] sm:$0xff]  ;;  %v6720_v2 = vcombine.low %v344_v52, %v348_v54 }
 0x208   :  { %3820 = vmatprep.subr.bf16.mxu1 %v6769_v0  ;;  %v212_v61 = vld [vmem:[#allocation6 + $0x238] sm:$0xff] }
 0x209   :  { %3780 = vmatpush2.bf16.msra.mxu0 %v6640_v6  ;;  %v336_v62 = vld [vmem:[#allocation6 + $0x618] sm:$0xff]  ;;  %v6585_v4 = vcombine.high %v208_v60, %v212_v61  ;;  %v6584_v11 = vcombine.low %v208_v60, %v212_v61 }
 0x20a   :  { %3781 = vmatprep.subr.bf16.mxu0 %v6633_v8  ;;  %v340_v0 = vld [vmem:[#allocation6 + $0x638] sm:$0xff] }
 0x20b   :  { %3821 = vmatpush2.bf16.msra.mxu1 %v6768_v7  ;;  %v6713_v5 = vcombine.high %v336_v62, %v340_v0  ;;  %v456_v6 = vld [vmem:[#allocation6 + $0x9d8] sm:$0xff]  ;;  %v6712_v12 = vcombine.low %v336_v62, %v340_v0 }
 0x20c   :  { %3822 = vmatprep.subr.bf16.mxu1 %v6761_v10  ;;  %v460_v7 = vld [vmem:[#allocation6 + $0x9f8] sm:$0xff] }
 0x20d   :  { %3782 = vmatpush2.bf16.msra.mxu0 %v6632_v16  ;;  %v584_v8 = vld [vmem:[#allocation6 + $0xdd8] sm:$0xff]  ;;  %v6833_v14 = vcombine.high %v456_v6, %v460_v7  ;;  %v6832_v21 = vcombine.low %v456_v6, %v460_v7 }
 0x20e   :  { %3783 = vmatprep.subr.bf16.mxu0 %v6625_v17  ;;  %v588_v10 = vld [vmem:[#allocation6 + $0xdf8] sm:$0xff] }
 0x20f   :  { %3823 = vmatpush2.bf16.msra.mxu1 %v6760_v9  ;;  %v6961_v15 = vcombine.high %v584_v8, %v588_v10  ;;  %v448_v16 = vld [vmem:[#allocation6 + $0x998] sm:$0xff]  ;;  %v6960_v22 = vcombine.low %v584_v8, %v588_v10 }
 0x210   :  { %3824 = vmatprep.subr.bf16.mxu1 %v6753_v18  ;;  %v452_v9 = vld [vmem:[#allocation6 + $0x9b8] sm:$0xff] }
 0x211   :  { %3784 = vmatpush2.bf16.msra.mxu0 %v6624_v24  ;;  %v576_v17 = vld [vmem:[#allocation6 + $0xd98] sm:$0xff]  ;;  %v6825_v24 = vcombine.high %v448_v16, %v452_v9 }
 0x212   :  { %3785 = vmatprep.subr.bf16.mxu0 %v6617_v41  ;;  %v580_v18 = vld [vmem:[#allocation6 + $0xdb8] sm:$0xff] }
 0x213   :  { %3825 = vmatpush2.bf16.msra.mxu1 %v6752_v25  ;;  %v6953_v25 = vcombine.high %v576_v17, %v580_v18  ;;  %v440_v41 = vld [vmem:[#allocation6 + $0x958] sm:$0xff]  ;;  %v6952_v38 = vcombine.low %v576_v17, %v580_v18 }
 0x214   :  { %3826 = vmatprep.subr.bf16.mxu1 %v6745_v26  ;;  %v444_v26 = vld [vmem:[#allocation6 + $0x978] sm:$0xff] }
 0x215   :  { %3786 = vmatpush2.bf16.msra.mxu0 %v6616_v51  ;;  %v568_v30 = vld [vmem:[#allocation6 + $0xd58] sm:$0xff]  ;;  %v6817_v39 = vcombine.high %v440_v41, %v444_v26 }
 0x216   :  { %3787 = vmatprep.subr.bf16.mxu0 %v6609_v36  ;;  %v572_v31 = vld [vmem:[#allocation6 + $0xd78] sm:$0xff]  ;;  %v6824_v36 = vcombine.low %v448_v16, %v452_v9 }
 0x217   :  { %3827 = vmatpush2.bf16.msra.mxu1 %v6744_v34  ;;  %v424_v60 = vld [vmem:[#allocation6 + $0x8d8] sm:$0xff] }
 0x218   :  { %3828 = vmatprep.subr.bf16.mxu1 %v6737_v37  ;;  %v428_v61 = vld [vmem:[#allocation6 + $0x8f8] sm:$0xff] }
 0x219   :  { %3788 = vmatpush2.bf16.msra.mxu0 %v6608_v43  ;;  %v432_v43 = vld [vmem:[#allocation6 + $0x918] sm:$0xff]  ;;  %v6800_v29 = vcombine.low %v424_v60, %v428_v61 }
 0x21a   :  { %3789 = vmatprep.subr.bf16.mxu0 %v6601_v46  ;;  %v560_v46 = vld [vmem:[#allocation6 + $0xd18] sm:$0xff] }
 0x21b   :  { %3829 = vmatpush2.bf16.msra.mxu1 %v6736_v45  ;;  %v436_v45 = vld [vmem:[#allocation6 + $0x938] sm:$0xff] }
 0x21c   :  { %3830 = vmatprep.subr.bf16.mxu1 %v6729_v47  ;;  %v564_v47 = vld [vmem:[#allocation6 + $0xd38] sm:$0xff] }
 0x21d   :  { %3790 = vmatpush2.bf16.msra.mxu0 %v6600_v55  ;;  %v6944_v55 = vcombine.low %v568_v30, %v572_v31  ;;  %v556_v62 = vld [vmem:[#allocation6 + $0xcf8] sm:$0xff] }
 0x21e   :  { %3791 = vmatprep.subr.bf16.mxu0 %v6593_v57  ;;  %v416_v8 = vld [vmem:[#allocation6 + $0x898] sm:$0xff] }
 0x21f   :  { %3831 = vmatpush2.bf16.msra.mxu1 %v6728_v56  ;;  %v6809_v56 = vcombine.high %v432_v43, %v436_v45  ;;  %v420_v10 = vld [vmem:[#allocation6 + $0x8b8] sm:$0xff] }
 0x220   :  { %3832 = vmatprep.subr.bf16.mxu1 %v6721_v59  ;;  %v6937_v59 = vcombine.high %v560_v46, %v564_v47  ;;  %v412_v16 = vld [vmem:[#allocation6 + $0x878] sm:$0xff]  ;;  %v6792_v18 = vcombine.low %v416_v8, %v420_v10 }
 0x221   :  { %3792 = vmatpush2.bf16.msra.mxu0 %v6592_v1  ;;  %v536_v9 = vld [vmem:[#allocation6 + $0xc58] sm:$0xff] }
 0x222   :  { %3793 = vmatprep.subr.bf16.mxu0 %v6585_v4  ;;  %v6936_v4 = vcombine.low %v560_v46, %v564_v47  ;;  %v540_v17 = vld [vmem:[#allocation6 + $0xc78] sm:$0xff] }
 0x223   :  { %3833 = vmatpush2.bf16.msra.mxu1 %v6720_v2  ;;  %v6808_v2 = vcombine.low %v432_v43, %v436_v45  ;;  %v512_v46 = vld [vmem:[#allocation6 + $0xb98] sm:$0xff] }
 0x224   :  { %3834 = vmatprep.subr.bf16.mxu1 %v6713_v5  ;;  %v6801_v5 = vcombine.high %v424_v60, %v428_v61  ;;  %v516_v47 = vld [vmem:[#allocation6 + $0xbb8] sm:$0xff] }
 0x225   :  { %3794 = vmatpush2.bf16.msra.mxu0 %v6584_v11  ;;  %v544_v11 = vld [vmem:[#allocation6 + $0xc98] sm:$0xff] }
 0x226   :  { %3845 = vmatprep.subr.bf16.mxu0 %v6833_v14  ;;  %v6921_v14 = vcombine.high %v544_v11, %v548_v19  ;;  %v6920_v20 = vcombine.low %v544_v11, %v548_v19  ;;  %v504_v60 = vld [vmem:[#allocation6 + $0xb58] sm:$0xff] }
 0x227   :  { %3835 = vmatpush2.bf16.msra.mxu1 %v6712_v12  ;;  %v6793_v12 = vcombine.high %v416_v8, %v420_v10  ;;  %v508_v61 = vld [vmem:[#allocation6 + $0xb78] sm:$0xff] }
 0x228   :  { %3886 = vmatprep.subr.bf16.mxu1 %v6961_v15  ;;  %v3551_v27 = vpop.f32.mrf.mxu0  ;;  %3796 = vmatmul.mubr.bf16.vlgmr.msra.gmra.mxu0 %v8133_v23  ;;  %v6945_v23 = vcombine.high %v568_v30, %v572_v31  ;;  %v408_v15 = vld [vmem:[#allocation6 + $0x858] sm:$0xff]  ;;  %v6881_v8 = vcombine.high %v504_v60, %v508_v61 }
 0x229   :  { %v3552_v51 = vadd.f32 %v3551_v27, %v8184_v58  ;;  %3846 = vmatpush1.bf16.msra.mxu0 %v6832_v21  ;;  %3877 = vmatprep.mubr.bf16.mxu0 %v8136_v33  ;;  %v6785_v13 = vcombine.high %v408_v15, %v412_v16  ;;  %v6913_v21 = vcombine.high %v536_v9, %v540_v17  ;;  %v496_v11 = vld [vmem:[#allocation6 + $0xb18] sm:$0xff] }
 0x22a   :  { %v3592_v34 = vpop.f32.mrf.mxu1  ;;  %3837 = vmatmul.mubr.bf16.vlgmr.msra.gmra.mxu1 %v8140_v28  ;;  %v3553_v37 = vpop.f32.mrf.mxu0  ;;  %3847 = vmatprep.subr.bf16.mxu0 %v6825_v24  ;;  %v8197_v28 = vsub.s32 %v3939_v63, %v8103_v44  ;;  %v404_v24 = vld [vmem:[#allocation6 + $0x838] sm:$0xff]  ;;  %v6912_v27 = vcombine.low %v536_v9, %v540_v17 }
 0x22b   :  { %3887 = vmatpush1.bf16.msra.mxu1 %v6960_v22  ;;  %v3554_v40 = vadd.f32 %v3553_v37, %v8187_v3  ;;  %3918 = vmatprep.mubr.bf16.mxu1 %v8145_v53  ;;  %v3593_v48 = vadd.f32 %v3592_v34, %v3552_v51  ;;  %v6816_v3 = vcombine.low %v440_v41, %v444_v26  ;;  %v552_v53 = vld [vmem:[#allocation6 + $0xcd8] sm:$0xff]  ;;  %v8211_v34 = vsub.s32 0, %v8103_v44 }
 0x22c   :  { %v3594_v42 = vpop.f32.mrf.mxu1  ;;  %3888 = vmatprep.subr.bf16.mxu1 %v6953_v25  ;;  %v3555_v58 = vpop.f32.mrf.mxu0  ;;  %v8203_v0 = vrot.slane %v3935_v35, %v8197_v28  ;;  %v6929_v7 = vcombine.high %v552_v53, %v556_v62  ;;  %v6928_v35 = vcombine.low %v552_v53, %v556_v62  ;;  %v400_v22 = vld [vmem:[#allocation6 + $0x818] sm:$0xff]  ;;  %v6784_v26 = vcombine.low %v408_v15, %v412_v16 }
 0x22d   :  { %v3595_v49 = vadd.f32 %v3594_v42, %v3554_v40  ;;  %3848 = vmatpush1.bf16.msra.mxu0 %v6824_v36  ;;  %v528_v25 = vld [vmem:[#allocation6 + $0xc18] sm:$0xff]  ;;  %v6777_v30 = vcombine.high %v400_v22, %v404_v24  ;;  %v3992_v40 = vsub.s32 2, %v8103_v44  ;;  %v3996_v42 = vsub.s32 3, %v8103_v44 }
 0x22e   :  { %v3596_v52 = vpop.f32.mrf.mxu1  ;;  %v3556_v54 = vpop.f32.mrf.mxu0  ;;  %3849 = vmatprep.subr.bf16.mxu0 %v6817_v39  ;;  %v532_v41 = vld [vmem:[#allocation6 + $0xc38] sm:$0xff]  ;;  %v8216_v39 = vsub.s32 1, %v8103_v44  ;;  %v6880_v15 = vcombine.low %v504_v60, %v508_v61 }
 0x22f   :  { %3889 = vmatpush1.bf16.msra.mxu1 %v6952_v38  ;;  %v3936_v57 = vcombine.low %v3593_v48, %v3595_v49  ;;  %v6905_v31 = vcombine.high %v528_v25, %v532_v41  ;;  %v520_v63 = vld [vmem:[#allocation6 + $0xbd8] sm:$0xff]  ;;  %v8213_v38 = vld [vmem:[#allocation8] sm:$0xff]  ;;  %v6904_v43 = vcombine.low %v528_v25, %v532_v41 }
 0x230   :  { %v3597_v33 = vpop.f32.mrf.mxu1  ;;  %3890 = vmatprep.subr.bf16.mxu1 %v6945_v23  ;;  %v524_v51 = vld [vmem:[#allocation6 + $0xbf8] sm:$0xff]  ;;  %v6776_v23 = vcombine.low %v400_v22, %v404_v24  ;;  %v3985_v48 = vrot.slane %v8213_v38, %v8211_v34  ;;  %v3993_v54 = vrot.slane %v8213_v38, %v3992_v40 }
 0x231   :  { %v8206_v1 = vrot.slane %v3936_v57, %v8197_v28  ;;  %3850 = vmatpush1.bf16.msra.mxu0 %v6816_v3  ;;  %v648_v36 = vld [vmem:[#allocation6 + $0xfd8] sm:$0xff]  ;;  %v6897_v45 = vcombine.high %v520_v63, %v524_v51  ;;  %v3989_v3 = vrot.slane %v8213_v38, %v8216_v39  ;;  %v6889_v33 = vcombine.high %v512_v46, %v516_v47 }
 0x232   :  { %3851 = vmatprep.subr.bf16.mxu0 %v6809_v56  ;;  %v652_v37 = vld [vmem:[#allocation6 + $0xff8] sm:$0xff]  ;;  %v6896_v56 = vcombine.low %v520_v63, %v524_v51 }
 0x233   :  { %3891 = vmatpush1.bf16.msra.mxu1 %v6944_v55  ;;  %v3951_v6 = vcombine.low %v8203_v0, %v8206_v1  ;;  %v7025_v58 = vcombine.high %v648_v36, %v652_v37  ;;  %v640_v49 = vld [vmem:[#allocation6 + $0xf98] sm:$0xff]  ;;  %v3997_v55 = vrot.slane %v8213_v38, %v3996_v42  ;;  %v7024_v57 = vcombine.low %v648_v36, %v652_v37 }
 0x234   :  { %3892 = vmatprep.subr.bf16.mxu1 %v6937_v59  ;;  %v644_v52 = vld [vmem:[#allocation6 + $0xfb8] sm:$0xff] }
 0x235   :  { %3852 = vmatpush1.bf16.msra.mxu0 %v6808_v2  ;;  %v7017_v59 = vcombine.high %v640_v49, %v644_v52  ;;  %v632_v53 = vld [vmem:[#allocation6 + $0xf58] sm:$0xff]  ;;  %v4014_v2 = vcombine.low %v3985_v48, %v3989_v3 }
 0x236   :  { %3853 = vmatprep.subr.bf16.mxu0 %v6801_v5  ;;  %v636_v62 = vld [vmem:[#allocation6 + $0xf78] sm:$0xff]  ;;  %v6888_v5 = vcombine.low %v512_v46, %v516_v47 }
 0x237   :  { %3893 = vmatpush1.bf16.msra.mxu1 %v6936_v4  ;;  %v4015_v4 = vcombine.low %v3993_v54, %v3997_v55  ;;  %v7009_v10 = vcombine.high %v632_v53, %v636_v62  ;;  %v500_v19 = vld [vmem:[#allocation6 + $0xb38] sm:$0xff]  ;;  %v7008_v16 = vcombine.low %v632_v53, %v636_v62 }
 0x238   :  { %3894 = vmatprep.subr.bf16.mxu1 %v6929_v7  ;;  %v7016_v7 = vcombine.low %v640_v49, %v644_v52  ;;  %v6873_v9 = vcombine.high %v496_v11, %v500_v19  ;;  %v6872_v24 = vcombine.low %v496_v11, %v500_v19  ;;  %v612_v63 = vld [vmem:[#allocation6 + $0xeb8] sm:$0xff] }
 0x239   :  { %3854 = vmatpush1.bf16.msra.mxu0 %v6800_v29  ;;  %v624_v29 = vld [vmem:[#allocation6 + $0xf18] sm:$0xff] }
 0x23a   :  { %3855 = vmatprep.subr.bf16.mxu0 %v6793_v12  ;;  %v4022_v12 = vrot.slane %v4014_v2, %v8197_v28  ;;  %v600_v46 = vld [vmem:[#allocation6 + $0xe58] sm:$0xff] }
 0x23b   :  { %3895 = vmatpush1.bf16.msra.mxu1 %v6928_v35  ;;  %v628_v35 = vld [vmem:[#allocation6 + $0xf38] sm:$0xff] }
 0x23c   :  { %3896 = vmatprep.subr.bf16.mxu1 %v6921_v14  ;;  %v4029_v14 = vrot.slane %v4015_v4, %v8197_v28  ;;  %v7001_v17 = vcombine.high %v624_v29, %v628_v35  ;;  %v7000_v25 = vcombine.low %v624_v29, %v628_v35  ;;  %v604_v47 = vld [vmem:[#allocation6 + $0xe78] sm:$0xff] }
 0x23d   :  { %3856 = vmatpush1.bf16.msra.mxu0 %v6792_v18  ;;  %v488_v18 = vld [vmem:[#allocation6 + $0xad8] sm:$0xff]  ;;  %v6977_v1 = vcombine.high %v600_v46, %v604_v47 }
 0x23e   :  { %3857 = vmatprep.subr.bf16.mxu0 %v6785_v13  ;;  %v616_v13 = vld [vmem:[#allocation6 + $0xed8] sm:$0xff]  ;;  %v4030_v22 = vcombine.low %v4022_v12, %v4029_v14 }
 0x23f   :  { %3897 = vmatpush1.bf16.msra.mxu1 %v6920_v20  ;;  %v492_v20 = vld [vmem:[#allocation6 + $0xaf8] sm:$0xff] }
 0x240   :  { %3898 = vmatprep.subr.bf16.mxu1 %v6913_v21  ;;  %v620_v21 = vld [vmem:[#allocation6 + $0xef8] sm:$0xff]  ;;  %v6865_v41 = vcombine.high %v488_v18, %v492_v20  ;;  %v4050_v51 = vadd.f32 %v4030_v22, %v3951_v6  ;;  %v6864_v36 = vcombine.low %v488_v18, %v492_v20 }
 0x241   :  { %3858 = vmatpush1.bf16.msra.mxu0 %v6784_v26  ;;  %v6993_v26 = vcombine.high %v616_v13, %v620_v21  ;;  %v6992_v37 = vcombine.low %v616_v13, %v620_v21  ;;  %v464_v6 = vld [vmem:[#allocation6 + $0xa18] sm:$0xff] }
 0x242   :  { %3859 = vmatprep.subr.bf16.mxu0 %v6777_v30  ;;  %v484_v30 = vld [vmem:[#allocation6 + $0xab8] sm:$0xff]  ;;  %v4052_v49 = vmax.f32 %v4050_v51, 0.0 }
 0x243   :  { %3899 = vmatpush1.bf16.msra.mxu1 %v6912_v27  ;;  %v480_v27 = vld [vmem:[#allocation6 + $0xa98] sm:$0xff] }
 0x244   :  { %3900 = vmatprep.subr.bf16.mxu1 %v6905_v31  ;;  %v608_v31 = vld [vmem:[#allocation6 + $0xe98] sm:$0xff]  ;;  %v6856_v48 = vcombine.low %v480_v27, %v484_v30  ;;  %v8236_v61 = vrot.slane %v4052_v49, %v8197_v28 }
 0x245   :  { %3860 = vmatpush1.bf16.msra.mxu0 %v6776_v23  ;;  %v6857_v23 = vcombine.high %v480_v27, %v484_v30  ;;  %v6984_v52 = vcombine.low %v608_v31, %v612_v63  ;;  %v468_v3 = vld [vmem:[#allocation6 + $0xa38] sm:$0xff] }
 0x246   :  { %3861 = vmatprep.subr.bf16.mxu0 %v6897_v45  ;;  %v472_v45 = vld [vmem:[#allocation6 + $0xa58] sm:$0xff]  ;;  %v6840_v53 = vcombine.low %v464_v6, %v468_v3 }
 0x247   :  { %3901 = vmatpush1.bf16.msra.mxu1 %v6904_v43  ;;  %v6985_v43 = vcombine.high %v608_v31, %v612_v63  ;;  %v592_v54 = vld [vmem:[#allocation6 + $0xe18] sm:$0xff] }
 0x248   :  { %3902 = vmatprep.subr.bf16.mxu1 %v7025_v58  ;;  %v476_v58 = vld [vmem:[#allocation6 + $0xa78] sm:$0xff] }
 0x249   :  { %3862 = vmatpush2.bf16.msra.mxu0 %v6896_v56  ;;  %v6849_v0 = vcombine.high %v472_v45, %v476_v58  ;;  %v596_v55 = vld [vmem:[#allocation6 + $0xe38] sm:$0xff]  ;;  %v6848_v56 = vcombine.low %v472_v45, %v476_v58 }
 0x24a   :  { %3863 = vmatprep.subr.bf16.mxu0 %v6889_v33  ;;  %v6976_v33 = vcombine.low %v600_v46, %v604_v47  ;;  %v6969_v60 = vcombine.high %v592_v54, %v596_v55  ;;  %v6968_v2 = vcombine.low %v592_v54, %v596_v55  ;;  %v7365_v4 = vld [vmem:[#allocation9 + $0xe4] ss:$16 sps:$4 sm:$0xff]   ;;  %v7366_v11 = vld [vmem:[#allocation9 + $0x2e0] ss:$16 sps:$4 sm:$0xff]  }
 0x24b   :  { %3903 = vmatpush2.bf16.msra.mxu1 %v7024_v57  ;;  %v4056_v57 = vcombine.high %v4052_v49, %v4052_v49  ;;  %v7371_v19 = vld [vmem:[#allocation9 + $0xc4] ss:$16 sps:$4 sm:$0xff]   ;;  %v7372_v18 = vld [vmem:[#allocation9 + $0x2c0] ss:$16 sps:$4 sm:$0xff]  }
 0x24c   :  { %3904 = vmatprep.subr.bf16.mxu1 %v7017_v59  ;;  %v6841_v59 = vcombine.high %v464_v6, %v468_v3  ;;  %v7374_v12 = vld [vmem:[#allocation9 + $0x2c4] ss:$16 sps:$4 sm:$0xff]   ;;  %v7381_v31 = vld [vmem:[#allocation9 + $0x80] ss:$16 sps:$4 sm:$0xff]  }
 0x24d   :  { %3864 = vmatpush2.bf16.msra.mxu0 %v6888_v5  ;;  %v8239_v62 = vrot.slane %v4056_v57, %v8197_v28  ;;  %v7368_v5 = vld [vmem:[#allocation9 + $0x2e4] ss:$16 sps:$4 sm:$0xff]   ;;  %v7384_v63 = vld [vmem:[#allocation9 + $0x280] ss:$16 sps:$4 sm:$0xff]  }
 0x24e   :  { %3865 = vmatprep.subr.bf16.mxu0 %v6881_v8  ;;  %v7363_v8 = vld [vmem:[#allocation9 + $0xe0] ss:$16 sps:$4 sm:$0xff]   ;;  %v7377_v20 = vld [vmem:[#allocation9 + $0xa4] ss:$16 sps:$4 sm:$0xff]  }
 0x24f   :  { %3905 = vmatpush2.bf16.msra.mxu1 %v7016_v7  ;;  %v4071_v7 = vcombine.high %v8236_v61, %v8236_v61  ;;  %v7380_v13 = vld [vmem:[#allocation9 + $0x2a4] ss:$16 sps:$4 sm:$0xff]   ;;  %v7393_v58 = vld [vmem:[#allocation9 + $0x40] ss:$16 sps:$4 sm:$0xff]  }
 0x250   :  { %3906 = vmatprep.subr.bf16.mxu1 %v7009_v10  ;;  %v4072_v10 = vcombine.high %v8239_v62, %v8239_v62  ;;  %v7386_v30 = vld [vmem:[#allocation9 + $0x284] ss:$16 sps:$4 sm:$0xff]   ;;  %v7396_v46 = vld [vmem:[#allocation9 + $0x240] ss:$16 sps:$4 sm:$0xff]  }
 0x251   :  { %3866 = vmatpush2.bf16.msra.mxu0 %v6880_v15  ;;  %v8246_v35 = vpack.c.bf16 %v4071_v7, %v4071_v7  ;;  %v7389_v51 = vld [vmem:[#allocation9 + $0x64] ss:$16 sps:$4 sm:$0xff]   ;;  %v7399_v49 = vld [vmem:[#allocation9 + $0x20] ss:$16 sps:$4 sm:$0xff]  }
 0x252   :  { %3867 = vmatprep.subr.bf16.mxu0 %v6873_v9  ;;  %v8249_v15 = vpack.c.bf16 %v4072_v10, %v4072_v10  ;;  %v7398_v45 = vld [vmem:[#allocation9 + $0x244] ss:$16 sps:$4 sm:$0xff]   ;;  %v7405_v6 = vld [vmem:[#allocation9] ss:$16 sps:$4 sm:$0xff]  }
 0x253   :  { %3907 = vmatpush2.bf16.msra.mxu1 %v7008_v16  ;;  %v7369_v16 = vld [vmem:[#allocation9 + $0xc0] ss:$16 sps:$4 sm:$0xff]   ;;  %v7401_v47 = vld [vmem:[#allocation9 + $0x24] ss:$16 sps:$4 sm:$0xff]  }
 0x254   :  { %3908 = vmatprep.subr.bf16.mxu1 %v7001_v17  ;;  %v7408_v3 = vld [vmem:[#allocation9 + $0x200] ss:$16 sps:$4 sm:$0xff]   ;;  %v7413_v54 = vld [vmem:[#allocation9 + $0x1e4] ss:$16 sps:$4 sm:$0xff]  }
 0x255   :  { %3868 = vmatpush2.bf16.msra.mxu0 %v6872_v24  ;;  %v7375_v24 = vld [vmem:[#allocation9 + $0xa0] ss:$16 sps:$4 sm:$0xff]   ;;  %v7416_v55 = vld [vmem:[#allocation9 + $0x3e4] ss:$16 sps:$4 sm:$0xff]  }
 0x256   :  { %3869 = vmatprep.subr.bf16.mxu0 %v6865_v41  ;;  %v7378_v41 = vld [vmem:[#allocation9 + $0x2a0] ss:$16 sps:$4 sm:$0xff]   ;;  %v7434_v10 = vld [vmem:[#allocation9 + $0x384] ss:$16 sps:$4 sm:$0xff]  }
 0x257   :  { %3909 = vmatpush2.bf16.msra.mxu1 %v7000_v25  ;;  %v7414_v57 = vld [vmem:[#allocation9 + $0x3e0] ss:$16 sps:$4 sm:$0xff]  }
 0x258   :  { %3910 = vmatprep.subr.bf16.mxu1 %v6993_v26  ;;  %v7383_v26 = vld [vmem:[#allocation9 + $0x84] ss:$16 sps:$4 sm:$0xff]   ;;  %v7426_v7 = vld [vmem:[#allocation9 + $0x3a0] ss:$16 sps:$4 sm:$0xff]  }
 0x259   :  { %3870 = vmatpush2.bf16.msra.mxu0 %v6864_v36  ;;  %v7392_v36 = vld [vmem:[#allocation9 + $0x264] ss:$16 sps:$4 sm:$0xff]  }
 0x25a   :  { %3871 = vmatprep.subr.bf16.mxu0 %v6857_v23  ;;  %v7390_v23 = vld [vmem:[#allocation9 + $0x260] ss:$16 sps:$4 sm:$0xff]  }
 0x25b   :  { %3911 = vmatpush2.bf16.msra.mxu1 %v6992_v37  ;;  %v7387_v37 = vld [vmem:[#allocation9 + $0x60] ss:$16 sps:$4 sm:$0xff]  }
 0x25c   :  { %3912 = vmatprep.subr.bf16.mxu1 %v6985_v43  ;;  %v7395_v43 = vld [vmem:[#allocation9 + $0x44] ss:$16 sps:$4 sm:$0xff]  }
 0x25d   :  { %3872 = vmatpush2.bf16.msra.mxu0 %v6856_v48  ;;  %v7404_v48 = vld [vmem:[#allocation9 + $0x224] ss:$16 sps:$4 sm:$0xff]  }
 0x25e   :  { %3873 = vmatprep.subr.bf16.mxu0 %v6849_v0  ;;  %v7407_v0 = vld [vmem:[#allocation9 + $0x4] ss:$16 sps:$4 sm:$0xff]  }
 0x25f   :  { %3913 = vmatpush2.bf16.msra.mxu1 %v6984_v52  ;;  %v7402_v52 = vld [vmem:[#allocation9 + $0x220] ss:$16 sps:$4 sm:$0xff]  }
 0x260   :  { %3914 = vmatprep.subr.bf16.mxu1 %v6977_v1  ;;  %v7410_v1 = vld [vmem:[#allocation9 + $0x204] ss:$16 sps:$4 sm:$0xff]  }
 0x261   :  { %3874 = vmatpush2.bf16.msra.mxu0 %v6848_v56  ;;  %v7411_v56 = vld [vmem:[#allocation9 + $0x1e0] ss:$16 sps:$4 sm:$0xff]  }
 0x262   :  { %3875 = vmatprep.subr.bf16.mxu0 %v6841_v59  ;;  %v7422_v59 = vld [vmem:[#allocation9 + $0x3c4] ss:$16 sps:$4 sm:$0xff]  }
 0x263   :  { %3915 = vmatpush2.bf16.msra.mxu1 %v6976_v33  ;;  %v7419_v33 = vld [vmem:[#allocation9 + $0x1c4] ss:$16 sps:$4 sm:$0xff]  }
 0x264   :  { %3916 = vmatprep.subr.bf16.mxu1 %v6969_v60  ;;  %v7417_v60 = vld [vmem:[#allocation9 + $0x1c0] ss:$16 sps:$4 sm:$0xff]  }
 0x265   :  { %3876 = vmatpush2.bf16.msra.mxu0 %v6840_v53  ;;  %v7420_v53 = vld [vmem:[#allocation9 + $0x3c0] ss:$16 sps:$4 sm:$0xff]  }
 0x266   :  { %5664 = vmatprep.subr.bf16.mxu0 %v7365_v4  ;;  %v7428_v4 = vld [vmem:[#allocation9 + $0x3a4] ss:$16 sps:$4 sm:$0xff]  }
 0x267   :  { %3917 = vmatpush2.bf16.msra.mxu1 %v6968_v2  ;;  %v7425_v2 = vld [vmem:[#allocation9 + $0x1a4] ss:$16 sps:$4 sm:$0xff]  }
 0x268   :  { %5705 = vmatprep.subr.bf16.mxu1 %v7368_v5  ;;  %v3633_v29 = vpop.f32.mrf.mxu0  ;;  %3878 = vmatmul.mubr.bf16.vlgmr.msra.gmra.mxu0 %v8127_v32  ;;  %v7423_v5 = vld [vmem:[#allocation9 + $0x1a0] ss:$16 sps:$4 sm:$0xff]  }
 0x269   :  { %5665 = vmatpush1.bf16.msra.mxu0 %v7363_v8  ;;  %5696 = vmatprep.mubr.bf16.mxu0 %v8246_v35  ;;  %v7431_v8 = vld [vmem:[#allocation9 + $0x184] ss:$16 sps:$4 sm:$0xff]  }
 0x26a   :  { %v3674_v14 = vpop.f32.mrf.mxu1  ;;  %3919 = vmatmul.mubr.bf16.vlgmr.msra.gmra.mxu1 %v8152_v50  ;;  %v3635_v17 = vpop.f32.mrf.mxu0  ;;  %5666 = vmatprep.subr.bf16.mxu0 %v7371_v19  ;;  %v7432_v19 = vld [vmem:[#allocation9 + $0x380] ss:$16 sps:$4 sm:$0xff]  }
 0x26b   :  { %v8251_v9 = vadd.f32 %v3674_v14, %v3633_v29  ;;  %5706 = vmatpush1.bf16.msra.mxu1 %v7366_v11  ;;  %5737 = vmatprep.mubr.bf16.mxu1 %v8249_v15  ;;  %v7429_v11 = vld [vmem:[#allocation9 + $0x180] ss:$16 sps:$4 sm:$0xff]   ;;  %v7437_v29 = vld [vmem:[#allocation9 + $0x164] ss:$16 sps:$4 sm:$0xff]  }
 0x26c   :  { %v3676_v32 = vpop.f32.mrf.mxu1  ;;  %v3637_v50 = vpop.f32.mrf.mxu0  ;;  %5707 = vmatprep.subr.bf16.mxu1 %v7374_v12  ;;  %v7440_v12 = vld [vmem:[#allocation9 + $0x364] ss:$16 sps:$4 sm:$0xff]   ;;  %v7435_v14 = vld [vmem:[#allocation9 + $0x160] ss:$16 sps:$4 sm:$0xff]  }
 0x26d   :  { %v8255_v21 = vadd.f32 %v3676_v32, %v3635_v17  ;;  %5667 = vmatpush1.bf16.msra.mxu0 %v7369_v16  ;;  %v7438_v16 = vld [vmem:[#allocation9 + $0x360] ss:$16 sps:$4 sm:$0xff]   ;;  %v7443_v17 = vld [vmem:[#allocation9 + $0x144] ss:$16 sps:$4 sm:$0xff]  }
 0x26e   :  { %v3678_v22 = vpop.f32.mrf.mxu1  ;;  %v3638_v25 = vpop.f32.mrf.mxu0  ;;  %5668 = vmatprep.subr.bf16.mxu0 %v7377_v20  ;;  %v7441_v20 = vld [vmem:[#allocation9 + $0x140] ss:$16 sps:$4 sm:$0xff]   ;;  %v7452_v50 = vld [vmem:[#allocation9 + $0x324] ss:$16 sps:$4 sm:$0xff]  }
 0x26f   :  { %5708 = vmatpush1.bf16.msra.mxu1 %v7372_v18  ;;  %v7446_v18 = vld [vmem:[#allocation9 + $0x344] ss:$16 sps:$4 sm:$0xff]   ;;  %v7444_v32 = vld [vmem:[#allocation9 + $0x340] ss:$16 sps:$4 sm:$0xff]  }
 0x270   :  { %v3679_v27 = vpop.f32.mrf.mxu1  ;;  %5709 = vmatprep.subr.bf16.mxu1 %v7380_v13  ;;  %v7449_v13 = vld [vmem:[#allocation9 + $0x124] ss:$16 sps:$4 sm:$0xff]   ;;  %v7447_v22 = vld [vmem:[#allocation9 + $0x120] ss:$16 sps:$4 sm:$0xff]  }
 0x271   :  { %5669 = vmatpush1.bf16.msra.mxu0 %v7375_v24  ;;  %v7450_v24 = vld [vmem:[#allocation9 + $0x320] ss:$16 sps:$4 sm:$0xff]   ;;  %v7455_v25 = vld [vmem:[#allocation9 + $0x104] ss:$16 sps:$4 sm:$0xff]  }
 0x272   :  { %5670 = vmatprep.subr.bf16.mxu0 %v7383_v26  ;;  %v7453_v26 = vld [vmem:[#allocation9 + $0x100] ss:$16 sps:$4 sm:$0xff]  }
 0x273   :  { %5710 = vmatpush1.bf16.msra.mxu1 %v7378_v41  ;;  %v7458_v41 = vld [vmem:[#allocation9 + $0x304] ss:$16 sps:$4 sm:$0xff]   ;;  %v7456_v27 = vld [vmem:[#allocation9 + $0x300] ss:$16 sps:$4 sm:$0xff]  }
 0x274   :  { %5711 = vmatprep.subr.bf16.mxu1 %v7386_v30  ;;  %v7461_v30 = vld [vmem:[#allocation9 + $0x4e4] ss:$16 sps:$4 sm:$0xff]  }
 0x275   :  { %5671 = vmatpush1.bf16.msra.mxu0 %v7381_v31  ;;  %v7464_v31 = vld [vmem:[#allocation9 + $0x6e4] ss:$16 sps:$4 sm:$0xff]  }
 0x276   :  { %5672 = vmatprep.subr.bf16.mxu0 %v7389_v51  ;;  %v8259_v51 = vpack.c.bf16 %v8236_v61, %v8236_v61  ;;  %v7465_v61 = vld [vmem:[#allocation9 + $0x4c0] ss:$16 sps:$4 sm:$0xff]  }
 0x277   :  { %5712 = vmatpush1.bf16.msra.mxu1 %v7384_v63  ;;  %v7459_v63 = vld [vmem:[#allocation9 + $0x4e0] ss:$16 sps:$4 sm:$0xff]  }
 0x278   :  { %5713 = vmatprep.subr.bf16.mxu1 %v7392_v36  ;;  %v7462_v36 = vld [vmem:[#allocation9 + $0x6e0] ss:$16 sps:$4 sm:$0xff]  }
 0x279   :  { %5673 = vmatpush1.bf16.msra.mxu0 %v7387_v37  ;;  %v7467_v37 = vld [vmem:[#allocation9 + $0x4c4] ss:$16 sps:$4 sm:$0xff]  }
 0x27a   :  { %5674 = vmatprep.subr.bf16.mxu0 %v7395_v43  ;;  %v7470_v43 = vld [vmem:[#allocation9 + $0x6c4] ss:$16 sps:$4 sm:$0xff]  }
 0x27b   :  { %5714 = vmatpush1.bf16.msra.mxu1 %v7390_v23  ;;  %v8263_v23 = vpack.c.bf16 %v8239_v62, %v8239_v62 }
 0x27c   :  { %5715 = vmatprep.subr.bf16.mxu1 %v7398_v45 }
 0x27d   :  { %5675 = vmatpush1.bf16.msra.mxu0 %v7393_v58 }
 0x27e   :  { %5676 = vmatprep.subr.bf16.mxu0 %v7401_v47 }
 0x27f   :  { %5716 = vmatpush1.bf16.msra.mxu1 %v7396_v46 }
 0x280   :  { %5717 = vmatprep.subr.bf16.mxu1 %v7404_v48  ;;  %v7468_v48 = vld [vmem:[#allocation9 + $0x6c0] ss:$16 sps:$4 sm:$0xff]  }
 0x281   :  { %5677 = vmatpush1.bf16.msra.mxu0 %v7399_v49  ;;  %v7473_v49 = vld [vmem:[#allocation9 + $0x4a4] ss:$16 sps:$4 sm:$0xff]  }
 0x282   :  { %5678 = vmatprep.subr.bf16.mxu0 %v7407_v0 }
 0x283   :  { %5718 = vmatpush1.bf16.msra.mxu1 %v7402_v52 }
 0x284   :  { %5719 = vmatprep.subr.bf16.mxu1 %v7410_v1  ;;  %v7476_v1 = vld [vmem:[#allocation9 + $0x6a4] ss:$16 sps:$4 sm:$0xff]  }
 0x285   :  { %5679 = vmatpush1.bf16.msra.mxu0 %v7405_v6 }
 0x286   :  { %5680 = vmatprep.subr.bf16.mxu0 %v7413_v54  ;;  %v7471_v54 = vld [vmem:[#allocation9 + $0x4a0] ss:$16 sps:$4 sm:$0xff]  }
 0x287   :  { %5720 = vmatpush1.bf16.msra.mxu1 %v7408_v3 }
 0x288   :  { %5721 = vmatprep.subr.bf16.mxu1 %v7416_v55 }
 0x289   :  { %5681 = vmatpush2.bf16.msra.mxu0 %v7411_v56  ;;  %v7474_v56 = vld [vmem:[#allocation9 + $0x6a0] ss:$16 sps:$4 sm:$0xff]  }
 0x28a   :  { %5682 = vmatprep.subr.bf16.mxu0 %v7419_v33 }
 0x28b   :  { %5722 = vmatpush2.bf16.msra.mxu1 %v7414_v57  ;;  %v7479_v57 = vld [vmem:[#allocation9 + $0x484] ss:$16 sps:$4 sm:$0xff]  }
 0x28c   :  { %5723 = vmatprep.subr.bf16.mxu1 %v7422_v59 }
 0x28d   :  { %5683 = vmatpush2.bf16.msra.mxu0 %v7417_v60  ;;  %v7477_v60 = vld [vmem:[#allocation9 + $0x480] ss:$16 sps:$4 sm:$0xff]  }
 0x28e   :  { %5684 = vmatprep.subr.bf16.mxu0 %v7425_v2  ;;  %v7485_v2 = vld [vmem:[#allocation9 + $0x464] ss:$16 sps:$4 sm:$0xff]  }
 0x28f   :  { %5724 = vmatpush2.bf16.msra.mxu1 %v7420_v53  ;;  %v7480_v53 = vld [vmem:[#allocation9 + $0x680] ss:$16 sps:$4 sm:$0xff]  }
 0x290   :  { %5725 = vmatprep.subr.bf16.mxu1 %v7428_v4  ;;  %v7488_v4 = vld [vmem:[#allocation9 + $0x664] ss:$16 sps:$4 sm:$0xff]  }
 0x291   :  { %5685 = vmatpush2.bf16.msra.mxu0 %v7423_v5  ;;  %v7483_v5 = vld [vmem:[#allocation9 + $0x460] ss:$16 sps:$4 sm:$0xff]  }
 0x292   :  { %5686 = vmatprep.subr.bf16.mxu0 %v7431_v8  ;;  %v7491_v8 = vld [vmem:[#allocation9 + $0x444] ss:$16 sps:$4 sm:$0xff]  }
 0x293   :  { %5726 = vmatpush2.bf16.msra.mxu1 %v7426_v7  ;;  %v7486_v7 = vld [vmem:[#allocation9 + $0x660] ss:$16 sps:$4 sm:$0xff]  }
 0x294   :  { %5727 = vmatprep.subr.bf16.mxu1 %v7434_v10  ;;  %v7494_v10 = vld [vmem:[#allocation9 + $0x644] ss:$16 sps:$4 sm:$0xff]  }
 0x295   :  { %5687 = vmatpush2.bf16.msra.mxu0 %v7429_v11  ;;  %v7489_v11 = vld [vmem:[#allocation9 + $0x440] ss:$16 sps:$4 sm:$0xff]  }
 0x296   :  { %5688 = vmatprep.subr.bf16.mxu0 %v7437_v29  ;;  %v7497_v29 = vld [vmem:[#allocation9 + $0x424] ss:$16 sps:$4 sm:$0xff]  }
 0x297   :  { %5728 = vmatpush2.bf16.msra.mxu1 %v7432_v19  ;;  %v7492_v19 = vld [vmem:[#allocation9 + $0x640] ss:$16 sps:$4 sm:$0xff]  }
 0x298   :  { %5729 = vmatprep.subr.bf16.mxu1 %v7440_v12  ;;  %v7500_v12 = vld [vmem:[#allocation9 + $0x624] ss:$16 sps:$4 sm:$0xff]  }
 0x299   :  { %5689 = vmatpush2.bf16.msra.mxu0 %v7435_v14  ;;  %v7495_v14 = vld [vmem:[#allocation9 + $0x420] ss:$16 sps:$4 sm:$0xff]  }
 0x29a   :  { %5690 = vmatprep.subr.bf16.mxu0 %v7443_v17  ;;  %v7503_v17 = vld [vmem:[#allocation9 + $0x404] ss:$16 sps:$4 sm:$0xff]  }
 0x29b   :  { %5730 = vmatpush2.bf16.msra.mxu1 %v7438_v16  ;;  %v7498_v16 = vld [vmem:[#allocation9 + $0x620] ss:$16 sps:$4 sm:$0xff]  }
 0x29c   :  { %5731 = vmatprep.subr.bf16.mxu1 %v7446_v18  ;;  %v7506_v18 = vld [vmem:[#allocation9 + $0x604] ss:$16 sps:$4 sm:$0xff]  }
 0x29d   :  { %5691 = vmatpush2.bf16.msra.mxu0 %v7441_v20  ;;  %v7501_v20 = vld [vmem:[#allocation9 + $0x400] ss:$16 sps:$4 sm:$0xff]  }
 0x29e   :  { %5692 = vmatprep.subr.bf16.mxu0 %v7449_v13  ;;  %v7509_v13 = vld [vmem:[#allocation9 + $0x5e4] ss:$16 sps:$4 sm:$0xff]  }
 0x29f   :  { %5732 = vmatpush2.bf16.msra.mxu1 %v7444_v32  ;;  %v7504_v32 = vld [vmem:[#allocation9 + $0x600] ss:$16 sps:$4 sm:$0xff]  }
 0x2a0   :  { %5733 = vmatprep.subr.bf16.mxu1 %v7452_v50  ;;  %v7512_v50 = vld [vmem:[#allocation9 + $0x7e4] ss:$16 sps:$4 sm:$0xff]  }
 0x2a1   :  { %5693 = vmatpush2.bf16.msra.mxu0 %v7447_v22  ;;  %v7507_v22 = vld [vmem:[#allocation9 + $0x5e0] ss:$16 sps:$4 sm:$0xff]  }
 0x2a2   :  { %5694 = vmatprep.subr.bf16.mxu0 %v7455_v25  ;;  %v7515_v25 = vld [vmem:[#allocation9 + $0x5c4] ss:$16 sps:$4 sm:$0xff]  }
 0x2a3   :  { %5734 = vmatpush2.bf16.msra.mxu1 %v7450_v24  ;;  %v7510_v24 = vld [vmem:[#allocation9 + $0x7e0] ss:$16 sps:$4 sm:$0xff]  }
 0x2a4   :  { %5735 = vmatprep.subr.bf16.mxu1 %v7458_v41  ;;  %v7518_v41 = vld [vmem:[#allocation9 + $0x7c4] ss:$16 sps:$4 sm:$0xff]  }
 0x2a5   :  { %5695 = vmatpush2.bf16.msra.mxu0 %v7453_v26  ;;  %v7513_v26 = vld [vmem:[#allocation9 + $0x5c0] ss:$16 sps:$4 sm:$0xff]  }
 0x2a6   :  { %5746 = vmatprep.subr.bf16.mxu0 %v7461_v30  ;;  %v7521_v30 = vld [vmem:[#allocation9 + $0x5a4] ss:$16 sps:$4 sm:$0xff]  }
 0x2a7   :  { %5736 = vmatpush2.bf16.msra.mxu1 %v7456_v27  ;;  %v7516_v27 = vld [vmem:[#allocation9 + $0x7c0] ss:$16 sps:$4 sm:$0xff]  }
 0x2a8   :  { %5787 = vmatprep.subr.bf16.mxu1 %v7464_v31  ;;  %v3715_v45 = vpop.f32.mrf.mxu0  ;;  %5697 = vmatmul.mubr.bf16.vlgmr.msra.gmra.mxu0 %v8259_v51  ;;  %v7524_v31 = vld [vmem:[#allocation9 + $0x7a4] ss:$16 sps:$4 sm:$0xff]  }
 0x2a9   :  { %v3716_v58 = vadd.f32 %v3715_v45, %v8251_v9  ;;  %5747 = vmatpush1.bf16.msra.mxu0 %v7459_v63  ;;  %v7519_v63 = vld [vmem:[#allocation9 + $0x5a0] ss:$16 sps:$4 sm:$0xff]  }
 0x2aa   :  { %v3756_v46 = vpop.f32.mrf.mxu1  ;;  %5738 = vmatmul.mubr.bf16.vlgmr.msra.gmra.mxu1 %v8263_v23  ;;  %v3717_v47 = vpop.f32.mrf.mxu0  ;;  %5748 = vmatprep.subr.bf16.mxu0 %v7467_v37  ;;  %v7527_v37 = vld [vmem:[#allocation9 + $0x584] ss:$16 sps:$4 sm:$0xff]   ;;  %v7525_v45 = vld [vmem:[#allocation9 + $0x580] ss:$16 sps:$4 sm:$0xff]  }
 0x2ab   :  { %5788 = vmatpush1.bf16.msra.mxu1 %v7462_v36  ;;  %v8268_v52 = vadd.f32 %v3756_v46, %v3716_v58  ;;  %v3718_v62 = vadd.f32 %v3717_v47, %v8255_v21  ;;  %v7482_v21 = vld [vmem:[#allocation9 + $0x684] ss:$16 sps:$4 sm:$0xff]   ;;  %v7522_v36 = vld [vmem:[#allocation9 + $0x7a0] ss:$16 sps:$4 sm:$0xff]  }
 0x2ac   :  { %v3758_v0 = vpop.f32.mrf.mxu1  ;;  %5789 = vmatprep.subr.bf16.mxu1 %v7470_v43  ;;  %v3719_v6 = vpop.f32.mrf.mxu0  ;;  %v7530_v43 = vld [vmem:[#allocation9 + $0x784] ss:$16 sps:$4 sm:$0xff]   ;;  %v7528_v58 = vld [vmem:[#allocation9 + $0x780] ss:$16 sps:$4 sm:$0xff]  }
 0x2ad   :  { %v8271_v3 = vadd.f32 %v3758_v0, %v3718_v62  ;;  %5749 = vmatpush1.bf16.msra.mxu0 %v7465_v61  ;;  %v7533_v46 = vld [vmem:[#allocation9 + $0x564] ss:$16 sps:$4 sm:$0xff]   ;;  %v7531_v47 = vld [vmem:[#allocation9 + $0x560] ss:$16 sps:$4 sm:$0xff]  }
 0x2ae   :  { %v3760_v9 = vpop.f32.mrf.mxu1  ;;  %v3720_v55 = vpop.f32.mrf.mxu0  ;;  %5750 = vmatprep.subr.bf16.mxu0 %v7473_v49  ;;  %v7536_v61 = vld [vmem:[#allocation9 + $0x764] ss:$16 sps:$4 sm:$0xff]   ;;  %v7537_v0 = vld [vmem:[#allocation9 + $0x540] ss:$16 sps:$4 sm:$0xff]  }
 0x2af   :  { %5790 = vmatpush1.bf16.msra.mxu1 %v7468_v48  ;;  %v3952_v33 = vcombine.low %v8268_v52, %v8271_v3  ;;  %v7534_v48 = vld [vmem:[#allocation9 + $0x760] ss:$16 sps:$4 sm:$0xff]   ;;  %v7539_v49 = vld [vmem:[#allocation9 + $0x544] ss:$16 sps:$4 sm:$0xff]   ;;  %v7558_v3 = vld [vmem:[#allocation9 + $0x2e8] ss:$16 sps:$4 sm:$0xff]  }
 0x2b0   :  { %v3761_v59 = vpop.f32.mrf.mxu1  ;;  %5791 = vmatprep.subr.bf16.mxu1 %v7476_v1  ;;  %v7542_v62 = vld [vmem:[#allocation9 + $0x744] ss:$16 sps:$4 sm:$0xff]   ;;  %v7540_v1 = vld [vmem:[#allocation9 + $0x740] ss:$16 sps:$4 sm:$0xff]  }
 0x2b1   :  { %5751 = vmatpush1.bf16.msra.mxu0 %v7471_v54  ;;  %v7545_v6 = vld [vmem:[#allocation9 + $0x524] ss:$16 sps:$4 sm:$0xff]   ;;  %v7543_v54 = vld [vmem:[#allocation9 + $0x520] ss:$16 sps:$4 sm:$0xff]  }
 0x2b2   :  { %5752 = vmatprep.subr.bf16.mxu0 %v7479_v57  ;;  %v7548_v9 = vld [vmem:[#allocation9 + $0x724] ss:$16 sps:$4 sm:$0xff]   ;;  %v7546_v55 = vld [vmem:[#allocation9 + $0x720] ss:$16 sps:$4 sm:$0xff]  }
 0x2b3   :  { %5792 = vmatpush1.bf16.msra.mxu1 %v7474_v56  ;;  %v7551_v56 = vld [vmem:[#allocation9 + $0x504] ss:$16 sps:$4 sm:$0xff]   ;;  %v7549_v59 = vld [vmem:[#allocation9 + $0x500] ss:$16 sps:$4 sm:$0xff]  }
 0x2b4   :  { %5793 = vmatprep.subr.bf16.mxu1 %v7482_v21  ;;  %v7554_v57 = vld [vmem:[#allocation9 + $0x704] ss:$16 sps:$4 sm:$0xff]   ;;  %v7552_v21 = vld [vmem:[#allocation9 + $0x700] ss:$16 sps:$4 sm:$0xff]  }
 0x2b5   :  { %5753 = vmatpush1.bf16.msra.mxu0 %v7477_v60  ;;  %v7557_v60 = vld [vmem:[#allocation9 + $0xec] ss:$16 sps:$4 sm:$0xff]  }
 0x2b6   :  { %5754 = vmatprep.subr.bf16.mxu0 %v7485_v2 }
 0x2b7   :  { %5794 = vmatpush1.bf16.msra.mxu1 %v7480_v53  ;;  %v7560_v53 = vld [vmem:[#allocation9 + $0x2ec] ss:$16 sps:$4 sm:$0xff]  }
 0x2b8   :  { %5795 = vmatprep.subr.bf16.mxu1 %v7488_v4 }
 0x2b9   :  { %5755 = vmatpush1.bf16.msra.mxu0 %v7483_v5 }
 0x2ba   :  { %5756 = vmatprep.subr.bf16.mxu0 %v7491_v8 }
 0x2bb   :  { %5796 = vmatpush1.bf16.msra.mxu1 %v7486_v7 }
 0x2bc   :  { %5797 = vmatprep.subr.bf16.mxu1 %v7494_v10 }
 0x2bd   :  { %5757 = vmatpush1.bf16.msra.mxu0 %v7489_v11 }
 0x2be   :  { %5758 = vmatprep.subr.bf16.mxu0 %v7497_v29  ;;  %v4000_v29 = vsub.s32 4, %v8103_v44 }
 0x2bf   :  { %5798 = vmatpush1.bf16.msra.mxu1 %v7492_v19 }
 0x2c0   :  { %5799 = vmatprep.subr.bf16.mxu1 %v7500_v12  ;;  %v4004_v12 = vsub.s32 5, %v8103_v44 }
 0x2c1   :  { %5759 = vmatpush1.bf16.msra.mxu0 %v7495_v14  ;;  %v4008_v14 = vsub.s32 6, %v8103_v44 }
 0x2c2   :  { %5760 = vmatprep.subr.bf16.mxu0 %v7503_v17  ;;  %v4001_v17 = vrot.slane %v8213_v38, %v4000_v29  ;;  %v7576_v29 = vld [vmem:[#allocation9 + $0x288] ss:$16 sps:$4 sm:$0xff]  }
 0x2c3   :  { %5800 = vmatpush1.bf16.msra.mxu1 %v7498_v16  ;;  %v4012_v16 = vsub.s32 7, %v8103_v44 }
 0x2c4   :  { %5801 = vmatprep.subr.bf16.mxu1 %v7506_v18  ;;  %v4005_v18 = vrot.slane %v8213_v38, %v4004_v12  ;;  %v7584_v12 = vld [vmem:[#allocation9 + $0x26c] ss:$16 sps:$4 sm:$0xff]  }
 0x2c5   :  { %5761 = vmatpush1.bf16.msra.mxu0 %v7501_v20  ;;  %v4009_v20 = vrot.slane %v8213_v38, %v4008_v14  ;;  %v7587_v14 = vld [vmem:[#allocation9 + $0x4c] ss:$16 sps:$4 sm:$0xff]  }
 0x2c6   :  { %5762 = vmatprep.subr.bf16.mxu0 %v7509_v13 }
 0x2c7   :  { %5802 = vmatpush1.bf16.msra.mxu1 %v7504_v32  ;;  %v4013_v32 = vrot.slane %v8213_v38, %v4012_v16  ;;  %v7582_v16 = vld [vmem:[#allocation9 + $0x268] ss:$16 sps:$4 sm:$0xff]  }
 0x2c8   :  { %5803 = vmatprep.subr.bf16.mxu1 %v7512_v50 }
 0x2c9   :  { %5763 = vmatpush2.bf16.msra.mxu0 %v7507_v22 }
 0x2ca   :  { %5764 = vmatprep.subr.bf16.mxu0 %v7515_v25 }
 0x2cb   :  { %5804 = vmatpush2.bf16.msra.mxu1 %v7510_v24 }
 0x2cc   :  { %5805 = vmatprep.subr.bf16.mxu1 %v7518_v41  ;;  %v4031_v41 = vcombine.low %v4001_v17, %v4005_v18  ;;  %v7590_v17 = vld [vmem:[#allocation9 + $0x24c] ss:$16 sps:$4 sm:$0xff]   ;;  %v7585_v18 = vld [vmem:[#allocation9 + $0x48] ss:$16 sps:$4 sm:$0xff]  }
 0x2cd   :  { %5765 = vmatpush2.bf16.msra.mxu0 %v7513_v26  ;;  %v4032_v26 = vcombine.low %v4009_v20, %v4013_v32  ;;  %v7593_v20 = vld [vmem:[#allocation9 + $0x2c] ss:$16 sps:$4 sm:$0xff]   ;;  %v7588_v32 = vld [vmem:[#allocation9 + $0x248] ss:$16 sps:$4 sm:$0xff]  }
 0x2ce   :  { %5766 = vmatprep.subr.bf16.mxu0 %v7521_v30 }
 0x2cf   :  { %5806 = vmatpush2.bf16.msra.mxu1 %v7516_v27 }
 0x2d0   :  { %5807 = vmatprep.subr.bf16.mxu1 %v7524_v31 }
 0x2d1   :  { %5767 = vmatpush2.bf16.msra.mxu0 %v7519_v63 }
 0x2d2   :  { %5768 = vmatprep.subr.bf16.mxu0 %v7527_v37 }
 0x2d3   :  { %5808 = vmatpush2.bf16.msra.mxu1 %v7522_v36 }
 0x2d4   :  { %5809 = vmatprep.subr.bf16.mxu1 %v7530_v43  ;;  %v4039_v43 = vrot.slane %v4031_v41, %v8197_v28  ;;  %v7597_v41 = vld [vmem:[#allocation9 + $0x8] ss:$16 sps:$4 sm:$0xff]  }
 0x2d5   :  { %5769 = vmatpush2.bf16.msra.mxu0 %v7525_v45  ;;  %v4046_v45 = vrot.slane %v4032_v26, %v8197_v28  ;;  %v7605_v26 = vld [vmem:[#allocation9 + $0x1ec] ss:$16 sps:$4 sm:$0xff]  }
 0x2d6   :  { %5770 = vmatprep.subr.bf16.mxu0 %v7533_v46 }
 0x2d7   :  { %5810 = vmatpush2.bf16.msra.mxu1 %v7528_v58 }
 0x2d8   :  { %5811 = vmatprep.subr.bf16.mxu1 %v7536_v61 }
 0x2d9   :  { %5771 = vmatpush2.bf16.msra.mxu0 %v7531_v47  ;;  %v3960_v47 = vrot.slane %v3952_v33, %v8197_v28  ;;  %v7563_v33 = vld [vmem:[#allocation9 + $0xcc] ss:$16 sps:$4 sm:$0xff]  }
 0x2da   :  { %5772 = vmatprep.subr.bf16.mxu0 %v7539_v49  ;;  %v4047_v49 = vcombine.low %v4039_v43, %v4046_v45  ;;  %v7609_v43 = vld [vmem:[#allocation9 + $0x1c8] ss:$16 sps:$4 sm:$0xff]   ;;  %v7617_v45 = vld [vmem:[#allocation9 + $0x1ac] ss:$16 sps:$4 sm:$0xff]  }
 0x2db   :  { %5812 = vmatpush2.bf16.msra.mxu1 %v7534_v48 }
 0x2dc   :  { %5813 = vmatprep.subr.bf16.mxu1 %v7542_v62 }
 0x2dd   :  { %5773 = vmatpush2.bf16.msra.mxu0 %v7537_v0 }
 0x2de   :  { %5774 = vmatprep.subr.bf16.mxu0 %v7545_v6 }
 0x2df   :  { %5814 = vmatpush2.bf16.msra.mxu1 %v7540_v1 }
 0x2e0   :  { %5815 = vmatprep.subr.bf16.mxu1 %v7548_v9 }
 0x2e1   :  { %5775 = vmatpush2.bf16.msra.mxu0 %v7543_v54 }
 0x2e2   :  { %5776 = vmatprep.subr.bf16.mxu0 %v7551_v56 }
 0x2e3   :  { %5816 = vmatpush2.bf16.msra.mxu1 %v7546_v55 }
 0x2e4   :  { %5817 = vmatprep.subr.bf16.mxu1 %v7554_v57  ;;  %v7555_v57 = vld [vmem:[#allocation9 + $0xe8] ss:$16 sps:$4 sm:$0xff]  }
 0x2e5   :  { %5777 = vmatpush2.bf16.msra.mxu0 %v7549_v59 }
 0x2e6   :  { %5828 = vmatprep.subr.bf16.mxu0 %v7557_v60 }
 0x2e7   :  { %5818 = vmatpush2.bf16.msra.mxu1 %v7552_v21 }
 0x2e8   :  { %5869 = vmatprep.subr.bf16.mxu1 %v7560_v53  ;;  %v3797_v2 = vpop.f32.mrf.mxu0  ;;  %v7566_v53 = vld [vmem:[#allocation9 + $0x2cc] ss:$16 sps:$4 sm:$0xff]  }
 0x2ea   :  { %v3838_v4 = vpop.f32.mrf.mxu1  ;;  %v3799_v5 = vpop.f32.mrf.mxu0 }
 0x2eb   :  { %v3839_v13 = vadd.f32 %v3838_v4, %v3797_v2  ;;  %v7569_v2 = vld [vmem:[#allocation9 + $0xac] ss:$16 sps:$4 sm:$0xff]   ;;  %v7564_v4 = vld [vmem:[#allocation9 + $0x2c8] ss:$16 sps:$4 sm:$0xff]  }
 0x2ec   :  { %v3840_v7 = vpop.f32.mrf.mxu1  ;;  %v3801_v8 = vpop.f32.mrf.mxu0 }
 0x2ed   :  { %v3841_v22 = vadd.f32 %v3840_v7, %v3799_v5  ;;  %v7572_v5 = vld [vmem:[#allocation9 + $0x2ac] ss:$16 sps:$4 sm:$0xff]   ;;  %v7567_v7 = vld [vmem:[#allocation9 + $0xa8] ss:$16 sps:$4 sm:$0xff]  }
 0x2ee   :  { %v3842_v10 = vpop.f32.mrf.mxu1  ;;  %v3802_v11 = vpop.f32.mrf.mxu0  ;;  %v7575_v8 = vld [vmem:[#allocation9 + $0x8c] ss:$16 sps:$4 sm:$0xff]  }
 0x2ef   :  { %v7570_v10 = vld [vmem:[#allocation9 + $0x2a8] ss:$16 sps:$4 sm:$0xff]   ;;  %v7578_v11 = vld [vmem:[#allocation9 + $0x28c] ss:$16 sps:$4 sm:$0xff]  }
 0x2f0   :  { %v3843_v19 = vpop.f32.mrf.mxu1 }
 0x2f1   :  { %v7581_v19 = vld [vmem:[#allocation9 + $0x6c] ss:$16 sps:$4 sm:$0xff]  }
 0x328   :  { %v3879_v50 = vpop.f32.mrf.mxu0 }
 0x329   :  { %v3880_v24 = vadd.f32 %v3879_v50, %v3839_v13  ;;  %v7596_v13 = vld [vmem:[#allocation9 + $0x22c] ss:$16 sps:$4 sm:$0xff]   ;;  %v7591_v50 = vld [vmem:[#allocation9 + $0x28] ss:$16 sps:$4 sm:$0xff]  }
 0x32a   :  { %v3920_v25 = vpop.f32.mrf.mxu1  ;;  %v3881_v27 = vpop.f32.mrf.mxu0 }
 0x32b   :  { %v3882_v30 = vadd.f32 %v3881_v27, %v3841_v22  ;;  %v3921_v36 = vadd.f32 %v3920_v25, %v3880_v24  ;;  %v7599_v22 = vld [vmem:[#allocation9 + $0xc] ss:$16 sps:$4 sm:$0xff]   ;;  %v7594_v24 = vld [vmem:[#allocation9 + $0x228] ss:$16 sps:$4 sm:$0xff]  }
 0x32c   :  { %v3922_v31 = vpop.f32.mrf.mxu1  ;;  %v3883_v63 = vpop.f32.mrf.mxu0  ;;  %v7602_v25 = vld [vmem:[#allocation9 + $0x20c] ss:$16 sps:$4 sm:$0xff]   ;;  %v7600_v27 = vld [vmem:[#allocation9 + $0x208] ss:$16 sps:$4 sm:$0xff]  }
 0x32d   :  { %v3923_v37 = vadd.f32 %v3922_v31, %v3882_v30  ;;  %v7608_v30 = vld [vmem:[#allocation9 + $0x3ec] ss:$16 sps:$4 sm:$0xff]   ;;  %v7603_v31 = vld [vmem:[#allocation9 + $0x1e8] ss:$16 sps:$4 sm:$0xff]  }
 0x32e   :  { %v3924_v58 = vpop.f32.mrf.mxu1  ;;  %v3884_v46 = vpop.f32.mrf.mxu0  ;;  %v7611_v63 = vld [vmem:[#allocation9 + $0x1cc] ss:$16 sps:$4 sm:$0xff]  }
 0x32f   :  { %v3953_v38 = vcombine.low %v3921_v36, %v3923_v37  ;;  %v7606_v36 = vld [vmem:[#allocation9 + $0x3e8] ss:$16 sps:$4 sm:$0xff]   ;;  %v7614_v37 = vld [vmem:[#allocation9 + $0x3cc] ss:$16 sps:$4 sm:$0xff]   ;;  %v8306_v58 = vld [vmem:[#allocation11] sm:$0xf] }
 0x330   :  { %v3925_v61 = vpop.f32.mrf.mxu1  ;;  %v7612_v46 = vld [vmem:[#allocation9 + $0x3c8] ss:$16 sps:$4 sm:$0xff]  }
 0x331   :  { %v3967_v48 = vrot.slane %v3953_v38, %v8197_v28  ;;  %v7620_v38 = vld [vmem:[#allocation9 + $0x3ac] ss:$16 sps:$4 sm:$0xff]   ;;  %v7615_v61 = vld [vmem:[#allocation9 + $0x1a8] ss:$16 sps:$4 sm:$0xff]  }
 0x333   :  { %v3968_v62 = vcombine.low %v3960_v47, %v3967_v48  ;;  %v4367_v47 = vrot.slane %v8306_v58, %v8211_v34  ;;  %v7623_v48 = vld [vmem:[#allocation9 + $0x18c] ss:$16 sps:$4 sm:$0xff]  }
 0x335   :  { %v4051_v0 = vadd.f32 %v4047_v49, %v3968_v62  ;;  %v7618_v49 = vld [vmem:[#allocation9 + $0x3a8] ss:$16 sps:$4 sm:$0xff]   ;;  %v4371_v62 = vrot.slane %v8306_v58, %v8216_v39 }
 0x337   :  { %v4053_v1 = vmax.f32 %v4051_v0, 0.0 }
 0x339   :  { %v4080_v6 = vrot.slane %v4053_v1, %v8197_v28  ;;  %v4073_v9 = vcombine.high %v4053_v1, %v4053_v1  ;;  %v7626_v1 = vld [vmem:[#allocation9 + $0x38c] ss:$16 sps:$4 sm:$0xff]  }
 0x33b   :  { %v4088_v54 = vcombine.high %v4080_v6, %v4080_v6  ;;  %v4087_v55 = vrot.slane %v4073_v9, %v8197_v28  ;;  %v8294_v21 = vpack.c.bf16 %v4080_v6, %v4080_v6  ;;  %v7561_v28 = vld [vmem:[#allocation9 + $0xc8] ss:$16 sps:$4 sm:$0xff]  }
 0x33d   :  { %v8292_v56 = vpack.c.bf16 %v4088_v54, %v4088_v54  ;;  %v4089_v59 = vcombine.high %v4087_v55, %v4087_v55  ;;  %v8300_v60 = vpack.c.bf16 %v4087_v55, %v4087_v55  ;;  %v7621_v54 = vld [vmem:[#allocation9 + $0x188] ss:$16 sps:$4 sm:$0xff]  }
 0x33f   :  { %5778 = vmatprep.mubr.bf16.mxu0 %v8292_v56  ;;  %v8297_v52 = vpack.c.bf16 %v4089_v59, %v4089_v59 }
 0x340   :  { %5779 = vmatmul.mubr.bf16.vlgmr.msra.gmra.mxu0 %v8294_v21 }
 0x341   :  { %5829 = vmatpush1.bf16.msra.mxu0 %v7555_v57  ;;  %5819 = vmatprep.mubr.bf16.mxu1 %v8297_v52  ;;  %v7629_v57 = vld [vmem:[#allocation9 + $0x16c] ss:$16 sps:$4 sm:$0xff]  }
 0x342   :  { %5860 = vmatprep.mubr.bf16.mxu0 %v8246_v35  ;;  %5820 = vmatmul.mubr.bf16.vlgmr.msra.gmra.mxu1 %v8300_v60  ;;  %v7573_v35 = vld [vmem:[#allocation9 + $0x88] ss:$16 sps:$4 sm:$0xff]  }
 0x343   :  { %5870 = vmatpush1.bf16.msra.mxu1 %v7558_v3  ;;  %5830 = vmatprep.subr.bf16.mxu0 %v7563_v33 }
 0x344   :  { %5901 = vmatprep.mubr.bf16.mxu1 %v8249_v15  ;;  %5871 = vmatprep.subr.bf16.mxu1 %v7566_v53  ;;  %v7579_v15 = vld [vmem:[#allocation9 + $0x68] ss:$16 sps:$4 sm:$0xff]  }
 0x345   :  { %5831 = vmatpush1.bf16.msra.mxu0 %v7561_v28  ;;  %v7624_v53 = vld [vmem:[#allocation9 + $0x388] ss:$16 sps:$4 sm:$0xff]  }
 0x346   :  { %5832 = vmatprep.subr.bf16.mxu0 %v7569_v2  ;;  %v7632_v2 = vld [vmem:[#allocation9 + $0x36c] ss:$16 sps:$4 sm:$0xff]  }
 0x347   :  { %5872 = vmatpush1.bf16.msra.mxu1 %v7564_v4 }
 0x348   :  { %5873 = vmatprep.subr.bf16.mxu1 %v7572_v5 }
 0x349   :  { %5833 = vmatpush1.bf16.msra.mxu0 %v7567_v7  ;;  %v7627_v7 = vld [vmem:[#allocation9 + $0x168] ss:$16 sps:$4 sm:$0xff]  }
 0x34a   :  { %5834 = vmatprep.subr.bf16.mxu0 %v7575_v8 }
 0x34b   :  { %5874 = vmatpush1.bf16.msra.mxu1 %v7570_v10  ;;  %v7635_v10 = vld [vmem:[#allocation9 + $0x14c] ss:$16 sps:$4 sm:$0xff]  }
 0x34c   :  { %5875 = vmatprep.subr.bf16.mxu1 %v7578_v11 }
 0x34d   :  { %5835 = vmatpush1.bf16.msra.mxu0 %v7573_v35  ;;  %v7630_v35 = vld [vmem:[#allocation9 + $0x368] ss:$16 sps:$4 sm:$0xff]  }
 0x34e   :  { %5836 = vmatprep.subr.bf16.mxu0 %v7581_v19  ;;  %v7638_v19 = vld [vmem:[#allocation9 + $0x34c] ss:$16 sps:$4 sm:$0xff]  }
 0x34f   :  { %5876 = vmatpush1.bf16.msra.mxu1 %v7576_v29  ;;  %v7633_v29 = vld [vmem:[#allocation9 + $0x148] ss:$16 sps:$4 sm:$0xff]  }
 0x350   :  { %5877 = vmatprep.subr.bf16.mxu1 %v7584_v12  ;;  %v7641_v12 = vld [vmem:[#allocation9 + $0x12c] ss:$16 sps:$4 sm:$0xff]  }
 0x351   :  { %5837 = vmatpush1.bf16.msra.mxu0 %v7579_v15  ;;  %v7636_v15 = vld [vmem:[#allocation9 + $0x348] ss:$16 sps:$4 sm:$0xff]  }
 0x352   :  { %5838 = vmatprep.subr.bf16.mxu0 %v7587_v14  ;;  %v7644_v14 = vld [vmem:[#allocation9 + $0x32c] ss:$16 sps:$4 sm:$0xff]  }
 0x353   :  { %5878 = vmatpush1.bf16.msra.mxu1 %v7582_v16  ;;  %v7639_v16 = vld [vmem:[#allocation9 + $0x128] ss:$16 sps:$4 sm:$0xff]  }
 0x354   :  { %5879 = vmatprep.subr.bf16.mxu1 %v7590_v17  ;;  %v7647_v17 = vld [vmem:[#allocation9 + $0x10c] ss:$16 sps:$4 sm:$0xff]  }
 0x355   :  { %5839 = vmatpush1.bf16.msra.mxu0 %v7585_v18  ;;  %v7642_v18 = vld [vmem:[#allocation9 + $0x328] ss:$16 sps:$4 sm:$0xff]  }
 0x356   :  { %5840 = vmatprep.subr.bf16.mxu0 %v7593_v20  ;;  %v7650_v20 = vld [vmem:[#allocation9 + $0x30c] ss:$16 sps:$4 sm:$0xff]  }
 0x357   :  { %5880 = vmatpush1.bf16.msra.mxu1 %v7588_v32  ;;  %v7645_v32 = vld [vmem:[#allocation9 + $0x108] ss:$16 sps:$4 sm:$0xff]  }
 0x358   :  { %5881 = vmatprep.subr.bf16.mxu1 %v7596_v13  ;;  %v7653_v13 = vld [vmem:[#allocation9 + $0x4ec] ss:$16 sps:$4 sm:$0xff]  }
 0x359   :  { %5841 = vmatpush1.bf16.msra.mxu0 %v7591_v50  ;;  %v7648_v50 = vld [vmem:[#allocation9 + $0x308] ss:$16 sps:$4 sm:$0xff]  }
 0x35a   :  { %5842 = vmatprep.subr.bf16.mxu0 %v7599_v22  ;;  %v7656_v22 = vld [vmem:[#allocation9 + $0x6ec] ss:$16 sps:$4 sm:$0xff]  }
 0x35b   :  { %5882 = vmatpush1.bf16.msra.mxu1 %v7594_v24  ;;  %v7651_v24 = vld [vmem:[#allocation9 + $0x4e8] ss:$16 sps:$4 sm:$0xff]  }
 0x35c   :  { %5883 = vmatprep.subr.bf16.mxu1 %v7602_v25  ;;  %v7659_v25 = vld [vmem:[#allocation9 + $0x4cc] ss:$16 sps:$4 sm:$0xff]  }
 0x35d   :  { %5843 = vmatpush1.bf16.msra.mxu0 %v7597_v41  ;;  %v7654_v41 = vld [vmem:[#allocation9 + $0x6e8] ss:$16 sps:$4 sm:$0xff]  }
 0x35e   :  { %5844 = vmatprep.subr.bf16.mxu0 %v7605_v26  ;;  %v7662_v26 = vld [vmem:[#allocation9 + $0x6cc] ss:$16 sps:$4 sm:$0xff]  }
 0x35f   :  { %5884 = vmatpush1.bf16.msra.mxu1 %v7600_v27  ;;  %v7657_v27 = vld [vmem:[#allocation9 + $0x4c8] ss:$16 sps:$4 sm:$0xff]  }
 0x360   :  { %5885 = vmatprep.subr.bf16.mxu1 %v7608_v30  ;;  %v7665_v30 = vld [vmem:[#allocation9 + $0x4ac] ss:$16 sps:$4 sm:$0xff]  }
 0x361   :  { %5845 = vmatpush2.bf16.msra.mxu0 %v7603_v31  ;;  %v7660_v31 = vld [vmem:[#allocation9 + $0x6c8] ss:$16 sps:$4 sm:$0xff]  }
 0x362   :  { %5846 = vmatprep.subr.bf16.mxu0 %v7611_v63  ;;  %v7668_v63 = vld [vmem:[#allocation9 + $0x6ac] ss:$16 sps:$4 sm:$0xff]  }
 0x363   :  { %5886 = vmatpush2.bf16.msra.mxu1 %v7606_v36  ;;  %v7663_v36 = vld [vmem:[#allocation9 + $0x4a8] ss:$16 sps:$4 sm:$0xff]  }
 0x364   :  { %5887 = vmatprep.subr.bf16.mxu1 %v7614_v37  ;;  %v7666_v37 = vld [vmem:[#allocation9 + $0x6a8] ss:$16 sps:$4 sm:$0xff]  }
 0x365   :  { %5847 = vmatpush2.bf16.msra.mxu0 %v7609_v43  ;;  %v7674_v43 = vld [vmem:[#allocation9 + $0x68c] ss:$16 sps:$4 sm:$0xff]  }
 0x366   :  { %5848 = vmatprep.subr.bf16.mxu0 %v7617_v45  ;;  %v7672_v45 = vld [vmem:[#allocation9 + $0x688] ss:$16 sps:$4 sm:$0xff]  }
 0x367   :  { %5888 = vmatpush2.bf16.msra.mxu1 %v7612_v46  ;;  %v7680_v46 = vld [vmem:[#allocation9 + $0x66c] ss:$16 sps:$4 sm:$0xff]  }
 0x368   :  { %v5698_v0 = vpop.f32.mrf.mxu0  ;;  %5889 = vmatprep.subr.bf16.mxu1 %v7620_v38  ;;  %v7683_v38 = vld [vmem:[#allocation9 + $0x44c] ss:$16 sps:$4 sm:$0xff]  }
 0x369   :  { %v5699_v6 = vadd.f32 %v5698_v0, %v4367_v47  ;;  %5849 = vmatpush2.bf16.msra.mxu0 %v7615_v61  ;;  %v7678_v61 = vld [vmem:[#allocation9 + $0x668] ss:$16 sps:$4 sm:$0xff]   ;;  %v7686_v47 = vld [vmem:[#allocation9 + $0x64c] ss:$16 sps:$4 sm:$0xff]  }
 0x36a   :  { %v5739_v9 = vpop.f32.mrf.mxu1  ;;  %v5700_v55 = vpop.f32.mrf.mxu0  ;;  %5850 = vmatprep.subr.bf16.mxu0 %v7623_v48  ;;  %v7681_v48 = vld [vmem:[#allocation9 + $0x448] ss:$16 sps:$4 sm:$0xff]   ;;  %v7692_v0 = vld [vmem:[#allocation9 + $0x62c] ss:$16 sps:$4 sm:$0xff]  }
 0x36b   :  { %v8312_v59 = vadd.f32 %v5739_v9, %v5699_v6  ;;  %v5701_v3 = vadd.f32 %v5700_v55, %v4371_v62  ;;  %5890 = vmatpush2.bf16.msra.mxu1 %v7618_v49  ;;  %v7689_v49 = vld [vmem:[#allocation9 + $0x42c] ss:$16 sps:$4 sm:$0xff]   ;;  %v7684_v62 = vld [vmem:[#allocation9 + $0x648] ss:$16 sps:$4 sm:$0xff]  }
 0x36c   :  { %v5741_v33 = vpop.f32.mrf.mxu1  ;;  %v5702_v28 = vpop.f32.mrf.mxu0  ;;  %5891 = vmatprep.subr.bf16.mxu1 %v7626_v1  ;;  %v7687_v1 = vld [vmem:[#allocation9 + $0x428] ss:$16 sps:$4 sm:$0xff]   ;;  %v7695_v6 = vld [vmem:[#allocation9 + $0x40c] ss:$16 sps:$4 sm:$0xff]  }
 0x36d   :  { %v8314_v4 = vadd.f32 %v5741_v33, %v5701_v3  ;;  %5851 = vmatpush2.bf16.msra.mxu0 %v7621_v54  ;;  %v7690_v9 = vld [vmem:[#allocation9 + $0x628] ss:$16 sps:$4 sm:$0xff]   ;;  %v7698_v54 = vld [vmem:[#allocation9 + $0x60c] ss:$16 sps:$4 sm:$0xff]  }
 0x36e   :  { %v5743_v5 = vpop.f32.mrf.mxu1  ;;  %v5703_v8 = vpop.f32.mrf.mxu0  ;;  %5852 = vmatprep.subr.bf16.mxu0 %v7629_v57  ;;  %v7693_v55 = vld [vmem:[#allocation9 + $0x408] ss:$16 sps:$4 sm:$0xff]   ;;  %v7701_v57 = vld [vmem:[#allocation9 + $0x5ec] ss:$16 sps:$4 sm:$0xff]  }
 0x36f   :  { %5892 = vmatpush2.bf16.msra.mxu1 %v7624_v53  ;;  %v7696_v3 = vld [vmem:[#allocation9 + $0x608] ss:$16 sps:$4 sm:$0xff]   ;;  %v7704_v33 = vld [vmem:[#allocation9 + $0x7ec] ss:$16 sps:$4 sm:$0xff]  }
 0x370   :  { %v5744_v11 = vpop.f32.mrf.mxu1  ;;  %5893 = vmatprep.subr.bf16.mxu1 %v7632_v2  ;;  %v7699_v53 = vld [vmem:[#allocation9 + $0x5e8] ss:$16 sps:$4 sm:$0xff]   ;;  %v7707_v28 = vld [vmem:[#allocation9 + $0x5cc] ss:$16 sps:$4 sm:$0xff]  }
 0x371   :  { %5853 = vmatpush2.bf16.msra.mxu0 %v7627_v7  ;;  %v7702_v2 = vld [vmem:[#allocation9 + $0x7e8] ss:$16 sps:$4 sm:$0xff]   ;;  %v7710_v5 = vld [vmem:[#allocation9 + $0x7cc] ss:$16 sps:$4 sm:$0xff]  }
 0x372   :  { %5854 = vmatprep.subr.bf16.mxu0 %v7635_v10  ;;  %v7705_v7 = vld [vmem:[#allocation9 + $0x5c8] ss:$16 sps:$4 sm:$0xff]   ;;  %v7713_v8 = vld [vmem:[#allocation9 + $0x5ac] ss:$16 sps:$4 sm:$0xff]  }
 0x373   :  { %5894 = vmatpush2.bf16.msra.mxu1 %v7630_v35  ;;  %v7708_v10 = vld [vmem:[#allocation9 + $0x7c8] ss:$16 sps:$4 sm:$0xff]   ;;  %v7716_v11 = vld [vmem:[#allocation9 + $0x7ac] ss:$16 sps:$4 sm:$0xff]  }
 0x374   :  { %5895 = vmatprep.subr.bf16.mxu1 %v7638_v19  ;;  %v7711_v35 = vld [vmem:[#allocation9 + $0x5a8] ss:$16 sps:$4 sm:$0xff]   ;;  %v7719_v19 = vld [vmem:[#allocation9 + $0x58c] ss:$16 sps:$4 sm:$0xff]  }
 0x375   :  { %5855 = vmatpush2.bf16.msra.mxu0 %v7633_v29  ;;  %v7714_v29 = vld [vmem:[#allocation9 + $0x7a8] ss:$16 sps:$4 sm:$0xff]  }
 0x376   :  { %5856 = vmatprep.subr.bf16.mxu0 %v7641_v12  ;;  %v7722_v12 = vld [vmem:[#allocation9 + $0x78c] ss:$16 sps:$4 sm:$0xff]  }
 0x377   :  { %5896 = vmatpush2.bf16.msra.mxu1 %v7636_v15  ;;  %v7717_v15 = vld [vmem:[#allocation9 + $0x588] ss:$16 sps:$4 sm:$0xff]  }
 0x378   :  { %5897 = vmatprep.subr.bf16.mxu1 %v7644_v14  ;;  %v7725_v14 = vld [vmem:[#allocation9 + $0x56c] ss:$16 sps:$4 sm:$0xff]  }
 0x379   :  { %5857 = vmatpush2.bf16.msra.mxu0 %v7639_v16  ;;  %v7720_v16 = vld [vmem:[#allocation9 + $0x788] ss:$16 sps:$4 sm:$0xff]  }
 0x37a   :  { %5858 = vmatprep.subr.bf16.mxu0 %v7647_v17  ;;  %v7728_v17 = vld [vmem:[#allocation9 + $0x76c] ss:$16 sps:$4 sm:$0xff]  }
 0x37b   :  { %5898 = vmatpush2.bf16.msra.mxu1 %v7642_v18  ;;  %v7723_v18 = vld [vmem:[#allocation9 + $0x568] ss:$16 sps:$4 sm:$0xff]  }
 0x37c   :  { %5899 = vmatprep.subr.bf16.mxu1 %v7650_v20  ;;  %v7731_v20 = vld [vmem:[#allocation9 + $0x54c] ss:$16 sps:$4 sm:$0xff]  }
 0x37d   :  { %5859 = vmatpush2.bf16.msra.mxu0 %v7645_v32  ;;  %v7726_v32 = vld [vmem:[#allocation9 + $0x768] ss:$16 sps:$4 sm:$0xff]  }
 0x37e   :  { %5910 = vmatprep.subr.bf16.mxu0 %v7653_v13  ;;  %v7734_v13 = vld [vmem:[#allocation9 + $0x74c] ss:$16 sps:$4 sm:$0xff]  }
 0x37f   :  { %5900 = vmatpush2.bf16.msra.mxu1 %v7648_v50  ;;  %v7729_v50 = vld [vmem:[#allocation9 + $0x548] ss:$16 sps:$4 sm:$0xff]  }
 0x380   :  { %5861 = vmatmul.mubr.bf16.vlgmr.msra.gmra.mxu0 %v8259_v51  ;;  %5951 = vmatprep.subr.bf16.mxu1 %v7656_v22  ;;  %v7671_v51 = vld [vmem:[#allocation9 + $0x48c] ss:$16 sps:$4 sm:$0xff]  }
 0x381   :  { %5911 = vmatpush1.bf16.msra.mxu0 %v7651_v24  ;;  %5942 = vmatprep.mubr.bf16.mxu0 %v8292_v56  ;;  %v7669_v56 = vld [vmem:[#allocation9 + $0x488] ss:$16 sps:$4 sm:$0xff]   ;;  %v7737_v22 = vld [vmem:[#allocation9 + $0x52c] ss:$16 sps:$4 sm:$0xff]  }
 0x382   :  { %5902 = vmatmul.mubr.bf16.vlgmr.msra.gmra.mxu1 %v8263_v23  ;;  %5912 = vmatprep.subr.bf16.mxu0 %v7659_v25  ;;  %v7677_v23 = vld [vmem:[#allocation9 + $0x46c] ss:$16 sps:$4 sm:$0xff]   ;;  %v7732_v24 = vld [vmem:[#allocation9 + $0x748] ss:$16 sps:$4 sm:$0xff]  }
 0x383   :  { %5952 = vmatpush1.bf16.msra.mxu1 %v7654_v41  ;;  %5983 = vmatprep.mubr.bf16.mxu1 %v8297_v52  ;;  %v7675_v52 = vld [vmem:[#allocation9 + $0x468] ss:$16 sps:$4 sm:$0xff]   ;;  %v7740_v25 = vld [vmem:[#allocation9 + $0x72c] ss:$16 sps:$4 sm:$0xff]  }
 0x384   :  { %5953 = vmatprep.subr.bf16.mxu1 %v7662_v26  ;;  %v7735_v41 = vld [vmem:[#allocation9 + $0x528] ss:$16 sps:$4 sm:$0xff]   ;;  %v7743_v26 = vld [vmem:[#allocation9 + $0x50c] ss:$16 sps:$4 sm:$0xff]  }
 0x385   :  { %5913 = vmatpush1.bf16.msra.mxu0 %v7657_v27  ;;  %v7738_v27 = vld [vmem:[#allocation9 + $0x728] ss:$16 sps:$4 sm:$0xff]  }
 0x386   :  { %5914 = vmatprep.subr.bf16.mxu0 %v7665_v30  ;;  %v7746_v30 = vld [vmem:[#allocation9 + $0x70c] ss:$16 sps:$4 sm:$0xff]  }
 0x387   :  { %5954 = vmatpush1.bf16.msra.mxu1 %v7660_v31  ;;  %v7741_v31 = vld [vmem:[#allocation9 + $0x508] ss:$16 sps:$4 sm:$0xff]  }
 0x388   :  { %5955 = vmatprep.subr.bf16.mxu1 %v7668_v63  ;;  %v7749_v63 = vld [vmem:[#allocation12 + $0x74] ss:$8 sps:$4 sm:$0xff]  }
 0x389   :  { %5915 = vmatpush1.bf16.msra.mxu0 %v7663_v36  ;;  %v7744_v36 = vld [vmem:[#allocation9 + $0x708] ss:$16 sps:$4 sm:$0xff]  }
 0x38a   :  { %5916 = vmatprep.subr.bf16.mxu0 %v7671_v51  ;;  %v7747_v51 = vld [vmem:[#allocation12 + $0x70] ss:$8 sps:$4 sm:$0xff]  }
 0x38b   :  { %5956 = vmatpush1.bf16.msra.mxu1 %v7666_v37  ;;  %v7752_v37 = vld [vmem:[#allocation12 + $0x64] ss:$8 sps:$4 sm:$0xff]  }
 0x38c   :  { %5957 = vmatprep.subr.bf16.mxu1 %v7674_v43  ;;  %v7750_v43 = vld [vmem:[#allocation12 + $0x60] ss:$8 sps:$4 sm:$0xff]  }
 0x38d   :  { %5917 = vmatpush1.bf16.msra.mxu0 %v7669_v56  ;;  %v7755_v56 = vld [vmem:[#allocation12 + $0x54] ss:$8 sps:$4 sm:$0xff]  }
 0x38e   :  { %5918 = vmatprep.subr.bf16.mxu0 %v7677_v23  ;;  %v7753_v23 = vld [vmem:[#allocation12 + $0x50] ss:$8 sps:$4 sm:$0xff]  }
 0x38f   :  { %5958 = vmatpush1.bf16.msra.mxu1 %v7672_v45  ;;  %v7758_v45 = vld [vmem:[#allocation12 + $0x44] ss:$8 sps:$4 sm:$0xff]  }
 0x390   :  { %5959 = vmatprep.subr.bf16.mxu1 %v7680_v46  ;;  %v7795_v46 = vld [vmem:[#allocation12 + $0x170] ss:$8 sps:$4 sm:$0xff]  }
 0x391   :  { %5919 = vmatpush1.bf16.msra.mxu0 %v7675_v52  ;;  %v7797_v52 = vld [vmem:[#allocation12 + $0x174] ss:$8 sps:$4 sm:$0xff]  }
 0x392   :  { %5920 = vmatprep.subr.bf16.mxu0 %v7683_v38  ;;  %v7756_v38 = vld [vmem:[#allocation12 + $0x40] ss:$8 sps:$4 sm:$0xff]  }
 0x393   :  { %5960 = vmatpush1.bf16.msra.mxu1 %v7678_v61  ;;  %v7800_v61 = vld [vmem:[#allocation12 + $0x164] ss:$8 sps:$4 sm:$0xff]  }
 0x394   :  { %5961 = vmatprep.subr.bf16.mxu1 %v7686_v47  ;;  %v7761_v47 = vld [vmem:[#allocation12 + $0x34] ss:$8 sps:$4 sm:$0xff]  }
 0x395   :  { %5921 = vmatpush1.bf16.msra.mxu0 %v7681_v48  ;;  %v7803_v48 = vld [vmem:[#allocation12 + $0x154] ss:$8 sps:$4 sm:$0xff]  }
 0x396   :  { %5922 = vmatprep.subr.bf16.mxu0 %v7689_v49  ;;  %v7764_v49 = vld [vmem:[#allocation12 + $0x24] ss:$8 sps:$4 sm:$0xff]  }
 0x397   :  { %5962 = vmatpush1.bf16.msra.mxu1 %v7684_v62  ;;  %v7801_v62 = vld [vmem:[#allocation12 + $0x150] ss:$8 sps:$4 sm:$0xff]  }
 0x398   :  { %5963 = vmatprep.subr.bf16.mxu1 %v7692_v0  ;;  %v7806_v0 = vld [vmem:[#allocation12 + $0x144] ss:$8 sps:$4 sm:$0xff]  }
 0x399   :  { %5923 = vmatpush1.bf16.msra.mxu0 %v7687_v1  ;;  %v7762_v1 = vld [vmem:[#allocation12 + $0x20] ss:$8 sps:$4 sm:$0xff]  }
 0x39a   :  { %5924 = vmatprep.subr.bf16.mxu0 %v7695_v6  ;;  %v7767_v6 = vld [vmem:[#allocation12 + $0x14] ss:$8 sps:$4 sm:$0xff]  }
 0x39b   :  { %5964 = vmatpush1.bf16.msra.mxu1 %v7690_v9  ;;  %v7804_v9 = vld [vmem:[#allocation12 + $0x140] ss:$8 sps:$4 sm:$0xff]  }
 0x39c   :  { %5965 = vmatprep.subr.bf16.mxu1 %v7698_v54  ;;  %v7809_v54 = vld [vmem:[#allocation12 + $0x134] ss:$8 sps:$4 sm:$0xff]  }
 0x39d   :  { %5925 = vmatpush1.bf16.msra.mxu0 %v7693_v55  ;;  %v7765_v55 = vld [vmem:[#allocation12 + $0x10] ss:$8 sps:$4 sm:$0xff]  }
 0x39e   :  { %5926 = vmatprep.subr.bf16.mxu0 %v7701_v57  ;;  %v7770_v57 = vld [vmem:[#allocation12 + $0x4] ss:$8 sps:$4 sm:$0xff]  }
 0x39f   :  { %5966 = vmatpush1.bf16.msra.mxu1 %v7696_v3  ;;  %v7807_v3 = vld [vmem:[#allocation12 + $0x130] ss:$8 sps:$4 sm:$0xff]  }
 0x3a0   :  { %5967 = vmatprep.subr.bf16.mxu1 %v7704_v33  ;;  %v7812_v33 = vld [vmem:[#allocation12 + $0x124] ss:$8 sps:$4 sm:$0xff]  }
 0x3a1   :  { %5927 = vmatpush2.bf16.msra.mxu0 %v7699_v53  ;;  %v7768_v53 = vld [vmem:[#allocation12] ss:$8 sps:$4 sm:$0xff]  }
 0x3a2   :  { %5928 = vmatprep.subr.bf16.mxu0 %v7707_v28  ;;  %v7773_v28 = vld [vmem:[#allocation12 + $0xf4] ss:$8 sps:$4 sm:$0xff]  }
 0x3a3   :  { %5968 = vmatpush2.bf16.msra.mxu1 %v7702_v2  ;;  %v7810_v2 = vld [vmem:[#allocation12 + $0x120] ss:$8 sps:$4 sm:$0xff]  }
 0x3a4   :  { %5969 = vmatprep.subr.bf16.mxu1 %v7710_v5  ;;  %v7815_v5 = vld [vmem:[#allocation12 + $0x114] ss:$8 sps:$4 sm:$0xff]  }
 0x3a5   :  { %5929 = vmatpush2.bf16.msra.mxu0 %v7705_v7  ;;  %v7771_v7 = vld [vmem:[#allocation12 + $0xf0] ss:$8 sps:$4 sm:$0xff]  }
 0x3a6   :  { %5930 = vmatprep.subr.bf16.mxu0 %v7713_v8  ;;  %v7776_v8 = vld [vmem:[#allocation12 + $0xe4] ss:$8 sps:$4 sm:$0xff]  }
 0x3a7   :  { %5970 = vmatpush2.bf16.msra.mxu1 %v7708_v10  ;;  %v7813_v10 = vld [vmem:[#allocation12 + $0x110] ss:$8 sps:$4 sm:$0xff]  }
 0x3a8   :  { %5971 = vmatprep.subr.bf16.mxu1 %v7716_v11  ;;  %v7818_v11 = vld [vmem:[#allocation12 + $0x104] ss:$8 sps:$4 sm:$0xff]  }
 0x3a9   :  { %5931 = vmatpush2.bf16.msra.mxu0 %v7711_v35  ;;  %v7774_v35 = vld [vmem:[#allocation12 + $0xe0] ss:$8 sps:$4 sm:$0xff]  }
 0x3aa   :  { %5932 = vmatprep.subr.bf16.mxu0 %v7719_v19  ;;  %v7779_v19 = vld [vmem:[#allocation12 + $0xd4] ss:$8 sps:$4 sm:$0xff]  }
 0x3ab   :  { %5972 = vmatpush2.bf16.msra.mxu1 %v7714_v29  ;;  %v7816_v29 = vld [vmem:[#allocation12 + $0x100] ss:$8 sps:$4 sm:$0xff]  }
 0x3ac   :  { %5973 = vmatprep.subr.bf16.mxu1 %v7722_v12  ;;  %v7821_v12 = vld [vmem:[#allocation12 + $0x1f4] ss:$8 sps:$4 sm:$0xff]  }
 0x3ad   :  { %5933 = vmatpush2.bf16.msra.mxu0 %v7717_v15  ;;  %v7777_v15 = vld [vmem:[#allocation12 + $0xd0] ss:$8 sps:$4 sm:$0xff]  }
 0x3ae   :  { %5934 = vmatprep.subr.bf16.mxu0 %v7725_v14  ;;  %v7782_v14 = vld [vmem:[#allocation12 + $0xc4] ss:$8 sps:$4 sm:$0xff]  }
 0x3af   :  { %5974 = vmatpush2.bf16.msra.mxu1 %v7720_v16  ;;  %v7819_v16 = vld [vmem:[#allocation12 + $0x1f0] ss:$8 sps:$4 sm:$0xff]  }
 0x3b0   :  { %5975 = vmatprep.subr.bf16.mxu1 %v7728_v17  ;;  %v7824_v17 = vld [vmem:[#allocation12 + $0x1e4] ss:$8 sps:$4 sm:$0xff]  }
 0x3b1   :  { %5935 = vmatpush2.bf16.msra.mxu0 %v7723_v18  ;;  %v7780_v18 = vld [vmem:[#allocation12 + $0xc0] ss:$8 sps:$4 sm:$0xff]  }
 0x3b2   :  { %5936 = vmatprep.subr.bf16.mxu0 %v7731_v20  ;;  %v7785_v20 = vld [vmem:[#allocation12 + $0xb4] ss:$8 sps:$4 sm:$0xff]  }
 0x3b3   :  { %5976 = vmatpush2.bf16.msra.mxu1 %v7726_v32  ;;  %v7822_v32 = vld [vmem:[#allocation12 + $0x1e0] ss:$8 sps:$4 sm:$0xff]  }
 0x3b4   :  { %5977 = vmatprep.subr.bf16.mxu1 %v7734_v13  ;;  %v7827_v13 = vld [vmem:[#allocation12 + $0x1d4] ss:$8 sps:$4 sm:$0xff]  }
 0x3b5   :  { %5937 = vmatpush2.bf16.msra.mxu0 %v7729_v50  ;;  %v7783_v50 = vld [vmem:[#allocation12 + $0xb0] ss:$8 sps:$4 sm:$0xff]  }
 0x3b6   :  { %5938 = vmatprep.subr.bf16.mxu0 %v7737_v22  ;;  %v7788_v22 = vld [vmem:[#allocation12 + $0xa4] ss:$8 sps:$4 sm:$0xff]  }
 0x3b7   :  { %5978 = vmatpush2.bf16.msra.mxu1 %v7732_v24  ;;  %v7825_v24 = vld [vmem:[#allocation12 + $0x1d0] ss:$8 sps:$4 sm:$0xff]  }
 0x3b8   :  { %5979 = vmatprep.subr.bf16.mxu1 %v7740_v25  ;;  %v7830_v25 = vld [vmem:[#allocation12 + $0x1c4] ss:$8 sps:$4 sm:$0xff]  }
 0x3b9   :  { %5939 = vmatpush2.bf16.msra.mxu0 %v7735_v41  ;;  %v7786_v41 = vld [vmem:[#allocation12 + $0xa0] ss:$8 sps:$4 sm:$0xff]  }
 0x3ba   :  { %5940 = vmatprep.subr.bf16.mxu0 %v7743_v26  ;;  %v7791_v26 = vld [vmem:[#allocation12 + $0x94] ss:$8 sps:$4 sm:$0xff]  }
 0x3bb   :  { %5980 = vmatpush2.bf16.msra.mxu1 %v7738_v27  ;;  %v7828_v27 = vld [vmem:[#allocation12 + $0x1c0] ss:$8 sps:$4 sm:$0xff]  }
 0x3bc   :  { %5981 = vmatprep.subr.bf16.mxu1 %v7746_v30  ;;  %v7833_v30 = vld [vmem:[#allocation12 + $0x1b4] ss:$8 sps:$4 sm:$0xff]  }
 0x3bd   :  { %5941 = vmatpush2.bf16.msra.mxu0 %v7741_v31  ;;  %v7789_v31 = vld [vmem:[#allocation12 + $0x90] ss:$8 sps:$4 sm:$0xff]  }
 0x3be   :  { %6396 = vmatprep.subr.bf16.mxu0 %v7749_v63  ;;  %v7794_v63 = vld [vmem:[#allocation12 + $0x84] ss:$8 sps:$4 sm:$0xff]  }
 0x3bf   :  { %5982 = vmatpush2.bf16.msra.mxu1 %v7744_v36  ;;  %v7831_v36 = vld [vmem:[#allocation12 + $0x1b0] ss:$8 sps:$4 sm:$0xff]  }
 0x3c0   :  { %5943 = vmatmul.mubr.bf16.vlgmr.msra.gmra.mxu0 %v8294_v21  ;;  %6437 = vmatprep.subr.bf16.mxu1 %v7797_v52  ;;  %v7798_v21 = vld [vmem:[#allocation12 + $0x160] ss:$8 sps:$4 sm:$0xff]  }
 0x3c1   :  { %6397 = vmatpush1.bf16.msra.mxu0 %v7747_v51  ;;  %v7792_v51 = vld [vmem:[#allocation12 + $0x80] ss:$8 sps:$4 sm:$0xff]  }
 0x3c2   :  { %5984 = vmatmul.mubr.bf16.vlgmr.msra.gmra.mxu1 %v8300_v60  ;;  %6398 = vmatprep.subr.bf16.mxu0 %v7752_v37  ;;  %v7759_v60 = vld [vmem:[#allocation12 + $0x30] ss:$8 sps:$4 sm:$0xff]   ;;  %v7836_v37 = vld [vmem:[#allocation12 + $0x1a4] ss:$8 sps:$4 sm:$0xff]  }
 0x3c3   :  { %6438 = vmatpush1.bf16.msra.mxu1 %v7795_v46 }
 0x3c4   :  { %6439 = vmatprep.subr.bf16.mxu1 %v7800_v61  ;;  %v7839_v61 = vld [vmem:[#allocation12 + $0x194] ss:$8 sps:$4 sm:$0xff]  }
 0x3c5   :  { %6399 = vmatpush1.bf16.msra.mxu0 %v7750_v43 }
 0x3c6   :  { %6400 = vmatprep.subr.bf16.mxu0 %v7755_v56  ;;  %v7834_v56 = vld [vmem:[#allocation12 + $0x1a0] ss:$8 sps:$4 sm:$0xff]  }
 0x3c7   :  { %6440 = vmatpush1.bf16.msra.mxu1 %v7798_v21 }
 0x3c8   :  { %6441 = vmatprep.subr.bf16.mxu1 %v7803_v48  ;;  %v7837_v48 = vld [vmem:[#allocation12 + $0x190] ss:$8 sps:$4 sm:$0xff]  }
 0x3c9   :  { %6401 = vmatpush1.bf16.msra.mxu0 %v7753_v23 }
 0x3ca   :  { %6402 = vmatprep.subr.bf16.mxu0 %v7758_v45 }
 0x3cb   :  { %6442 = vmatpush1.bf16.msra.mxu1 %v7801_v62 }
 0x3cc   :  { %6443 = vmatprep.subr.bf16.mxu1 %v7806_v0 }
 0x3cd   :  { %6403 = vmatpush1.bf16.msra.mxu0 %v7756_v38 }
 0x3ce   :  { %6404 = vmatprep.subr.bf16.mxu0 %v7761_v47 }
 0x3cf   :  { %6444 = vmatpush1.bf16.msra.mxu1 %v7804_v9  ;;  %v7840_v9 = vld [vmem:[#allocation12 + $0x180] ss:$8 sps:$4 sm:$0xff]  }
 0x3d0   :  { %6445 = vmatprep.subr.bf16.mxu1 %v7809_v54 }
 0x3d1   :  { %6405 = vmatpush1.bf16.msra.mxu0 %v7759_v60 }
 0x3d2   :  { %6406 = vmatprep.subr.bf16.mxu0 %v7764_v49 }
 0x3d3   :  { %6446 = vmatpush1.bf16.msra.mxu1 %v7807_v3 }
 0x3d4   :  { %6447 = vmatprep.subr.bf16.mxu1 %v7812_v33 }
 0x3d5   :  { %6407 = vmatpush1.bf16.msra.mxu0 %v7762_v1 }
 0x3d6   :  { %6408 = vmatprep.subr.bf16.mxu0 %v7767_v6  ;;  %v7842_v6 = vld [vmem:[#allocation12 + $0x184] ss:$8 sps:$4 sm:$0xff]  }
 0x3d7   :  { %6448 = vmatpush1.bf16.msra.mxu1 %v7810_v2 }
 0x3d8   :  { %6449 = vmatprep.subr.bf16.mxu1 %v7815_v5 }
 0x3d9   :  { %6409 = vmatpush1.bf16.msra.mxu0 %v7765_v55 }
 0x3da   :  { %6410 = vmatprep.subr.bf16.mxu0 %v7770_v57 }
 0x3db   :  { %6450 = vmatpush1.bf16.msra.mxu1 %v7813_v10 }
 0x3dc   :  { %6451 = vmatprep.subr.bf16.mxu1 %v7818_v11 }
 0x3dd   :  { %6411 = vmatpush1.bf16.msra.mxu0 %v7768_v53 }
 0x3de   :  { %6412 = vmatprep.subr.bf16.mxu0 %v7773_v28 }
 0x3df   :  { %6452 = vmatpush1.bf16.msra.mxu1 %v7816_v29 }
 0x3e0   :  { %6453 = vmatprep.subr.bf16.mxu1 %v7821_v12 }
 0x3e1   :  { %6413 = vmatpush2.bf16.msra.mxu0 %v7771_v7  ;;  %v4375_v7 = vrot.slane %v8306_v58, %v3992_v40 }
 0x3e2   :  { %6414 = vmatprep.subr.bf16.mxu0 %v7776_v8  ;;  %v4379_v8 = vrot.slane %v8306_v58, %v3996_v42 }
 0x3e3   :  { %6454 = vmatpush2.bf16.msra.mxu1 %v7819_v16 }
 0x3e4   :  { %6455 = vmatprep.subr.bf16.mxu1 %v7824_v17 }
 0x3e5   :  { %6415 = vmatpush2.bf16.msra.mxu0 %v7774_v35 }
 0x3e6   :  { %6416 = vmatprep.subr.bf16.mxu0 %v7779_v19 }
 0x3e7   :  { %6456 = vmatpush2.bf16.msra.mxu1 %v7822_v32 }
 0x3e8   :  { %6457 = vmatprep.subr.bf16.mxu1 %v7827_v13 }
 0x3e9   :  { %6417 = vmatpush2.bf16.msra.mxu0 %v7777_v15 }
 0x3ea   :  { %6418 = vmatprep.subr.bf16.mxu0 %v7782_v14 }
 0x3eb   :  { %6458 = vmatpush2.bf16.msra.mxu1 %v7825_v24 }
 0x3ec   :  { %6459 = vmatprep.subr.bf16.mxu1 %v7830_v25 }
 0x3ed   :  { %6419 = vmatpush2.bf16.msra.mxu0 %v7780_v18 }
 0x3ee   :  { %6420 = vmatprep.subr.bf16.mxu0 %v7785_v20 }
 0x3ef   :  { %6460 = vmatpush2.bf16.msra.mxu1 %v7828_v27  ;;  %v6064_v27 = vld [vmem:[#allocation14] sm:$0x3] }
 0x3f0   :  { %6461 = vmatprep.subr.bf16.mxu1 %v7833_v30  ;;  %v6069_v30 = vrot.slane %v6064_v27, %v8211_v34 }
 0x3f1   :  { %6421 = vmatpush2.bf16.msra.mxu0 %v7783_v50 }
 0x3f2   :  { %6422 = vmatprep.subr.bf16.mxu0 %v7788_v22 }
 0x3f3   :  { %6462 = vmatpush2.bf16.msra.mxu1 %v7831_v36 }
 0x3f4   :  { %6463 = vmatprep.subr.bf16.mxu1 %v7836_v37 }
 0x3f5   :  { %6423 = vmatpush2.bf16.msra.mxu0 %v7786_v41 }
 0x3f6   :  { %6424 = vmatprep.subr.bf16.mxu0 %v7791_v26 }
 0x3f7   :  { %6464 = vmatpush2.bf16.msra.mxu1 %v7834_v56 }
 0x3f8   :  { %6465 = vmatprep.subr.bf16.mxu1 %v7839_v61 }
 0x3f9   :  { %6425 = vmatpush2.bf16.msra.mxu0 %v7789_v31  ;;  %v6073_v31 = vrot.slane %v6064_v27, %v8216_v39 }
 0x3fa   :  { %6426 = vmatprep.subr.bf16.mxu0 %v7794_v63  ;;  %v6480_v63 = vld [vmem:[#allocation15] sm:$0x3] }
 0x3fb   :  { %6466 = vmatpush2.bf16.msra.mxu1 %v7837_v48  ;;  %v6485_v56 = vrot.slane %v6480_v63, %v8211_v34 }
 0x3fc   :  { %6467 = vmatprep.subr.bf16.mxu1 %v7842_v6 }
 0x3fd   :  { %6427 = vmatpush2.bf16.msra.mxu0 %v7792_v51 }
 0x3ff   :  { %6468 = vmatpush2.bf16.msra.mxu1 %v7840_v9 }
 0x400   :  { %v5780_v43 = vpop.f32.mrf.mxu0 }
 0x401   :  { %v5781_v23 = vadd.f32 %v5780_v43, %v8312_v59 }
 0x402   :  { %v5782_v45 = vpop.f32.mrf.mxu0  ;;  %v5821_v46 = vpop.f32.mrf.mxu1 }
 0x403   :  { %v5783_v52 = vadd.f32 %v5782_v45, %v8314_v4  ;;  %v5822_v38 = vadd.f32 %v5821_v46, %v5781_v23 }
 0x404   :  { %v5784_v47 = vpop.f32.mrf.mxu0  ;;  %v5823_v21 = vpop.f32.mrf.mxu1 }
 0x405   :  { %v5824_v60 = vadd.f32 %v5823_v21, %v5783_v52  ;;  %v5992_v49 = vmax.f32 %v5822_v38, 0.0  ;;  %v6489_v52 = vrot.slane %v6480_v63, %v8216_v39 }
 0x406   :  { %v5785_v62 = vpop.f32.mrf.mxu0  ;;  %v5825_v0 = vpop.f32.mrf.mxu1 }
 0x407   :  { %v5993_v1 = vmax.f32 %v5824_v60, 0.0  ;;  %v5996_v55 = vpack.c.bf16 %v5992_v49, %v5992_v49  ;;  %v6501_v0 = vstv %s8348_s8 }
 0x408   :  { %v5826_v59 = vpop.f32.mrf.mxu1 }
 0x409   :  { %v5997_v54 = vpack.c.bf16 %v5993_v1, %v5993_v1 }
 0x40b   :  { %6428 = vmatprep.mubr.bf16.mxu0 %v5997_v54 }
 0x40c   :  { %6429 = vmatmul.mubr.bf16.vlgmr.msra.gmra.mxu0 %v5996_v55 }
 0x440   :  { %v5862_v4 = vpop.f32.mrf.mxu0 }
 0x441   :  { %v5863_v10 = vadd.f32 %v5862_v4, %v4375_v7 }
 0x442   :  { %v5864_v57 = vpop.f32.mrf.mxu0  ;;  %v5903_v3 = vpop.f32.mrf.mxu1 }
 0x443   :  { %v5865_v11 = vadd.f32 %v5864_v57, %v4379_v8  ;;  %v5904_v35 = vadd.f32 %v5903_v3, %v5863_v10 }
 0x444   :  { %v5866_v33 = vpop.f32.mrf.mxu0  ;;  %v5905_v53 = vpop.f32.mrf.mxu1 }
 0x445   :  { %v5906_v29 = vadd.f32 %v5905_v53, %v5865_v11 }
 0x446   :  { %v5867_v28 = vpop.f32.mrf.mxu0  ;;  %v5907_v2 = vpop.f32.mrf.mxu1 }
 0x448   :  { %v5908_v5 = vpop.f32.mrf.mxu1 }
 0x480   :  { %v5944_v19 = vpop.f32.mrf.mxu0 }
 0x481   :  { %v5945_v12 = vadd.f32 %v5944_v19, %v5904_v35 }
 0x482   :  { %v5946_v15 = vpop.f32.mrf.mxu0  ;;  %v5985_v14 = vpop.f32.mrf.mxu1 }
 0x483   :  { %v5947_v16 = vadd.f32 %v5946_v15, %v5906_v29  ;;  %v5986_v17 = vadd.f32 %v5985_v14, %v5945_v12 }
 0x484   :  { %v5948_v18 = vpop.f32.mrf.mxu0  ;;  %v5987_v20 = vpop.f32.mrf.mxu1 }
 0x485   :  { %v5988_v32 = vadd.f32 %v5987_v20, %v5947_v16  ;;  %v5994_v13 = vmax.f32 %v5986_v17, 0.0 }
 0x486   :  { %v5949_v50 = vpop.f32.mrf.mxu0  ;;  %v5989_v40 = vpop.f32.mrf.mxu1 }
 0x487   :  { %v5995_v22 = vmax.f32 %v5988_v32, 0.0  ;;  %v5998_v42 = vpack.c.bf16 %v5994_v13, %v5994_v13 }
 0x488   :  { %v5990_v44 = vpop.f32.mrf.mxu1 }
 0x489   :  { %v5999_v24 = vpack.c.bf16 %v5995_v22, %v5995_v22 }
 0x48b   :  { %6469 = vmatprep.mubr.bf16.mxu1 %v5999_v24 }
 0x48c   :  { %6470 = vmatmul.mubr.bf16.vlgmr.msra.gmra.mxu1 %v5998_v42 }
 0x4cc   :  { %v6430_v58 = vpop.f32.mrf.mxu0 }
 0x4cd   :  { %v6431_v36 = vadd.f32 %v6430_v58, %v6069_v30 }
 0x4ce   :  { %v6432_v25 = vpop.f32.mrf.mxu0 }
 0x4cf   :  { %v6433_v37 = vadd.f32 %v6432_v25, %v6073_v31 }
 0x4d0   :  { %v6434_v41 = vpop.f32.mrf.mxu0 }
 0x4d2   :  { %v6435_v26 = vpop.f32.mrf.mxu0 }
 0x54c   :  { %v6471_v51 = vpop.f32.mrf.mxu1 }
 0x54d   :  { %v6472_v43 = vadd.f32 %v6471_v51, %v6431_v36 }
 0x54e   :  { %v6473_v23 = vpop.f32.mrf.mxu1 }
 0x54f   :  { %v6478_v45 = vmax.f32 %v6472_v43, 0.0  ;;  %v6474_v46 = vadd.f32 %v6473_v23, %v6433_v37 }
 0x550   :  { %v6475_v38 = vpop.f32.mrf.mxu1 }
 0x551   :  { %v6479_v61 = vmax.f32 %v6474_v46, 0.0  ;;  %v6492_v47 = vmul.f32 %v6485_v56, %v6478_v45 }
 0x552   :  { %v6476_v21 = vpop.f32.mrf.mxu1 }
 0x553   :  { %v6493_v48 = vmul.f32 %v6489_v52, %v6479_v61  ;;  %v6495_v60 = vsel %vm6494_vm0, %v6492_v47, 0.0 }
 0x555   :  { %v6496_v49 = vsel %vm6494_vm0, %v6493_v48, 0.0 }
 0x556   :  { %v6497_v62 = vadd.f32 %v6496_v49, %v6495_v60 }
 0x558   :  { %6498 = vadd.xlane.f32.xlu0 %v6497_v62 }
 0x5e1   :  { %v6499_v34 = vpop.xlane.xlu0 %6498 }
 0x5e2   :  { %v6502_v1 = vadd.f32 %v6501_v0, %v6499_v34 }
 0x5e4   :  { %6504 = vst.msk [vmem:[%s8349_s9] sm:$0x3] %vm6503_vm1, %v6502_v1 }
 0x5e5   :  { %6509 = vsyncpa [#allocation5], 1 }
 0x5e6   :  { %6510 = vsyncpa [#allocation7], 1 }
 0x5e7   :  { %6511 = vsyncpa [#allocation10], 1 }
 0x5e8   :  { %6512 = vsyncpa [#allocation13], 1 }
 0x5e9   :  { %6513 = vsyncpa [#allocation16], 1 }

// kernel: tpu_custom_call.1
= control target key start
LH: loop header
LB: loop body
LE: loop exit
PB: predicated region body
PF: predicated region fallthrough
CT: control target
= control target key end

     0   :  { %15 = vsyncpa [#allocation5], 0  ;;  %s8340_s0 = inlined_call_operand.hbm [shape: bf16[2,1024], index: 0, kind: input, shape index: {}]   ;;  %s8341_s1 = inlined_call_operand.hbm [shape: bf16[1024,1024], index: 1, kind: input, shape index: {}]   ;;  %s8342_s2 = inlined_call_operand.hbm [shape: f32[1,1024], index: 2, kind: input, shape index: {}]   ;;  %s8343_s3 = inlined_call_operand.hbm [shape: bf16[1024,512], index: 3, kind: input, shape index: {}]   ;;  %s8344_s4 = inlined_call_operand.hbm [shape: f32[1,512], index: 4, kind: input, shape index: {}]   ;;  %s8345_s5 = inlined_call_operand.hbm [shape: bf16[512,256], index: 5, kind: input, shape index: {}]   ;;  %s8346_s6 = inlined_call_operand.hbm [shape: f32[1,256], index: 6, kind: input, shape index: {}]   ;;  %s8347_s7 = inlined_call_operand.hbm [shape: f32[1,256], index: 7, kind: input, shape index: {}]   ;;  %s8348_s8 = inlined_call_operand.<no memory space> [shape: f32[1,1], index: 8, kind: input, shape index: {}]   ;;  %s8349_s9 = inlined_call_operand.vmem [shape: f32[2,1], index: 9, kind: output, shape index: {}]  }
   0x1   :  { %16 = vsyncpa [#allocation7], 0 }
   0x2   :  { %17 = vsyncpa [#allocation10], 0 }
   0x3   :  { %18 = vsyncpa [#allocation13], 0 }
   0x4   :  { %19 = vsyncpa [#allocation16], 0  ;;  %s8013_s30 = smov [#allocation6]  }
   0x5   :  { %s35_s10 = sshll.u32 %s8013_s30, 4  ;;  %s36_s10 = int_to_ptr.vmem [resolvable:$true] %s35_s10 }
   0x6   :  { %s7851_s11 = scalar_lea.vmem %s36_s10, 65536  ;;  %p7856_p1 = scmp.lt.s32.totalorder %s36_s10, %s36_s10 }
   0x7   :  { %p7852_p0 = scmp.ne.s32.totalorder %s36_s10, %s7851_s11  ;;  %p7857_p2 = scmp.lt.s32.totalorder %s7851_s11, %s7851_s11 }
   0x9   :  { %p7858_p3 = por %p7857_p2, %p7856_p1 }
   0xb   :  { %p7859_p4 = pnand %p7858_p3, %p7852_p0 }
   0xd   :  { %7862 = shalt.err (!%p7859_p4)
}
   0xe   :  { %s8014_s12 = smov 512   ;;  %s8015_s13 = smov 32  }
   0xf   :  { %41 = dma.hbm_to_vmem [thread:$0]  %s8341_s1, 65536, %s36_s10, [#allocation7], %s8014_s12, %s8014_s12, %s8015_s13  }
  0x10   :  { %s8016_s16 = smov [#allocation9]  }
  0x11   :  { %s57_s17 = sshll.u32 %s8016_s16, 4  ;;  %s58_s17 = int_to_ptr.vmem [resolvable:$true] %s57_s17 }
  0x12   :  { %s7871_s18 = scalar_lea.vmem %s58_s17, 32768  ;;  %p7876_p6 = scmp.lt.s32.totalorder %s58_s17, %s58_s17 }
  0x13   :  { %p7872_p5 = scmp.ne.s32.totalorder %s58_s17, %s7871_s18  ;;  %p7877_p7 = scmp.lt.s32.totalorder %s7871_s18, %s7871_s18 }
  0x15   :  { %p7878_p8 = por %p7877_p7, %p7876_p6 }
  0x17   :  { %p7879_p9 = pnand %p7878_p8, %p7872_p5 }
  0x19   :  { %7882 = shalt.err (!%p7879_p9)
}
  0x1a   :  { %s8017_s19 = smov 256   ;;  %s8018_s20 = smov 16  }
  0x1b   :  { %63 = dma.hbm_to_vmem [thread:$0]  %s8343_s3, 32768, %s58_s17, [#allocation10], %s8017_s19, %s8017_s19, %s8018_s20  }
  0x1c   :  { %s8019_s23 = smov [#allocation12]  }
  0x1d   :  { %s79_s24 = sshll.u32 %s8019_s23, 4  ;;  %s80_s24 = int_to_ptr.vmem [resolvable:$true] %s79_s24 }
  0x1e   :  { %s7891_s1 = scalar_lea.vmem %s80_s24, 8192  ;;  %p7896_p11 = scmp.lt.s32.totalorder %s80_s24, %s80_s24 }
  0x1f   :  { %p7892_p10 = scmp.ne.s32.totalorder %s80_s24, %s7891_s1  ;;  %p7897_p12 = scmp.lt.s32.totalorder %s7891_s1, %s7891_s1 }
  0x21   :  { %p7898_p13 = por %p7897_p12, %p7896_p11 }
  0x23   :  { %p7899_p0 = pnand %p7898_p13, %p7892_p10 }
  0x25   :  { %7902 = shalt.err (!%p7899_p0)
}
  0x26   :  { %s8020_s25 = smov 128   ;;  %s8021_s26 = smov 8  }
  0x27   :  { %85 = dma.hbm_to_vmem [thread:$0]  %s8345_s5, 8192, %s80_s24, [#allocation13], %s8020_s25, %s8020_s25, %s8021_s26  }
  0x28   :  { %s8022_s29 = smov [#allocation4]   ;;  %s8023_s3 = smov [#allocation8]  }
  0x29   :  { %s26_s30 = sshll.u32 %s8022_s29, 4  ;;  %s48_s10 = sshll.u32 %s8023_s3, 4  ;;  %s27_s30 = int_to_ptr.vmem [resolvable:$true] %s26_s30  ;;  %s49_s10 = int_to_ptr.vmem [resolvable:$true] %s48_s10 }
  0x2a   :  { %s7911_s11 = scalar_lea.vmem %s27_s30, 128  ;;  %p7916_p2 = scmp.lt.s32.totalorder %s27_s30, %s27_s30 }
  0x2b   :  { %p7912_p1 = scmp.ne.s32.totalorder %s27_s30, %s7911_s11  ;;  %p7917_p3 = scmp.lt.s32.totalorder %s7911_s11, %s7911_s11 }
  0x2d   :  { %p7918_p4 = por %p7917_p3, %p7916_p2 }
  0x2f   :  { %p7919_p5 = pnand %p7918_p4, %p7912_p1 }
  0x31   :  { %7922 = shalt.err (!%p7919_p5)
}
  0x32   :  { %29 = dma.hbm_to_vmem [thread:$0]  %s8340_s0, 128, %s27_s30, [#allocation5]  }
  0x33   :  { %s7931_s14 = scalar_lea.vmem %s49_s10, 128  ;;  %p7936_p7 = scmp.lt.s32.totalorder %s49_s10, %s49_s10 }
  0x34   :  { %p7932_p6 = scmp.ne.s32.totalorder %s49_s10, %s7931_s14  ;;  %p7937_p8 = scmp.lt.s32.totalorder %s7931_s14, %s7931_s14 }
  0x36   :  { %p7938_p9 = por %p7937_p8, %p7936_p7 }
  0x38   :  { %p7939_p10 = pnand %p7938_p9, %p7932_p6 }
  0x3a   :  { %7942 = shalt.err (!%p7939_p10)
}
  0x3b   :  { %51 = dma.hbm_to_vmem [thread:$0]  %s8342_s2, 128, %s49_s10, [#allocation7]  }
  0x3c   :  { %s8024_s16 = smov [#allocation11]   ;;  %s8025_s18 = smov [#allocation14]  }
  0x3d   :  { %s70_s17 = sshll.u32 %s8024_s16, 4  ;;  %s92_s19 = sshll.u32 %s8025_s18, 4  ;;  %s71_s17 = int_to_ptr.vmem [resolvable:$true] %s70_s17  ;;  %s93_s19 = int_to_ptr.vmem [resolvable:$true] %s92_s19 }
  0x3e   :  { %s7951_s20 = scalar_lea.vmem %s71_s17, 64  ;;  %p7956_p12 = scmp.lt.s32.totalorder %s71_s17, %s71_s17 }
  0x3f   :  { %p7952_p11 = scmp.ne.s32.totalorder %s71_s17, %s7951_s20  ;;  %p7957_p13 = scmp.lt.s32.totalorder %s7951_s20, %s7951_s20 }
  0x41   :  { %p7958_p0 = por %p7957_p13, %p7956_p12 }
  0x43   :  { %p7959_p1 = pnand %p7958_p0, %p7952_p11 }
  0x45   :  { %7962 = shalt.err (!%p7959_p1)
}
  0x46   :  { %73 = dma.hbm_to_vmem [thread:$0]  %s8344_s4, 64, %s71_s17, [#allocation10]  }
  0x47   :  { %s7971_s22 = scalar_lea.vmem %s93_s19, 32  ;;  %p7976_p3 = scmp.lt.s32.totalorder %s93_s19, %s93_s19 }
  0x48   :  { %p7972_p2 = scmp.ne.s32.totalorder %s93_s19, %s7971_s22  ;;  %p7977_p4 = scmp.lt.s32.totalorder %s7971_s22, %s7971_s22 }
  0x4a   :  { %p7978_p5 = por %p7977_p4, %p7976_p3 }
  0x4c   :  { %p7979_p6 = pnand %p7978_p5, %p7972_p2 }
  0x4e   :  { %7982 = shalt.err (!%p7979_p6)
}
  0x4f   :  { %95 = dma.hbm_to_vmem [thread:$0]  %s8346_s6, 32, %s93_s19, [#allocation13]  }
  0x50   :  { %s8026_s24 = smov [#allocation15]  }
  0x51   :  { %s102_s1 = sshll.u32 %s8026_s24, 4  ;;  %s103_s1 = int_to_ptr.vmem [resolvable:$true] %s102_s1 }
  0x52   :  { %s7991_s25 = scalar_lea.vmem %s103_s1, 32  ;;  %p7996_p8 = scmp.lt.s32.totalorder %s103_s1, %s103_s1 }
  0x53   :  { %p7992_p7 = scmp.ne.s32.totalorder %s103_s1, %s7991_s25  ;;  %p7997_p9 = scmp.lt.s32.totalorder %s7991_s25, %s7991_s25 }
  0x55   :  { %p7998_p10 = por %p7997_p9, %p7996_p8 }
  0x57   :  { %p7999_p11 = pnand %p7998_p10, %p7992_p7 }
  0x59   :  { %8002 = shalt.err (!%p7999_p11)
}
  0x5a   :  { %105 = dma.hbm_to_vmem [thread:$0]  %s8347_s7, 32, %s103_s1, [#allocation16]  }
  0x5b   :  { %8003 = dma.done.wait [#allocation5], 128  }
  0x5c   :  { %8004 = vsyncadd [#allocation5], 4294967168 }
  0x5d   :  { %8005 = dma.done.wait [#allocation7], 65664  }
  0x5e   :  { %8006 = vsyncadd [#allocation7], 4294901632 }
  0x5f   :  { %8007 = dma.done.wait [#allocation10], 32832  }
  0x60   :  { %8008 = vsyncadd [#allocation10], 4294934464 }
  0x61   :  { %8009 = dma.done.wait [#allocation13], 8224  }
  0x62   :  { %8010 = vsyncadd [#allocation13], 4294959072 }
  0x63   :  { %8011 = dma.done.wait [#allocation16], 32  }
  0x64   :  { %8012 = vsyncadd [#allocation16], 4294967264  ;;  %v197_v0 = vld [vmem:[#allocation6 + $0x1c0] sm:$0xff]  ;;  %v8027_v32 = vmov 1966171168   ;;  %v658_v34 = vlaneseq  ;;  %v140_v59 = vld [vmem:[#allocation4] sm:$0xff] }
  0x65   :  { %v201_v1 = vld [vmem:[#allocation6 + $0x1e0] sm:$0xff]  ;;  %v656_v33 = vunpack.c.l.s4 %v8027_v32  ;;  %vm6494_vm0 = vcmask 1041408   ;;  %vm6503_vm1 = vcmask 1024  }
  0x66   :  { %v325_v2 = vld [vmem:[#allocation6 + $0x5c0] sm:$0xff]  ;;  %v6571_v3 = vcombine.high %v197_v0, %v201_v1  ;;  %v6570_v5 = vcombine.low %v197_v0, %v201_v1  ;;  %v8103_v44 = vshrl.u32 %v658_v34, 7 }
  0x67   :  { %v329_v4 = vld [vmem:[#allocation6 + $0x5e0] sm:$0xff]  ;;  %v657_v43 = vunpack.c.0.s8 %v656_v33 }
  0x68   :  { %v189_v6 = vld [vmem:[#allocation6 + $0x180] sm:$0xff]  ;;  %v6699_v8 = vcombine.high %v325_v2, %v329_v4  ;;  %v6698_v9 = vcombine.low %v325_v2, %v329_v4  ;;  %3271 = vmatprep.subr.bf16.mxu0 %v6571_v3 }
  0x69   :  { %v193_v7 = vld [vmem:[#allocation6 + $0x1a0] sm:$0xff]  ;;  %3272 = vmatpush1.bf16.msra.mxu0 %v6570_v5  ;;  %v8106_v53 = vsub.s32 %v657_v43, %v8103_v44 }
  0x6a   :  { %v6563_v10 = vcombine.high %v189_v6, %v193_v7  ;;  %v317_v11 = vld [vmem:[#allocation6 + $0x580] sm:$0xff]  ;;  %3312 = vmatprep.subr.bf16.mxu1 %v6699_v8  ;;  %v6562_v18 = vcombine.low %v189_v6, %v193_v7 }
  0x6b   :  { %v321_v12 = vld [vmem:[#allocation6 + $0x5a0] sm:$0xff]  ;;  %3313 = vmatpush1.bf16.msra.mxu1 %v6698_v9  ;;  %v8109_v63 = vrot.slane %v140_v59, %v8106_v53 }
  0x6c   :  { %v181_v13 = vld [vmem:[#allocation6 + $0x140] sm:$0xff]  ;;  %v6691_v14 = vcombine.high %v317_v11, %v321_v12  ;;  %3273 = vmatprep.subr.bf16.mxu0 %v6563_v10  ;;  %v6690_v19 = vcombine.low %v317_v11, %v321_v12 }
  0x6d   :  { %v185_v15 = vld [vmem:[#allocation6 + $0x160] sm:$0xff]  ;;  %3274 = vmatpush1.bf16.msra.mxu0 %v6562_v18  ;;  %v669_v3 = vcombine.high %v8109_v63, %v8109_v63 }
  0x6e   :  { %v309_v16 = vld [vmem:[#allocation6 + $0x540] sm:$0xff]  ;;  %v6555_v20 = vcombine.high %v181_v13, %v185_v15  ;;  %3314 = vmatprep.subr.bf16.mxu1 %v6691_v14  ;;  %v6554_v26 = vcombine.low %v181_v13, %v185_v15 }
  0x6f   :  { %v313_v17 = vld [vmem:[#allocation6 + $0x560] sm:$0xff]  ;;  %3315 = vmatpush1.bf16.msra.mxu1 %v6690_v19  ;;  %v8114_v9 = vrot.slane %v669_v3, %v8106_v53  ;;  %v654_v19 = vcombine.high %v140_v59, %v140_v59 }
  0x70   :  { %v6683_v21 = vcombine.high %v309_v16, %v313_v17  ;;  %v173_v22 = vld [vmem:[#allocation6 + $0x100] sm:$0xff]  ;;  %3275 = vmatprep.subr.bf16.mxu0 %v6555_v20  ;;  %v6682_v27 = vcombine.low %v309_v16, %v313_v17 }
  0x71   :  { %v177_v23 = vld [vmem:[#allocation6 + $0x120] sm:$0xff]  ;;  %3276 = vmatpush1.bf16.msra.mxu0 %v6554_v26  ;;  %3303 = vmatprep.mubr.bf16.mxu0 %v8114_v9  ;;  %v8119_v13 = vcombine.high %v8114_v9, %v8114_v9 }
  0x72   :  { %v301_v24 = vld [vmem:[#allocation6 + $0x500] sm:$0xff]  ;;  %v6547_v28 = vcombine.high %v173_v22, %v177_v23  ;;  %3316 = vmatprep.subr.bf16.mxu1 %v6683_v21  ;;  %v6546_v37 = vcombine.low %v173_v22, %v177_v23 }
  0x73   :  { %v305_v25 = vld [vmem:[#allocation6 + $0x520] sm:$0xff]  ;;  %3317 = vmatpush1.bf16.msra.mxu1 %v6682_v27  ;;  %3344 = vmatprep.mubr.bf16.mxu1 %v8119_v13 }
  0x74   :  { %v6675_v29 = vcombine.high %v301_v24, %v305_v25  ;;  %v165_v30 = vld [vmem:[#allocation6 + $0xc0] sm:$0xff]  ;;  %3277 = vmatprep.subr.bf16.mxu0 %v6547_v28  ;;  %v6674_v38 = vcombine.low %v301_v24, %v305_v25  ;;  %v8123_v28 = vrot.slane %v654_v19, %v8106_v53 }
  0x75   :  { %v169_v31 = vld [vmem:[#allocation6 + $0xe0] sm:$0xff]  ;;  %3278 = vmatpush1.bf16.msra.mxu0 %v6546_v37 }
  0x76   :  { %v293_v35 = vld [vmem:[#allocation6 + $0x4c0] sm:$0xff]  ;;  %v6539_v39 = vcombine.high %v165_v30, %v169_v31  ;;  %3318 = vmatprep.subr.bf16.mxu1 %v6675_v29  ;;  %v6538_v47 = vcombine.low %v165_v30, %v169_v31  ;;  %v8127_v32 = vrot.slane %v8123_v28, %v8106_v53 }
  0x77   :  { %v297_v36 = vld [vmem:[#allocation6 + $0x4e0] sm:$0xff]  ;;  %3319 = vmatpush1.bf16.msra.mxu1 %v6674_v38 }
  0x78   :  { %v6667_v40 = vcombine.high %v293_v35, %v297_v36  ;;  %v157_v41 = vld [vmem:[#allocation6 + $0x80] sm:$0xff]  ;;  %3279 = vmatprep.subr.bf16.mxu0 %v6539_v39  ;;  %v6666_v48 = vcombine.low %v293_v35, %v297_v36 }
  0x79   :  { %v161_v42 = vld [vmem:[#allocation6 + $0xa0] sm:$0xff]  ;;  %3280 = vmatpush1.bf16.msra.mxu0 %v6538_v47 }
  0x7a   :  { %v285_v45 = vld [vmem:[#allocation6 + $0x480] sm:$0xff]  ;;  %v6531_v49 = vcombine.high %v157_v41, %v161_v42  ;;  %3320 = vmatprep.subr.bf16.mxu1 %v6667_v40  ;;  %v6530_v56 = vcombine.low %v157_v41, %v161_v42 }
  0x7b   :  { %v289_v46 = vld [vmem:[#allocation6 + $0x4a0] sm:$0xff]  ;;  %3321 = vmatpush1.bf16.msra.mxu1 %v6666_v48 }
  0x7c   :  { %v6659_v50 = vcombine.high %v285_v45, %v289_v46  ;;  %v149_v51 = vld [vmem:[#allocation6 + $0x40] sm:$0xff]  ;;  %3281 = vmatprep.subr.bf16.mxu0 %v6531_v49  ;;  %v6658_v57 = vcombine.low %v285_v45, %v289_v46 }
  0x7d   :  { %v153_v52 = vld [vmem:[#allocation6 + $0x60] sm:$0xff]  ;;  %3282 = vmatpush1.bf16.msra.mxu0 %v6530_v56 }
  0x7e   :  { %v277_v54 = vld [vmem:[#allocation6 + $0x440] sm:$0xff]  ;;  %v6523_v58 = vcombine.high %v149_v51, %v153_v52  ;;  %3322 = vmatprep.subr.bf16.mxu1 %v6659_v50  ;;  %v6522_v2 = vcombine.low %v149_v51, %v153_v52 }
  0x7f   :  { %v281_v55 = vld [vmem:[#allocation6 + $0x460] sm:$0xff]  ;;  %3323 = vmatpush1.bf16.msra.mxu1 %v6658_v57 }
  0x80   :  { %v6651_v60 = vcombine.high %v277_v54, %v281_v55  ;;  %v141_v61 = vld [vmem:[#allocation6] sm:$0xff]  ;;  %3283 = vmatprep.subr.bf16.mxu0 %v6523_v58  ;;  %v6650_v4 = vcombine.low %v277_v54, %v281_v55 }
  0x81   :  { %v145_v62 = vld [vmem:[#allocation6 + $0x20] sm:$0xff]  ;;  %3284 = vmatpush1.bf16.msra.mxu0 %v6522_v2 }
  0x82   :  { %v269_v0 = vld [vmem:[#allocation6 + $0x400] sm:$0xff]  ;;  %v6515_v5 = vcombine.high %v141_v61, %v145_v62  ;;  %3324 = vmatprep.subr.bf16.mxu1 %v6651_v60  ;;  %v6514_v12 = vcombine.low %v141_v61, %v145_v62 }
  0x83   :  { %v273_v1 = vld [vmem:[#allocation6 + $0x420] sm:$0xff]  ;;  %3325 = vmatpush1.bf16.msra.mxu1 %v6650_v4 }
  0x84   :  { %v6643_v6 = vcombine.high %v269_v0, %v273_v1  ;;  %v261_v7 = vld [vmem:[#allocation6 + $0x3c0] sm:$0xff]  ;;  %3285 = vmatprep.subr.bf16.mxu0 %v6515_v5  ;;  %v6642_v14 = vcombine.low %v269_v0, %v273_v1 }
  0x85   :  { %v265_v8 = vld [vmem:[#allocation6 + $0x3e0] sm:$0xff]  ;;  %3286 = vmatpush1.bf16.msra.mxu0 %v6514_v12 }
  0x86   :  { %v389_v10 = vld [vmem:[#allocation6 + $0x7c0] sm:$0xff]  ;;  %v6635_v15 = vcombine.high %v261_v7, %v265_v8  ;;  %3326 = vmatprep.subr.bf16.mxu1 %v6643_v6  ;;  %v6634_v22 = vcombine.low %v261_v7, %v265_v8 }
  0x87   :  { %v393_v11 = vld [vmem:[#allocation6 + $0x7e0] sm:$0xff]  ;;  %3327 = vmatpush1.bf16.msra.mxu1 %v6642_v14 }
  0x88   :  { %v6763_v16 = vcombine.high %v389_v10, %v393_v11  ;;  %v253_v17 = vld [vmem:[#allocation6 + $0x380] sm:$0xff]  ;;  %3287 = vmatprep.subr.bf16.mxu0 %v6635_v15  ;;  %v6762_v23 = vcombine.low %v389_v10, %v393_v11 }
  0x89   :  { %v257_v18 = vld [vmem:[#allocation6 + $0x3a0] sm:$0xff]  ;;  %3288 = vmatpush2.bf16.msra.mxu0 %v6634_v22 }
  0x8a   :  { %v381_v20 = vld [vmem:[#allocation6 + $0x780] sm:$0xff]  ;;  %v6627_v24 = vcombine.high %v253_v17, %v257_v18  ;;  %3328 = vmatprep.subr.bf16.mxu1 %v6763_v16  ;;  %v6626_v31 = vcombine.low %v253_v17, %v257_v18 }
  0x8b   :  { %v385_v21 = vld [vmem:[#allocation6 + $0x7a0] sm:$0xff]  ;;  %3329 = vmatpush2.bf16.msra.mxu1 %v6762_v23  ;;  %v8133_v23 = vrot.slane %v8109_v63, %v8106_v53 }
  0x8c   :  { %v6755_v25 = vcombine.high %v381_v20, %v385_v21  ;;  %v245_v26 = vld [vmem:[#allocation6 + $0x340] sm:$0xff]  ;;  %3289 = vmatprep.subr.bf16.mxu0 %v6627_v24  ;;  %v6754_v33 = vcombine.low %v381_v20, %v385_v21  ;;  %v670_v21 = vcombine.high %v8123_v28, %v8123_v28 }
  0x8d   :  { %v249_v27 = vld [vmem:[#allocation6 + $0x360] sm:$0xff]  ;;  %3290 = vmatpush2.bf16.msra.mxu0 %v6626_v31  ;;  %v8140_v28 = vcombine.high %v8133_v23, %v8133_v23 }
  0x8e   :  { %v373_v29 = vld [vmem:[#allocation6 + $0x740] sm:$0xff]  ;;  %v6619_v34 = vcombine.high %v245_v26, %v249_v27  ;;  %3330 = vmatprep.subr.bf16.mxu1 %v6755_v25  ;;  %v6618_v40 = vcombine.low %v245_v26, %v249_v27 }
  0x8f   :  { %v377_v30 = vld [vmem:[#allocation6 + $0x760] sm:$0xff]  ;;  %3331 = vmatpush2.bf16.msra.mxu1 %v6754_v33  ;;  %v8136_v33 = vrot.slane %v670_v21, %v8106_v53 }
  0x90   :  { %v6747_v35 = vcombine.high %v373_v29, %v377_v30  ;;  %v237_v36 = vld [vmem:[#allocation6 + $0x300] sm:$0xff]  ;;  %3291 = vmatprep.subr.bf16.mxu0 %v6619_v34  ;;  %v6746_v41 = vcombine.low %v373_v29, %v377_v30 }
  0x91   :  { %v241_v37 = vld [vmem:[#allocation6 + $0x320] sm:$0xff]  ;;  %3292 = vmatpush2.bf16.msra.mxu0 %v6618_v40  ;;  %v8145_v53 = vcombine.high %v8136_v33, %v8136_v33 }
  0x92   :  { %v365_v38 = vld [vmem:[#allocation6 + $0x700] sm:$0xff]  ;;  %v6611_v42 = vcombine.high %v237_v36, %v241_v37  ;;  %3332 = vmatprep.subr.bf16.mxu1 %v6747_v35  ;;  %v6610_v49 = vcombine.low %v237_v36, %v241_v37 }
  0x93   :  { %v369_v39 = vld [vmem:[#allocation6 + $0x720] sm:$0xff]  ;;  %3333 = vmatpush2.bf16.msra.mxu1 %v6746_v41 }
  0x94   :  { %v6739_v43 = vcombine.high %v365_v38, %v369_v39  ;;  %v229_v45 = vld [vmem:[#allocation6 + $0x2c0] sm:$0xff]  ;;  %3293 = vmatprep.subr.bf16.mxu0 %v6611_v42  ;;  %v6738_v50 = vcombine.low %v365_v38, %v369_v39 }
  0x95   :  { %v233_v46 = vld [vmem:[#allocation6 + $0x2e0] sm:$0xff]  ;;  %3294 = vmatpush2.bf16.msra.mxu0 %v6610_v49 }
  0x96   :  { %v357_v47 = vld [vmem:[#allocation6 + $0x6c0] sm:$0xff]  ;;  %v6603_v51 = vcombine.high %v229_v45, %v233_v46  ;;  %3334 = vmatprep.subr.bf16.mxu1 %v6739_v43  ;;  %v6602_v58 = vcombine.low %v229_v45, %v233_v46 }
  0x97   :  { %v361_v48 = vld [vmem:[#allocation6 + $0x6e0] sm:$0xff]  ;;  %3335 = vmatpush2.bf16.msra.mxu1 %v6738_v50 }
  0x98   :  { %v6731_v52 = vcombine.high %v357_v47, %v361_v48  ;;  %v221_v54 = vld [vmem:[#allocation6 + $0x280] sm:$0xff]  ;;  %3295 = vmatprep.subr.bf16.mxu0 %v6603_v51  ;;  %v6730_v59 = vcombine.low %v357_v47, %v361_v48 }
  0x99   :  { %v225_v55 = vld [vmem:[#allocation6 + $0x2a0] sm:$0xff]  ;;  %3296 = vmatpush2.bf16.msra.mxu0 %v6602_v58 }
  0x9a   :  { %v349_v56 = vld [vmem:[#allocation6 + $0x680] sm:$0xff]  ;;  %v6595_v60 = vcombine.high %v221_v54, %v225_v55  ;;  %3336 = vmatprep.subr.bf16.mxu1 %v6731_v52  ;;  %v6594_v3 = vcombine.low %v221_v54, %v225_v55 }
  0x9b   :  { %v353_v57 = vld [vmem:[#allocation6 + $0x6a0] sm:$0xff]  ;;  %3337 = vmatpush2.bf16.msra.mxu1 %v6730_v59 }
  0x9c   :  { %v6723_v61 = vcombine.high %v349_v56, %v353_v57  ;;  %v213_v62 = vld [vmem:[#allocation6 + $0x240] sm:$0xff]  ;;  %3297 = vmatprep.subr.bf16.mxu0 %v6595_v60  ;;  %v6722_v4 = vcombine.low %v349_v56, %v353_v57 }
  0x9d   :  { %v217_v0 = vld [vmem:[#allocation6 + $0x260] sm:$0xff]  ;;  %3298 = vmatpush2.bf16.msra.mxu0 %v6594_v3 }
  0x9e   :  { %v341_v1 = vld [vmem:[#allocation6 + $0x640] sm:$0xff]  ;;  %v6587_v5 = vcombine.high %v213_v62, %v217_v0  ;;  %3338 = vmatprep.subr.bf16.mxu1 %v6723_v61  ;;  %v6586_v12 = vcombine.low %v213_v62, %v217_v0 }
  0x9f   :  { %v345_v2 = vld [vmem:[#allocation6 + $0x660] sm:$0xff]  ;;  %3339 = vmatpush2.bf16.msra.mxu1 %v6722_v4 }
  0xa0   :  { %v6715_v6 = vcombine.high %v341_v1, %v345_v2  ;;  %v205_v7 = vld [vmem:[#allocation6 + $0x200] sm:$0xff]  ;;  %3299 = vmatprep.subr.bf16.mxu0 %v6587_v5  ;;  %v6714_v14 = vcombine.low %v341_v1, %v345_v2 }
  0xa1   :  { %v209_v8 = vld [vmem:[#allocation6 + $0x220] sm:$0xff]  ;;  %3300 = vmatpush2.bf16.msra.mxu0 %v6586_v12 }
  0xa2   :  { %v333_v10 = vld [vmem:[#allocation6 + $0x600] sm:$0xff]  ;;  %v6579_v15 = vcombine.high %v205_v7, %v209_v8  ;;  %3340 = vmatprep.subr.bf16.mxu1 %v6715_v6  ;;  %v6578_v22 = vcombine.low %v205_v7, %v209_v8 }
  0xa3   :  { %v337_v11 = vld [vmem:[#allocation6 + $0x620] sm:$0xff]  ;;  %3341 = vmatpush2.bf16.msra.mxu1 %v6714_v14 }
  0xa4   :  { %v6707_v16 = vcombine.high %v333_v10, %v337_v11  ;;  %v453_v17 = vld [vmem:[#allocation6 + $0x9c0] sm:$0xff]  ;;  %3301 = vmatprep.subr.bf16.mxu0 %v6579_v15  ;;  %v6706_v24 = vcombine.low %v333_v10, %v337_v11 }
  0xa5   :  { %v457_v18 = vld [vmem:[#allocation6 + $0x9e0] sm:$0xff]  ;;  %3302 = vmatpush2.bf16.msra.mxu0 %v6578_v22 }
  0xa6   :  { %v581_v19 = vld [vmem:[#allocation6 + $0xdc0] sm:$0xff]  ;;  %v6827_v25 = vcombine.high %v453_v17, %v457_v18  ;;  %3342 = vmatprep.subr.bf16.mxu1 %v6707_v16  ;;  %v6826_v63 = vcombine.low %v453_v17, %v457_v18 }
  0xa7   :  { %v585_v20 = vld [vmem:[#allocation6 + $0xde0] sm:$0xff]  ;;  %3343 = vmatpush2.bf16.msra.mxu1 %v6706_v24 }
  0xa8   :  { %v6955_v26 = vcombine.high %v581_v19, %v585_v20  ;;  %v445_v27 = vld [vmem:[#allocation6 + $0x980] sm:$0xff]  ;;  %3353 = vmatprep.subr.bf16.mxu0 %v6827_v25  ;;  %v6954_v34 = vcombine.low %v581_v19, %v585_v20  ;;  %3304 = vmatmul.mubr.bf16.vlgmr.msra.gmra.mxu0 %v8133_v23 }
  0xa9   :  { %v449_v29 = vld [vmem:[#allocation6 + $0x9a0] sm:$0xff]  ;;  %3354 = vmatpush1.bf16.msra.mxu0 %v6826_v63  ;;  %3385 = vmatprep.mubr.bf16.mxu0 %v8136_v33 }
  0xaa   :  { %v573_v30 = vld [vmem:[#allocation6 + $0xd80] sm:$0xff]  ;;  %v6819_v35 = vcombine.high %v445_v27, %v449_v29  ;;  %3394 = vmatprep.subr.bf16.mxu1 %v6955_v26  ;;  %3345 = vmatmul.mubr.bf16.vlgmr.msra.gmra.mxu1 %v8140_v28  ;;  %v6818_v41 = vcombine.low %v445_v27, %v449_v29 }
  0xab   :  { %v577_v31 = vld [vmem:[#allocation6 + $0xda0] sm:$0xff]  ;;  %3395 = vmatpush1.bf16.msra.mxu1 %v6954_v34  ;;  %3426 = vmatprep.mubr.bf16.mxu1 %v8145_v53 }
  0xac   :  { %v437_v36 = vld [vmem:[#allocation6 + $0x940] sm:$0xff]  ;;  %v6947_v39 = vcombine.high %v573_v30, %v577_v31  ;;  %3355 = vmatprep.subr.bf16.mxu0 %v6819_v35  ;;  %v6946_v42 = vcombine.low %v573_v30, %v577_v31 }
  0xad   :  { %v441_v37 = vld [vmem:[#allocation6 + $0x960] sm:$0xff]  ;;  %3356 = vmatpush1.bf16.msra.mxu0 %v6818_v41 }
  0xae   :  { %v565_v38 = vld [vmem:[#allocation6 + $0xd40] sm:$0xff]  ;;  %v6811_v43 = vcombine.high %v437_v36, %v441_v37  ;;  %3396 = vmatprep.subr.bf16.mxu1 %v6947_v39  ;;  %v6810_v50 = vcombine.low %v437_v36, %v441_v37 }
  0xaf   :  { %v569_v40 = vld [vmem:[#allocation6 + $0xd60] sm:$0xff]  ;;  %3397 = vmatpush1.bf16.msra.mxu1 %v6946_v42 }
  0xb0   :  { %v429_v45 = vld [vmem:[#allocation6 + $0x900] sm:$0xff]  ;;  %v6939_v48 = vcombine.high %v565_v38, %v569_v40  ;;  %3357 = vmatprep.subr.bf16.mxu0 %v6811_v43  ;;  %v6938_v51 = vcombine.low %v565_v38, %v569_v40 }
  0xb1   :  { %v433_v46 = vld [vmem:[#allocation6 + $0x920] sm:$0xff]  ;;  %3358 = vmatpush1.bf16.msra.mxu0 %v6810_v50 }
  0xb2   :  { %v557_v47 = vld [vmem:[#allocation6 + $0xd00] sm:$0xff]  ;;  %v6803_v52 = vcombine.high %v429_v45, %v433_v46  ;;  %3398 = vmatprep.subr.bf16.mxu1 %v6939_v48  ;;  %v6802_v59 = vcombine.low %v429_v45, %v433_v46 }
  0xb3   :  { %v561_v49 = vld [vmem:[#allocation6 + $0xd20] sm:$0xff]  ;;  %3399 = vmatpush1.bf16.msra.mxu1 %v6938_v51 }
  0xb4   :  { %v421_v54 = vld [vmem:[#allocation6 + $0x8c0] sm:$0xff]  ;;  %v6931_v57 = vcombine.high %v557_v47, %v561_v49  ;;  %3359 = vmatprep.subr.bf16.mxu0 %v6803_v52  ;;  %v6930_v60 = vcombine.low %v557_v47, %v561_v49 }
  0xb5   :  { %v425_v55 = vld [vmem:[#allocation6 + $0x8e0] sm:$0xff]  ;;  %3360 = vmatpush1.bf16.msra.mxu0 %v6802_v59 }
  0xb6   :  { %v549_v56 = vld [vmem:[#allocation6 + $0xcc0] sm:$0xff]  ;;  %v6795_v61 = vcombine.high %v421_v54, %v425_v55  ;;  %3400 = vmatprep.subr.bf16.mxu1 %v6931_v57  ;;  %v6794_v4 = vcombine.low %v421_v54, %v425_v55 }
  0xb7   :  { %v553_v58 = vld [vmem:[#allocation6 + $0xce0] sm:$0xff]  ;;  %3401 = vmatpush1.bf16.msra.mxu1 %v6930_v60 }
  0xb8   :  { %v413_v62 = vld [vmem:[#allocation6 + $0x880] sm:$0xff]  ;;  %v6923_v2 = vcombine.high %v549_v56, %v553_v58  ;;  %3361 = vmatprep.subr.bf16.mxu0 %v6795_v61  ;;  %v6922_v5 = vcombine.low %v549_v56, %v553_v58 }
  0xb9   :  { %v417_v0 = vld [vmem:[#allocation6 + $0x8a0] sm:$0xff]  ;;  %3362 = vmatpush1.bf16.msra.mxu0 %v6794_v4 }
  0xba   :  { %v541_v1 = vld [vmem:[#allocation6 + $0xc80] sm:$0xff]  ;;  %v6787_v6 = vcombine.high %v413_v62, %v417_v0  ;;  %3402 = vmatprep.subr.bf16.mxu1 %v6923_v2  ;;  %v6786_v14 = vcombine.low %v413_v62, %v417_v0 }
  0xbb   :  { %v545_v3 = vld [vmem:[#allocation6 + $0xca0] sm:$0xff]  ;;  %3403 = vmatpush1.bf16.msra.mxu1 %v6922_v5 }
  0xbc   :  { %v405_v7 = vld [vmem:[#allocation6 + $0x840] sm:$0xff]  ;;  %v6915_v11 = vcombine.high %v541_v1, %v545_v3  ;;  %3363 = vmatprep.subr.bf16.mxu0 %v6787_v6  ;;  %v6914_v15 = vcombine.low %v541_v1, %v545_v3 }
  0xbd   :  { %v409_v8 = vld [vmem:[#allocation6 + $0x860] sm:$0xff]  ;;  %3364 = vmatpush1.bf16.msra.mxu0 %v6786_v14 }
  0xbe   :  { %v533_v10 = vld [vmem:[#allocation6 + $0xc40] sm:$0xff]  ;;  %v6779_v16 = vcombine.high %v405_v7, %v409_v8  ;;  %3404 = vmatprep.subr.bf16.mxu1 %v6915_v11  ;;  %v6778_v22 = vcombine.low %v405_v7, %v409_v8 }
  0xbf   :  { %v537_v12 = vld [vmem:[#allocation6 + $0xc60] sm:$0xff]  ;;  %3405 = vmatpush1.bf16.msra.mxu1 %v6914_v15 }
  0xc0   :  { %v397_v17 = vld [vmem:[#allocation6 + $0x800] sm:$0xff]  ;;  %v6907_v20 = vcombine.high %v533_v10, %v537_v12  ;;  %3365 = vmatprep.subr.bf16.mxu0 %v6779_v16  ;;  %v6906_v24 = vcombine.low %v533_v10, %v537_v12 }
  0xc1   :  { %v401_v18 = vld [vmem:[#allocation6 + $0x820] sm:$0xff]  ;;  %3366 = vmatpush1.bf16.msra.mxu0 %v6778_v22 }
  0xc2   :  { %v525_v19 = vld [vmem:[#allocation6 + $0xc00] sm:$0xff]  ;;  %v6771_v25 = vcombine.high %v397_v17, %v401_v18  ;;  %3406 = vmatprep.subr.bf16.mxu1 %v6907_v20  ;;  %v6770_v63 = vcombine.low %v397_v17, %v401_v18 }
  0xc3   :  { %v529_v21 = vld [vmem:[#allocation6 + $0xc20] sm:$0xff]  ;;  %3407 = vmatpush1.bf16.msra.mxu1 %v6906_v24 }
  0xc4   :  { %v517_v26 = vld [vmem:[#allocation6 + $0xbc0] sm:$0xff]  ;;  %v6899_v30 = vcombine.high %v525_v19, %v529_v21  ;;  %3367 = vmatprep.subr.bf16.mxu0 %v6771_v25  ;;  %v6898_v34 = vcombine.low %v525_v19, %v529_v21 }
  0xc5   :  { %v521_v27 = vld [vmem:[#allocation6 + $0xbe0] sm:$0xff]  ;;  %3368 = vmatpush1.bf16.msra.mxu0 %v6770_v63 }
  0xc6   :  { %v645_v29 = vld [vmem:[#allocation6 + $0xfc0] sm:$0xff]  ;;  %v6891_v35 = vcombine.high %v517_v26, %v521_v27  ;;  %3408 = vmatprep.subr.bf16.mxu1 %v6899_v30  ;;  %v6890_v41 = vcombine.low %v517_v26, %v521_v27 }
  0xc7   :  { %v649_v31 = vld [vmem:[#allocation6 + $0xfe0] sm:$0xff]  ;;  %3409 = vmatpush1.bf16.msra.mxu1 %v6898_v34 }
  0xc8   :  { %v509_v36 = vld [vmem:[#allocation6 + $0xb80] sm:$0xff]  ;;  %v7019_v39 = vcombine.high %v645_v29, %v649_v31  ;;  %3369 = vmatprep.subr.bf16.mxu0 %v6891_v35  ;;  %v7018_v42 = vcombine.low %v645_v29, %v649_v31 }
  0xc9   :  { %v513_v37 = vld [vmem:[#allocation6 + $0xba0] sm:$0xff]  ;;  %3370 = vmatpush2.bf16.msra.mxu0 %v6890_v41 }
  0xca   :  { %v637_v38 = vld [vmem:[#allocation6 + $0xf80] sm:$0xff]  ;;  %v6883_v43 = vcombine.high %v509_v36, %v513_v37  ;;  %3410 = vmatprep.subr.bf16.mxu1 %v7019_v39  ;;  %v6882_v50 = vcombine.low %v509_v36, %v513_v37  ;;  %v198_v36 = vld [vmem:[#allocation6 + $0x1c8] sm:$0xff] }
  0xcb   :  { %v641_v40 = vld [vmem:[#allocation6 + $0xfa0] sm:$0xff]  ;;  %3411 = vmatpush2.bf16.msra.mxu1 %v7018_v42  ;;  %v202_v37 = vld [vmem:[#allocation6 + $0x1e8] sm:$0xff] }
  0xcc   :  { %v501_v45 = vld [vmem:[#allocation6 + $0xb40] sm:$0xff]  ;;  %v7011_v48 = vcombine.high %v637_v38, %v641_v40  ;;  %3371 = vmatprep.subr.bf16.mxu0 %v6883_v43  ;;  %v7010_v51 = vcombine.low %v637_v38, %v641_v40  ;;  %v326_v38 = vld [vmem:[#allocation6 + $0x5c8] sm:$0xff]  ;;  %v6573_v43 = vcombine.high %v198_v36, %v202_v37 }
  0xcd   :  { %v505_v46 = vld [vmem:[#allocation6 + $0xb60] sm:$0xff]  ;;  %3372 = vmatpush2.bf16.msra.mxu0 %v6882_v50  ;;  %v330_v40 = vld [vmem:[#allocation6 + $0x5e8] sm:$0xff]  ;;  %v8152_v50 = vcombine.high %v8127_v32, %v8127_v32 }
  0xce   :  { %v629_v47 = vld [vmem:[#allocation6 + $0xf40] sm:$0xff]  ;;  %v6875_v52 = vcombine.high %v501_v45, %v505_v46  ;;  %3412 = vmatprep.subr.bf16.mxu1 %v7011_v48  ;;  %v6874_v59 = vcombine.low %v501_v45, %v505_v46  ;;  %v190_v45 = vld [vmem:[#allocation6 + $0x188] sm:$0xff]  ;;  %v6701_v48 = vcombine.high %v326_v38, %v330_v40 }
  0xcf   :  { %v633_v49 = vld [vmem:[#allocation6 + $0xf60] sm:$0xff]  ;;  %3413 = vmatpush2.bf16.msra.mxu1 %v7010_v51  ;;  %v194_v46 = vld [vmem:[#allocation6 + $0x1a8] sm:$0xff]  ;;  %v6572_v51 = vcombine.low %v198_v36, %v202_v37 }
  0xd0   :  { %v493_v54 = vld [vmem:[#allocation6 + $0xb00] sm:$0xff]  ;;  %v7003_v57 = vcombine.high %v629_v47, %v633_v49  ;;  %3373 = vmatprep.subr.bf16.mxu0 %v6875_v52  ;;  %v7002_v60 = vcombine.low %v629_v47, %v633_v49  ;;  %v318_v47 = vld [vmem:[#allocation6 + $0x588] sm:$0xff]  ;;  %v6700_v52 = vcombine.low %v326_v38, %v330_v40 }
  0xd1   :  { %v497_v55 = vld [vmem:[#allocation6 + $0xb20] sm:$0xff]  ;;  %3374 = vmatpush2.bf16.msra.mxu0 %v6874_v59  ;;  %v322_v49 = vld [vmem:[#allocation6 + $0x5a8] sm:$0xff] }
  0xd2   :  { %v621_v56 = vld [vmem:[#allocation6 + $0xf00] sm:$0xff]  ;;  %v6867_v61 = vcombine.high %v493_v54, %v497_v55  ;;  %3414 = vmatprep.subr.bf16.mxu1 %v7003_v57  ;;  %v6866_v4 = vcombine.low %v493_v54, %v497_v55  ;;  %v6565_v54 = vcombine.high %v190_v45, %v194_v46  ;;  %v182_v55 = vld [vmem:[#allocation6 + $0x148] sm:$0xff] }
  0xd3   :  { %v625_v58 = vld [vmem:[#allocation6 + $0xf20] sm:$0xff]  ;;  %3415 = vmatpush2.bf16.msra.mxu1 %v7002_v60  ;;  %v310_v57 = vld [vmem:[#allocation6 + $0x548] sm:$0xff]  ;;  %v6564_v60 = vcombine.low %v190_v45, %v194_v46 }
  0xd4   :  { %v485_v62 = vld [vmem:[#allocation6 + $0xac0] sm:$0xff]  ;;  %v6995_v2 = vcombine.high %v621_v56, %v625_v58  ;;  %3375 = vmatprep.subr.bf16.mxu0 %v6867_v61  ;;  %v6994_v5 = vcombine.low %v621_v56, %v625_v58  ;;  %v186_v56 = vld [vmem:[#allocation6 + $0x168] sm:$0xff]  ;;  %v6693_v58 = vcombine.high %v318_v47, %v322_v49  ;;  %v6692_v61 = vcombine.low %v318_v47, %v322_v49 }
  0xd5   :  { %v489_v0 = vld [vmem:[#allocation6 + $0xae0] sm:$0xff]  ;;  %3376 = vmatpush2.bf16.msra.mxu0 %v6866_v4  ;;  %v314_v59 = vld [vmem:[#allocation6 + $0x568] sm:$0xff] }
  0xd6   :  { %v613_v1 = vld [vmem:[#allocation6 + $0xec0] sm:$0xff]  ;;  %v6859_v6 = vcombine.high %v485_v62, %v489_v0  ;;  %3416 = vmatprep.subr.bf16.mxu1 %v6995_v2  ;;  %v6858_v14 = vcombine.low %v485_v62, %v489_v0  ;;  %v6557_v62 = vcombine.high %v182_v55, %v186_v56  ;;  %v174_v0 = vld [vmem:[#allocation6 + $0x108] sm:$0xff] }
  0xd7   :  { %v617_v3 = vld [vmem:[#allocation6 + $0xee0] sm:$0xff]  ;;  %3417 = vmatpush2.bf16.msra.mxu1 %v6994_v5  ;;  %v302_v2 = vld [vmem:[#allocation6 + $0x508] sm:$0xff]  ;;  %v6556_v5 = vcombine.low %v182_v55, %v186_v56 }
  0xd8   :  { %v477_v7 = vld [vmem:[#allocation6 + $0xa80] sm:$0xff]  ;;  %v6987_v11 = vcombine.high %v613_v1, %v617_v3  ;;  %3377 = vmatprep.subr.bf16.mxu0 %v6859_v6  ;;  %v6986_v15 = vcombine.low %v613_v1, %v617_v3  ;;  %v178_v1 = vld [vmem:[#allocation6 + $0x128] sm:$0xff]  ;;  %v6685_v3 = vcombine.high %v310_v57, %v314_v59  ;;  %v6684_v6 = vcombine.low %v310_v57, %v314_v59 }
  0xd9   :  { %v481_v8 = vld [vmem:[#allocation6 + $0xaa0] sm:$0xff]  ;;  %3378 = vmatpush2.bf16.msra.mxu0 %v6858_v14  ;;  %v306_v4 = vld [vmem:[#allocation6 + $0x528] sm:$0xff] }
  0xda   :  { %v605_v10 = vld [vmem:[#allocation6 + $0xe80] sm:$0xff]  ;;  %v6851_v16 = vcombine.high %v477_v7, %v481_v8  ;;  %3418 = vmatprep.subr.bf16.mxu1 %v6987_v11  ;;  %v6850_v22 = vcombine.low %v477_v7, %v481_v8  ;;  %v6549_v7 = vcombine.high %v174_v0, %v178_v1  ;;  %v166_v8 = vld [vmem:[#allocation6 + $0xc8] sm:$0xff] }
  0xdb   :  { %v609_v12 = vld [vmem:[#allocation6 + $0xea0] sm:$0xff]  ;;  %3419 = vmatpush2.bf16.msra.mxu1 %v6986_v15  ;;  %v294_v11 = vld [vmem:[#allocation6 + $0x4c8] sm:$0xff]  ;;  %v6548_v15 = vcombine.low %v174_v0, %v178_v1 }
  0xdc   :  { %v469_v17 = vld [vmem:[#allocation6 + $0xa40] sm:$0xff]  ;;  %v6979_v20 = vcombine.high %v605_v10, %v609_v12  ;;  %3379 = vmatprep.subr.bf16.mxu0 %v6851_v16  ;;  %v6978_v24 = vcombine.low %v605_v10, %v609_v12  ;;  %v170_v10 = vld [vmem:[#allocation6 + $0xe8] sm:$0xff]  ;;  %v6677_v12 = vcombine.high %v302_v2, %v306_v4  ;;  %v6676_v16 = vcombine.low %v302_v2, %v306_v4 }
  0xdd   :  { %v473_v18 = vld [vmem:[#allocation6 + $0xa60] sm:$0xff]  ;;  %3380 = vmatpush2.bf16.msra.mxu0 %v6850_v22  ;;  %v298_v14 = vld [vmem:[#allocation6 + $0x4e8] sm:$0xff] }
  0xde   :  { %v597_v19 = vld [vmem:[#allocation6 + $0xe40] sm:$0xff]  ;;  %v6843_v25 = vcombine.high %v469_v17, %v473_v18  ;;  %3420 = vmatprep.subr.bf16.mxu1 %v6979_v20  ;;  %v6842_v63 = vcombine.low %v469_v17, %v473_v18  ;;  %v6541_v17 = vcombine.high %v166_v8, %v170_v10  ;;  %v158_v18 = vld [vmem:[#allocation6 + $0x88] sm:$0xff] }
  0xdf   :  { %v601_v21 = vld [vmem:[#allocation6 + $0xe60] sm:$0xff]  ;;  %3421 = vmatpush2.bf16.msra.mxu1 %v6978_v24  ;;  %v286_v20 = vld [vmem:[#allocation6 + $0x488] sm:$0xff]  ;;  %v6540_v24 = vcombine.low %v166_v8, %v170_v10 }
  0xe0   :  { %v461_v26 = vld [vmem:[#allocation6 + $0xa00] sm:$0xff]  ;;  %v6971_v30 = vcombine.high %v597_v19, %v601_v21  ;;  %3381 = vmatprep.subr.bf16.mxu0 %v6843_v25  ;;  %v6970_v34 = vcombine.low %v597_v19, %v601_v21  ;;  %v162_v19 = vld [vmem:[#allocation6 + $0xa8] sm:$0xff]  ;;  %v6669_v21 = vcombine.high %v294_v11, %v298_v14  ;;  %v6668_v25 = vcombine.low %v294_v11, %v298_v14 }
  0xe1   :  { %v465_v27 = vld [vmem:[#allocation6 + $0xa20] sm:$0xff]  ;;  %3382 = vmatpush2.bf16.msra.mxu0 %v6842_v63  ;;  %v290_v22 = vld [vmem:[#allocation6 + $0x4a8] sm:$0xff] }
  0xe2   :  { %v589_v29 = vld [vmem:[#allocation6 + $0xe00] sm:$0xff]  ;;  %v6835_v35 = vcombine.high %v461_v26, %v465_v27  ;;  %3422 = vmatprep.subr.bf16.mxu1 %v6971_v30  ;;  %v6834_v41 = vcombine.low %v461_v26, %v465_v27  ;;  %v6533_v26 = vcombine.high %v158_v18, %v162_v19  ;;  %v150_v27 = vld [vmem:[#allocation6 + $0x48] sm:$0xff] }
  0xe3   :  { %v593_v31 = vld [vmem:[#allocation6 + $0xe20] sm:$0xff]  ;;  %3423 = vmatpush2.bf16.msra.mxu1 %v6970_v34  ;;  %v278_v30 = vld [vmem:[#allocation6 + $0x448] sm:$0xff]  ;;  %v6532_v34 = vcombine.low %v158_v18, %v162_v19 }
  0xe4   :  { %v6963_v39 = vcombine.high %v589_v29, %v593_v31  ;;  %3383 = vmatprep.subr.bf16.mxu0 %v6835_v35  ;;  %v6962_v42 = vcombine.low %v589_v29, %v593_v31  ;;  %v154_v29 = vld [vmem:[#allocation6 + $0x68] sm:$0xff]  ;;  %v6661_v31 = vcombine.high %v286_v20, %v290_v22  ;;  %v6660_v35 = vcombine.low %v286_v20, %v290_v22 }
  0xe5   :  { %3384 = vmatpush2.bf16.msra.mxu0 %v6834_v41  ;;  %v282_v63 = vld [vmem:[#allocation6 + $0x468] sm:$0xff]  ;;  %v6525_v36 = vcombine.high %v150_v27, %v154_v29 }
  0xe6   :  { %3424 = vmatprep.subr.bf16.mxu1 %v6963_v39  ;;  %3435 = vmatprep.subr.bf16.mxu0 %v6573_v43  ;;  %v142_v37 = vld [vmem:[#allocation6 + $0x8] sm:$0xff]  ;;  %v6653_v40 = vcombine.high %v278_v30, %v282_v63  ;;  %v6652_v43 = vcombine.low %v278_v30, %v282_v63 }
  0xe7   :  { %3425 = vmatpush2.bf16.msra.mxu1 %v6962_v42  ;;  %v146_v38 = vld [vmem:[#allocation6 + $0x28] sm:$0xff]  ;;  %v6524_v42 = vcombine.low %v150_v27, %v154_v29 }
  0xe8   :  { %3476 = vmatprep.subr.bf16.mxu1 %v6701_v48  ;;  %3386 = vmatmul.mubr.bf16.vlgmr.msra.gmra.mxu0 %v8127_v32  ;;  %v270_v39 = vld [vmem:[#allocation6 + $0x408] sm:$0xff]  ;;  %v6517_v45 = vcombine.high %v142_v37, %v146_v38 }
  0xe9   :  { %3436 = vmatpush1.bf16.msra.mxu0 %v6572_v51  ;;  %3467 = vmatprep.mubr.bf16.mxu0 %v8114_v9  ;;  %v274_v41 = vld [vmem:[#allocation6 + $0x428] sm:$0xff] }
  0xea   :  { %3427 = vmatmul.mubr.bf16.vlgmr.msra.gmra.mxu1 %v8152_v50  ;;  %3437 = vmatprep.subr.bf16.mxu0 %v6565_v54  ;;  %v262_v46 = vld [vmem:[#allocation6 + $0x3c8] sm:$0xff]  ;;  %v6645_v49 = vcombine.high %v270_v39, %v274_v41  ;;  %v6644_v54 = vcombine.low %v270_v39, %v274_v41 }
  0xeb   :  { %3477 = vmatpush1.bf16.msra.mxu1 %v6700_v52  ;;  %3508 = vmatprep.mubr.bf16.mxu1 %v8119_v13  ;;  %v266_v47 = vld [vmem:[#allocation6 + $0x3e8] sm:$0xff]  ;;  %v6516_v52 = vcombine.low %v142_v37, %v146_v38 }
  0xec   :  { %3478 = vmatprep.subr.bf16.mxu1 %v6693_v58  ;;  %v390_v48 = vld [vmem:[#allocation6 + $0x7c8] sm:$0xff]  ;;  %v6637_v55 = vcombine.high %v262_v46, %v266_v47 }
  0xed   :  { %3438 = vmatpush1.bf16.msra.mxu0 %v6564_v60  ;;  %v394_v51 = vld [vmem:[#allocation6 + $0x7e8] sm:$0xff] }
  0xee   :  { %3439 = vmatprep.subr.bf16.mxu0 %v6557_v62  ;;  %v254_v56 = vld [vmem:[#allocation6 + $0x388] sm:$0xff]  ;;  %v6765_v59 = vcombine.high %v390_v48, %v394_v51  ;;  %v6764_v62 = vcombine.low %v390_v48, %v394_v51 }
  0xef   :  { %3479 = vmatpush1.bf16.msra.mxu1 %v6692_v61  ;;  %v258_v57 = vld [vmem:[#allocation6 + $0x3a8] sm:$0xff]  ;;  %v6636_v61 = vcombine.low %v262_v46, %v266_v47 }
  0xf0   :  { %3480 = vmatprep.subr.bf16.mxu1 %v6685_v3  ;;  %v382_v58 = vld [vmem:[#allocation6 + $0x788] sm:$0xff]  ;;  %v6629_v0 = vcombine.high %v254_v56, %v258_v57 }
  0xf1   :  { %3440 = vmatpush1.bf16.msra.mxu0 %v6556_v5  ;;  %v386_v60 = vld [vmem:[#allocation6 + $0x7a8] sm:$0xff] }
  0xf2   :  { %3441 = vmatprep.subr.bf16.mxu0 %v6549_v7  ;;  %v246_v1 = vld [vmem:[#allocation6 + $0x348] sm:$0xff]  ;;  %v6757_v4 = vcombine.high %v382_v58, %v386_v60  ;;  %v6756_v7 = vcombine.low %v382_v58, %v386_v60 }
  0xf3   :  { %3481 = vmatpush1.bf16.msra.mxu1 %v6684_v6  ;;  %v250_v2 = vld [vmem:[#allocation6 + $0x368] sm:$0xff]  ;;  %v6628_v6 = vcombine.low %v254_v56, %v258_v57 }
  0xf4   :  { %3482 = vmatprep.subr.bf16.mxu1 %v6677_v12  ;;  %v374_v3 = vld [vmem:[#allocation6 + $0x748] sm:$0xff]  ;;  %v6621_v8 = vcombine.high %v246_v1, %v250_v2 }
  0xf5   :  { %3442 = vmatpush1.bf16.msra.mxu0 %v6548_v15  ;;  %v378_v5 = vld [vmem:[#allocation6 + $0x768] sm:$0xff] }
  0xf6   :  { %3443 = vmatprep.subr.bf16.mxu0 %v6541_v17  ;;  %v238_v10 = vld [vmem:[#allocation6 + $0x308] sm:$0xff]  ;;  %v6749_v14 = vcombine.high %v374_v3, %v378_v5  ;;  %v6748_v17 = vcombine.low %v374_v3, %v378_v5 }
  0xf7   :  { %3483 = vmatpush1.bf16.msra.mxu1 %v6676_v16  ;;  %v242_v11 = vld [vmem:[#allocation6 + $0x328] sm:$0xff]  ;;  %v6620_v16 = vcombine.low %v246_v1, %v250_v2 }
  0xf8   :  { %3484 = vmatprep.subr.bf16.mxu1 %v6669_v21  ;;  %v366_v12 = vld [vmem:[#allocation6 + $0x708] sm:$0xff]  ;;  %v6613_v18 = vcombine.high %v238_v10, %v242_v11 }
  0xf9   :  { %3444 = vmatpush1.bf16.msra.mxu0 %v6540_v24  ;;  %v370_v15 = vld [vmem:[#allocation6 + $0x728] sm:$0xff] }
  0xfa   :  { %3445 = vmatprep.subr.bf16.mxu0 %v6533_v26  ;;  %v230_v19 = vld [vmem:[#allocation6 + $0x2c8] sm:$0xff]  ;;  %v6741_v22 = vcombine.high %v366_v12, %v370_v15  ;;  %v6740_v26 = vcombine.low %v366_v12, %v370_v15 }
  0xfb   :  { %3485 = vmatpush1.bf16.msra.mxu1 %v6668_v25  ;;  %v234_v20 = vld [vmem:[#allocation6 + $0x2e8] sm:$0xff]  ;;  %v6612_v25 = vcombine.low %v238_v10, %v242_v11 }
  0xfc   :  { %3486 = vmatprep.subr.bf16.mxu1 %v6661_v31  ;;  %v358_v21 = vld [vmem:[#allocation6 + $0x6c8] sm:$0xff]  ;;  %v6605_v27 = vcombine.high %v230_v19, %v234_v20 }
  0xfd   :  { %3446 = vmatpush1.bf16.msra.mxu0 %v6532_v34  ;;  %v362_v24 = vld [vmem:[#allocation6 + $0x6e8] sm:$0xff] }
  0xfe   :  { %3447 = vmatprep.subr.bf16.mxu0 %v6525_v36  ;;  %v222_v29 = vld [vmem:[#allocation6 + $0x288] sm:$0xff]  ;;  %v6733_v63 = vcombine.high %v358_v21, %v362_v24  ;;  %v6732_v36 = vcombine.low %v358_v21, %v362_v24 }
  0xff   :  { %3487 = vmatpush1.bf16.msra.mxu1 %v6660_v35  ;;  %v226_v30 = vld [vmem:[#allocation6 + $0x2a8] sm:$0xff]  ;;  %v6604_v35 = vcombine.low %v230_v19, %v234_v20 }
 0x100   :  { %3488 = vmatprep.subr.bf16.mxu1 %v6653_v40  ;;  %v350_v31 = vld [vmem:[#allocation6 + $0x688] sm:$0xff]  ;;  %v6597_v37 = vcombine.high %v222_v29, %v226_v30 }
 0x101   :  { %3448 = vmatpush1.bf16.msra.mxu0 %v6524_v42  ;;  %v354_v34 = vld [vmem:[#allocation6 + $0x6a8] sm:$0xff] }
 0x102   :  { %3449 = vmatprep.subr.bf16.mxu0 %v6517_v45  ;;  %v214_v38 = vld [vmem:[#allocation6 + $0x248] sm:$0xff]  ;;  %v6725_v41 = vcombine.high %v350_v31, %v354_v34  ;;  %v6724_v45 = vcombine.low %v350_v31, %v354_v34 }
 0x103   :  { %3489 = vmatpush1.bf16.msra.mxu1 %v6652_v43  ;;  %v218_v39 = vld [vmem:[#allocation6 + $0x268] sm:$0xff]  ;;  %v6596_v43 = vcombine.low %v222_v29, %v226_v30 }
 0x104   :  { %3490 = vmatprep.subr.bf16.mxu1 %v6645_v49  ;;  %v342_v40 = vld [vmem:[#allocation6 + $0x648] sm:$0xff]  ;;  %v6589_v46 = vcombine.high %v214_v38, %v218_v39 }
 0x105   :  { %3450 = vmatpush1.bf16.msra.mxu0 %v6516_v52  ;;  %v346_v42 = vld [vmem:[#allocation6 + $0x668] sm:$0xff] }
 0x106   :  { %3451 = vmatprep.subr.bf16.mxu0 %v6637_v55  ;;  %v206_v47 = vld [vmem:[#allocation6 + $0x208] sm:$0xff]  ;;  %v6717_v51 = vcombine.high %v342_v40, %v346_v42  ;;  %v6716_v55 = vcombine.low %v342_v40, %v346_v42 }
 0x107   :  { %3491 = vmatpush1.bf16.msra.mxu1 %v6644_v54  ;;  %v210_v48 = vld [vmem:[#allocation6 + $0x228] sm:$0xff]  ;;  %v6588_v54 = vcombine.low %v214_v38, %v218_v39 }
 0x108   :  { %3492 = vmatprep.subr.bf16.mxu1 %v6765_v59  ;;  %v334_v49 = vld [vmem:[#allocation6 + $0x608] sm:$0xff]  ;;  %v6581_v56 = vcombine.high %v206_v47, %v210_v48 }
 0x109   :  { %3452 = vmatpush2.bf16.msra.mxu0 %v6636_v61  ;;  %v338_v52 = vld [vmem:[#allocation6 + $0x628] sm:$0xff] }
 0x10a   :  { %3453 = vmatprep.subr.bf16.mxu0 %v6629_v0  ;;  %v454_v57 = vld [vmem:[#allocation6 + $0x9c8] sm:$0xff]  ;;  %v6709_v60 = vcombine.high %v334_v49, %v338_v52  ;;  %v6708_v0 = vcombine.low %v334_v49, %v338_v52 }
 0x10b   :  { %3493 = vmatpush2.bf16.msra.mxu1 %v6764_v62  ;;  %v458_v58 = vld [vmem:[#allocation6 + $0x9e8] sm:$0xff]  ;;  %v6580_v62 = vcombine.low %v206_v47, %v210_v48 }
 0x10c   :  { %3494 = vmatprep.subr.bf16.mxu1 %v6757_v4  ;;  %v582_v59 = vld [vmem:[#allocation6 + $0xdc8] sm:$0xff]  ;;  %v6829_v1 = vcombine.high %v454_v57, %v458_v58 }
 0x10d   :  { %3454 = vmatpush2.bf16.msra.mxu0 %v6628_v6  ;;  %v586_v61 = vld [vmem:[#allocation6 + $0xde8] sm:$0xff] }
 0x10e   :  { %3455 = vmatprep.subr.bf16.mxu0 %v6621_v8  ;;  %v446_v2 = vld [vmem:[#allocation6 + $0x988] sm:$0xff]  ;;  %v6957_v5 = vcombine.high %v582_v59, %v586_v61  ;;  %v6956_v8 = vcombine.low %v582_v59, %v586_v61 }
 0x10f   :  { %3495 = vmatpush2.bf16.msra.mxu1 %v6756_v7  ;;  %v450_v3 = vld [vmem:[#allocation6 + $0x9a8] sm:$0xff]  ;;  %v6828_v7 = vcombine.low %v454_v57, %v458_v58 }
 0x110   :  { %3496 = vmatprep.subr.bf16.mxu1 %v6749_v14  ;;  %v574_v4 = vld [vmem:[#allocation6 + $0xd88] sm:$0xff]  ;;  %v6821_v10 = vcombine.high %v446_v2, %v450_v3 }
 0x111   :  { %3456 = vmatpush2.bf16.msra.mxu0 %v6620_v16  ;;  %v578_v6 = vld [vmem:[#allocation6 + $0xda8] sm:$0xff] }
 0x112   :  { %3457 = vmatprep.subr.bf16.mxu0 %v6613_v18  ;;  %v438_v11 = vld [vmem:[#allocation6 + $0x948] sm:$0xff]  ;;  %v6949_v15 = vcombine.high %v574_v4, %v578_v6  ;;  %v6948_v18 = vcombine.low %v574_v4, %v578_v6 }
 0x113   :  { %3497 = vmatpush2.bf16.msra.mxu1 %v6748_v17  ;;  %v442_v12 = vld [vmem:[#allocation6 + $0x968] sm:$0xff]  ;;  %v6820_v17 = vcombine.low %v446_v2, %v450_v3 }
 0x114   :  { %3498 = vmatprep.subr.bf16.mxu1 %v6741_v22  ;;  %v566_v14 = vld [vmem:[#allocation6 + $0xd48] sm:$0xff]  ;;  %v6813_v19 = vcombine.high %v438_v11, %v442_v12 }
 0x115   :  { %3458 = vmatpush2.bf16.msra.mxu0 %v6612_v25  ;;  %v570_v16 = vld [vmem:[#allocation6 + $0xd68] sm:$0xff] }
 0x116   :  { %3459 = vmatprep.subr.bf16.mxu0 %v6605_v27  ;;  %v430_v20 = vld [vmem:[#allocation6 + $0x908] sm:$0xff]  ;;  %v6941_v24 = vcombine.high %v566_v14, %v570_v16  ;;  %v6940_v27 = vcombine.low %v566_v14, %v570_v16 }
 0x117   :  { %3499 = vmatpush2.bf16.msra.mxu1 %v6740_v26  ;;  %v434_v21 = vld [vmem:[#allocation6 + $0x928] sm:$0xff]  ;;  %v6812_v26 = vcombine.low %v438_v11, %v442_v12 }
 0x118   :  { %3500 = vmatprep.subr.bf16.mxu1 %v6733_v63  ;;  %v558_v22 = vld [vmem:[#allocation6 + $0xd08] sm:$0xff]  ;;  %v6805_v29 = vcombine.high %v430_v20, %v434_v21 }
 0x119   :  { %3460 = vmatpush2.bf16.msra.mxu0 %v6604_v35  ;;  %v562_v25 = vld [vmem:[#allocation6 + $0xd28] sm:$0xff] }
 0x11a   :  { %3461 = vmatprep.subr.bf16.mxu0 %v6597_v37  ;;  %v422_v30 = vld [vmem:[#allocation6 + $0x8c8] sm:$0xff]  ;;  %v6933_v34 = vcombine.high %v558_v22, %v562_v25  ;;  %v6932_v37 = vcombine.low %v558_v22, %v562_v25 }
 0x11b   :  { %3501 = vmatpush2.bf16.msra.mxu1 %v6732_v36  ;;  %v426_v31 = vld [vmem:[#allocation6 + $0x8e8] sm:$0xff]  ;;  %v6804_v36 = vcombine.low %v430_v20, %v434_v21 }
 0x11c   :  { %3502 = vmatprep.subr.bf16.mxu1 %v6725_v41  ;;  %v550_v63 = vld [vmem:[#allocation6 + $0xcc8] sm:$0xff]  ;;  %v6797_v38 = vcombine.high %v422_v30, %v426_v31 }
 0x11d   :  { %3462 = vmatpush2.bf16.msra.mxu0 %v6596_v43  ;;  %v554_v35 = vld [vmem:[#allocation6 + $0xce8] sm:$0xff] }
 0x11e   :  { %3463 = vmatprep.subr.bf16.mxu0 %v6589_v46  ;;  %v414_v39 = vld [vmem:[#allocation6 + $0x888] sm:$0xff]  ;;  %v6925_v42 = vcombine.high %v550_v63, %v554_v35  ;;  %v6924_v46 = vcombine.low %v550_v63, %v554_v35 }
 0x11f   :  { %3503 = vmatpush2.bf16.msra.mxu1 %v6724_v45  ;;  %v418_v40 = vld [vmem:[#allocation6 + $0x8a8] sm:$0xff]  ;;  %v6796_v45 = vcombine.low %v422_v30, %v426_v31 }
 0x120   :  { %3504 = vmatprep.subr.bf16.mxu1 %v6717_v51  ;;  %v542_v41 = vld [vmem:[#allocation6 + $0xc88] sm:$0xff]  ;;  %v6789_v47 = vcombine.high %v414_v39, %v418_v40 }
 0x121   :  { %3464 = vmatpush2.bf16.msra.mxu0 %v6588_v54  ;;  %v546_v43 = vld [vmem:[#allocation6 + $0xca8] sm:$0xff] }
 0x122   :  { %3465 = vmatprep.subr.bf16.mxu0 %v6581_v56  ;;  %v406_v48 = vld [vmem:[#allocation6 + $0x848] sm:$0xff]  ;;  %v6917_v52 = vcombine.high %v542_v41, %v546_v43  ;;  %v6916_v56 = vcombine.low %v542_v41, %v546_v43 }
 0x123   :  { %3505 = vmatpush2.bf16.msra.mxu1 %v6716_v55  ;;  %v410_v49 = vld [vmem:[#allocation6 + $0x868] sm:$0xff]  ;;  %v6788_v55 = vcombine.low %v414_v39, %v418_v40 }
 0x124   :  { %3506 = vmatprep.subr.bf16.mxu1 %v6709_v60  ;;  %v534_v51 = vld [vmem:[#allocation6 + $0xc48] sm:$0xff]  ;;  %v6781_v57 = vcombine.high %v406_v48, %v410_v49 }
 0x125   :  { %3466 = vmatpush2.bf16.msra.mxu0 %v6580_v62  ;;  %v538_v54 = vld [vmem:[#allocation6 + $0xc68] sm:$0xff] }
 0x126   :  { %3517 = vmatprep.subr.bf16.mxu0 %v6829_v1  ;;  %v398_v58 = vld [vmem:[#allocation6 + $0x808] sm:$0xff]  ;;  %v6909_v61 = vcombine.high %v534_v51, %v538_v54  ;;  %v6908_v1 = vcombine.low %v534_v51, %v538_v54 }
 0x127   :  { %3507 = vmatpush2.bf16.msra.mxu1 %v6708_v0  ;;  %v402_v59 = vld [vmem:[#allocation6 + $0x828] sm:$0xff]  ;;  %v6780_v0 = vcombine.low %v406_v48, %v410_v49 }
 0x128   :  { %3558 = vmatprep.subr.bf16.mxu1 %v6957_v5  ;;  %3468 = vmatmul.mubr.bf16.vlgmr.msra.gmra.mxu0 %v8133_v23  ;;  %v526_v60 = vld [vmem:[#allocation6 + $0xc08] sm:$0xff]  ;;  %v6773_v2 = vcombine.high %v398_v58, %v402_v59 }
 0x129   :  { %3518 = vmatpush1.bf16.msra.mxu0 %v6828_v7  ;;  %3549 = vmatprep.mubr.bf16.mxu0 %v8136_v33  ;;  %v530_v62 = vld [vmem:[#allocation6 + $0xc28] sm:$0xff] }
 0x12a   :  { %3509 = vmatmul.mubr.bf16.vlgmr.msra.gmra.mxu1 %v8140_v28  ;;  %3519 = vmatprep.subr.bf16.mxu0 %v6821_v10  ;;  %v518_v3 = vld [vmem:[#allocation6 + $0xbc8] sm:$0xff]  ;;  %v6901_v6 = vcombine.high %v526_v60, %v530_v62  ;;  %v6900_v10 = vcombine.low %v526_v60, %v530_v62 }
 0x12b   :  { %3559 = vmatpush1.bf16.msra.mxu1 %v6956_v8  ;;  %3590 = vmatprep.mubr.bf16.mxu1 %v8145_v53  ;;  %v522_v4 = vld [vmem:[#allocation6 + $0xbe8] sm:$0xff]  ;;  %v6772_v8 = vcombine.low %v398_v58, %v402_v59 }
 0x12c   :  { %3560 = vmatprep.subr.bf16.mxu1 %v6949_v15  ;;  %v646_v5 = vld [vmem:[#allocation6 + $0xfc8] sm:$0xff]  ;;  %v6893_v11 = vcombine.high %v518_v3, %v522_v4 }
 0x12d   :  { %3520 = vmatpush1.bf16.msra.mxu0 %v6820_v17  ;;  %v650_v7 = vld [vmem:[#allocation6 + $0xfe8] sm:$0xff] }
 0x12e   :  { %3521 = vmatprep.subr.bf16.mxu0 %v6813_v19  ;;  %v510_v12 = vld [vmem:[#allocation6 + $0xb88] sm:$0xff]  ;;  %v7021_v16 = vcombine.high %v646_v5, %v650_v7  ;;  %v7020_v19 = vcombine.low %v646_v5, %v650_v7 }
 0x12f   :  { %3561 = vmatpush1.bf16.msra.mxu1 %v6948_v18  ;;  %v514_v14 = vld [vmem:[#allocation6 + $0xba8] sm:$0xff]  ;;  %v6892_v18 = vcombine.low %v518_v3, %v522_v4 }
 0x130   :  { %3562 = vmatprep.subr.bf16.mxu1 %v6941_v24  ;;  %v638_v15 = vld [vmem:[#allocation6 + $0xf88] sm:$0xff]  ;;  %v6885_v20 = vcombine.high %v510_v12, %v514_v14 }
 0x131   :  { %3522 = vmatpush1.bf16.msra.mxu0 %v6812_v26  ;;  %v642_v17 = vld [vmem:[#allocation6 + $0xfa8] sm:$0xff] }
 0x132   :  { %3523 = vmatprep.subr.bf16.mxu0 %v6805_v29  ;;  %v7013_v21 = vcombine.high %v638_v15, %v642_v17  ;;  %v502_v22 = vld [vmem:[#allocation6 + $0xb48] sm:$0xff]  ;;  %v7012_v29 = vcombine.low %v638_v15, %v642_v17  ;;  %v199_v15 = vld [vmem:[#allocation6 + $0x1d0] sm:$0xff] }
 0x133   :  { %3563 = vmatpush1.bf16.msra.mxu1 %v6940_v27  ;;  %v506_v24 = vld [vmem:[#allocation6 + $0xb68] sm:$0xff]  ;;  %v6884_v27 = vcombine.low %v510_v12, %v514_v14  ;;  %v327_v17 = vld [vmem:[#allocation6 + $0x5d0] sm:$0xff] }
 0x134   :  { %3564 = vmatprep.subr.bf16.mxu1 %v6933_v34  ;;  %v630_v25 = vld [vmem:[#allocation6 + $0xf48] sm:$0xff]  ;;  %v6877_v30 = vcombine.high %v502_v22, %v506_v24 }
 0x135   :  { %3524 = vmatpush1.bf16.msra.mxu0 %v6804_v36  ;;  %v634_v26 = vld [vmem:[#allocation6 + $0xf68] sm:$0xff] }
 0x136   :  { %3525 = vmatprep.subr.bf16.mxu0 %v6797_v38  ;;  %v7005_v31 = vcombine.high %v630_v25, %v634_v26  ;;  %v494_v63 = vld [vmem:[#allocation6 + $0xb08] sm:$0xff]  ;;  %v7004_v38 = vcombine.low %v630_v25, %v634_v26  ;;  %v195_v25 = vld [vmem:[#allocation6 + $0x1b0] sm:$0xff] }
 0x137   :  { %3565 = vmatpush1.bf16.msra.mxu1 %v6932_v37  ;;  %v498_v34 = vld [vmem:[#allocation6 + $0xb28] sm:$0xff]  ;;  %v6876_v37 = vcombine.low %v502_v22, %v506_v24  ;;  %v191_v24 = vld [vmem:[#allocation6 + $0x190] sm:$0xff] }
 0x138   :  { %3566 = vmatprep.subr.bf16.mxu1 %v6925_v42  ;;  %v622_v35 = vld [vmem:[#allocation6 + $0xf08] sm:$0xff]  ;;  %v6869_v39 = vcombine.high %v494_v63, %v498_v34  ;;  %v319_v26 = vld [vmem:[#allocation6 + $0x590] sm:$0xff] }
 0x139   :  { %3526 = vmatpush1.bf16.msra.mxu0 %v6796_v45  ;;  %v626_v36 = vld [vmem:[#allocation6 + $0xf28] sm:$0xff] }
 0x13a   :  { %3527 = vmatprep.subr.bf16.mxu0 %v6789_v47  ;;  %v6997_v40 = vcombine.high %v622_v35, %v626_v36  ;;  %v486_v41 = vld [vmem:[#allocation6 + $0xac8] sm:$0xff]  ;;  %v6996_v47 = vcombine.low %v622_v35, %v626_v36  ;;  %v187_v35 = vld [vmem:[#allocation6 + $0x170] sm:$0xff] }
 0x13b   :  { %3567 = vmatpush1.bf16.msra.mxu1 %v6924_v46  ;;  %v490_v42 = vld [vmem:[#allocation6 + $0xae8] sm:$0xff]  ;;  %v6868_v46 = vcombine.low %v494_v63, %v498_v34  ;;  %v183_v34 = vld [vmem:[#allocation6 + $0x150] sm:$0xff] }
 0x13c   :  { %3568 = vmatprep.subr.bf16.mxu1 %v6917_v52  ;;  %v614_v43 = vld [vmem:[#allocation6 + $0xec8] sm:$0xff]  ;;  %v6861_v48 = vcombine.high %v486_v41, %v490_v42 }
 0x13d   :  { %3528 = vmatpush1.bf16.msra.mxu0 %v6788_v55  ;;  %v618_v45 = vld [vmem:[#allocation6 + $0xee8] sm:$0xff] }
 0x13e   :  { %3529 = vmatprep.subr.bf16.mxu0 %v6781_v57  ;;  %v6989_v49 = vcombine.high %v614_v43, %v618_v45  ;;  %v478_v51 = vld [vmem:[#allocation6 + $0xa88] sm:$0xff]  ;;  %v6988_v57 = vcombine.low %v614_v43, %v618_v45  ;;  %v6559_v45 = vcombine.high %v183_v34, %v187_v35 }
 0x13f   :  { %3569 = vmatpush1.bf16.msra.mxu1 %v6916_v56  ;;  %v482_v52 = vld [vmem:[#allocation6 + $0xaa8] sm:$0xff]  ;;  %v6860_v56 = vcombine.low %v486_v41, %v490_v42 }
 0x140   :  { %3570 = vmatprep.subr.bf16.mxu1 %v6909_v61  ;;  %v606_v54 = vld [vmem:[#allocation6 + $0xe88] sm:$0xff]  ;;  %v6853_v58 = vcombine.high %v478_v51, %v482_v52 }
 0x141   :  { %3530 = vmatpush1.bf16.msra.mxu0 %v6780_v0  ;;  %v610_v55 = vld [vmem:[#allocation6 + $0xea8] sm:$0xff] }
 0x142   :  { %3531 = vmatprep.subr.bf16.mxu0 %v6773_v2  ;;  %v6981_v59 = vcombine.high %v606_v54, %v610_v55  ;;  %v470_v60 = vld [vmem:[#allocation6 + $0xa48] sm:$0xff]  ;;  %v6980_v2 = vcombine.low %v606_v54, %v610_v55  ;;  %v303_v54 = vld [vmem:[#allocation6 + $0x510] sm:$0xff] }
 0x143   :  { %3571 = vmatpush1.bf16.msra.mxu1 %v6908_v1  ;;  %v474_v61 = vld [vmem:[#allocation6 + $0xa68] sm:$0xff]  ;;  %v6852_v1 = vcombine.low %v478_v51, %v482_v52  ;;  %v307_v55 = vld [vmem:[#allocation6 + $0x530] sm:$0xff] }
 0x144   :  { %3572 = vmatprep.subr.bf16.mxu1 %v6901_v6  ;;  %v598_v62 = vld [vmem:[#allocation6 + $0xe48] sm:$0xff]  ;;  %v6845_v3 = vcombine.high %v470_v60, %v474_v61 }
 0x145   :  { %3532 = vmatpush1.bf16.msra.mxu0 %v6772_v8  ;;  %v602_v0 = vld [vmem:[#allocation6 + $0xe68] sm:$0xff] }
 0x146   :  { %3533 = vmatprep.subr.bf16.mxu0 %v6893_v11  ;;  %v6973_v4 = vcombine.high %v598_v62, %v602_v0  ;;  %v462_v5 = vld [vmem:[#allocation6 + $0xa08] sm:$0xff]  ;;  %v6972_v11 = vcombine.low %v598_v62, %v602_v0  ;;  %v6679_v62 = vcombine.high %v303_v54, %v307_v55  ;;  %v167_v0 = vld [vmem:[#allocation6 + $0xd0] sm:$0xff] }
 0x147   :  { %3573 = vmatpush1.bf16.msra.mxu1 %v6900_v10  ;;  %v466_v6 = vld [vmem:[#allocation6 + $0xa28] sm:$0xff]  ;;  %v6844_v10 = vcombine.low %v470_v60, %v474_v61 }
 0x148   :  { %3574 = vmatprep.subr.bf16.mxu1 %v7021_v16  ;;  %v590_v7 = vld [vmem:[#allocation6 + $0xe08] sm:$0xff]  ;;  %v6837_v12 = vcombine.high %v462_v5, %v466_v6  ;;  %v203_v16 = vld [vmem:[#allocation6 + $0x1f0] sm:$0xff] }
 0x149   :  { %3534 = vmatpush2.bf16.msra.mxu0 %v6892_v18  ;;  %v594_v8 = vld [vmem:[#allocation6 + $0xe28] sm:$0xff]  ;;  %v331_v18 = vld [vmem:[#allocation6 + $0x5f0] sm:$0xff] }
 0x14a   :  { %3535 = vmatprep.subr.bf16.mxu0 %v6885_v20  ;;  %v6965_v14 = vcombine.high %v590_v7, %v594_v8  ;;  %v6964_v20 = vcombine.low %v590_v7, %v594_v8  ;;  %v6703_v22 = vcombine.high %v327_v17, %v331_v18  ;;  %v159_v8 = vld [vmem:[#allocation6 + $0x90] sm:$0xff] }
 0x14b   :  { %3575 = vmatpush2.bf16.msra.mxu1 %v7020_v19  ;;  %v6836_v19 = vcombine.low %v462_v5, %v466_v6  ;;  %v6678_v5 = vcombine.low %v303_v54, %v307_v55 }
 0x14c   :  { %3576 = vmatprep.subr.bf16.mxu1 %v7013_v21  ;;  %v6575_v21 = vcombine.high %v199_v15, %v203_v16 }
 0x14d   :  { %3536 = vmatpush2.bf16.msra.mxu0 %v6884_v27  ;;  %v323_v27 = vld [vmem:[#allocation6 + $0x5b0] sm:$0xff] }
 0x14e   :  { %3537 = vmatprep.subr.bf16.mxu0 %v6877_v30  ;;  %v6702_v30 = vcombine.low %v327_v17, %v331_v18  ;;  %v6695_v63 = vcombine.high %v319_v26, %v323_v27  ;;  %v6694_v43 = vcombine.low %v319_v26, %v323_v27  ;;  %v151_v18 = vld [vmem:[#allocation6 + $0x50] sm:$0xff] }
 0x14f   :  { %3577 = vmatpush2.bf16.msra.mxu1 %v7012_v29  ;;  %v6574_v29 = vcombine.low %v199_v15, %v203_v16  ;;  %v143_v27 = vld [vmem:[#allocation6 + $0x10] sm:$0xff] }
 0x150   :  { %3578 = vmatprep.subr.bf16.mxu1 %v7005_v31  ;;  %v6567_v31 = vcombine.high %v191_v24, %v195_v25 }
 0x151   :  { %3538 = vmatpush2.bf16.msra.mxu0 %v6876_v37  ;;  %v311_v37 = vld [vmem:[#allocation6 + $0x550] sm:$0xff] }
 0x152   :  { %3539 = vmatprep.subr.bf16.mxu0 %v6869_v39 }
 0x153   :  { %3579 = vmatpush2.bf16.msra.mxu1 %v7004_v38  ;;  %v315_v38 = vld [vmem:[#allocation6 + $0x570] sm:$0xff] }
 0x154   :  { %3580 = vmatprep.subr.bf16.mxu1 %v6997_v40  ;;  %v6566_v40 = vcombine.low %v191_v24, %v195_v25 }
 0x155   :  { %3540 = vmatpush2.bf16.msra.mxu0 %v6868_v46 }
 0x156   :  { %3541 = vmatprep.subr.bf16.mxu0 %v6861_v48  ;;  %v175_v48 = vld [vmem:[#allocation6 + $0x110] sm:$0xff] }
 0x157   :  { %3581 = vmatpush2.bf16.msra.mxu1 %v6996_v47  ;;  %v6687_v47 = vcombine.high %v311_v37, %v315_v38 }
 0x158   :  { %3582 = vmatprep.subr.bf16.mxu1 %v6989_v49  ;;  %v179_v49 = vld [vmem:[#allocation6 + $0x130] sm:$0xff] }
 0x159   :  { %3542 = vmatpush2.bf16.msra.mxu0 %v6860_v56  ;;  %v6551_v60 = vcombine.high %v175_v48, %v179_v49 }
 0x15a   :  { %3543 = vmatprep.subr.bf16.mxu0 %v6853_v58 }
 0x15b   :  { %3583 = vmatpush2.bf16.msra.mxu1 %v6988_v57  ;;  %v6558_v57 = vcombine.low %v183_v34, %v187_v35 }
 0x15c   :  { %3584 = vmatprep.subr.bf16.mxu1 %v6981_v59  ;;  %v6686_v59 = vcombine.low %v311_v37, %v315_v38  ;;  %v263_v37 = vld [vmem:[#allocation6 + $0x3d0] sm:$0xff] }
 0x15d   :  { %3544 = vmatpush2.bf16.msra.mxu0 %v6852_v1  ;;  %v171_v1 = vld [vmem:[#allocation6 + $0xf0] sm:$0xff] }
 0x15e   :  { %3545 = vmatprep.subr.bf16.mxu0 %v6845_v3  ;;  %v299_v3 = vld [vmem:[#allocation6 + $0x4f0] sm:$0xff]  ;;  %v6543_v6 = vcombine.high %v167_v0, %v171_v1 }
 0x15f   :  { %3585 = vmatpush2.bf16.msra.mxu1 %v6980_v2  ;;  %v295_v2 = vld [vmem:[#allocation6 + $0x4d0] sm:$0xff] }
 0x160   :  { %3586 = vmatprep.subr.bf16.mxu1 %v6973_v4  ;;  %v6550_v4 = vcombine.low %v175_v48, %v179_v49  ;;  %v6671_v7 = vcombine.high %v295_v2, %v299_v3  ;;  %v6670_v15 = vcombine.low %v295_v2, %v299_v3  ;;  %v267_v38 = vld [vmem:[#allocation6 + $0x3f0] sm:$0xff] }
 0x161   :  { %3546 = vmatpush2.bf16.msra.mxu0 %v6844_v10  ;;  %v163_v10 = vld [vmem:[#allocation6 + $0xb0] sm:$0xff]  ;;  %v6638_v54 = vcombine.low %v263_v37, %v267_v38 }
 0x162   :  { %3547 = vmatprep.subr.bf16.mxu0 %v6837_v12  ;;  %v291_v12 = vld [vmem:[#allocation6 + $0x4b0] sm:$0xff]  ;;  %v6535_v16 = vcombine.high %v159_v8, %v163_v10 }
 0x163   :  { %3587 = vmatpush2.bf16.msra.mxu1 %v6972_v11  ;;  %v287_v11 = vld [vmem:[#allocation6 + $0x490] sm:$0xff] }
 0x164   :  { %3588 = vmatprep.subr.bf16.mxu1 %v6965_v14  ;;  %v6542_v14 = vcombine.low %v167_v0, %v171_v1  ;;  %v6663_v17 = vcombine.high %v287_v11, %v291_v12  ;;  %v6662_v24 = vcombine.low %v287_v11, %v291_v12  ;;  %v259_v48 = vld [vmem:[#allocation6 + $0x3b0] sm:$0xff] }
 0x165   :  { %3548 = vmatpush2.bf16.msra.mxu0 %v6836_v19  ;;  %v155_v19 = vld [vmem:[#allocation6 + $0x70] sm:$0xff] }
 0x166   :  { %3599 = vmatprep.subr.bf16.mxu0 %v6575_v21  ;;  %v283_v21 = vld [vmem:[#allocation6 + $0x470] sm:$0xff]  ;;  %v6527_v25 = vcombine.high %v151_v18, %v155_v19 }
 0x167   :  { %3589 = vmatpush2.bf16.msra.mxu1 %v6964_v20  ;;  %v279_v20 = vld [vmem:[#allocation6 + $0x450] sm:$0xff] }
 0x168   :  { %3640 = vmatprep.subr.bf16.mxu1 %v6703_v22  ;;  %v3305_v36 = vpop.f32.mrf.mxu0  ;;  %3550 = vmatmul.mubr.bf16.vlgmr.msra.gmra.mxu0 %v8127_v32  ;;  %v6534_v22 = vcombine.low %v159_v8, %v163_v10  ;;  %v6655_v26 = vcombine.high %v279_v20, %v283_v21  ;;  %v6654_v34 = vcombine.low %v279_v20, %v283_v21  ;;  %v383_v49 = vld [vmem:[#allocation6 + $0x790] sm:$0xff] }
 0x169   :  { %3600 = vmatpush1.bf16.msra.mxu0 %v6574_v29  ;;  %3631 = vmatprep.mubr.bf16.mxu0 %v8114_v9  ;;  %v147_v29 = vld [vmem:[#allocation6 + $0x30] sm:$0xff] }
 0x16a   :  { %v3346_v39 = vpop.f32.mrf.mxu1  ;;  %3591 = vmatmul.mubr.bf16.vlgmr.msra.gmra.mxu1 %v8152_v50  ;;  %v3307_v42 = vpop.f32.mrf.mxu0  ;;  %3601 = vmatprep.subr.bf16.mxu0 %v6567_v31  ;;  %v275_v31 = vld [vmem:[#allocation6 + $0x430] sm:$0xff]  ;;  %v6519_v35 = vcombine.high %v143_v27, %v147_v29 }
 0x16b   :  { %v8164_v41 = vadd.f32 %v3346_v39, %v3305_v36  ;;  %3641 = vmatpush1.bf16.msra.mxu1 %v6702_v30  ;;  %3672 = vmatprep.mubr.bf16.mxu1 %v8119_v13  ;;  %v271_v30 = vld [vmem:[#allocation6 + $0x410] sm:$0xff] }
 0x16c   :  { %v3348_v46 = vpop.f32.mrf.mxu1  ;;  %3642 = vmatprep.subr.bf16.mxu1 %v6695_v63  ;;  %v3309_v52 = vpop.f32.mrf.mxu0  ;;  %v6526_v63 = vcombine.low %v151_v18, %v155_v19  ;;  %v6647_v36 = vcombine.high %v271_v30, %v275_v31  ;;  %v391_v39 = vld [vmem:[#allocation6 + $0x7d0] sm:$0xff] }
 0x16d   :  { %v8167_v51 = vadd.f32 %v3348_v46, %v3307_v42  ;;  %3602 = vmatpush1.bf16.msra.mxu0 %v6566_v40  ;;  %v395_v40 = vld [vmem:[#allocation6 + $0x7f0] sm:$0xff]  ;;  %v6518_v42 = vcombine.low %v143_v27, %v147_v29 }
 0x16e   :  { %v3350_v56 = vpop.f32.mrf.mxu1  ;;  %v3310_v58 = vpop.f32.mrf.mxu0  ;;  %3603 = vmatprep.subr.bf16.mxu0 %v6559_v45  ;;  %v6639_v45 = vcombine.high %v263_v37, %v267_v38  ;;  %v6767_v46 = vcombine.high %v391_v39, %v395_v40  ;;  %v387_v52 = vld [vmem:[#allocation6 + $0x7b0] sm:$0xff]  ;;  %v6766_v55 = vcombine.low %v391_v39, %v395_v40 }
 0x16f   :  { %3643 = vmatpush1.bf16.msra.mxu1 %v6694_v43  ;;  %v6646_v43 = vcombine.low %v271_v30, %v275_v31  ;;  %v247_v58 = vld [vmem:[#allocation6 + $0x350] sm:$0xff]  ;;  %v6758_v0 = vcombine.low %v383_v49, %v387_v52 }
 0x170   :  { %v3351_v61 = vpop.f32.mrf.mxu1  ;;  %3644 = vmatprep.subr.bf16.mxu1 %v6687_v47  ;;  %v255_v47 = vld [vmem:[#allocation6 + $0x390] sm:$0xff] }
 0x171   :  { %3604 = vmatpush1.bf16.msra.mxu0 %v6558_v57  ;;  %v6631_v56 = vcombine.high %v255_v47, %v259_v48  ;;  %v6759_v57 = vcombine.high %v383_v49, %v387_v52  ;;  %v379_v61 = vld [vmem:[#allocation6 + $0x770] sm:$0xff] }
 0x172   :  { %3605 = vmatprep.subr.bf16.mxu0 %v6551_v60  ;;  %v375_v60 = vld [vmem:[#allocation6 + $0x750] sm:$0xff] }
 0x173   :  { %3645 = vmatpush1.bf16.msra.mxu1 %v6686_v59  ;;  %v251_v59 = vld [vmem:[#allocation6 + $0x370] sm:$0xff]  ;;  %v6751_v2 = vcombine.high %v375_v60, %v379_v61  ;;  %v6750_v8 = vcombine.low %v375_v60, %v379_v61 }
 0x174   :  { %3646 = vmatprep.subr.bf16.mxu1 %v6679_v62  ;;  %v6630_v62 = vcombine.low %v255_v47, %v259_v48  ;;  %v6623_v1 = vcombine.high %v247_v58, %v251_v59  ;;  %v239_v3 = vld [vmem:[#allocation6 + $0x310] sm:$0xff] }
 0x175   :  { %3606 = vmatpush1.bf16.msra.mxu0 %v6550_v4  ;;  %v243_v4 = vld [vmem:[#allocation6 + $0x330] sm:$0xff] }
 0x176   :  { %3607 = vmatprep.subr.bf16.mxu0 %v6543_v6  ;;  %v371_v6 = vld [vmem:[#allocation6 + $0x730] sm:$0xff]  ;;  %v6615_v10 = vcombine.high %v239_v3, %v243_v4 }
 0x177   :  { %3647 = vmatpush1.bf16.msra.mxu1 %v6678_v5  ;;  %v367_v5 = vld [vmem:[#allocation6 + $0x710] sm:$0xff] }
 0x178   :  { %3648 = vmatprep.subr.bf16.mxu1 %v6671_v7  ;;  %v6622_v7 = vcombine.low %v247_v58, %v251_v59  ;;  %v6743_v11 = vcombine.high %v367_v5, %v371_v6  ;;  %v231_v12 = vld [vmem:[#allocation6 + $0x2d0] sm:$0xff]  ;;  %v6742_v18 = vcombine.low %v367_v5, %v371_v6 }
 0x179   :  { %3608 = vmatpush1.bf16.msra.mxu0 %v6542_v14  ;;  %v235_v14 = vld [vmem:[#allocation6 + $0x2f0] sm:$0xff] }
 0x17a   :  { %3609 = vmatprep.subr.bf16.mxu0 %v6535_v16  ;;  %v363_v16 = vld [vmem:[#allocation6 + $0x6f0] sm:$0xff]  ;;  %v6607_v19 = vcombine.high %v231_v12, %v235_v14 }
 0x17b   :  { %3649 = vmatpush1.bf16.msra.mxu1 %v6670_v15  ;;  %v359_v15 = vld [vmem:[#allocation6 + $0x6d0] sm:$0xff] }
 0x17c   :  { %3650 = vmatprep.subr.bf16.mxu1 %v6663_v17  ;;  %v6614_v17 = vcombine.low %v239_v3, %v243_v4  ;;  %v6735_v20 = vcombine.high %v359_v15, %v363_v16  ;;  %v223_v21 = vld [vmem:[#allocation6 + $0x290] sm:$0xff]  ;;  %v6734_v27 = vcombine.low %v359_v15, %v363_v16 }
 0x17d   :  { %3610 = vmatpush1.bf16.msra.mxu0 %v6534_v22  ;;  %v227_v22 = vld [vmem:[#allocation6 + $0x2b0] sm:$0xff] }
 0x17e   :  { %3611 = vmatprep.subr.bf16.mxu0 %v6527_v25  ;;  %v355_v25 = vld [vmem:[#allocation6 + $0x6b0] sm:$0xff]  ;;  %v6599_v29 = vcombine.high %v223_v21, %v227_v22 }
 0x17f   :  { %3651 = vmatpush1.bf16.msra.mxu1 %v6662_v24  ;;  %v351_v24 = vld [vmem:[#allocation6 + $0x690] sm:$0xff] }
 0x180   :  { %3652 = vmatprep.subr.bf16.mxu1 %v6655_v26  ;;  %v6606_v26 = vcombine.low %v231_v12, %v235_v14  ;;  %v6727_v30 = vcombine.high %v351_v24, %v355_v25  ;;  %v215_v31 = vld [vmem:[#allocation6 + $0x250] sm:$0xff]  ;;  %v6726_v37 = vcombine.low %v351_v24, %v355_v25 }
 0x181   :  { %3612 = vmatpush1.bf16.msra.mxu0 %v6526_v63  ;;  %v219_v63 = vld [vmem:[#allocation6 + $0x270] sm:$0xff] }
 0x182   :  { %3613 = vmatprep.subr.bf16.mxu0 %v6519_v35  ;;  %v347_v35 = vld [vmem:[#allocation6 + $0x670] sm:$0xff]  ;;  %v6591_v38 = vcombine.high %v215_v31, %v219_v63 }
 0x183   :  { %3653 = vmatpush1.bf16.msra.mxu1 %v6654_v34  ;;  %v343_v34 = vld [vmem:[#allocation6 + $0x650] sm:$0xff] }
 0x184   :  { %3654 = vmatprep.subr.bf16.mxu1 %v6647_v36  ;;  %v6598_v36 = vcombine.low %v223_v21, %v227_v22  ;;  %v6719_v39 = vcombine.high %v343_v34, %v347_v35  ;;  %v207_v40 = vld [vmem:[#allocation6 + $0x210] sm:$0xff]  ;;  %v6718_v47 = vcombine.low %v343_v34, %v347_v35 }
 0x185   :  { %3614 = vmatpush1.bf16.msra.mxu0 %v6518_v42  ;;  %v211_v42 = vld [vmem:[#allocation6 + $0x230] sm:$0xff] }
 0x186   :  { %3615 = vmatprep.subr.bf16.mxu0 %v6639_v45  ;;  %v339_v45 = vld [vmem:[#allocation6 + $0x630] sm:$0xff]  ;;  %v6583_v48 = vcombine.high %v207_v40, %v211_v42 }
 0x187   :  { %3655 = vmatpush1.bf16.msra.mxu1 %v6646_v43  ;;  %v335_v43 = vld [vmem:[#allocation6 + $0x610] sm:$0xff] }
 0x188   :  { %3656 = vmatprep.subr.bf16.mxu1 %v6767_v46  ;;  %v6590_v46 = vcombine.low %v215_v31, %v219_v63  ;;  %v6711_v49 = vcombine.high %v335_v43, %v339_v45  ;;  %v455_v52 = vld [vmem:[#allocation6 + $0x9d0] sm:$0xff]  ;;  %v6710_v58 = vcombine.low %v335_v43, %v339_v45 }
 0x189   :  { %3616 = vmatpush2.bf16.msra.mxu0 %v6638_v54  ;;  %v459_v54 = vld [vmem:[#allocation6 + $0x9f0] sm:$0xff] }
 0x18a   :  { %3617 = vmatprep.subr.bf16.mxu0 %v6631_v56  ;;  %v587_v56 = vld [vmem:[#allocation6 + $0xdf0] sm:$0xff]  ;;  %v6831_v59 = vcombine.high %v455_v52, %v459_v54 }
 0x18b   :  { %3657 = vmatpush2.bf16.msra.mxu1 %v6766_v55  ;;  %v583_v55 = vld [vmem:[#allocation6 + $0xdd0] sm:$0xff] }
 0x18c   :  { %3658 = vmatprep.subr.bf16.mxu1 %v6759_v57  ;;  %v6582_v57 = vcombine.low %v207_v40, %v211_v42  ;;  %v6959_v60 = vcombine.high %v583_v55, %v587_v56  ;;  %v447_v61 = vld [vmem:[#allocation6 + $0x990] sm:$0xff]  ;;  %v6958_v3 = vcombine.low %v583_v55, %v587_v56 }
 0x18d   :  { %3618 = vmatpush2.bf16.msra.mxu0 %v6630_v62  ;;  %v451_v62 = vld [vmem:[#allocation6 + $0x9b0] sm:$0xff] }
 0x18e   :  { %3619 = vmatprep.subr.bf16.mxu0 %v6623_v1  ;;  %v579_v1 = vld [vmem:[#allocation6 + $0xdb0] sm:$0xff]  ;;  %v6823_v4 = vcombine.high %v447_v61, %v451_v62  ;;  %v6822_v15 = vcombine.low %v447_v61, %v451_v62 }
 0x18f   :  { %3659 = vmatpush2.bf16.msra.mxu1 %v6758_v0  ;;  %v575_v0 = vld [vmem:[#allocation6 + $0xd90] sm:$0xff] }
 0x190   :  { %3660 = vmatprep.subr.bf16.mxu1 %v6751_v2  ;;  %v6830_v2 = vcombine.low %v455_v52, %v459_v54  ;;  %v6951_v5 = vcombine.high %v575_v0, %v579_v1  ;;  %v439_v6 = vld [vmem:[#allocation6 + $0x950] sm:$0xff] }
 0x191   :  { %3620 = vmatpush2.bf16.msra.mxu0 %v6622_v7  ;;  %v443_v7 = vld [vmem:[#allocation6 + $0x970] sm:$0xff] }
 0x192   :  { %3621 = vmatprep.subr.bf16.mxu0 %v6615_v10  ;;  %v567_v10 = vld [vmem:[#allocation6 + $0xd50] sm:$0xff]  ;;  %v6814_v31 = vcombine.low %v439_v6, %v443_v7 }
 0x193   :  { %3661 = vmatpush2.bf16.msra.mxu1 %v6750_v8  ;;  %v431_v24 = vld [vmem:[#allocation6 + $0x910] sm:$0xff] }
 0x194   :  { %3662 = vmatprep.subr.bf16.mxu1 %v6743_v11  ;;  %v571_v11 = vld [vmem:[#allocation6 + $0xd70] sm:$0xff] }
 0x195   :  { %3622 = vmatpush2.bf16.msra.mxu0 %v6614_v17  ;;  %v6950_v17 = vcombine.low %v575_v0, %v579_v1  ;;  %v6943_v22 = vcombine.high %v567_v10, %v571_v11  ;;  %v435_v25 = vld [vmem:[#allocation6 + $0x930] sm:$0xff] }
 0x196   :  { %3623 = vmatprep.subr.bf16.mxu0 %v6607_v19  ;;  %v6807_v34 = vcombine.high %v431_v24, %v435_v25  ;;  %v551_v40 = vld [vmem:[#allocation6 + $0xcd0] sm:$0xff]  ;;  %v6806_v43 = vcombine.low %v431_v24, %v435_v25 }
 0x197   :  { %3663 = vmatpush2.bf16.msra.mxu1 %v6742_v18  ;;  %v6815_v18 = vcombine.high %v439_v6, %v443_v7  ;;  %v555_v42 = vld [vmem:[#allocation6 + $0xcf0] sm:$0xff] }
 0x198   :  { %3664 = vmatprep.subr.bf16.mxu1 %v6735_v20  ;;  %v543_v52 = vld [vmem:[#allocation6 + $0xc90] sm:$0xff]  ;;  %v6926_v56 = vcombine.low %v551_v40, %v555_v42 }
 0x199   :  { %3624 = vmatpush2.bf16.msra.mxu0 %v6606_v26  ;;  %v559_v26 = vld [vmem:[#allocation6 + $0xd10] sm:$0xff] }
 0x19a   :  { %3625 = vmatprep.subr.bf16.mxu0 %v6599_v29  ;;  %v547_v54 = vld [vmem:[#allocation6 + $0xcb0] sm:$0xff] }
 0x19b   :  { %3665 = vmatpush2.bf16.msra.mxu1 %v6734_v27  ;;  %v563_v27 = vld [vmem:[#allocation6 + $0xd30] sm:$0xff]  ;;  %v6918_v1 = vcombine.low %v543_v52, %v547_v54 }
 0x19c   :  { %3666 = vmatprep.subr.bf16.mxu1 %v6727_v30  ;;  %v6934_v45 = vcombine.low %v559_v26, %v563_v27  ;;  %v535_v61 = vld [vmem:[#allocation6 + $0xc50] sm:$0xff] }
 0x19d   :  { %3626 = vmatpush2.bf16.msra.mxu0 %v6598_v36  ;;  %v539_v62 = vld [vmem:[#allocation6 + $0xc70] sm:$0xff] }
 0x19e   :  { %3627 = vmatprep.subr.bf16.mxu0 %v6591_v38  ;;  %v423_v38 = vld [vmem:[#allocation6 + $0x8d0] sm:$0xff] }
 0x19f   :  { %3667 = vmatpush2.bf16.msra.mxu1 %v6726_v37  ;;  %v6935_v37 = vcombine.high %v559_v26, %v563_v27  ;;  %v527_v6 = vld [vmem:[#allocation6 + $0xc10] sm:$0xff] }
 0x1a0   :  { %3668 = vmatprep.subr.bf16.mxu1 %v6719_v39  ;;  %v427_v39 = vld [vmem:[#allocation6 + $0x8f0] sm:$0xff] }
 0x1a1   :  { %3628 = vmatpush2.bf16.msra.mxu0 %v6590_v46  ;;  %v6799_v46 = vcombine.high %v423_v38, %v427_v39  ;;  %v6798_v55 = vcombine.low %v423_v38, %v427_v39  ;;  %v531_v7 = vld [vmem:[#allocation6 + $0xc30] sm:$0xff] }
 0x1a2   :  { %3629 = vmatprep.subr.bf16.mxu0 %v6583_v48  ;;  %v415_v48 = vld [vmem:[#allocation6 + $0x890] sm:$0xff] }
 0x1a3   :  { %3669 = vmatpush2.bf16.msra.mxu1 %v6718_v47  ;;  %v6927_v47 = vcombine.high %v551_v40, %v555_v42  ;;  %v511_v24 = vld [vmem:[#allocation6 + $0xb90] sm:$0xff] }
 0x1a4   :  { %3670 = vmatprep.subr.bf16.mxu1 %v6711_v49  ;;  %v419_v49 = vld [vmem:[#allocation6 + $0x8b0] sm:$0xff] }
 0x1a5   :  { %3630 = vmatpush2.bf16.msra.mxu0 %v6582_v57  ;;  %v6791_v57 = vcombine.high %v415_v48, %v419_v49  ;;  %v6790_v0 = vcombine.low %v415_v48, %v419_v49  ;;  %v515_v25 = vld [vmem:[#allocation6 + $0xbb0] sm:$0xff] }
 0x1a6   :  { %3681 = vmatprep.subr.bf16.mxu0 %v6831_v59  ;;  %v407_v59 = vld [vmem:[#allocation6 + $0x850] sm:$0xff]  ;;  %v6886_v38 = vcombine.low %v511_v24, %v515_v25 }
 0x1a7   :  { %3671 = vmatpush2.bf16.msra.mxu1 %v6710_v58  ;;  %v6919_v58 = vcombine.high %v543_v52, %v547_v54  ;;  %v643_v26 = vld [vmem:[#allocation6 + $0xfb0] sm:$0xff] }
 0x1a8   :  { %3722 = vmatprep.subr.bf16.mxu1 %v6959_v60  ;;  %v3387_v8 = vpop.f32.mrf.mxu0  ;;  %3632 = vmatmul.mubr.bf16.vlgmr.msra.gmra.mxu0 %v8133_v23  ;;  %v411_v60 = vld [vmem:[#allocation6 + $0x870] sm:$0xff] }
 0x1a9   :  { %v3388_v12 = vadd.f32 %v3387_v8, %v8164_v41  ;;  %3682 = vmatpush1.bf16.msra.mxu0 %v6830_v2  ;;  %3713 = vmatprep.mubr.bf16.mxu0 %v8136_v33  ;;  %v6783_v2 = vcombine.high %v407_v59, %v411_v60  ;;  %v6782_v8 = vcombine.low %v407_v59, %v411_v60 }
 0x1aa   :  { %v3428_v14 = vpop.f32.mrf.mxu1  ;;  %3673 = vmatmul.mubr.bf16.vlgmr.msra.gmra.mxu1 %v8140_v28  ;;  %v3389_v16 = vpop.f32.mrf.mxu0  ;;  %3683 = vmatprep.subr.bf16.mxu0 %v6823_v4  ;;  %v399_v4 = vld [vmem:[#allocation6 + $0x810] sm:$0xff] }
 0x1ab   :  { %3723 = vmatpush1.bf16.msra.mxu1 %v6958_v3  ;;  %v8173_v19 = vadd.f32 %v3428_v14, %v3388_v12  ;;  %v3390_v20 = vadd.f32 %v3389_v16, %v8167_v51  ;;  %3754 = vmatprep.mubr.bf16.mxu1 %v8145_v53  ;;  %v6942_v51 = vcombine.low %v567_v10, %v571_v11  ;;  %v519_v14 = vld [vmem:[#allocation6 + $0xbd0] sm:$0xff] }
 0x1ac   :  { %v3430_v21 = vpop.f32.mrf.mxu1  ;;  %3724 = vmatprep.subr.bf16.mxu1 %v6951_v5  ;;  %v3391_v41 = vpop.f32.mrf.mxu0  ;;  %v6911_v3 = vcombine.high %v535_v61, %v539_v62  ;;  %v403_v5 = vld [vmem:[#allocation6 + $0x830] sm:$0xff]  ;;  %v6910_v10 = vcombine.low %v535_v61, %v539_v62  ;;  %v6903_v12 = vcombine.high %v527_v6, %v531_v7 }
 0x1ad   :  { %v8178_v29 = vadd.f32 %v3430_v21, %v3390_v20  ;;  %3684 = vmatpush1.bf16.msra.mxu0 %v6822_v15  ;;  %v6775_v11 = vcombine.high %v399_v4, %v403_v5  ;;  %v523_v15 = vld [vmem:[#allocation6 + $0xbf0] sm:$0xff]  ;;  %v6902_v20 = vcombine.low %v527_v6, %v531_v7 }
 0x1ae   :  { %v3432_v30 = vpop.f32.mrf.mxu1  ;;  %v3392_v63 = vpop.f32.mrf.mxu0  ;;  %3685 = vmatprep.subr.bf16.mxu0 %v6815_v18  ;;  %v647_v16 = vld [vmem:[#allocation6 + $0xfd0] sm:$0xff]  ;;  %v6774_v18 = vcombine.low %v399_v4, %v403_v5  ;;  %v6895_v21 = vcombine.high %v519_v14, %v523_v15  ;;  %v6894_v27 = vcombine.low %v519_v14, %v523_v15 }
 0x1af   :  { %3725 = vmatpush1.bf16.msra.mxu1 %v6950_v17  ;;  %v3935_v35 = vcombine.low %v8173_v19, %v8178_v29  ;;  %v651_v17 = vld [vmem:[#allocation6 + $0xff0] sm:$0xff]  ;;  %v548_v19 = vld [vmem:[#allocation6 + $0xcb8] sm:$0xff] }
 0x1b0   :  { %v3433_v36 = vpop.f32.mrf.mxu1  ;;  %3726 = vmatprep.subr.bf16.mxu1 %v6943_v22  ;;  %v7023_v22 = vcombine.high %v647_v16, %v651_v17  ;;  %v639_v41 = vld [vmem:[#allocation6 + $0xf90] sm:$0xff]  ;;  %v7022_v30 = vcombine.low %v647_v16, %v651_v17 }
 0x1b1   :  { %3686 = vmatpush1.bf16.msra.mxu0 %v6814_v31  ;;  %v6887_v31 = vcombine.high %v511_v24, %v515_v25  ;;  %v7015_v63 = vcombine.high %v639_v41, %v643_v26  ;;  %v631_v36 = vld [vmem:[#allocation6 + $0xf50] sm:$0xff]  ;;  %v7014_v39 = vcombine.low %v639_v41, %v643_v26 }
 0x1b2   :  { %3687 = vmatprep.subr.bf16.mxu0 %v6807_v34  ;;  %v507_v34 = vld [vmem:[#allocation6 + $0xb70] sm:$0xff] }
 0x1b3   :  { %3727 = vmatpush1.bf16.msra.mxu1 %v6942_v51  ;;  %v503_v51 = vld [vmem:[#allocation6 + $0xb50] sm:$0xff] }
 0x1b4   :  { %3728 = vmatprep.subr.bf16.mxu1 %v6935_v37  ;;  %v635_v37 = vld [vmem:[#allocation6 + $0xf70] sm:$0xff]  ;;  %v6879_v40 = vcombine.high %v503_v51, %v507_v34  ;;  %v6878_v48 = vcombine.low %v503_v51, %v507_v34 }
 0x1b5   :  { %3688 = vmatpush1.bf16.msra.mxu0 %v6806_v43  ;;  %v7007_v42 = vcombine.high %v631_v36, %v635_v37  ;;  %v495_v43 = vld [vmem:[#allocation6 + $0xb10] sm:$0xff]  ;;  %v7006_v49 = vcombine.low %v631_v36, %v635_v37 }
 0x1b6   :  { %3689 = vmatprep.subr.bf16.mxu0 %v6799_v46  ;;  %v623_v46 = vld [vmem:[#allocation6 + $0xf10] sm:$0xff] }
 0x1b7   :  { %3729 = vmatpush1.bf16.msra.mxu1 %v6934_v45  ;;  %v499_v45 = vld [vmem:[#allocation6 + $0xb30] sm:$0xff] }
 0x1b8   :  { %3730 = vmatprep.subr.bf16.mxu1 %v6927_v47  ;;  %v627_v47 = vld [vmem:[#allocation6 + $0xf30] sm:$0xff]  ;;  %v6871_v52 = vcombine.high %v495_v43, %v499_v45  ;;  %v6870_v59 = vcombine.low %v495_v43, %v499_v45 }
 0x1b9   :  { %3690 = vmatpush1.bf16.msra.mxu0 %v6798_v55  ;;  %v6999_v54 = vcombine.high %v623_v46, %v627_v47  ;;  %v487_v55 = vld [vmem:[#allocation6 + $0xad0] sm:$0xff]  ;;  %v6998_v60 = vcombine.low %v623_v46, %v627_v47 }
 0x1ba   :  { %3691 = vmatprep.subr.bf16.mxu0 %v6791_v57  ;;  %v615_v57 = vld [vmem:[#allocation6 + $0xed0] sm:$0xff] }
 0x1bb   :  { %3731 = vmatpush1.bf16.msra.mxu1 %v6926_v56  ;;  %v491_v56 = vld [vmem:[#allocation6 + $0xaf0] sm:$0xff] }
 0x1bc   :  { %3732 = vmatprep.subr.bf16.mxu1 %v6919_v58  ;;  %v619_v58 = vld [vmem:[#allocation6 + $0xef0] sm:$0xff]  ;;  %v6863_v61 = vcombine.high %v487_v55, %v491_v56  ;;  %v6862_v4 = vcombine.low %v487_v55, %v491_v56  ;;  %v316_v55 = vld [vmem:[#allocation6 + $0x578] sm:$0xff] }
 0x1bd   :  { %3692 = vmatpush1.bf16.msra.mxu0 %v6790_v0  ;;  %v6991_v62 = vcombine.high %v615_v57, %v619_v58  ;;  %v479_v0 = vld [vmem:[#allocation6 + $0xa90] sm:$0xff]  ;;  %v6990_v5 = vcombine.low %v615_v57, %v619_v58 }
 0x1be   :  { %3693 = vmatprep.subr.bf16.mxu0 %v6783_v2  ;;  %v607_v2 = vld [vmem:[#allocation6 + $0xe90] sm:$0xff] }
 0x1bf   :  { %3733 = vmatpush1.bf16.msra.mxu1 %v6918_v1  ;;  %v483_v1 = vld [vmem:[#allocation6 + $0xab0] sm:$0xff] }
 0x1c0   :  { %3734 = vmatprep.subr.bf16.mxu1 %v6911_v3  ;;  %v611_v3 = vld [vmem:[#allocation6 + $0xeb0] sm:$0xff]  ;;  %v6855_v6 = vcombine.high %v479_v0, %v483_v1  ;;  %v6854_v14 = vcombine.low %v479_v0, %v483_v1  ;;  %v176_v1 = vld [vmem:[#allocation6 + $0x118] sm:$0xff] }
 0x1c1   :  { %3694 = vmatpush1.bf16.msra.mxu0 %v6782_v8  ;;  %v6983_v7 = vcombine.high %v607_v2, %v611_v3  ;;  %v471_v8 = vld [vmem:[#allocation6 + $0xa50] sm:$0xff]  ;;  %v6982_v15 = vcombine.low %v607_v2, %v611_v3  ;;  %v180_v2 = vld [vmem:[#allocation6 + $0x138] sm:$0xff] }
 0x1c2   :  { %3695 = vmatprep.subr.bf16.mxu0 %v6775_v11  ;;  %v599_v11 = vld [vmem:[#allocation6 + $0xe50] sm:$0xff] }
 0x1c3   :  { %3735 = vmatpush1.bf16.msra.mxu1 %v6910_v10  ;;  %v475_v10 = vld [vmem:[#allocation6 + $0xa70] sm:$0xff] }
 0x1c4   :  { %3736 = vmatprep.subr.bf16.mxu1 %v6903_v12  ;;  %v603_v12 = vld [vmem:[#allocation6 + $0xe70] sm:$0xff]  ;;  %v6847_v16 = vcombine.high %v471_v8, %v475_v10  ;;  %v6846_v24 = vcombine.low %v471_v8, %v475_v10 }
 0x1c5   :  { %3696 = vmatpush1.bf16.msra.mxu0 %v6774_v18  ;;  %v6975_v17 = vcombine.high %v599_v11, %v603_v12  ;;  %v463_v18 = vld [vmem:[#allocation6 + $0xa10] sm:$0xff]  ;;  %v6974_v25 = vcombine.low %v599_v11, %v603_v12  ;;  %v6553_v12 = vcombine.high %v176_v1, %v180_v2 }
 0x1c6   :  { %3697 = vmatprep.subr.bf16.mxu0 %v6895_v21  ;;  %v591_v21 = vld [vmem:[#allocation6 + $0xe10] sm:$0xff] }
 0x1c7   :  { %3737 = vmatpush1.bf16.msra.mxu1 %v6902_v20  ;;  %v467_v20 = vld [vmem:[#allocation6 + $0xa30] sm:$0xff] }
 0x1c8   :  { %3738 = vmatprep.subr.bf16.mxu1 %v7023_v22  ;;  %v595_v22 = vld [vmem:[#allocation6 + $0xe30] sm:$0xff]  ;;  %v6839_v41 = vcombine.high %v463_v18, %v467_v20  ;;  %v6838_v51 = vcombine.low %v463_v18, %v467_v20  ;;  %v300_v18 = vld [vmem:[#allocation6 + $0x4f8] sm:$0xff]  ;;  %v6552_v20 = vcombine.low %v176_v1, %v180_v2 }
 0x1c9   :  { %3698 = vmatpush2.bf16.msra.mxu0 %v6894_v27  ;;  %v6967_v26 = vcombine.high %v591_v21, %v595_v22  ;;  %v200_v27 = vld [vmem:[#allocation6 + $0x1d8] sm:$0xff]  ;;  %v6966_v34 = vcombine.low %v591_v21, %v595_v22 }
 0x1ca   :  { %3699 = vmatprep.subr.bf16.mxu0 %v6887_v31  ;;  %v328_v31 = vld [vmem:[#allocation6 + $0x5d8] sm:$0xff] }
 0x1cb   :  { %3739 = vmatpush2.bf16.msra.mxu1 %v7022_v30  ;;  %v204_v30 = vld [vmem:[#allocation6 + $0x1f8] sm:$0xff] }
 0x1cc   :  { %3740 = vmatprep.subr.bf16.mxu1 %v7015_v63  ;;  %v332_v63 = vld [vmem:[#allocation6 + $0x5f8] sm:$0xff]  ;;  %v6577_v36 = vcombine.high %v200_v27, %v204_v30  ;;  %v6576_v43 = vcombine.low %v200_v27, %v204_v30 }
 0x1cd   :  { %3700 = vmatpush2.bf16.msra.mxu0 %v6886_v38  ;;  %v6705_v37 = vcombine.high %v328_v31, %v332_v63  ;;  %v192_v38 = vld [vmem:[#allocation6 + $0x198] sm:$0xff]  ;;  %v6704_v45 = vcombine.low %v328_v31, %v332_v63 }
 0x1ce   :  { %3701 = vmatprep.subr.bf16.mxu0 %v6879_v40  ;;  %v320_v40 = vld [vmem:[#allocation6 + $0x598] sm:$0xff] }
 0x1cf   :  { %3741 = vmatpush2.bf16.msra.mxu1 %v7014_v39  ;;  %v196_v39 = vld [vmem:[#allocation6 + $0x1b8] sm:$0xff] }
 0x1d0   :  { %3742 = vmatprep.subr.bf16.mxu1 %v7007_v42  ;;  %v324_v42 = vld [vmem:[#allocation6 + $0x5b8] sm:$0xff]  ;;  %v6569_v46 = vcombine.high %v192_v38, %v196_v39  ;;  %v6568_v57 = vcombine.low %v192_v38, %v196_v39 }
 0x1d1   :  { %3702 = vmatpush2.bf16.msra.mxu0 %v6878_v48  ;;  %v6697_v47 = vcombine.high %v320_v40, %v324_v42  ;;  %v184_v48 = vld [vmem:[#allocation6 + $0x158] sm:$0xff] }
 0x1d2   :  { %3703 = vmatprep.subr.bf16.mxu0 %v6871_v52  ;;  %v256_v1 = vld [vmem:[#allocation6 + $0x398] sm:$0xff] }
 0x1d3   :  { %3743 = vmatpush2.bf16.msra.mxu1 %v7006_v49  ;;  %v188_v49 = vld [vmem:[#allocation6 + $0x178] sm:$0xff] }
 0x1d4   :  { %3744 = vmatprep.subr.bf16.mxu1 %v6999_v54  ;;  %v312_v54 = vld [vmem:[#allocation6 + $0x558] sm:$0xff]  ;;  %v6560_v8 = vcombine.low %v184_v48, %v188_v49 }
 0x1d5   :  { %3704 = vmatpush2.bf16.msra.mxu0 %v6870_v59  ;;  %v6689_v0 = vcombine.high %v312_v54, %v316_v55  ;;  %v6688_v11 = vcombine.low %v312_v54, %v316_v55  ;;  %v264_v55 = vld [vmem:[#allocation6 + $0x3d8] sm:$0xff] }
 0x1d6   :  { %3705 = vmatprep.subr.bf16.mxu0 %v6863_v61  ;;  %v6561_v61 = vcombine.high %v184_v48, %v188_v49  ;;  %v260_v2 = vld [vmem:[#allocation6 + $0x3b8] sm:$0xff] }
 0x1d7   :  { %3745 = vmatpush2.bf16.msra.mxu1 %v6998_v60  ;;  %v6696_v60 = vcombine.low %v320_v40, %v324_v42 }
 0x1d8   :  { %3746 = vmatprep.subr.bf16.mxu1 %v6991_v62 }
 0x1d9   :  { %3706 = vmatpush2.bf16.msra.mxu0 %v6862_v4 }
 0x1da   :  { %3707 = vmatprep.subr.bf16.mxu0 %v6855_v6  ;;  %v308_v6 = vld [vmem:[#allocation6 + $0x538] sm:$0xff] }
 0x1db   :  { %3747 = vmatpush2.bf16.msra.mxu1 %v6990_v5  ;;  %v304_v5 = vld [vmem:[#allocation6 + $0x518] sm:$0xff] }
 0x1dc   :  { %3748 = vmatprep.subr.bf16.mxu1 %v6983_v7 }
 0x1dd   :  { %3708 = vmatpush2.bf16.msra.mxu0 %v6854_v14 }
 0x1de   :  { %3709 = vmatprep.subr.bf16.mxu0 %v6847_v16  ;;  %v168_v16 = vld [vmem:[#allocation6 + $0xd8] sm:$0xff] }
 0x1df   :  { %3749 = vmatpush2.bf16.msra.mxu1 %v6982_v15  ;;  %v6681_v15 = vcombine.high %v304_v5, %v308_v6 }
 0x1e0   :  { %3750 = vmatprep.subr.bf16.mxu1 %v6975_v17  ;;  %v296_v17 = vld [vmem:[#allocation6 + $0x4d8] sm:$0xff] }
 0x1e1   :  { %3710 = vmatpush2.bf16.msra.mxu0 %v6846_v24  ;;  %v6673_v22 = vcombine.high %v296_v17, %v300_v18  ;;  %v160_v24 = vld [vmem:[#allocation6 + $0x98] sm:$0xff]  ;;  %v6672_v30 = vcombine.low %v296_v17, %v300_v18 }
 0x1e2   :  { %3711 = vmatprep.subr.bf16.mxu0 %v6839_v41  ;;  %v288_v41 = vld [vmem:[#allocation6 + $0x498] sm:$0xff] }
 0x1e3   :  { %3751 = vmatpush2.bf16.msra.mxu1 %v6974_v25  ;;  %v164_v25 = vld [vmem:[#allocation6 + $0xb8] sm:$0xff] }
 0x1e4   :  { %3752 = vmatprep.subr.bf16.mxu1 %v6967_v26  ;;  %v292_v26 = vld [vmem:[#allocation6 + $0x4b8] sm:$0xff]  ;;  %v6537_v31 = vcombine.high %v160_v24, %v164_v25  ;;  %v6536_v38 = vcombine.low %v160_v24, %v164_v25 }
 0x1e5   :  { %3712 = vmatpush2.bf16.msra.mxu0 %v6838_v51  ;;  %v6665_v63 = vcombine.high %v288_v41, %v292_v26  ;;  %v152_v51 = vld [vmem:[#allocation6 + $0x58] sm:$0xff]  ;;  %v6664_v39 = vcombine.low %v288_v41, %v292_v26 }
 0x1e6   :  { %3763 = vmatprep.subr.bf16.mxu0 %v6577_v36  ;;  %v280_v36 = vld [vmem:[#allocation6 + $0x458] sm:$0xff] }
 0x1e7   :  { %3753 = vmatpush2.bf16.msra.mxu1 %v6966_v34  ;;  %v156_v34 = vld [vmem:[#allocation6 + $0x78] sm:$0xff] }
 0x1e8   :  { %3804 = vmatprep.subr.bf16.mxu1 %v6705_v37  ;;  %v3469_v52 = vpop.f32.mrf.mxu0  ;;  %3714 = vmatmul.mubr.bf16.vlgmr.msra.gmra.mxu0 %v8127_v32  ;;  %v284_v37 = vld [vmem:[#allocation6 + $0x478] sm:$0xff]  ;;  %v6529_v40 = vcombine.high %v152_v51, %v156_v34  ;;  %v6528_v48 = vcombine.low %v152_v51, %v156_v34 }
 0x1e9   :  { %3764 = vmatpush1.bf16.msra.mxu0 %v6576_v43  ;;  %3795 = vmatprep.mubr.bf16.mxu0 %v8114_v9  ;;  %v172_v9 = vld [vmem:[#allocation6 + $0xf8] sm:$0xff]  ;;  %v6657_v42 = vcombine.high %v280_v36, %v284_v37  ;;  %v6656_v49 = vcombine.low %v280_v36, %v284_v37 }
 0x1ea   :  { %v3510_v56 = vpop.f32.mrf.mxu1  ;;  %3755 = vmatmul.mubr.bf16.vlgmr.msra.gmra.mxu1 %v8152_v50  ;;  %v3471_v59 = vpop.f32.mrf.mxu0  ;;  %3765 = vmatprep.subr.bf16.mxu0 %v6569_v46  ;;  %v6545_v21 = vcombine.high %v168_v16, %v172_v9  ;;  %v6544_v27 = vcombine.low %v168_v16, %v172_v9  ;;  %v144_v43 = vld [vmem:[#allocation6 + $0x18] sm:$0xff]  ;;  %v6632_v16 = vcombine.low %v256_v1, %v260_v2 }
 0x1eb   :  { %v8184_v58 = vadd.f32 %v3510_v56, %v3469_v52  ;;  %3805 = vmatpush1.bf16.msra.mxu1 %v6704_v45  ;;  %3836 = vmatprep.mubr.bf16.mxu1 %v8119_v13  ;;  %v6680_v13 = vcombine.low %v304_v5, %v308_v6  ;;  %v148_v45 = vld [vmem:[#allocation6 + $0x38] sm:$0xff] }
 0x1ec   :  { %v3512_v62 = vpop.f32.mrf.mxu1  ;;  %3806 = vmatprep.subr.bf16.mxu1 %v6697_v47  ;;  %v3473_v4 = vpop.f32.mrf.mxu0  ;;  %v272_v46 = vld [vmem:[#allocation6 + $0x418] sm:$0xff]  ;;  %v6521_v52 = vcombine.high %v144_v43, %v148_v45 }
 0x1ed   :  { %v8187_v3 = vadd.f32 %v3512_v62, %v3471_v59  ;;  %3766 = vmatpush1.bf16.msra.mxu0 %v6568_v57  ;;  %v276_v47 = vld [vmem:[#allocation6 + $0x438] sm:$0xff] }
 0x1ee   :  { %v3514_v7 = vpop.f32.mrf.mxu1  ;;  %v3474_v10 = vpop.f32.mrf.mxu0  ;;  %3767 = vmatprep.subr.bf16.mxu0 %v6561_v61  ;;  %v6649_v54 = vcombine.high %v272_v46, %v276_v47  ;;  %v268_v56 = vld [vmem:[#allocation6 + $0x3f8] sm:$0xff]  ;;  %v6648_v61 = vcombine.low %v272_v46, %v276_v47 }
 0x1ef   :  { %3807 = vmatpush1.bf16.msra.mxu1 %v6696_v60  ;;  %v392_v57 = vld [vmem:[#allocation6 + $0x7d8] sm:$0xff]  ;;  %v6520_v60 = vcombine.low %v144_v43, %v148_v45  ;;  %v6641_v62 = vcombine.high %v264_v55, %v268_v56  ;;  %v6640_v6 = vcombine.low %v264_v55, %v268_v56 }
 0x1f0   :  { %v3515_v14 = vpop.f32.mrf.mxu1  ;;  %3808 = vmatprep.subr.bf16.mxu1 %v6689_v0  ;;  %v396_v59 = vld [vmem:[#allocation6 + $0x7f8] sm:$0xff] }
 0x1f1   :  { %3768 = vmatpush1.bf16.msra.mxu0 %v6560_v8  ;;  %v6769_v0 = vcombine.high %v392_v57, %v396_v59  ;;  %v384_v4 = vld [vmem:[#allocation6 + $0x798] sm:$0xff]  ;;  %v6768_v7 = vcombine.low %v392_v57, %v396_v59  ;;  %v6633_v8 = vcombine.high %v256_v1, %v260_v2 }
 0x1f2   :  { %3769 = vmatprep.subr.bf16.mxu0 %v6553_v12  ;;  %v388_v5 = vld [vmem:[#allocation6 + $0x7b8] sm:$0xff] }
 0x1f3   :  { %3809 = vmatpush1.bf16.msra.mxu1 %v6688_v11  ;;  %v6761_v10 = vcombine.high %v384_v4, %v388_v5  ;;  %v248_v11 = vld [vmem:[#allocation6 + $0x358] sm:$0xff]  ;;  %v6760_v9 = vcombine.low %v384_v4, %v388_v5 }
 0x1f4   :  { %3810 = vmatprep.subr.bf16.mxu1 %v6681_v15  ;;  %v252_v12 = vld [vmem:[#allocation6 + $0x378] sm:$0xff] }
 0x1f5   :  { %3770 = vmatpush1.bf16.msra.mxu0 %v6552_v20  ;;  %v376_v14 = vld [vmem:[#allocation6 + $0x758] sm:$0xff]  ;;  %v6625_v17 = vcombine.high %v248_v11, %v252_v12  ;;  %v6624_v24 = vcombine.low %v248_v11, %v252_v12 }
 0x1f6   :  { %3771 = vmatprep.subr.bf16.mxu0 %v6545_v21  ;;  %v380_v15 = vld [vmem:[#allocation6 + $0x778] sm:$0xff] }
 0x1f7   :  { %3811 = vmatpush1.bf16.msra.mxu1 %v6680_v13  ;;  %v6753_v18 = vcombine.high %v376_v14, %v380_v15  ;;  %v240_v20 = vld [vmem:[#allocation6 + $0x318] sm:$0xff]  ;;  %v6752_v25 = vcombine.low %v376_v14, %v380_v15 }
 0x1f8   :  { %3812 = vmatprep.subr.bf16.mxu1 %v6673_v22  ;;  %v244_v13 = vld [vmem:[#allocation6 + $0x338] sm:$0xff] }
 0x1f9   :  { %3772 = vmatpush1.bf16.msra.mxu0 %v6544_v27  ;;  %v368_v21 = vld [vmem:[#allocation6 + $0x718] sm:$0xff]  ;;  %v6617_v41 = vcombine.high %v240_v20, %v244_v13  ;;  %v6616_v51 = vcombine.low %v240_v20, %v244_v13  ;;  %v8028_v20 = vmov 1983009808  }
 0x1fa   :  { %3773 = vmatprep.subr.bf16.mxu0 %v6537_v31  ;;  %v372_v22 = vld [vmem:[#allocation6 + $0x738] sm:$0xff]  ;;  %v3938_v13 = vunpack.c.l.s4 %v8028_v20 }
 0x1fb   :  { %3813 = vmatpush1.bf16.msra.mxu1 %v6672_v30  ;;  %v6745_v26 = vcombine.high %v368_v21, %v372_v22  ;;  %v232_v27 = vld [vmem:[#allocation6 + $0x2d8] sm:$0xff]  ;;  %v6744_v34 = vcombine.low %v368_v21, %v372_v22 }
 0x1fc   :  { %3814 = vmatprep.subr.bf16.mxu1 %v6665_v63  ;;  %v236_v30 = vld [vmem:[#allocation6 + $0x2f8] sm:$0xff] }
 0x1fd   :  { %3774 = vmatpush1.bf16.msra.mxu0 %v6536_v38  ;;  %v360_v31 = vld [vmem:[#allocation6 + $0x6d8] sm:$0xff]  ;;  %v6609_v36 = vcombine.high %v232_v27, %v236_v30  ;;  %v6608_v43 = vcombine.low %v232_v27, %v236_v30 }
 0x1fe   :  { %3775 = vmatprep.subr.bf16.mxu0 %v6529_v40  ;;  %v364_v63 = vld [vmem:[#allocation6 + $0x6f8] sm:$0xff] }
 0x1ff   :  { %3815 = vmatpush1.bf16.msra.mxu1 %v6664_v39  ;;  %v6737_v37 = vcombine.high %v360_v31, %v364_v63  ;;  %v224_v38 = vld [vmem:[#allocation6 + $0x298] sm:$0xff]  ;;  %v6736_v45 = vcombine.low %v360_v31, %v364_v63  ;;  %v3939_v63 = vunpack.c.0.s8 %v3938_v13 }
 0x200   :  { %3816 = vmatprep.subr.bf16.mxu1 %v6657_v42  ;;  %v228_v39 = vld [vmem:[#allocation6 + $0x2b8] sm:$0xff] }
 0x201   :  { %3776 = vmatpush1.bf16.msra.mxu0 %v6528_v48  ;;  %v352_v40 = vld [vmem:[#allocation6 + $0x698] sm:$0xff]  ;;  %v6601_v46 = vcombine.high %v224_v38, %v228_v39  ;;  %v6600_v55 = vcombine.low %v224_v38, %v228_v39 }
 0x202   :  { %3777 = vmatprep.subr.bf16.mxu0 %v6521_v52  ;;  %v356_v42 = vld [vmem:[#allocation6 + $0x6b8] sm:$0xff] }
 0x203   :  { %3817 = vmatpush1.bf16.msra.mxu1 %v6656_v49  ;;  %v6729_v47 = vcombine.high %v352_v40, %v356_v42  ;;  %v216_v48 = vld [vmem:[#allocation6 + $0x258] sm:$0xff]  ;;  %v6728_v56 = vcombine.low %v352_v40, %v356_v42 }
 0x204   :  { %3818 = vmatprep.subr.bf16.mxu1 %v6649_v54  ;;  %v220_v49 = vld [vmem:[#allocation6 + $0x278] sm:$0xff] }
 0x205   :  { %3778 = vmatpush1.bf16.msra.mxu0 %v6520_v60  ;;  %v344_v52 = vld [vmem:[#allocation6 + $0x658] sm:$0xff]  ;;  %v6593_v57 = vcombine.high %v216_v48, %v220_v49  ;;  %v6592_v1 = vcombine.low %v216_v48, %v220_v49 }
 0x206   :  { %3779 = vmatprep.subr.bf16.mxu0 %v6641_v62  ;;  %v348_v54 = vld [vmem:[#allocation6 + $0x678] sm:$0xff] }
 0x207   :  { %3819 = vmatpush1.bf16.msra.mxu1 %v6648_v61  ;;  %v6721_v59 = vcombine.high %v344_v52, %v348_v54  ;;  %v208_v60 = vld [vmem:[#allocation6 + $0x218] sm:$0xff]  ;;  %v6720_v2 = vcombine.low %v344_v52, %v348_v54 }
 0x208   :  { %3820 = vmatprep.subr.bf16.mxu1 %v6769_v0  ;;  %v212_v61 = vld [vmem:[#allocation6 + $0x238] sm:$0xff] }
 0x209   :  { %3780 = vmatpush2.bf16.msra.mxu0 %v6640_v6  ;;  %v336_v62 = vld [vmem:[#allocation6 + $0x618] sm:$0xff]  ;;  %v6585_v4 = vcombine.high %v208_v60, %v212_v61  ;;  %v6584_v11 = vcombine.low %v208_v60, %v212_v61 }
 0x20a   :  { %3781 = vmatprep.subr.bf16.mxu0 %v6633_v8  ;;  %v340_v0 = vld [vmem:[#allocation6 + $0x638] sm:$0xff] }
 0x20b   :  { %3821 = vmatpush2.bf16.msra.mxu1 %v6768_v7  ;;  %v6713_v5 = vcombine.high %v336_v62, %v340_v0  ;;  %v456_v6 = vld [vmem:[#allocation6 + $0x9d8] sm:$0xff]  ;;  %v6712_v12 = vcombine.low %v336_v62, %v340_v0 }
 0x20c   :  { %3822 = vmatprep.subr.bf16.mxu1 %v6761_v10  ;;  %v460_v7 = vld [vmem:[#allocation6 + $0x9f8] sm:$0xff] }
 0x20d   :  { %3782 = vmatpush2.bf16.msra.mxu0 %v6632_v16  ;;  %v584_v8 = vld [vmem:[#allocation6 + $0xdd8] sm:$0xff]  ;;  %v6833_v14 = vcombine.high %v456_v6, %v460_v7  ;;  %v6832_v21 = vcombine.low %v456_v6, %v460_v7 }
 0x20e   :  { %3783 = vmatprep.subr.bf16.mxu0 %v6625_v17  ;;  %v588_v10 = vld [vmem:[#allocation6 + $0xdf8] sm:$0xff] }
 0x20f   :  { %3823 = vmatpush2.bf16.msra.mxu1 %v6760_v9  ;;  %v6961_v15 = vcombine.high %v584_v8, %v588_v10  ;;  %v448_v16 = vld [vmem:[#allocation6 + $0x998] sm:$0xff]  ;;  %v6960_v22 = vcombine.low %v584_v8, %v588_v10 }
 0x210   :  { %3824 = vmatprep.subr.bf16.mxu1 %v6753_v18  ;;  %v452_v9 = vld [vmem:[#allocation6 + $0x9b8] sm:$0xff] }
 0x211   :  { %3784 = vmatpush2.bf16.msra.mxu0 %v6624_v24  ;;  %v576_v17 = vld [vmem:[#allocation6 + $0xd98] sm:$0xff]  ;;  %v6825_v24 = vcombine.high %v448_v16, %v452_v9 }
 0x212   :  { %3785 = vmatprep.subr.bf16.mxu0 %v6617_v41  ;;  %v580_v18 = vld [vmem:[#allocation6 + $0xdb8] sm:$0xff] }
 0x213   :  { %3825 = vmatpush2.bf16.msra.mxu1 %v6752_v25  ;;  %v6953_v25 = vcombine.high %v576_v17, %v580_v18  ;;  %v440_v41 = vld [vmem:[#allocation6 + $0x958] sm:$0xff]  ;;  %v6952_v38 = vcombine.low %v576_v17, %v580_v18 }
 0x214   :  { %3826 = vmatprep.subr.bf16.mxu1 %v6745_v26  ;;  %v444_v26 = vld [vmem:[#allocation6 + $0x978] sm:$0xff] }
 0x215   :  { %3786 = vmatpush2.bf16.msra.mxu0 %v6616_v51  ;;  %v568_v30 = vld [vmem:[#allocation6 + $0xd58] sm:$0xff]  ;;  %v6817_v39 = vcombine.high %v440_v41, %v444_v26 }
 0x216   :  { %3787 = vmatprep.subr.bf16.mxu0 %v6609_v36  ;;  %v572_v31 = vld [vmem:[#allocation6 + $0xd78] sm:$0xff]  ;;  %v6824_v36 = vcombine.low %v448_v16, %v452_v9 }
 0x217   :  { %3827 = vmatpush2.bf16.msra.mxu1 %v6744_v34  ;;  %v424_v60 = vld [vmem:[#allocation6 + $0x8d8] sm:$0xff] }
 0x218   :  { %3828 = vmatprep.subr.bf16.mxu1 %v6737_v37  ;;  %v428_v61 = vld [vmem:[#allocation6 + $0x8f8] sm:$0xff] }
 0x219   :  { %3788 = vmatpush2.bf16.msra.mxu0 %v6608_v43  ;;  %v432_v43 = vld [vmem:[#allocation6 + $0x918] sm:$0xff]  ;;  %v6800_v29 = vcombine.low %v424_v60, %v428_v61 }
 0x21a   :  { %3789 = vmatprep.subr.bf16.mxu0 %v6601_v46  ;;  %v560_v46 = vld [vmem:[#allocation6 + $0xd18] sm:$0xff] }
 0x21b   :  { %3829 = vmatpush2.bf16.msra.mxu1 %v6736_v45  ;;  %v436_v45 = vld [vmem:[#allocation6 + $0x938] sm:$0xff] }
 0x21c   :  { %3830 = vmatprep.subr.bf16.mxu1 %v6729_v47  ;;  %v564_v47 = vld [vmem:[#allocation6 + $0xd38] sm:$0xff] }
 0x21d   :  { %3790 = vmatpush2.bf16.msra.mxu0 %v6600_v55  ;;  %v6944_v55 = vcombine.low %v568_v30, %v572_v31  ;;  %v556_v62 = vld [vmem:[#allocation6 + $0xcf8] sm:$0xff] }
 0x21e   :  { %3791 = vmatprep.subr.bf16.mxu0 %v6593_v57  ;;  %v416_v8 = vld [vmem:[#allocation6 + $0x898] sm:$0xff] }
 0x21f   :  { %3831 = vmatpush2.bf16.msra.mxu1 %v6728_v56  ;;  %v6809_v56 = vcombine.high %v432_v43, %v436_v45  ;;  %v420_v10 = vld [vmem:[#allocation6 + $0x8b8] sm:$0xff] }
 0x220   :  { %3832 = vmatprep.subr.bf16.mxu1 %v6721_v59  ;;  %v6937_v59 = vcombine.high %v560_v46, %v564_v47  ;;  %v412_v16 = vld [vmem:[#allocation6 + $0x878] sm:$0xff]  ;;  %v6792_v18 = vcombine.low %v416_v8, %v420_v10 }
 0x221   :  { %3792 = vmatpush2.bf16.msra.mxu0 %v6592_v1  ;;  %v536_v9 = vld [vmem:[#allocation6 + $0xc58] sm:$0xff] }
 0x222   :  { %3793 = vmatprep.subr.bf16.mxu0 %v6585_v4  ;;  %v6936_v4 = vcombine.low %v560_v46, %v564_v47  ;;  %v540_v17 = vld [vmem:[#allocation6 + $0xc78] sm:$0xff] }
 0x223   :  { %3833 = vmatpush2.bf16.msra.mxu1 %v6720_v2  ;;  %v6808_v2 = vcombine.low %v432_v43, %v436_v45  ;;  %v512_v46 = vld [vmem:[#allocation6 + $0xb98] sm:$0xff] }
 0x224   :  { %3834 = vmatprep.subr.bf16.mxu1 %v6713_v5  ;;  %v6801_v5 = vcombine.high %v424_v60, %v428_v61  ;;  %v516_v47 = vld [vmem:[#allocation6 + $0xbb8] sm:$0xff] }
 0x225   :  { %3794 = vmatpush2.bf16.msra.mxu0 %v6584_v11  ;;  %v544_v11 = vld [vmem:[#allocation6 + $0xc98] sm:$0xff] }
 0x226   :  { %3845 = vmatprep.subr.bf16.mxu0 %v6833_v14  ;;  %v6921_v14 = vcombine.high %v544_v11, %v548_v19  ;;  %v6920_v20 = vcombine.low %v544_v11, %v548_v19  ;;  %v504_v60 = vld [vmem:[#allocation6 + $0xb58] sm:$0xff] }
 0x227   :  { %3835 = vmatpush2.bf16.msra.mxu1 %v6712_v12  ;;  %v6793_v12 = vcombine.high %v416_v8, %v420_v10  ;;  %v508_v61 = vld [vmem:[#allocation6 + $0xb78] sm:$0xff] }
 0x228   :  { %3886 = vmatprep.subr.bf16.mxu1 %v6961_v15  ;;  %v3551_v27 = vpop.f32.mrf.mxu0  ;;  %3796 = vmatmul.mubr.bf16.vlgmr.msra.gmra.mxu0 %v8133_v23  ;;  %v6945_v23 = vcombine.high %v568_v30, %v572_v31  ;;  %v408_v15 = vld [vmem:[#allocation6 + $0x858] sm:$0xff]  ;;  %v6881_v8 = vcombine.high %v504_v60, %v508_v61 }
 0x229   :  { %v3552_v51 = vadd.f32 %v3551_v27, %v8184_v58  ;;  %3846 = vmatpush1.bf16.msra.mxu0 %v6832_v21  ;;  %3877 = vmatprep.mubr.bf16.mxu0 %v8136_v33  ;;  %v6785_v13 = vcombine.high %v408_v15, %v412_v16  ;;  %v6913_v21 = vcombine.high %v536_v9, %v540_v17  ;;  %v496_v11 = vld [vmem:[#allocation6 + $0xb18] sm:$0xff] }
 0x22a   :  { %v3592_v34 = vpop.f32.mrf.mxu1  ;;  %3837 = vmatmul.mubr.bf16.vlgmr.msra.gmra.mxu1 %v8140_v28  ;;  %v3553_v37 = vpop.f32.mrf.mxu0  ;;  %3847 = vmatprep.subr.bf16.mxu0 %v6825_v24  ;;  %v8197_v28 = vsub.s32 %v3939_v63, %v8103_v44  ;;  %v404_v24 = vld [vmem:[#allocation6 + $0x838] sm:$0xff]  ;;  %v6912_v27 = vcombine.low %v536_v9, %v540_v17 }
 0x22b   :  { %3887 = vmatpush1.bf16.msra.mxu1 %v6960_v22  ;;  %v3554_v40 = vadd.f32 %v3553_v37, %v8187_v3  ;;  %3918 = vmatprep.mubr.bf16.mxu1 %v8145_v53  ;;  %v3593_v48 = vadd.f32 %v3592_v34, %v3552_v51  ;;  %v6816_v3 = vcombine.low %v440_v41, %v444_v26  ;;  %v552_v53 = vld [vmem:[#allocation6 + $0xcd8] sm:$0xff]  ;;  %v8211_v34 = vsub.s32 0, %v8103_v44 }
 0x22c   :  { %v3594_v42 = vpop.f32.mrf.mxu1  ;;  %3888 = vmatprep.subr.bf16.mxu1 %v6953_v25  ;;  %v3555_v58 = vpop.f32.mrf.mxu0  ;;  %v8203_v0 = vrot.slane %v3935_v35, %v8197_v28  ;;  %v6929_v7 = vcombine.high %v552_v53, %v556_v62  ;;  %v6928_v35 = vcombine.low %v552_v53, %v556_v62  ;;  %v400_v22 = vld [vmem:[#allocation6 + $0x818] sm:$0xff]  ;;  %v6784_v26 = vcombine.low %v408_v15, %v412_v16 }
 0x22d   :  { %v3595_v49 = vadd.f32 %v3594_v42, %v3554_v40  ;;  %3848 = vmatpush1.bf16.msra.mxu0 %v6824_v36  ;;  %v528_v25 = vld [vmem:[#allocation6 + $0xc18] sm:$0xff]  ;;  %v6777_v30 = vcombine.high %v400_v22, %v404_v24  ;;  %v3992_v40 = vsub.s32 2, %v8103_v44  ;;  %v3996_v42 = vsub.s32 3, %v8103_v44 }
 0x22e   :  { %v3596_v52 = vpop.f32.mrf.mxu1  ;;  %v3556_v54 = vpop.f32.mrf.mxu0  ;;  %3849 = vmatprep.subr.bf16.mxu0 %v6817_v39  ;;  %v532_v41 = vld [vmem:[#allocation6 + $0xc38] sm:$0xff]  ;;  %v8216_v39 = vsub.s32 1, %v8103_v44  ;;  %v6880_v15 = vcombine.low %v504_v60, %v508_v61 }
 0x22f   :  { %3889 = vmatpush1.bf16.msra.mxu1 %v6952_v38  ;;  %v3936_v57 = vcombine.low %v3593_v48, %v3595_v49  ;;  %v6905_v31 = vcombine.high %v528_v25, %v532_v41  ;;  %v520_v63 = vld [vmem:[#allocation6 + $0xbd8] sm:$0xff]  ;;  %v8213_v38 = vld [vmem:[#allocation8] sm:$0xff]  ;;  %v6904_v43 = vcombine.low %v528_v25, %v532_v41 }
 0x230   :  { %v3597_v33 = vpop.f32.mrf.mxu1  ;;  %3890 = vmatprep.subr.bf16.mxu1 %v6945_v23  ;;  %v524_v51 = vld [vmem:[#allocation6 + $0xbf8] sm:$0xff]  ;;  %v6776_v23 = vcombine.low %v400_v22, %v404_v24  ;;  %v3985_v48 = vrot.slane %v8213_v38, %v8211_v34  ;;  %v3993_v54 = vrot.slane %v8213_v38, %v3992_v40 }
 0x231   :  { %v8206_v1 = vrot.slane %v3936_v57, %v8197_v28  ;;  %3850 = vmatpush1.bf16.msra.mxu0 %v6816_v3  ;;  %v648_v36 = vld [vmem:[#allocation6 + $0xfd8] sm:$0xff]  ;;  %v6897_v45 = vcombine.high %v520_v63, %v524_v51  ;;  %v3989_v3 = vrot.slane %v8213_v38, %v8216_v39  ;;  %v6889_v33 = vcombine.high %v512_v46, %v516_v47 }
 0x232   :  { %3851 = vmatprep.subr.bf16.mxu0 %v6809_v56  ;;  %v652_v37 = vld [vmem:[#allocation6 + $0xff8] sm:$0xff]  ;;  %v6896_v56 = vcombine.low %v520_v63, %v524_v51 }
 0x233   :  { %3891 = vmatpush1.bf16.msra.mxu1 %v6944_v55  ;;  %v3951_v6 = vcombine.low %v8203_v0, %v8206_v1  ;;  %v7025_v58 = vcombine.high %v648_v36, %v652_v37  ;;  %v640_v49 = vld [vmem:[#allocation6 + $0xf98] sm:$0xff]  ;;  %v3997_v55 = vrot.slane %v8213_v38, %v3996_v42  ;;  %v7024_v57 = vcombine.low %v648_v36, %v652_v37 }
 0x234   :  { %3892 = vmatprep.subr.bf16.mxu1 %v6937_v59  ;;  %v644_v52 = vld [vmem:[#allocation6 + $0xfb8] sm:$0xff] }
 0x235   :  { %3852 = vmatpush1.bf16.msra.mxu0 %v6808_v2  ;;  %v7017_v59 = vcombine.high %v640_v49, %v644_v52  ;;  %v632_v53 = vld [vmem:[#allocation6 + $0xf58] sm:$0xff]  ;;  %v4014_v2 = vcombine.low %v3985_v48, %v3989_v3 }
 0x236   :  { %3853 = vmatprep.subr.bf16.mxu0 %v6801_v5  ;;  %v636_v62 = vld [vmem:[#allocation6 + $0xf78] sm:$0xff]  ;;  %v6888_v5 = vcombine.low %v512_v46, %v516_v47 }
 0x237   :  { %3893 = vmatpush1.bf16.msra.mxu1 %v6936_v4  ;;  %v4015_v4 = vcombine.low %v3993_v54, %v3997_v55  ;;  %v7009_v10 = vcombine.high %v632_v53, %v636_v62  ;;  %v500_v19 = vld [vmem:[#allocation6 + $0xb38] sm:$0xff]  ;;  %v7008_v16 = vcombine.low %v632_v53, %v636_v62 }
 0x238   :  { %3894 = vmatprep.subr.bf16.mxu1 %v6929_v7  ;;  %v7016_v7 = vcombine.low %v640_v49, %v644_v52  ;;  %v6873_v9 = vcombine.high %v496_v11, %v500_v19  ;;  %v6872_v24 = vcombine.low %v496_v11, %v500_v19  ;;  %v612_v63 = vld [vmem:[#allocation6 + $0xeb8] sm:$0xff] }
 0x239   :  { %3854 = vmatpush1.bf16.msra.mxu0 %v6800_v29  ;;  %v624_v29 = vld [vmem:[#allocation6 + $0xf18] sm:$0xff] }
 0x23a   :  { %3855 = vmatprep.subr.bf16.mxu0 %v6793_v12  ;;  %v4022_v12 = vrot.slane %v4014_v2, %v8197_v28  ;;  %v600_v46 = vld [vmem:[#allocation6 + $0xe58] sm:$0xff] }
 0x23b   :  { %3895 = vmatpush1.bf16.msra.mxu1 %v6928_v35  ;;  %v628_v35 = vld [vmem:[#allocation6 + $0xf38] sm:$0xff] }
 0x23c   :  { %3896 = vmatprep.subr.bf16.mxu1 %v6921_v14  ;;  %v4029_v14 = vrot.slane %v4015_v4, %v8197_v28  ;;  %v7001_v17 = vcombine.high %v624_v29, %v628_v35  ;;  %v7000_v25 = vcombine.low %v624_v29, %v628_v35  ;;  %v604_v47 = vld [vmem:[#allocation6 + $0xe78] sm:$0xff] }
 0x23d   :  { %3856 = vmatpush1.bf16.msra.mxu0 %v6792_v18  ;;  %v488_v18 = vld [vmem:[#allocation6 + $0xad8] sm:$0xff]  ;;  %v6977_v1 = vcombine.high %v600_v46, %v604_v47 }
 0x23e   :  { %3857 = vmatprep.subr.bf16.mxu0 %v6785_v13  ;;  %v616_v13 = vld [vmem:[#allocation6 + $0xed8] sm:$0xff]  ;;  %v4030_v22 = vcombine.low %v4022_v12, %v4029_v14 }
 0x23f   :  { %3897 = vmatpush1.bf16.msra.mxu1 %v6920_v20  ;;  %v492_v20 = vld [vmem:[#allocation6 + $0xaf8] sm:$0xff] }
 0x240   :  { %3898 = vmatprep.subr.bf16.mxu1 %v6913_v21  ;;  %v620_v21 = vld [vmem:[#allocation6 + $0xef8] sm:$0xff]  ;;  %v6865_v41 = vcombine.high %v488_v18, %v492_v20  ;;  %v4050_v51 = vadd.f32 %v4030_v22, %v3951_v6  ;;  %v6864_v36 = vcombine.low %v488_v18, %v492_v20 }
 0x241   :  { %3858 = vmatpush1.bf16.msra.mxu0 %v6784_v26  ;;  %v6993_v26 = vcombine.high %v616_v13, %v620_v21  ;;  %v6992_v37 = vcombine.low %v616_v13, %v620_v21  ;;  %v464_v6 = vld [vmem:[#allocation6 + $0xa18] sm:$0xff] }
 0x242   :  { %3859 = vmatprep.subr.bf16.mxu0 %v6777_v30  ;;  %v484_v30 = vld [vmem:[#allocation6 + $0xab8] sm:$0xff]  ;;  %v4052_v49 = vmax.f32 %v4050_v51, 0.0 }
 0x243   :  { %3899 = vmatpush1.bf16.msra.mxu1 %v6912_v27  ;;  %v480_v27 = vld [vmem:[#allocation6 + $0xa98] sm:$0xff] }
 0x244   :  { %3900 = vmatprep.subr.bf16.mxu1 %v6905_v31  ;;  %v608_v31 = vld [vmem:[#allocation6 + $0xe98] sm:$0xff]  ;;  %v6856_v48 = vcombine.low %v480_v27, %v484_v30  ;;  %v8236_v61 = vrot.slane %v4052_v49, %v8197_v28 }
 0x245   :  { %3860 = vmatpush1.bf16.msra.mxu0 %v6776_v23  ;;  %v6857_v23 = vcombine.high %v480_v27, %v484_v30  ;;  %v6984_v52 = vcombine.low %v608_v31, %v612_v63  ;;  %v468_v3 = vld [vmem:[#allocation6 + $0xa38] sm:$0xff] }
 0x246   :  { %3861 = vmatprep.subr.bf16.mxu0 %v6897_v45  ;;  %v472_v45 = vld [vmem:[#allocation6 + $0xa58] sm:$0xff]  ;;  %v6840_v53 = vcombine.low %v464_v6, %v468_v3 }
 0x247   :  { %3901 = vmatpush1.bf16.msra.mxu1 %v6904_v43  ;;  %v6985_v43 = vcombine.high %v608_v31, %v612_v63  ;;  %v592_v54 = vld [vmem:[#allocation6 + $0xe18] sm:$0xff] }
 0x248   :  { %3902 = vmatprep.subr.bf16.mxu1 %v7025_v58  ;;  %v476_v58 = vld [vmem:[#allocation6 + $0xa78] sm:$0xff] }
 0x249   :  { %3862 = vmatpush2.bf16.msra.mxu0 %v6896_v56  ;;  %v6849_v0 = vcombine.high %v472_v45, %v476_v58  ;;  %v596_v55 = vld [vmem:[#allocation6 + $0xe38] sm:$0xff]  ;;  %v6848_v56 = vcombine.low %v472_v45, %v476_v58 }
 0x24a   :  { %3863 = vmatprep.subr.bf16.mxu0 %v6889_v33  ;;  %v6976_v33 = vcombine.low %v600_v46, %v604_v47  ;;  %v6969_v60 = vcombine.high %v592_v54, %v596_v55  ;;  %v6968_v2 = vcombine.low %v592_v54, %v596_v55  ;;  %v7365_v4 = vld [vmem:[#allocation9 + $0xe4] ss:$16 sps:$4 sm:$0xff]   ;;  %v7366_v11 = vld [vmem:[#allocation9 + $0x2e0] ss:$16 sps:$4 sm:$0xff]  }
 0x24b   :  { %3903 = vmatpush2.bf16.msra.mxu1 %v7024_v57  ;;  %v4056_v57 = vcombine.high %v4052_v49, %v4052_v49  ;;  %v7371_v19 = vld [vmem:[#allocation9 + $0xc4] ss:$16 sps:$4 sm:$0xff]   ;;  %v7372_v18 = vld [vmem:[#allocation9 + $0x2c0] ss:$16 sps:$4 sm:$0xff]  }
 0x24c   :  { %3904 = vmatprep.subr.bf16.mxu1 %v7017_v59  ;;  %v6841_v59 = vcombine.high %v464_v6, %v468_v3  ;;  %v7374_v12 = vld [vmem:[#allocation9 + $0x2c4] ss:$16 sps:$4 sm:$0xff]   ;;  %v7381_v31 = vld [vmem:[#allocation9 + $0x80] ss:$16 sps:$4 sm:$0xff]  }
 0x24d   :  { %3864 = vmatpush2.bf16.msra.mxu0 %v6888_v5  ;;  %v8239_v62 = vrot.slane %v4056_v57, %v8197_v28  ;;  %v7368_v5 = vld [vmem:[#allocation9 + $0x2e4] ss:$16 sps:$4 sm:$0xff]   ;;  %v7384_v63 = vld [vmem:[#allocation9 + $0x280] ss:$16 sps:$4 sm:$0xff]  }
 0x24e   :  { %3865 = vmatprep.subr.bf16.mxu0 %v6881_v8  ;;  %v7363_v8 = vld [vmem:[#allocation9 + $0xe0] ss:$16 sps:$4 sm:$0xff]   ;;  %v7377_v20 = vld [vmem:[#allocation9 + $0xa4] ss:$16 sps:$4 sm:$0xff]  }
 0x24f   :  { %3905 = vmatpush2.bf16.msra.mxu1 %v7016_v7  ;;  %v4071_v7 = vcombine.high %v8236_v61, %v8236_v61  ;;  %v7380_v13 = vld [vmem:[#allocation9 + $0x2a4] ss:$16 sps:$4 sm:$0xff]   ;;  %v7393_v58 = vld [vmem:[#allocation9 + $0x40] ss:$16 sps:$4 sm:$0xff]  }
 0x250   :  { %3906 = vmatprep.subr.bf16.mxu1 %v7009_v10  ;;  %v4072_v10 = vcombine.high %v8239_v62, %v8239_v62  ;;  %v7386_v30 = vld [vmem:[#allocation9 + $0x284] ss:$16 sps:$4 sm:$0xff]   ;;  %v7396_v46 = vld [vmem:[#allocation9 + $0x240] ss:$16 sps:$4 sm:$0xff]  }
 0x251   :  { %3866 = vmatpush2.bf16.msra.mxu0 %v6880_v15  ;;  %v8246_v35 = vpack.c.bf16 %v4071_v7, %v4071_v7  ;;  %v7389_v51 = vld [vmem:[#allocation9 + $0x64] ss:$16 sps:$4 sm:$0xff]   ;;  %v7399_v49 = vld [vmem:[#allocation9 + $0x20] ss:$16 sps:$4 sm:$0xff]  }
 0x252   :  { %3867 = vmatprep.subr.bf16.mxu0 %v6873_v9  ;;  %v8249_v15 = vpack.c.bf16 %v4072_v10, %v4072_v10  ;;  %v7398_v45 = vld [vmem:[#allocation9 + $0x244] ss:$16 sps:$4 sm:$0xff]   ;;  %v7405_v6 = vld [vmem:[#allocation9] ss:$16 sps:$4 sm:$0xff]  }
 0x253   :  { %3907 = vmatpush2.bf16.msra.mxu1 %v7008_v16  ;;  %v7369_v16 = vld [vmem:[#allocation9 + $0xc0] ss:$16 sps:$4 sm:$0xff]   ;;  %v7401_v47 = vld [vmem:[#allocation9 + $0x24] ss:$16 sps:$4 sm:$0xff]  }
 0x254   :  { %3908 = vmatprep.subr.bf16.mxu1 %v7001_v17  ;;  %v7408_v3 = vld [vmem:[#allocation9 + $0x200] ss:$16 sps:$4 sm:$0xff]   ;;  %v7413_v54 = vld [vmem:[#allocation9 + $0x1e4] ss:$16 sps:$4 sm:$0xff]  }
 0x255   :  { %3868 = vmatpush2.bf16.msra.mxu0 %v6872_v24  ;;  %v7375_v24 = vld [vmem:[#allocation9 + $0xa0] ss:$16 sps:$4 sm:$0xff]   ;;  %v7416_v55 = vld [vmem:[#allocation9 + $0x3e4] ss:$16 sps:$4 sm:$0xff]  }
 0x256   :  { %3869 = vmatprep.subr.bf16.mxu0 %v6865_v41  ;;  %v7378_v41 = vld [vmem:[#allocation9 + $0x2a0] ss:$16 sps:$4 sm:$0xff]   ;;  %v7434_v10 = vld [vmem:[#allocation9 + $0x384] ss:$16 sps:$4 sm:$0xff]  }
 0x257   :  { %3909 = vmatpush2.bf16.msra.mxu1 %v7000_v25  ;;  %v7414_v57 = vld [vmem:[#allocation9 + $0x3e0] ss:$16 sps:$4 sm:$0xff]  }
 0x258   :  { %3910 = vmatprep.subr.bf16.mxu1 %v6993_v26  ;;  %v7383_v26 = vld [vmem:[#allocation9 + $0x84] ss:$16 sps:$4 sm:$0xff]   ;;  %v7426_v7 = vld [vmem:[#allocation9 + $0x3a0] ss:$16 sps:$4 sm:$0xff]  }
 0x259   :  { %3870 = vmatpush2.bf16.msra.mxu0 %v6864_v36  ;;  %v7392_v36 = vld [vmem:[#allocation9 + $0x264] ss:$16 sps:$4 sm:$0xff]  }
 0x25a   :  { %3871 = vmatprep.subr.bf16.mxu0 %v6857_v23  ;;  %v7390_v23 = vld [vmem:[#allocation9 + $0x260] ss:$16 sps:$4 sm:$0xff]  }
 0x25b   :  { %3911 = vmatpush2.bf16.msra.mxu1 %v6992_v37  ;;  %v7387_v37 = vld [vmem:[#allocation9 + $0x60] ss:$16 sps:$4 sm:$0xff]  }
 0x25c   :  { %3912 = vmatprep.subr.bf16.mxu1 %v6985_v43  ;;  %v7395_v43 = vld [vmem:[#allocation9 + $0x44] ss:$16 sps:$4 sm:$0xff]  }
 0x25d   :  { %3872 = vmatpush2.bf16.msra.mxu0 %v6856_v48  ;;  %v7404_v48 = vld [vmem:[#allocation9 + $0x224] ss:$16 sps:$4 sm:$0xff]  }
 0x25e   :  { %3873 = vmatprep.subr.bf16.mxu0 %v6849_v0  ;;  %v7407_v0 = vld [vmem:[#allocation9 + $0x4] ss:$16 sps:$4 sm:$0xff]  }
 0x25f   :  { %3913 = vmatpush2.bf16.msra.mxu1 %v6984_v52  ;;  %v7402_v52 = vld [vmem:[#allocation9 + $0x220] ss:$16 sps:$4 sm:$0xff]  }
 0x260   :  { %3914 = vmatprep.subr.bf16.mxu1 %v6977_v1  ;;  %v7410_v1 = vld [vmem:[#allocation9 + $0x204] ss:$16 sps:$4 sm:$0xff]  }
 0x261   :  { %3874 = vmatpush2.bf16.msra.mxu0 %v6848_v56  ;;  %v7411_v56 = vld [vmem:[#allocation9 + $0x1e0] ss:$16 sps:$4 sm:$0xff]  }
 0x262   :  { %3875 = vmatprep.subr.bf16.mxu0 %v6841_v59  ;;  %v7422_v59 = vld [vmem:[#allocation9 + $0x3c4] ss:$16 sps:$4 sm:$0xff]  }
 0x263   :  { %3915 = vmatpush2.bf16.msra.mxu1 %v6976_v33  ;;  %v7419_v33 = vld [vmem:[#allocation9 + $0x1c4] ss:$16 sps:$4 sm:$0xff]  }
 0x264   :  { %3916 = vmatprep.subr.bf16.mxu1 %v6969_v60  ;;  %v7417_v60 = vld [vmem:[#allocation9 + $0x1c0] ss:$16 sps:$4 sm:$0xff]  }
 0x265   :  { %3876 = vmatpush2.bf16.msra.mxu0 %v6840_v53  ;;  %v7420_v53 = vld [vmem:[#allocation9 + $0x3c0] ss:$16 sps:$4 sm:$0xff]  }
 0x266   :  { %5664 = vmatprep.subr.bf16.mxu0 %v7365_v4  ;;  %v7428_v4 = vld [vmem:[#allocation9 + $0x3a4] ss:$16 sps:$4 sm:$0xff]  }
 0x267   :  { %3917 = vmatpush2.bf16.msra.mxu1 %v6968_v2  ;;  %v7425_v2 = vld [vmem:[#allocation9 + $0x1a4] ss:$16 sps:$4 sm:$0xff]  }
 0x268   :  { %5705 = vmatprep.subr.bf16.mxu1 %v7368_v5  ;;  %v3633_v29 = vpop.f32.mrf.mxu0  ;;  %3878 = vmatmul.mubr.bf16.vlgmr.msra.gmra.mxu0 %v8127_v32  ;;  %v7423_v5 = vld [vmem:[#allocation9 + $0x1a0] ss:$16 sps:$4 sm:$0xff]  }
 0x269   :  { %5665 = vmatpush1.bf16.msra.mxu0 %v7363_v8  ;;  %5696 = vmatprep.mubr.bf16.mxu0 %v8246_v35  ;;  %v7431_v8 = vld [vmem:[#allocation9 + $0x184] ss:$16 sps:$4 sm:$0xff]  }
 0x26a   :  { %v3674_v14 = vpop.f32.mrf.mxu1  ;;  %3919 = vmatmul.mubr.bf16.vlgmr.msra.gmra.mxu1 %v8152_v50  ;;  %v3635_v17 = vpop.f32.mrf.mxu0  ;;  %5666 = vmatprep.subr.bf16.mxu0 %v7371_v19  ;;  %v7432_v19 = vld [vmem:[#allocation9 + $0x380] ss:$16 sps:$4 sm:$0xff]  }
 0x26b   :  { %v8251_v9 = vadd.f32 %v3674_v14, %v3633_v29  ;;  %5706 = vmatpush1.bf16.msra.mxu1 %v7366_v11  ;;  %5737 = vmatprep.mubr.bf16.mxu1 %v8249_v15  ;;  %v7429_v11 = vld [vmem:[#allocation9 + $0x180] ss:$16 sps:$4 sm:$0xff]   ;;  %v7437_v29 = vld [vmem:[#allocation9 + $0x164] ss:$16 sps:$4 sm:$0xff]  }
 0x26c   :  { %v3676_v32 = vpop.f32.mrf.mxu1  ;;  %v3637_v50 = vpop.f32.mrf.mxu0  ;;  %5707 = vmatprep.subr.bf16.mxu1 %v7374_v12  ;;  %v7440_v12 = vld [vmem:[#allocation9 + $0x364] ss:$16 sps:$4 sm:$0xff]   ;;  %v7435_v14 = vld [vmem:[#allocation9 + $0x160] ss:$16 sps:$4 sm:$0xff]  }
 0x26d   :  { %v8255_v21 = vadd.f32 %v3676_v32, %v3635_v17  ;;  %5667 = vmatpush1.bf16.msra.mxu0 %v7369_v16  ;;  %v7438_v16 = vld [vmem:[#allocation9 + $0x360] ss:$16 sps:$4 sm:$0xff]   ;;  %v7443_v17 = vld [vmem:[#allocation9 + $0x144] ss:$16 sps:$4 sm:$0xff]  }
 0x26e   :  { %v3678_v22 = vpop.f32.mrf.mxu1  ;;  %v3638_v25 = vpop.f32.mrf.mxu0  ;;  %5668 = vmatprep.subr.bf16.mxu0 %v7377_v20  ;;  %v7441_v20 = vld [vmem:[#allocation9 + $0x140] ss:$16 sps:$4 sm:$0xff]   ;;  %v7452_v50 = vld [vmem:[#allocation9 + $0x324] ss:$16 sps:$4 sm:$0xff]  }
 0x26f   :  { %5708 = vmatpush1.bf16.msra.mxu1 %v7372_v18  ;;  %v7446_v18 = vld [vmem:[#allocation9 + $0x344] ss:$16 sps:$4 sm:$0xff]   ;;  %v7444_v32 = vld [vmem:[#allocation9 + $0x340] ss:$16 sps:$4 sm:$0xff]  }
 0x270   :  { %v3679_v27 = vpop.f32.mrf.mxu1  ;;  %5709 = vmatprep.subr.bf16.mxu1 %v7380_v13  ;;  %v7449_v13 = vld [vmem:[#allocation9 + $0x124] ss:$16 sps:$4 sm:$0xff]   ;;  %v7447_v22 = vld [vmem:[#allocation9 + $0x120] ss:$16 sps:$4 sm:$0xff]  }
 0x271   :  { %5669 = vmatpush1.bf16.msra.mxu0 %v7375_v24  ;;  %v7450_v24 = vld [vmem:[#allocation9 + $0x320] ss:$16 sps:$4 sm:$0xff]   ;;  %v7455_v25 = vld [vmem:[#allocation9 + $0x104] ss:$16 sps:$4 sm:$0xff]  }
 0x272   :  { %5670 = vmatprep.subr.bf16.mxu0 %v7383_v26  ;;  %v7453_v26 = vld [vmem:[#allocation9 + $0x100] ss:$16 sps:$4 sm:$0xff]  }
 0x273   :  { %5710 = vmatpush1.bf16.msra.mxu1 %v7378_v41  ;;  %v7458_v41 = vld [vmem:[#allocation9 + $0x304] ss:$16 sps:$4 sm:$0xff]   ;;  %v7456_v27 = vld [vmem:[#allocation9 + $0x300] ss:$16 sps:$4 sm:$0xff]  }
 0x274   :  { %5711 = vmatprep.subr.bf16.mxu1 %v7386_v30  ;;  %v7461_v30 = vld [vmem:[#allocation9 + $0x4e4] ss:$16 sps:$4 sm:$0xff]  }
 0x275   :  { %5671 = vmatpush1.bf16.msra.mxu0 %v7381_v31  ;;  %v7464_v31 = vld [vmem:[#allocation9 + $0x6e4] ss:$16 sps:$4 sm:$0xff]  }
 0x276   :  { %5672 = vmatprep.subr.bf16.mxu0 %v7389_v51  ;;  %v8259_v51 = vpack.c.bf16 %v8236_v61, %v8236_v61  ;;  %v7465_v61 = vld [vmem:[#allocation9 + $0x4c0] ss:$16 sps:$4 sm:$0xff]  }
 0x277   :  { %5712 = vmatpush1.bf16.msra.mxu1 %v7384_v63  ;;  %v7459_v63 = vld [vmem:[#allocation9 + $0x4e0] ss:$16 sps:$4 sm:$0xff]  }
 0x278   :  { %5713 = vmatprep.subr.bf16.mxu1 %v7392_v36  ;;  %v7462_v36 = vld [vmem:[#allocation9 + $0x6e0] ss:$16 sps:$4 sm:$0xff]  }
 0x279   :  { %5673 = vmatpush1.bf16.msra.mxu0 %v7387_v37  ;;  %v7467_v37 = vld [vmem:[#allocation9 + $0x4c4] ss:$16 sps:$4 sm:$0xff]  }
 0x27a   :  { %5674 = vmatprep.subr.bf16.mxu0 %v7395_v43  ;;  %v7470_v43 = vld [vmem:[#allocation9 + $0x6c4] ss:$16 sps:$4 sm:$0xff]  }
 0x27b   :  { %5714 = vmatpush1.bf16.msra.mxu1 %v7390_v23  ;;  %v8263_v23 = vpack.c.bf16 %v8239_v62, %v8239_v62 }
 0x27c   :  { %5715 = vmatprep.subr.bf16.mxu1 %v7398_v45 }
 0x27d   :  { %5675 = vmatpush1.bf16.msra.mxu0 %v7393_v58 }
 0x27e   :  { %5676 = vmatprep.subr.bf16.mxu0 %v7401_v47 }
 0x27f   :  { %5716 = vmatpush1.bf16.msra.mxu1 %v7396_v46 }
 0x280   :  { %5717 = vmatprep.subr.bf16.mxu1 %v7404_v48  ;;  %v7468_v48 = vld [vmem:[#allocation9 + $0x6c0] ss:$16 sps:$4 sm:$0xff]  }
 0x281   :  { %5677 = vmatpush1.bf16.msra.mxu0 %v7399_v49  ;;  %v7473_v49 = vld [vmem:[#allocation9 + $0x4a4] ss:$16 sps:$4 sm:$0xff]  }
 0x282   :  { %5678 = vmatprep.subr.bf16.mxu0 %v7407_v0 }
 0x283   :  { %5718 = vmatpush1.bf16.msra.mxu1 %v7402_v52 }
 0x284   :  { %5719 = vmatprep.subr.bf16.mxu1 %v7410_v1  ;;  %v7476_v1 = vld [vmem:[#allocation9 + $0x6a4] ss:$16 sps:$4 sm:$0xff]  }
 0x285   :  { %5679 = vmatpush1.bf16.msra.mxu0 %v7405_v6 }
 0x286   :  { %5680 = vmatprep.subr.bf16.mxu0 %v7413_v54  ;;  %v7471_v54 = vld [vmem:[#allocation9 + $0x4a0] ss:$16 sps:$4 sm:$0xff]  }
 0x287   :  { %5720 = vmatpush1.bf16.msra.mxu1 %v7408_v3 }
 0x288   :  { %5721 = vmatprep.subr.bf16.mxu1 %v7416_v55 }
 0x289   :  { %5681 = vmatpush2.bf16.msra.mxu0 %v7411_v56  ;;  %v7474_v56 = vld [vmem:[#allocation9 + $0x6a0] ss:$16 sps:$4 sm:$0xff]  }
 0x28a   :  { %5682 = vmatprep.subr.bf16.mxu0 %v7419_v33 }
 0x28b   :  { %5722 = vmatpush2.bf16.msra.mxu1 %v7414_v57  ;;  %v7479_v57 = vld [vmem:[#allocation9 + $0x484] ss:$16 sps:$4 sm:$0xff]  }
 0x28c   :  { %5723 = vmatprep.subr.bf16.mxu1 %v7422_v59 }
 0x28d   :  { %5683 = vmatpush2.bf16.msra.mxu0 %v7417_v60  ;;  %v7477_v60 = vld [vmem:[#allocation9 + $0x480] ss:$16 sps:$4 sm:$0xff]  }
 0x28e   :  { %5684 = vmatprep.subr.bf16.mxu0 %v7425_v2  ;;  %v7485_v2 = vld [vmem:[#allocation9 + $0x464] ss:$16 sps:$4 sm:$0xff]  }
 0x28f   :  { %5724 = vmatpush2.bf16.msra.mxu1 %v7420_v53  ;;  %v7480_v53 = vld [vmem:[#allocation9 + $0x680] ss:$16 sps:$4 sm:$0xff]  }
 0x290   :  { %5725 = vmatprep.subr.bf16.mxu1 %v7428_v4  ;;  %v7488_v4 = vld [vmem:[#allocation9 + $0x664] ss:$16 sps:$4 sm:$0xff]  }
 0x291   :  { %5685 = vmatpush2.bf16.msra.mxu0 %v7423_v5  ;;  %v7483_v5 = vld [vmem:[#allocation9 + $0x460] ss:$16 sps:$4 sm:$0xff]  }
 0x292   :  { %5686 = vmatprep.subr.bf16.mxu0 %v7431_v8  ;;  %v7491_v8 = vld [vmem:[#allocation9 + $0x444] ss:$16 sps:$4 sm:$0xff]  }
 0x293   :  { %5726 = vmatpush2.bf16.msra.mxu1 %v7426_v7  ;;  %v7486_v7 = vld [vmem:[#allocation9 + $0x660] ss:$16 sps:$4 sm:$0xff]  }
 0x294   :  { %5727 = vmatprep.subr.bf16.mxu1 %v7434_v10  ;;  %v7494_v10 = vld [vmem:[#allocation9 + $0x644] ss:$16 sps:$4 sm:$0xff]  }
 0x295   :  { %5687 = vmatpush2.bf16.msra.mxu0 %v7429_v11  ;;  %v7489_v11 = vld [vmem:[#allocation9 + $0x440] ss:$16 sps:$4 sm:$0xff]  }
 0x296   :  { %5688 = vmatprep.subr.bf16.mxu0 %v7437_v29  ;;  %v7497_v29 = vld [vmem:[#allocation9 + $0x424] ss:$16 sps:$4 sm:$0xff]  }
 0x297   :  { %5728 = vmatpush2.bf16.msra.mxu1 %v7432_v19  ;;  %v7492_v19 = vld [vmem:[#allocation9 + $0x640] ss:$16 sps:$4 sm:$0xff]  }
 0x298   :  { %5729 = vmatprep.subr.bf16.mxu1 %v7440_v12  ;;  %v7500_v12 = vld [vmem:[#allocation9 + $0x624] ss:$16 sps:$4 sm:$0xff]  }
 0x299   :  { %5689 = vmatpush2.bf16.msra.mxu0 %v7435_v14  ;;  %v7495_v14 = vld [vmem:[#allocation9 + $0x420] ss:$16 sps:$4 sm:$0xff]  }
 0x29a   :  { %5690 = vmatprep.subr.bf16.mxu0 %v7443_v17  ;;  %v7503_v17 = vld [vmem:[#allocation9 + $0x404] ss:$16 sps:$4 sm:$0xff]  }
 0x29b   :  { %5730 = vmatpush2.bf16.msra.mxu1 %v7438_v16  ;;  %v7498_v16 = vld [vmem:[#allocation9 + $0x620] ss:$16 sps:$4 sm:$0xff]  }
 0x29c   :  { %5731 = vmatprep.subr.bf16.mxu1 %v7446_v18  ;;  %v7506_v18 = vld [vmem:[#allocation9 + $0x604] ss:$16 sps:$4 sm:$0xff]  }
 0x29d   :  { %5691 = vmatpush2.bf16.msra.mxu0 %v7441_v20  ;;  %v7501_v20 = vld [vmem:[#allocation9 + $0x400] ss:$16 sps:$4 sm:$0xff]  }
 0x29e   :  { %5692 = vmatprep.subr.bf16.mxu0 %v7449_v13  ;;  %v7509_v13 = vld [vmem:[#allocation9 + $0x5e4] ss:$16 sps:$4 sm:$0xff]  }
 0x29f   :  { %5732 = vmatpush2.bf16.msra.mxu1 %v7444_v32  ;;  %v7504_v32 = vld [vmem:[#allocation9 + $0x600] ss:$16 sps:$4 sm:$0xff]  }
 0x2a0   :  { %5733 = vmatprep.subr.bf16.mxu1 %v7452_v50  ;;  %v7512_v50 = vld [vmem:[#allocation9 + $0x7e4] ss:$16 sps:$4 sm:$0xff]  }
 0x2a1   :  { %5693 = vmatpush2.bf16.msra.mxu0 %v7447_v22  ;;  %v7507_v22 = vld [vmem:[#allocation9 + $0x5e0] ss:$16 sps:$4 sm:$0xff]  }
 0x2a2   :  { %5694 = vmatprep.subr.bf16.mxu0 %v7455_v25  ;;  %v7515_v25 = vld [vmem:[#allocation9 + $0x5c4] ss:$16 sps:$4 sm:$0xff]  }
 0x2a3   :  { %5734 = vmatpush2.bf16.msra.mxu1 %v7450_v24  ;;  %v7510_v24 = vld [vmem:[#allocation9 + $0x7e0] ss:$16 sps:$4 sm:$0xff]  }
 0x2a4   :  { %5735 = vmatprep.subr.bf16.mxu1 %v7458_v41  ;;  %v7518_v41 = vld [vmem:[#allocation9 + $0x7c4] ss:$16 sps:$4 sm:$0xff]  }
 0x2a5   :  { %5695 = vmatpush2.bf16.msra.mxu0 %v7453_v26  ;;  %v7513_v26 = vld [vmem:[#allocation9 + $0x5c0] ss:$16 sps:$4 sm:$0xff]  }
 0x2a6   :  { %5746 = vmatprep.subr.bf16.mxu0 %v7461_v30  ;;  %v7521_v30 = vld [vmem:[#allocation9 + $0x5a4] ss:$16 sps:$4 sm:$0xff]  }
 0x2a7   :  { %5736 = vmatpush2.bf16.msra.mxu1 %v7456_v27  ;;  %v7516_v27 = vld [vmem:[#allocation9 + $0x7c0] ss:$16 sps:$4 sm:$0xff]  }
 0x2a8   :  { %5787 = vmatprep.subr.bf16.mxu1 %v7464_v31  ;;  %v3715_v45 = vpop.f32.mrf.mxu0  ;;  %5697 = vmatmul.mubr.bf16.vlgmr.msra.gmra.mxu0 %v8259_v51  ;;  %v7524_v31 = vld [vmem:[#allocation9 + $0x7a4] ss:$16 sps:$4 sm:$0xff]  }
 0x2a9   :  { %v3716_v58 = vadd.f32 %v3715_v45, %v8251_v9  ;;  %5747 = vmatpush1.bf16.msra.mxu0 %v7459_v63  ;;  %v7519_v63 = vld [vmem:[#allocation9 + $0x5a0] ss:$16 sps:$4 sm:$0xff]  }
 0x2aa   :  { %v3756_v46 = vpop.f32.mrf.mxu1  ;;  %5738 = vmatmul.mubr.bf16.vlgmr.msra.gmra.mxu1 %v8263_v23  ;;  %v3717_v47 = vpop.f32.mrf.mxu0  ;;  %5748 = vmatprep.subr.bf16.mxu0 %v7467_v37  ;;  %v7527_v37 = vld [vmem:[#allocation9 + $0x584] ss:$16 sps:$4 sm:$0xff]   ;;  %v7525_v45 = vld [vmem:[#allocation9 + $0x580] ss:$16 sps:$4 sm:$0xff]  }
 0x2ab   :  { %5788 = vmatpush1.bf16.msra.mxu1 %v7462_v36  ;;  %v8268_v52 = vadd.f32 %v3756_v46, %v3716_v58  ;;  %v3718_v62 = vadd.f32 %v3717_v47, %v8255_v21  ;;  %v7482_v21 = vld [vmem:[#allocation9 + $0x684] ss:$16 sps:$4 sm:$0xff]   ;;  %v7522_v36 = vld [vmem:[#allocation9 + $0x7a0] ss:$16 sps:$4 sm:$0xff]  }
 0x2ac   :  { %v3758_v0 = vpop.f32.mrf.mxu1  ;;  %5789 = vmatprep.subr.bf16.mxu1 %v7470_v43  ;;  %v3719_v6 = vpop.f32.mrf.mxu0  ;;  %v7530_v43 = vld [vmem:[#allocation9 + $0x784] ss:$16 sps:$4 sm:$0xff]   ;;  %v7528_v58 = vld [vmem:[#allocation9 + $0x780] ss:$16 sps:$4 sm:$0xff]  }
 0x2ad   :  { %v8271_v3 = vadd.f32 %v3758_v0, %v3718_v62  ;;  %5749 = vmatpush1.bf16.msra.mxu0 %v7465_v61  ;;  %v7533_v46 = vld [vmem:[#allocation9 + $0x564] ss:$16 sps:$4 sm:$0xff]   ;;  %v7531_v47 = vld [vmem:[#allocation9 + $0x560] ss:$16 sps:$4 sm:$0xff]  }
 0x2ae   :  { %v3760_v9 = vpop.f32.mrf.mxu1  ;;  %v3720_v55 = vpop.f32.mrf.mxu0  ;;  %5750 = vmatprep.subr.bf16.mxu0 %v7473_v49  ;;  %v7536_v61 = vld [vmem:[#allocation9 + $0x764] ss:$16 sps:$4 sm:$0xff]   ;;  %v7537_v0 = vld [vmem:[#allocation9 + $0x540] ss:$16 sps:$4 sm:$0xff]  }
 0x2af   :  { %5790 = vmatpush1.bf16.msra.mxu1 %v7468_v48  ;;  %v3952_v33 = vcombine.low %v8268_v52, %v8271_v3  ;;  %v7534_v48 = vld [vmem:[#allocation9 + $0x760] ss:$16 sps:$4 sm:$0xff]   ;;  %v7539_v49 = vld [vmem:[#allocation9 + $0x544] ss:$16 sps:$4 sm:$0xff]   ;;  %v7558_v3 = vld [vmem:[#allocation9 + $0x2e8] ss:$16 sps:$4 sm:$0xff]  }
 0x2b0   :  { %v3761_v59 = vpop.f32.mrf.mxu1  ;;  %5791 = vmatprep.subr.bf16.mxu1 %v7476_v1  ;;  %v7542_v62 = vld [vmem:[#allocation9 + $0x744] ss:$16 sps:$4 sm:$0xff]   ;;  %v7540_v1 = vld [vmem:[#allocation9 + $0x740] ss:$16 sps:$4 sm:$0xff]  }
 0x2b1   :  { %5751 = vmatpush1.bf16.msra.mxu0 %v7471_v54  ;;  %v7545_v6 = vld [vmem:[#allocation9 + $0x524] ss:$16 sps:$4 sm:$0xff]   ;;  %v7543_v54 = vld [vmem:[#allocation9 + $0x520] ss:$16 sps:$4 sm:$0xff]  }
 0x2b2   :  { %5752 = vmatprep.subr.bf16.mxu0 %v7479_v57  ;;  %v7548_v9 = vld [vmem:[#allocation9 + $0x724] ss:$16 sps:$4 sm:$0xff]   ;;  %v7546_v55 = vld [vmem:[#allocation9 + $0x720] ss:$16 sps:$4 sm:$0xff]  }
 0x2b3   :  { %5792 = vmatpush1.bf16.msra.mxu1 %v7474_v56  ;;  %v7551_v56 = vld [vmem:[#allocation9 + $0x504] ss:$16 sps:$4 sm:$0xff]   ;;  %v7549_v59 = vld [vmem:[#allocation9 + $0x500] ss:$16 sps:$4 sm:$0xff]  }
 0x2b4   :  { %5793 = vmatprep.subr.bf16.mxu1 %v7482_v21  ;;  %v7554_v57 = vld [vmem:[#allocation9 + $0x704] ss:$16 sps:$4 sm:$0xff]   ;;  %v7552_v21 = vld [vmem:[#allocation9 + $0x700] ss:$16 sps:$4 sm:$0xff]  }
 0x2b5   :  { %5753 = vmatpush1.bf16.msra.mxu0 %v7477_v60  ;;  %v7557_v60 = vld [vmem:[#allocation9 + $0xec] ss:$16 sps:$4 sm:$0xff]  }
 0x2b6   :  { %5754 = vmatprep.subr.bf16.mxu0 %v7485_v2 }
 0x2b7   :  { %5794 = vmatpush1.bf16.msra.mxu1 %v7480_v53  ;;  %v7560_v53 = vld [vmem:[#allocation9 + $0x2ec] ss:$16 sps:$4 sm:$0xff]  }
 0x2b8   :  { %5795 = vmatprep.subr.bf16.mxu1 %v7488_v4 }
 0x2b9   :  { %5755 = vmatpush1.bf16.msra.mxu0 %v7483_v5 }
 0x2ba   :  { %5756 = vmatprep.subr.bf16.mxu0 %v7491_v8 }
 0x2bb   :  { %5796 = vmatpush1.bf16.msra.mxu1 %v7486_v7 }
 0x2bc   :  { %5797 = vmatprep.subr.bf16.mxu1 %v7494_v10 }
 0x2bd   :  { %5757 = vmatpush1.bf16.msra.mxu0 %v7489_v11 }
 0x2be   :  { %5758 = vmatprep.subr.bf16.mxu0 %v7497_v29  ;;  %v4000_v29 = vsub.s32 4, %v8103_v44 }
 0x2bf   :  { %5798 = vmatpush1.bf16.msra.mxu1 %v7492_v19 }
 0x2c0   :  { %5799 = vmatprep.subr.bf16.mxu1 %v7500_v12  ;;  %v4004_v12 = vsub.s32 5, %v8103_v44 }
 0x2c1   :  { %5759 = vmatpush1.bf16.msra.mxu0 %v7495_v14  ;;  %v4008_v14 = vsub.s32 6, %v8103_v44 }
 0x2c2   :  { %5760 = vmatprep.subr.bf16.mxu0 %v7503_v17  ;;  %v4001_v17 = vrot.slane %v8213_v38, %v4000_v29  ;;  %v7576_v29 = vld [vmem:[#allocation9 + $0x288] ss:$16 sps:$4 sm:$0xff]  }
 0x2c3   :  { %5800 = vmatpush1.bf16.msra.mxu1 %v7498_v16  ;;  %v4012_v16 = vsub.s32 7, %v8103_v44 }
 0x2c4   :  { %5801 = vmatprep.subr.bf16.mxu1 %v7506_v18  ;;  %v4005_v18 = vrot.slane %v8213_v38, %v4004_v12  ;;  %v7584_v12 = vld [vmem:[#allocation9 + $0x26c] ss:$16 sps:$4 sm:$0xff]  }
 0x2c5   :  { %5761 = vmatpush1.bf16.msra.mxu0 %v7501_v20  ;;  %v4009_v20 = vrot.slane %v8213_v38, %v4008_v14  ;;  %v7587_v14 = vld [vmem:[#allocation9 + $0x4c] ss:$16 sps:$4 sm:$0xff]  }
 0x2c6   :  { %5762 = vmatprep.subr.bf16.mxu0 %v7509_v13 }
 0x2c7   :  { %5802 = vmatpush1.bf16.msra.mxu1 %v7504_v32  ;;  %v4013_v32 = vrot.slane %v8213_v38, %v4012_v16  ;;  %v7582_v16 = vld [vmem:[#allocation9 + $0x268] ss:$16 sps:$4 sm:$0xff]  }
 0x2c8   :  { %5803 = vmatprep.subr.bf16.mxu1 %v7512_v50 }
 0x2c9   :  { %5763 = vmatpush2.bf16.msra.mxu0 %v7507_v22 }
 0x2ca   :  { %5764 = vmatprep.subr.bf16.mxu0 %v7515_v25 }
 0x2cb   :  { %5804 = vmatpush2.bf16.msra.mxu1 %v7510_v24 }
 0x2cc   :  { %5805 = vmatprep.subr.bf16.mxu1 %v7518_v41  ;;  %v4031_v41 = vcombine.low %v4001_v17, %v4005_v18  ;;  %v7590_v17 = vld [vmem:[#allocation9 + $0x24c] ss:$16 sps:$4 sm:$0xff]   ;;  %v7585_v18 = vld [vmem:[#allocation9 + $0x48] ss:$16 sps:$4 sm:$0xff]  }
 0x2cd   :  { %5765 = vmatpush2.bf16.msra.mxu0 %v7513_v26  ;;  %v4032_v26 = vcombine.low %v4009_v20, %v4013_v32  ;;  %v7593_v20 = vld [vmem:[#allocation9 + $0x2c] ss:$16 sps:$4 sm:$0xff]   ;;  %v7588_v32 = vld [vmem:[#allocation9 + $0x248] ss:$16 sps:$4 sm:$0xff]  }
 0x2ce   :  { %5766 = vmatprep.subr.bf16.mxu0 %v7521_v30 }
 0x2cf   :  { %5806 = vmatpush2.bf16.msra.mxu1 %v7516_v27 }
 0x2d0   :  { %5807 = vmatprep.subr.bf16.mxu1 %v7524_v31 }
 0x2d1   :  { %5767 = vmatpush2.bf16.msra.mxu0 %v7519_v63 }
 0x2d2   :  { %5768 = vmatprep.subr.bf16.mxu0 %v7527_v37 }
 0x2d3   :  { %5808 = vmatpush2.bf16.msra.mxu1 %v7522_v36 }
 0x2d4   :  { %5809 = vmatprep.subr.bf16.mxu1 %v7530_v43  ;;  %v4039_v43 = vrot.slane %v4031_v41, %v8197_v28  ;;  %v7597_v41 = vld [vmem:[#allocation9 + $0x8] ss:$16 sps:$4 sm:$0xff]  }
 0x2d5   :  { %5769 = vmatpush2.bf16.msra.mxu0 %v7525_v45  ;;  %v4046_v45 = vrot.slane %v4032_v26, %v8197_v28  ;;  %v7605_v26 = vld [vmem:[#allocation9 + $0x1ec] ss:$16 sps:$4 sm:$0xff]  }
 0x2d6   :  { %5770 = vmatprep.subr.bf16.mxu0 %v7533_v46 }
 0x2d7   :  { %5810 = vmatpush2.bf16.msra.mxu1 %v7528_v58 }
 0x2d8   :  { %5811 = vmatprep.subr.bf16.mxu1 %v7536_v61 }
 0x2d9   :  { %5771 = vmatpush2.bf16.msra.mxu0 %v7531_v47  ;;  %v3960_v47 = vrot.slane %v3952_v33, %v8197_v28  ;;  %v7563_v33 = vld [vmem:[#allocation9 + $0xcc] ss:$16 sps:$4 sm:$0xff]  }
 0x2da   :  { %5772 = vmatprep.subr.bf16.mxu0 %v7539_v49  ;;  %v4047_v49 = vcombine.low %v4039_v43, %v4046_v45  ;;  %v7609_v43 = vld [vmem:[#allocation9 + $0x1c8] ss:$16 sps:$4 sm:$0xff]   ;;  %v7617_v45 = vld [vmem:[#allocation9 + $0x1ac] ss:$16 sps:$4 sm:$0xff]  }
 0x2db   :  { %5812 = vmatpush2.bf16.msra.mxu1 %v7534_v48 }
 0x2dc   :  { %5813 = vmatprep.subr.bf16.mxu1 %v7542_v62 }
 0x2dd   :  { %5773 = vmatpush2.bf16.msra.mxu0 %v7537_v0 }
 0x2de   :  { %5774 = vmatprep.subr.bf16.mxu0 %v7545_v6 }
 0x2df   :  { %5814 = vmatpush2.bf16.msra.mxu1 %v7540_v1 }
 0x2e0   :  { %5815 = vmatprep.subr.bf16.mxu1 %v7548_v9 }
 0x2e1   :  { %5775 = vmatpush2.bf16.msra.mxu0 %v7543_v54 }
 0x2e2   :  { %5776 = vmatprep.subr.bf16.mxu0 %v7551_v56 }
 0x2e3   :  { %5816 = vmatpush2.bf16.msra.mxu1 %v7546_v55 }
 0x2e4   :  { %5817 = vmatprep.subr.bf16.mxu1 %v7554_v57  ;;  %v7555_v57 = vld [vmem:[#allocation9 + $0xe8] ss:$16 sps:$4 sm:$0xff]  }
 0x2e5   :  { %5777 = vmatpush2.bf16.msra.mxu0 %v7549_v59 }
 0x2e6   :  { %5828 = vmatprep.subr.bf16.mxu0 %v7557_v60 }
 0x2e7   :  { %5818 = vmatpush2.bf16.msra.mxu1 %v7552_v21 }
 0x2e8   :  { %5869 = vmatprep.subr.bf16.mxu1 %v7560_v53  ;;  %v3797_v2 = vpop.f32.mrf.mxu0  ;;  %v7566_v53 = vld [vmem:[#allocation9 + $0x2cc] ss:$16 sps:$4 sm:$0xff]  }
 0x2ea   :  { %v3838_v4 = vpop.f32.mrf.mxu1  ;;  %v3799_v5 = vpop.f32.mrf.mxu0 }
 0x2eb   :  { %v3839_v13 = vadd.f32 %v3838_v4, %v3797_v2  ;;  %v7569_v2 = vld [vmem:[#allocation9 + $0xac] ss:$16 sps:$4 sm:$0xff]   ;;  %v7564_v4 = vld [vmem:[#allocation9 + $0x2c8] ss:$16 sps:$4 sm:$0xff]  }
 0x2ec   :  { %v3840_v7 = vpop.f32.mrf.mxu1  ;;  %v3801_v8 = vpop.f32.mrf.mxu0 }
 0x2ed   :  { %v3841_v22 = vadd.f32 %v3840_v7, %v3799_v5  ;;  %v7572_v5 = vld [vmem:[#allocation9 + $0x2ac] ss:$16 sps:$4 sm:$0xff]   ;;  %v7567_v7 = vld [vmem:[#allocation9 + $0xa8] ss:$16 sps:$4 sm:$0xff]  }
 0x2ee   :  { %v3842_v10 = vpop.f32.mrf.mxu1  ;;  %v3802_v11 = vpop.f32.mrf.mxu0  ;;  %v7575_v8 = vld [vmem:[#allocation9 + $0x8c] ss:$16 sps:$4 sm:$0xff]  }
 0x2ef   :  { %v7570_v10 = vld [vmem:[#allocation9 + $0x2a8] ss:$16 sps:$4 sm:$0xff]   ;;  %v7578_v11 = vld [vmem:[#allocation9 + $0x28c] ss:$16 sps:$4 sm:$0xff]  }
 0x2f0   :  { %v3843_v19 = vpop.f32.mrf.mxu1 }
 0x2f1   :  { %v7581_v19 = vld [vmem:[#allocation9 + $0x6c] ss:$16 sps:$4 sm:$0xff]  }
 0x328   :  { %v3879_v50 = vpop.f32.mrf.mxu0 }
 0x329   :  { %v3880_v24 = vadd.f32 %v3879_v50, %v3839_v13  ;;  %v7596_v13 = vld [vmem:[#allocation9 + $0x22c] ss:$16 sps:$4 sm:$0xff]   ;;  %v7591_v50 = vld [vmem:[#allocation9 + $0x28] ss:$16 sps:$4 sm:$0xff]  }
 0x32a   :  { %v3920_v25 = vpop.f32.mrf.mxu1  ;;  %v3881_v27 = vpop.f32.mrf.mxu0 }
 0x32b   :  { %v3882_v30 = vadd.f32 %v3881_v27, %v3841_v22  ;;  %v3921_v36 = vadd.f32 %v3920_v25, %v3880_v24  ;;  %v7599_v22 = vld [vmem:[#allocation9 + $0xc] ss:$16 sps:$4 sm:$0xff]   ;;  %v7594_v24 = vld [vmem:[#allocation9 + $0x228] ss:$16 sps:$4 sm:$0xff]  }
 0x32c   :  { %v3922_v31 = vpop.f32.mrf.mxu1  ;;  %v3883_v63 = vpop.f32.mrf.mxu0  ;;  %v7602_v25 = vld [vmem:[#allocation9 + $0x20c] ss:$16 sps:$4 sm:$0xff]   ;;  %v7600_v27 = vld [vmem:[#allocation9 + $0x208] ss:$16 sps:$4 sm:$0xff]  }
 0x32d   :  { %v3923_v37 = vadd.f32 %v3922_v31, %v3882_v30  ;;  %v7608_v30 = vld [vmem:[#allocation9 + $0x3ec] ss:$16 sps:$4 sm:$0xff]   ;;  %v7603_v31 = vld [vmem:[#allocation9 + $0x1e8] ss:$16 sps:$4 sm:$0xff]  }
 0x32e   :  { %v3924_v58 = vpop.f32.mrf.mxu1  ;;  %v3884_v46 = vpop.f32.mrf.mxu0  ;;  %v7611_v63 = vld [vmem:[#allocation9 + $0x1cc] ss:$16 sps:$4 sm:$0xff]  }
 0x32f   :  { %v3953_v38 = vcombine.low %v3921_v36, %v3923_v37  ;;  %v7606_v36 = vld [vmem:[#allocation9 + $0x3e8] ss:$16 sps:$4 sm:$0xff]   ;;  %v7614_v37 = vld [vmem:[#allocation9 + $0x3cc] ss:$16 sps:$4 sm:$0xff]   ;;  %v8306_v58 = vld [vmem:[#allocation11] sm:$0xf] }
 0x330   :  { %v3925_v61 = vpop.f32.mrf.mxu1  ;;  %v7612_v46 = vld [vmem:[#allocation9 + $0x3c8] ss:$16 sps:$4 sm:$0xff]  }
 0x331   :  { %v3967_v48 = vrot.slane %v3953_v38, %v8197_v28  ;;  %v7620_v38 = vld [vmem:[#allocation9 + $0x3ac] ss:$16 sps:$4 sm:$0xff]   ;;  %v7615_v61 = vld [vmem:[#allocation9 + $0x1a8] ss:$16 sps:$4 sm:$0xff]  }
 0x333   :  { %v3968_v62 = vcombine.low %v3960_v47, %v3967_v48  ;;  %v4367_v47 = vrot.slane %v8306_v58, %v8211_v34  ;;  %v7623_v48 = vld [vmem:[#allocation9 + $0x18c] ss:$16 sps:$4 sm:$0xff]  }
 0x335   :  { %v4051_v0 = vadd.f32 %v4047_v49, %v3968_v62  ;;  %v7618_v49 = vld [vmem:[#allocation9 + $0x3a8] ss:$16 sps:$4 sm:$0xff]   ;;  %v4371_v62 = vrot.slane %v8306_v58, %v8216_v39 }
 0x337   :  { %v4053_v1 = vmax.f32 %v4051_v0, 0.0 }
 0x339   :  { %v4080_v6 = vrot.slane %v4053_v1, %v8197_v28  ;;  %v4073_v9 = vcombine.high %v4053_v1, %v4053_v1  ;;  %v7626_v1 = vld [vmem:[#allocation9 + $0x38c] ss:$16 sps:$4 sm:$0xff]  }
 0x33b   :  { %v4088_v54 = vcombine.high %v4080_v6, %v4080_v6  ;;  %v4087_v55 = vrot.slane %v4073_v9, %v8197_v28  ;;  %v8294_v21 = vpack.c.bf16 %v4080_v6, %v4080_v6  ;;  %v7561_v28 = vld [vmem:[#allocation9 + $0xc8] ss:$16 sps:$4 sm:$0xff]  }
 0x33d   :  { %v8292_v56 = vpack.c.bf16 %v4088_v54, %v4088_v54  ;;  %v4089_v59 = vcombine.high %v4087_v55, %v4087_v55  ;;  %v8300_v60 = vpack.c.bf16 %v4087_v55, %v4087_v55  ;;  %v7621_v54 = vld [vmem:[#allocation9 + $0x188] ss:$16 sps:$4 sm:$0xff]  }
 0x33f   :  { %5778 = vmatprep.mubr.bf16.mxu0 %v8292_v56  ;;  %v8297_v52 = vpack.c.bf16 %v4089_v59, %v4089_v59 }
 0x340   :  { %5779 = vmatmul.mubr.bf16.vlgmr.msra.gmra.mxu0 %v8294_v21 }
 0x341   :  { %5829 = vmatpush1.bf16.msra.mxu0 %v7555_v57  ;;  %5819 = vmatprep.mubr.bf16.mxu1 %v8297_v52  ;;  %v7629_v57 = vld [vmem:[#allocation9 + $0x16c] ss:$16 sps:$4 sm:$0xff]  }
 0x342   :  { %5860 = vmatprep.mubr.bf16.mxu0 %v8246_v35  ;;  %5820 = vmatmul.mubr.bf16.vlgmr.msra.gmra.mxu1 %v8300_v60  ;;  %v7573_v35 = vld [vmem:[#allocation9 + $0x88] ss:$16 sps:$4 sm:$0xff]  }
 0x343   :  { %5870 = vmatpush1.bf16.msra.mxu1 %v7558_v3  ;;  %5830 = vmatprep.subr.bf16.mxu0 %v7563_v33 }
 0x344   :  { %5901 = vmatprep.mubr.bf16.mxu1 %v8249_v15  ;;  %5871 = vmatprep.subr.bf16.mxu1 %v7566_v53  ;;  %v7579_v15 = vld [vmem:[#allocation9 + $0x68] ss:$16 sps:$4 sm:$0xff]  }
 0x345   :  { %5831 = vmatpush1.bf16.msra.mxu0 %v7561_v28  ;;  %v7624_v53 = vld [vmem:[#allocation9 + $0x388] ss:$16 sps:$4 sm:$0xff]  }
 0x346   :  { %5832 = vmatprep.subr.bf16.mxu0 %v7569_v2  ;;  %v7632_v2 = vld [vmem:[#allocation9 + $0x36c] ss:$16 sps:$4 sm:$0xff]  }
 0x347   :  { %5872 = vmatpush1.bf16.msra.mxu1 %v7564_v4 }
 0x348   :  { %5873 = vmatprep.subr.bf16.mxu1 %v7572_v5 }
 0x349   :  { %5833 = vmatpush1.bf16.msra.mxu0 %v7567_v7  ;;  %v7627_v7 = vld [vmem:[#allocation9 + $0x168] ss:$16 sps:$4 sm:$0xff]  }
 0x34a   :  { %5834 = vmatprep.subr.bf16.mxu0 %v7575_v8 }
 0x34b   :  { %5874 = vmatpush1.bf16.msra.mxu1 %v7570_v10  ;;  %v7635_v10 = vld [vmem:[#allocation9 + $0x14c] ss:$16 sps:$4 sm:$0xff]  }
 0x34c   :  { %5875 = vmatprep.subr.bf16.mxu1 %v7578_v11 }
 0x34d   :  { %5835 = vmatpush1.bf16.msra.mxu0 %v7573_v35  ;;  %v7630_v35 = vld [vmem:[#allocation9 + $0x368] ss:$16 sps:$4 sm:$0xff]  }
 0x34e   :  { %5836 = vmatprep.subr.bf16.mxu0 %v7581_v19  ;;  %v7638_v19 = vld [vmem:[#allocation9 + $0x34c] ss:$16 sps:$4 sm:$0xff]  }
 0x34f   :  { %5876 = vmatpush1.bf16.msra.mxu1 %v7576_v29  ;;  %v7633_v29 = vld [vmem:[#allocation9 + $0x148] ss:$16 sps:$4 sm:$0xff]  }
 0x350   :  { %5877 = vmatprep.subr.bf16.mxu1 %v7584_v12  ;;  %v7641_v12 = vld [vmem:[#allocation9 + $0x12c] ss:$16 sps:$4 sm:$0xff]  }
 0x351   :  { %5837 = vmatpush1.bf16.msra.mxu0 %v7579_v15  ;;  %v7636_v15 = vld [vmem:[#allocation9 + $0x348] ss:$16 sps:$4 sm:$0xff]  }
 0x352   :  { %5838 = vmatprep.subr.bf16.mxu0 %v7587_v14  ;;  %v7644_v14 = vld [vmem:[#allocation9 + $0x32c] ss:$16 sps:$4 sm:$0xff]  }
 0x353   :  { %5878 = vmatpush1.bf16.msra.mxu1 %v7582_v16  ;;  %v7639_v16 = vld [vmem:[#allocation9 + $0x128] ss:$16 sps:$4 sm:$0xff]  }
 0x354   :  { %5879 = vmatprep.subr.bf16.mxu1 %v7590_v17  ;;  %v7647_v17 = vld [vmem:[#allocation9 + $0x10c] ss:$16 sps:$4 sm:$0xff]  }
 0x355   :  { %5839 = vmatpush1.bf16.msra.mxu0 %v7585_v18  ;;  %v7642_v18 = vld [vmem:[#allocation9 + $0x328] ss:$16 sps:$4 sm:$0xff]  }
 0x356   :  { %5840 = vmatprep.subr.bf16.mxu0 %v7593_v20  ;;  %v7650_v20 = vld [vmem:[#allocation9 + $0x30c] ss:$16 sps:$4 sm:$0xff]  }
 0x357   :  { %5880 = vmatpush1.bf16.msra.mxu1 %v7588_v32  ;;  %v7645_v32 = vld [vmem:[#allocation9 + $0x108] ss:$16 sps:$4 sm:$0xff]  }
 0x358   :  { %5881 = vmatprep.subr.bf16.mxu1 %v7596_v13  ;;  %v7653_v13 = vld [vmem:[#allocation9 + $0x4ec] ss:$16 sps:$4 sm:$0xff]  }
 0x359   :  { %5841 = vmatpush1.bf16.msra.mxu0 %v7591_v50  ;;  %v7648_v50 = vld [vmem:[#allocation9 + $0x308] ss:$16 sps:$4 sm:$0xff]  }
 0x35a   :  { %5842 = vmatprep.subr.bf16.mxu0 %v7599_v22  ;;  %v7656_v22 = vld [vmem:[#allocation9 + $0x6ec] ss:$16 sps:$4 sm:$0xff]  }
 0x35b   :  { %5882 = vmatpush1.bf16.msra.mxu1 %v7594_v24  ;;  %v7651_v24 = vld [vmem:[#allocation9 + $0x4e8] ss:$16 sps:$4 sm:$0xff]  }
 0x35c   :  { %5883 = vmatprep.subr.bf16.mxu1 %v7602_v25  ;;  %v7659_v25 = vld [vmem:[#allocation9 + $0x4cc] ss:$16 sps:$4 sm:$0xff]  }
 0x35d   :  { %5843 = vmatpush1.bf16.msra.mxu0 %v7597_v41  ;;  %v7654_v41 = vld [vmem:[#allocation9 + $0x6e8] ss:$16 sps:$4 sm:$0xff]  }
 0x35e   :  { %5844 = vmatprep.subr.bf16.mxu0 %v7605_v26  ;;  %v7662_v26 = vld [vmem:[#allocation9 + $0x6cc] ss:$16 sps:$4 sm:$0xff]  }
 0x35f   :  { %5884 = vmatpush1.bf16.msra.mxu1 %v7600_v27  ;;  %v7657_v27 = vld [vmem:[#allocation9 + $0x4c8] ss:$16 sps:$4 sm:$0xff]  }
 0x360   :  { %5885 = vmatprep.subr.bf16.mxu1 %v7608_v30  ;;  %v7665_v30 = vld [vmem:[#allocation9 + $0x4ac] ss:$16 sps:$4 sm:$0xff]  }
 0x361   :  { %5845 = vmatpush2.bf16.msra.mxu0 %v7603_v31  ;;  %v7660_v31 = vld [vmem:[#allocation9 + $0x6c8] ss:$16 sps:$4 sm:$0xff]  }
 0x362   :  { %5846 = vmatprep.subr.bf16.mxu0 %v7611_v63  ;;  %v7668_v63 = vld [vmem:[#allocation9 + $0x6ac] ss:$16 sps:$4 sm:$0xff]  }
 0x363   :  { %5886 = vmatpush2.bf16.msra.mxu1 %v7606_v36  ;;  %v7663_v36 = vld [vmem:[#allocation9 + $0x4a8] ss:$16 sps:$4 sm:$0xff]  }
 0x364   :  { %5887 = vmatprep.subr.bf16.mxu1 %v7614_v37  ;;  %v7666_v37 = vld [vmem:[#allocation9 + $0x6a8] ss:$16 sps:$4 sm:$0xff]  }
 0x365   :  { %5847 = vmatpush2.bf16.msra.mxu0 %v7609_v43  ;;  %v7674_v43 = vld [vmem:[#allocation9 + $0x68c] ss:$16 sps:$4 sm:$0xff]  }
 0x366   :  { %5848 = vmatprep.subr.bf16.mxu0 %v7617_v45  ;;  %v7672_v45 = vld [vmem:[#allocation9 + $0x688] ss:$16 sps:$4 sm:$0xff]  }
 0x367   :  { %5888 = vmatpush2.bf16.msra.mxu1 %v7612_v46  ;;  %v7680_v46 = vld [vmem:[#allocation9 + $0x66c] ss:$16 sps:$4 sm:$0xff]  }
 0x368   :  { %v5698_v0 = vpop.f32.mrf.mxu0  ;;  %5889 = vmatprep.subr.bf16.mxu1 %v7620_v38  ;;  %v7683_v38 = vld [vmem:[#allocation9 + $0x44c] ss:$16 sps:$4 sm:$0xff]  }
 0x369   :  { %v5699_v6 = vadd.f32 %v5698_v0, %v4367_v47  ;;  %5849 = vmatpush2.bf16.msra.mxu0 %v7615_v61  ;;  %v7678_v61 = vld [vmem:[#allocation9 + $0x668] ss:$16 sps:$4 sm:$0xff]   ;;  %v7686_v47 = vld [vmem:[#allocation9 + $0x64c] ss:$16 sps:$4 sm:$0xff]  }
 0x36a   :  { %v5739_v9 = vpop.f32.mrf.mxu1  ;;  %v5700_v55 = vpop.f32.mrf.mxu0  ;;  %5850 = vmatprep.subr.bf16.mxu0 %v7623_v48  ;;  %v7681_v48 = vld [vmem:[#allocation9 + $0x448] ss:$16 sps:$4 sm:$0xff]   ;;  %v7692_v0 = vld [vmem:[#allocation9 + $0x62c] ss:$16 sps:$4 sm:$0xff]  }
 0x36b   :  { %v8312_v59 = vadd.f32 %v5739_v9, %v5699_v6  ;;  %v5701_v3 = vadd.f32 %v5700_v55, %v4371_v62  ;;  %5890 = vmatpush2.bf16.msra.mxu1 %v7618_v49  ;;  %v7689_v49 = vld [vmem:[#allocation9 + $0x42c] ss:$16 sps:$4 sm:$0xff]   ;;  %v7684_v62 = vld [vmem:[#allocation9 + $0x648] ss:$16 sps:$4 sm:$0xff]  }
 0x36c   :  { %v5741_v33 = vpop.f32.mrf.mxu1  ;;  %v5702_v28 = vpop.f32.mrf.mxu0  ;;  %5891 = vmatprep.subr.bf16.mxu1 %v7626_v1  ;;  %v7687_v1 = vld [vmem:[#allocation9 + $0x428] ss:$16 sps:$4 sm:$0xff]   ;;  %v7695_v6 = vld [vmem:[#allocation9 + $0x40c] ss:$16 sps:$4 sm:$0xff]  }
 0x36d   :  { %v8314_v4 = vadd.f32 %v5741_v33, %v5701_v3  ;;  %5851 = vmatpush2.bf16.msra.mxu0 %v7621_v54  ;;  %v7690_v9 = vld [vmem:[#allocation9 + $0x628] ss:$16 sps:$4 sm:$0xff]   ;;  %v7698_v54 = vld [vmem:[#allocation9 + $0x60c] ss:$16 sps:$4 sm:$0xff]  }
 0x36e   :  { %v5743_v5 = vpop.f32.mrf.mxu1  ;;  %v5703_v8 = vpop.f32.mrf.mxu0  ;;  %5852 = vmatprep.subr.bf16.mxu0 %v7629_v57  ;;  %v7693_v55 = vld [vmem:[#allocation9 + $0x408] ss:$16 sps:$4 sm:$0xff]   ;;  %v7701_v57 = vld [vmem:[#allocation9 + $0x5ec] ss:$16 sps:$4 sm:$0xff]  }
 0x36f   :  { %5892 = vmatpush2.bf16.msra.mxu1 %v7624_v53  ;;  %v7696_v3 = vld [vmem:[#allocation9 + $0x608] ss:$16 sps:$4 sm:$0xff]   ;;  %v7704_v33 = vld [vmem:[#allocation9 + $0x7ec] ss:$16 sps:$4 sm:$0xff]  }
 0x370   :  { %v5744_v11 = vpop.f32.mrf.mxu1  ;;  %5893 = vmatprep.subr.bf16.mxu1 %v7632_v2  ;;  %v7699_v53 = vld [vmem:[#allocation9 + $0x5e8] ss:$16 sps:$4 sm:$0xff]   ;;  %v7707_v28 = vld [vmem:[#allocation9 + $0x5cc] ss:$16 sps:$4 sm:$0xff]  }
 0x371   :  { %5853 = vmatpush2.bf16.msra.mxu0 %v7627_v7  ;;  %v7702_v2 = vld [vmem:[#allocation9 + $0x7e8] ss:$16 sps:$4 sm:$0xff]   ;;  %v7710_v5 = vld [vmem:[#allocation9 + $0x7cc] ss:$16 sps:$4 sm:$0xff]  }
 0x372   :  { %5854 = vmatprep.subr.bf16.mxu0 %v7635_v10  ;;  %v7705_v7 = vld [vmem:[#allocation9 + $0x5c8] ss:$16 sps:$4 sm:$0xff]   ;;  %v7713_v8 = vld [vmem:[#allocation9 + $0x5ac] ss:$16 sps:$4 sm:$0xff]  }
 0x373   :  { %5894 = vmatpush2.bf16.msra.mxu1 %v7630_v35  ;;  %v7708_v10 = vld [vmem:[#allocation9 + $0x7c8] ss:$16 sps:$4 sm:$0xff]   ;;  %v7716_v11 = vld [vmem:[#allocation9 + $0x7ac] ss:$16 sps:$4 sm:$0xff]  }
 0x374   :  { %5895 = vmatprep.subr.bf16.mxu1 %v7638_v19  ;;  %v7711_v35 = vld [vmem:[#allocation9 + $0x5a8] ss:$16 sps:$4 sm:$0xff]   ;;  %v7719_v19 = vld [vmem:[#allocation9 + $0x58c] ss:$16 sps:$4 sm:$0xff]  }
 0x375   :  { %5855 = vmatpush2.bf16.msra.mxu0 %v7633_v29  ;;  %v7714_v29 = vld [vmem:[#allocation9 + $0x7a8] ss:$16 sps:$4 sm:$0xff]  }
 0x376   :  { %5856 = vmatprep.subr.bf16.mxu0 %v7641_v12  ;;  %v7722_v12 = vld [vmem:[#allocation9 + $0x78c] ss:$16 sps:$4 sm:$0xff]  }
 0x377   :  { %5896 = vmatpush2.bf16.msra.mxu1 %v7636_v15  ;;  %v7717_v15 = vld [vmem:[#allocation9 + $0x588] ss:$16 sps:$4 sm:$0xff]  }
 0x378   :  { %5897 = vmatprep.subr.bf16.mxu1 %v7644_v14  ;;  %v7725_v14 = vld [vmem:[#allocation9 + $0x56c] ss:$16 sps:$4 sm:$0xff]  }
 0x379   :  { %5857 = vmatpush2.bf16.msra.mxu0 %v7639_v16  ;;  %v7720_v16 = vld [vmem:[#allocation9 + $0x788] ss:$16 sps:$4 sm:$0xff]  }
 0x37a   :  { %5858 = vmatprep.subr.bf16.mxu0 %v7647_v17  ;;  %v7728_v17 = vld [vmem:[#allocation9 + $0x76c] ss:$16 sps:$4 sm:$0xff]  }
 0x37b   :  { %5898 = vmatpush2.bf16.msra.mxu1 %v7642_v18  ;;  %v7723_v18 = vld [vmem:[#allocation9 + $0x568] ss:$16 sps:$4 sm:$0xff]  }
 0x37c   :  { %5899 = vmatprep.subr.bf16.mxu1 %v7650_v20  ;;  %v7731_v20 = vld [vmem:[#allocation9 + $0x54c] ss:$16 sps:$4 sm:$0xff]  }
 0x37d   :  { %5859 = vmatpush2.bf16.msra.mxu0 %v7645_v32  ;;  %v7726_v32 = vld [vmem:[#allocation9 + $0x768] ss:$16 sps:$4 sm:$0xff]  }
 0x37e   :  { %5910 = vmatprep.subr.bf16.mxu0 %v7653_v13  ;;  %v7734_v13 = vld [vmem:[#allocation9 + $0x74c] ss:$16 sps:$4 sm:$0xff]  }
 0x37f   :  { %5900 = vmatpush2.bf16.msra.mxu1 %v7648_v50  ;;  %v7729_v50 = vld [vmem:[#allocation9 + $0x548] ss:$16 sps:$4 sm:$0xff]  }
 0x380   :  { %5861 = vmatmul.mubr.bf16.vlgmr.msra.gmra.mxu0 %v8259_v51  ;;  %5951 = vmatprep.subr.bf16.mxu1 %v7656_v22  ;;  %v7671_v51 = vld [vmem:[#allocation9 + $0x48c] ss:$16 sps:$4 sm:$0xff]  }
 0x381   :  { %5911 = vmatpush1.bf16.msra.mxu0 %v7651_v24  ;;  %5942 = vmatprep.mubr.bf16.mxu0 %v8292_v56  ;;  %v7669_v56 = vld [vmem:[#allocation9 + $0x488] ss:$16 sps:$4 sm:$0xff]   ;;  %v7737_v22 = vld [vmem:[#allocation9 + $0x52c] ss:$16 sps:$4 sm:$0xff]  }
 0x382   :  { %5902 = vmatmul.mubr.bf16.vlgmr.msra.gmra.mxu1 %v8263_v23  ;;  %5912 = vmatprep.subr.bf16.mxu0 %v7659_v25  ;;  %v7677_v23 = vld [vmem:[#allocation9 + $0x46c] ss:$16 sps:$4 sm:$0xff]   ;;  %v7732_v24 = vld [vmem:[#allocation9 + $0x748] ss:$16 sps:$4 sm:$0xff]  }
 0x383   :  { %5952 = vmatpush1.bf16.msra.mxu1 %v7654_v41  ;;  %5983 = vmatprep.mubr.bf16.mxu1 %v8297_v52  ;;  %v7675_v52 = vld [vmem:[#allocation9 + $0x468] ss:$16 sps:$4 sm:$0xff]   ;;  %v7740_v25 = vld [vmem:[#allocation9 + $0x72c] ss:$16 sps:$4 sm:$0xff]  }
 0x384   :  { %5953 = vmatprep.subr.bf16.mxu1 %v7662_v26  ;;  %v7735_v41 = vld [vmem:[#allocation9 + $0x528] ss:$16 sps:$4 sm:$0xff]   ;;  %v7743_v26 = vld [vmem:[#allocation9 + $0x50c] ss:$16 sps:$4 sm:$0xff]  }
 0x385   :  { %5913 = vmatpush1.bf16.msra.mxu0 %v7657_v27  ;;  %v7738_v27 = vld [vmem:[#allocation9 + $0x728] ss:$16 sps:$4 sm:$0xff]  }
 0x386   :  { %5914 = vmatprep.subr.bf16.mxu0 %v7665_v30  ;;  %v7746_v30 = vld [vmem:[#allocation9 + $0x70c] ss:$16 sps:$4 sm:$0xff]  }
 0x387   :  { %5954 = vmatpush1.bf16.msra.mxu1 %v7660_v31  ;;  %v7741_v31 = vld [vmem:[#allocation9 + $0x508] ss:$16 sps:$4 sm:$0xff]  }
 0x388   :  { %5955 = vmatprep.subr.bf16.mxu1 %v7668_v63  ;;  %v7749_v63 = vld [vmem:[#allocation12 + $0x74] ss:$8 sps:$4 sm:$0xff]  }
 0x389   :  { %5915 = vmatpush1.bf16.msra.mxu0 %v7663_v36  ;;  %v7744_v36 = vld [vmem:[#allocation9 + $0x708] ss:$16 sps:$4 sm:$0xff]  }
 0x38a   :  { %5916 = vmatprep.subr.bf16.mxu0 %v7671_v51  ;;  %v7747_v51 = vld [vmem:[#allocation12 + $0x70] ss:$8 sps:$4 sm:$0xff]  }
 0x38b   :  { %5956 = vmatpush1.bf16.msra.mxu1 %v7666_v37  ;;  %v7752_v37 = vld [vmem:[#allocation12 + $0x64] ss:$8 sps:$4 sm:$0xff]  }
 0x38c   :  { %5957 = vmatprep.subr.bf16.mxu1 %v7674_v43  ;;  %v7750_v43 = vld [vmem:[#allocation12 + $0x60] ss:$8 sps:$4 sm:$0xff]  }
 0x38d   :  { %5917 = vmatpush1.bf16.msra.mxu0 %v7669_v56  ;;  %v7755_v56 = vld [vmem:[#allocation12 + $0x54] ss:$8 sps:$4 sm:$0xff]  }
 0x38e   :  { %5918 = vmatprep.subr.bf16.mxu0 %v7677_v23  ;;  %v7753_v23 = vld [vmem:[#allocation12 + $0x50] ss:$8 sps:$4 sm:$0xff]  }
 0x38f   :  { %5958 = vmatpush1.bf16.msra.mxu1 %v7672_v45  ;;  %v7758_v45 = vld [vmem:[#allocation12 + $0x44] ss:$8 sps:$4 sm:$0xff]  }
 0x390   :  { %5959 = vmatprep.subr.bf16.mxu1 %v7680_v46  ;;  %v7795_v46 = vld [vmem:[#allocation12 + $0x170] ss:$8 sps:$4 sm:$0xff]  }
 0x391   :  { %5919 = vmatpush1.bf16.msra.mxu0 %v7675_v52  ;;  %v7797_v52 = vld [vmem:[#allocation12 + $0x174] ss:$8 sps:$4 sm:$0xff]  }
 0x392   :  { %5920 = vmatprep.subr.bf16.mxu0 %v7683_v38  ;;  %v7756_v38 = vld [vmem:[#allocation12 + $0x40] ss:$8 sps:$4 sm:$0xff]  }
 0x393   :  { %5960 = vmatpush1.bf16.msra.mxu1 %v7678_v61  ;;  %v7800_v61 = vld [vmem:[#allocation12 + $0x164] ss:$8 sps:$4 sm:$0xff]  }
 0x394   :  { %5961 = vmatprep.subr.bf16.mxu1 %v7686_v47  ;;  %v7761_v47 = vld [vmem:[#allocation12 + $0x34] ss:$8 sps:$4 sm:$0xff]  }
 0x395   :  { %5921 = vmatpush1.bf16.msra.mxu0 %v7681_v48  ;;  %v7803_v48 = vld [vmem:[#allocation12 + $0x154] ss:$8 sps:$4 sm:$0xff]  }
 0x396   :  { %5922 = vmatprep.subr.bf16.mxu0 %v7689_v49  ;;  %v7764_v49 = vld [vmem:[#allocation12 + $0x24] ss:$8 sps:$4 sm:$0xff]  }
 0x397   :  { %5962 = vmatpush1.bf16.msra.mxu1 %v7684_v62  ;;  %v7801_v62 = vld [vmem:[#allocation12 + $0x150] ss:$8 sps:$4 sm:$0xff]  }
 0x398   :  { %5963 = vmatprep.subr.bf16.mxu1 %v7692_v0  ;;  %v7806_v0 = vld [vmem:[#allocation12 + $0x144] ss:$8 sps:$4 sm:$0xff]  }
 0x399   :  { %5923 = vmatpush1.bf16.msra.mxu0 %v7687_v1  ;;  %v7762_v1 = vld [vmem:[#allocation12 + $0x20] ss:$8 sps:$4 sm:$0xff]  }
 0x39a   :  { %5924 = vmatprep.subr.bf16.mxu0 %v7695_v6  ;;  %v7767_v6 = vld [vmem:[#allocation12 + $0x14] ss:$8 sps:$4 sm:$0xff]  }
 0x39b   :  { %5964 = vmatpush1.bf16.msra.mxu1 %v7690_v9  ;;  %v7804_v9 = vld [vmem:[#allocation12 + $0x140] ss:$8 sps:$4 sm:$0xff]  }
 0x39c   :  { %5965 = vmatprep.subr.bf16.mxu1 %v7698_v54  ;;  %v7809_v54 = vld [vmem:[#allocation12 + $0x134] ss:$8 sps:$4 sm:$0xff]  }
 0x39d   :  { %5925 = vmatpush1.bf16.msra.mxu0 %v7693_v55  ;;  %v7765_v55 = vld [vmem:[#allocation12 + $0x10] ss:$8 sps:$4 sm:$0xff]  }
 0x39e   :  { %5926 = vmatprep.subr.bf16.mxu0 %v7701_v57  ;;  %v7770_v57 = vld [vmem:[#allocation12 + $0x4] ss:$8 sps:$4 sm:$0xff]  }
 0x39f   :  { %5966 = vmatpush1.bf16.msra.mxu1 %v7696_v3  ;;  %v7807_v3 = vld [vmem:[#allocation12 + $0x130] ss:$8 sps:$4 sm:$0xff]  }
 0x3a0   :  { %5967 = vmatprep.subr.bf16.mxu1 %v7704_v33  ;;  %v7812_v33 = vld [vmem:[#allocation12 + $0x124] ss:$8 sps:$4 sm:$0xff]  }
 0x3a1   :  { %5927 = vmatpush2.bf16.msra.mxu0 %v7699_v53  ;;  %v7768_v53 = vld [vmem:[#allocation12] ss:$8 sps:$4 sm:$0xff]  }
 0x3a2   :  { %5928 = vmatprep.subr.bf16.mxu0 %v7707_v28  ;;  %v7773_v28 = vld [vmem:[#allocation12 + $0xf4] ss:$8 sps:$4 sm:$0xff]  }
 0x3a3   :  { %5968 = vmatpush2.bf16.msra.mxu1 %v7702_v2  ;;  %v7810_v2 = vld [vmem:[#allocation12 + $0x120] ss:$8 sps:$4 sm:$0xff]  }
 0x3a4   :  { %5969 = vmatprep.subr.bf16.mxu1 %v7710_v5  ;;  %v7815_v5 = vld [vmem:[#allocation12 + $0x114] ss:$8 sps:$4 sm:$0xff]  }
 0x3a5   :  { %5929 = vmatpush2.bf16.msra.mxu0 %v7705_v7  ;;  %v7771_v7 = vld [vmem:[#allocation12 + $0xf0] ss:$8 sps:$4 sm:$0xff]  }
 0x3a6   :  { %5930 = vmatprep.subr.bf16.mxu0 %v7713_v8  ;;  %v7776_v8 = vld [vmem:[#allocation12 + $0xe4] ss:$8 sps:$4 sm:$0xff]  }
 0x3a7   :  { %5970 = vmatpush2.bf16.msra.mxu1 %v7708_v10  ;;  %v7813_v10 = vld [vmem:[#allocation12 + $0x110] ss:$8 sps:$4 sm:$0xff]  }
 0x3a8   :  { %5971 = vmatprep.subr.bf16.mxu1 %v7716_v11  ;;  %v7818_v11 = vld [vmem:[#allocation12 + $0x104] ss:$8 sps:$4 sm:$0xff]  }
 0x3a9   :  { %5931 = vmatpush2.bf16.msra.mxu0 %v7711_v35  ;;  %v7774_v35 = vld [vmem:[#allocation12 + $0xe0] ss:$8 sps:$4 sm:$0xff]  }
 0x3aa   :  { %5932 = vmatprep.subr.bf16.mxu0 %v7719_v19  ;;  %v7779_v19 = vld [vmem:[#allocation12 + $0xd4] ss:$8 sps:$4 sm:$0xff]  }
 0x3ab   :  { %5972 = vmatpush2.bf16.msra.mxu1 %v7714_v29  ;;  %v7816_v29 = vld [vmem:[#allocation12 + $0x100] ss:$8 sps:$4 sm:$0xff]  }
 0x3ac   :  { %5973 = vmatprep.subr.bf16.mxu1 %v7722_v12  ;;  %v7821_v12 = vld [vmem:[#allocation12 + $0x1f4] ss:$8 sps:$4 sm:$0xff]  }
 0x3ad   :  { %5933 = vmatpush2.bf16.msra.mxu0 %v7717_v15  ;;  %v7777_v15 = vld [vmem:[#allocation12 + $0xd0] ss:$8 sps:$4 sm:$0xff]  }
 0x3ae   :  { %5934 = vmatprep.subr.bf16.mxu0 %v7725_v14  ;;  %v7782_v14 = vld [vmem:[#allocation12 + $0xc4] ss:$8 sps:$4 sm:$0xff]  }
 0x3af   :  { %5974 = vmatpush2.bf16.msra.mxu1 %v7720_v16  ;;  %v7819_v16 = vld [vmem:[#allocation12 + $0x1f0] ss:$8 sps:$4 sm:$0xff]  }
 0x3b0   :  { %5975 = vmatprep.subr.bf16.mxu1 %v7728_v17  ;;  %v7824_v17 = vld [vmem:[#allocation12 + $0x1e4] ss:$8 sps:$4 sm:$0xff]  }
 0x3b1   :  { %5935 = vmatpush2.bf16.msra.mxu0 %v7723_v18  ;;  %v7780_v18 = vld [vmem:[#allocation12 + $0xc0] ss:$8 sps:$4 sm:$0xff]  }
 0x3b2   :  { %5936 = vmatprep.subr.bf16.mxu0 %v7731_v20  ;;  %v7785_v20 = vld [vmem:[#allocation12 + $0xb4] ss:$8 sps:$4 sm:$0xff]  }
 0x3b3   :  { %5976 = vmatpush2.bf16.msra.mxu1 %v7726_v32  ;;  %v7822_v32 = vld [vmem:[#allocation12 + $0x1e0] ss:$8 sps:$4 sm:$0xff]  }
 0x3b4   :  { %5977 = vmatprep.subr.bf16.mxu1 %v7734_v13  ;;  %v7827_v13 = vld [vmem:[#allocation12 + $0x1d4] ss:$8 sps:$4 sm:$0xff]  }
 0x3b5   :  { %5937 = vmatpush2.bf16.msra.mxu0 %v7729_v50  ;;  %v7783_v50 = vld [vmem:[#allocation12 + $0xb0] ss:$8 sps:$4 sm:$0xff]  }
 0x3b6   :  { %5938 = vmatprep.subr.bf16.mxu0 %v7737_v22  ;;  %v7788_v22 = vld [vmem:[#allocation12 + $0xa4] ss:$8 sps:$4 sm:$0xff]  }
 0x3b7   :  { %5978 = vmatpush2.bf16.msra.mxu1 %v7732_v24  ;;  %v7825_v24 = vld [vmem:[#allocation12 + $0x1d0] ss:$8 sps:$4 sm:$0xff]  }
 0x3b8   :  { %5979 = vmatprep.subr.bf16.mxu1 %v7740_v25  ;;  %v7830_v25 = vld [vmem:[#allocation12 + $0x1c4] ss:$8 sps:$4 sm:$0xff]  }
 0x3b9   :  { %5939 = vmatpush2.bf16.msra.mxu0 %v7735_v41  ;;  %v7786_v41 = vld [vmem:[#allocation12 + $0xa0] ss:$8 sps:$4 sm:$0xff]  }
 0x3ba   :  { %5940 = vmatprep.subr.bf16.mxu0 %v7743_v26  ;;  %v7791_v26 = vld [vmem:[#allocation12 + $0x94] ss:$8 sps:$4 sm:$0xff]  }
 0x3bb   :  { %5980 = vmatpush2.bf16.msra.mxu1 %v7738_v27  ;;  %v7828_v27 = vld [vmem:[#allocation12 + $0x1c0] ss:$8 sps:$4 sm:$0xff]  }
 0x3bc   :  { %5981 = vmatprep.subr.bf16.mxu1 %v7746_v30  ;;  %v7833_v30 = vld [vmem:[#allocation12 + $0x1b4] ss:$8 sps:$4 sm:$0xff]  }
 0x3bd   :  { %5941 = vmatpush2.bf16.msra.mxu0 %v7741_v31  ;;  %v7789_v31 = vld [vmem:[#allocation12 + $0x90] ss:$8 sps:$4 sm:$0xff]  }
 0x3be   :  { %6396 = vmatprep.subr.bf16.mxu0 %v7749_v63  ;;  %v7794_v63 = vld [vmem:[#allocation12 + $0x84] ss:$8 sps:$4 sm:$0xff]  }
 0x3bf   :  { %5982 = vmatpush2.bf16.msra.mxu1 %v7744_v36  ;;  %v7831_v36 = vld [vmem:[#allocation12 + $0x1b0] ss:$8 sps:$4 sm:$0xff]  }
 0x3c0   :  { %5943 = vmatmul.mubr.bf16.vlgmr.msra.gmra.mxu0 %v8294_v21  ;;  %6437 = vmatprep.subr.bf16.mxu1 %v7797_v52  ;;  %v7798_v21 = vld [vmem:[#allocation12 + $0x160] ss:$8 sps:$4 sm:$0xff]  }
 0x3c1   :  { %6397 = vmatpush1.bf16.msra.mxu0 %v7747_v51  ;;  %v7792_v51 = vld [vmem:[#allocation12 + $0x80] ss:$8 sps:$4 sm:$0xff]  }
 0x3c2   :  { %5984 = vmatmul.mubr.bf16.vlgmr.msra.gmra.mxu1 %v8300_v60  ;;  %6398 = vmatprep.subr.bf16.mxu0 %v7752_v37  ;;  %v7759_v60 = vld [vmem:[#allocation12 + $0x30] ss:$8 sps:$4 sm:$0xff]   ;;  %v7836_v37 = vld [vmem:[#allocation12 + $0x1a4] ss:$8 sps:$4 sm:$0xff]  }
 0x3c3   :  { %6438 = vmatpush1.bf16.msra.mxu1 %v7795_v46 }
 0x3c4   :  { %6439 = vmatprep.subr.bf16.mxu1 %v7800_v61  ;;  %v7839_v61 = vld [vmem:[#allocation12 + $0x194] ss:$8 sps:$4 sm:$0xff]  }
 0x3c5   :  { %6399 = vmatpush1.bf16.msra.mxu0 %v7750_v43 }
 0x3c6   :  { %6400 = vmatprep.subr.bf16.mxu0 %v7755_v56  ;;  %v7834_v56 = vld [vmem:[#allocation12 + $0x1a0] ss:$8 sps:$4 sm:$0xff]  }
 0x3c7   :  { %6440 = vmatpush1.bf16.msra.mxu1 %v7798_v21 }
 0x3c8   :  { %6441 = vmatprep.subr.bf16.mxu1 %v7803_v48  ;;  %v7837_v48 = vld [vmem:[#allocation12 + $0x190] ss:$8 sps:$4 sm:$0xff]  }
 0x3c9   :  { %6401 = vmatpush1.bf16.msra.mxu0 %v7753_v23 }
 0x3ca   :  { %6402 = vmatprep.subr.bf16.mxu0 %v7758_v45 }
 0x3cb   :  { %6442 = vmatpush1.bf16.msra.mxu1 %v7801_v62 }
 0x3cc   :  { %6443 = vmatprep.subr.bf16.mxu1 %v7806_v0 }
 0x3cd   :  { %6403 = vmatpush1.bf16.msra.mxu0 %v7756_v38 }
 0x3ce   :  { %6404 = vmatprep.subr.bf16.mxu0 %v7761_v47 }
 0x3cf   :  { %6444 = vmatpush1.bf16.msra.mxu1 %v7804_v9  ;;  %v7840_v9 = vld [vmem:[#allocation12 + $0x180] ss:$8 sps:$4 sm:$0xff]  }
 0x3d0   :  { %6445 = vmatprep.subr.bf16.mxu1 %v7809_v54 }
 0x3d1   :  { %6405 = vmatpush1.bf16.msra.mxu0 %v7759_v60 }
 0x3d2   :  { %6406 = vmatprep.subr.bf16.mxu0 %v7764_v49 }
 0x3d3   :  { %6446 = vmatpush1.bf16.msra.mxu1 %v7807_v3 }
 0x3d4   :  { %6447 = vmatprep.subr.bf16.mxu1 %v7812_v33 }
 0x3d5   :  { %6407 = vmatpush1.bf16.msra.mxu0 %v7762_v1 }
 0x3d6   :  { %6408 = vmatprep.subr.bf16.mxu0 %v7767_v6  ;;  %v7842_v6 = vld [vmem:[#allocation12 + $0x184] ss:$8 sps:$4 sm:$0xff]  }
 0x3d7   :  { %6448 = vmatpush1.bf16.msra.mxu1 %v7810_v2 }
 0x3d8   :  { %6449 = vmatprep.subr.bf16.mxu1 %v7815_v5 }
 0x3d9   :  { %6409 = vmatpush1.bf16.msra.mxu0 %v7765_v55 }
 0x3da   :  { %6410 = vmatprep.subr.bf16.mxu0 %v7770_v57 }
 0x3db   :  { %6450 = vmatpush1.bf16.msra.mxu1 %v7813_v10 }
 0x3dc   :  { %6451 = vmatprep.subr.bf16.mxu1 %v7818_v11 }
 0x3dd   :  { %6411 = vmatpush1.bf16.msra.mxu0 %v7768_v53 }
 0x3de   :  { %6412 = vmatprep.subr.bf16.mxu0 %v7773_v28 }
 0x3df   :  { %6452 = vmatpush1.bf16.msra.mxu1 %v7816_v29 }
 0x3e0   :  { %6453 = vmatprep.subr.bf16.mxu1 %v7821_v12 }
 0x3e1   :  { %6413 = vmatpush2.bf16.msra.mxu0 %v7771_v7  ;;  %v4375_v7 = vrot.slane %v8306_v58, %v3992_v40 }
 0x3e2   :  { %6414 = vmatprep.subr.bf16.mxu0 %v7776_v8  ;;  %v4379_v8 = vrot.slane %v8306_v58, %v3996_v42 }
 0x3e3   :  { %6454 = vmatpush2.bf16.msra.mxu1 %v7819_v16 }
 0x3e4   :  { %6455 = vmatprep.subr.bf16.mxu1 %v7824_v17 }
 0x3e5   :  { %6415 = vmatpush2.bf16.msra.mxu0 %v7774_v35 }
 0x3e6   :  { %6416 = vmatprep.subr.bf16.mxu0 %v7779_v19 }
 0x3e7   :  { %6456 = vmatpush2.bf16.msra.mxu1 %v7822_v32 }
 0x3e8   :  { %6457 = vmatprep.subr.bf16.mxu1 %v7827_v13 }
 0x3e9   :  { %6417 = vmatpush2.bf16.msra.mxu0 %v7777_v15 }
 0x3ea   :  { %6418 = vmatprep.subr.bf16.mxu0 %v7782_v14 }
 0x3eb   :  { %6458 = vmatpush2.bf16.msra.mxu1 %v7825_v24 }
 0x3ec   :  { %6459 = vmatprep.subr.bf16.mxu1 %v7830_v25 }
 0x3ed   :  { %6419 = vmatpush2.bf16.msra.mxu0 %v7780_v18 }
 0x3ee   :  { %6420 = vmatprep.subr.bf16.mxu0 %v7785_v20 }
 0x3ef   :  { %6460 = vmatpush2.bf16.msra.mxu1 %v7828_v27  ;;  %v6064_v27 = vld [vmem:[#allocation14] sm:$0x3] }
 0x3f0   :  { %6461 = vmatprep.subr.bf16.mxu1 %v7833_v30  ;;  %v6069_v30 = vrot.slane %v6064_v27, %v8211_v34 }
 0x3f1   :  { %6421 = vmatpush2.bf16.msra.mxu0 %v7783_v50 }
 0x3f2   :  { %6422 = vmatprep.subr.bf16.mxu0 %v7788_v22 }
 0x3f3   :  { %6462 = vmatpush2.bf16.msra.mxu1 %v7831_v36 }
 0x3f4   :  { %6463 = vmatprep.subr.bf16.mxu1 %v7836_v37 }
 0x3f5   :  { %6423 = vmatpush2.bf16.msra.mxu0 %v7786_v41 }
 0x3f6   :  { %6424 = vmatprep.subr.bf16.mxu0 %v7791_v26 }
 0x3f7   :  { %6464 = vmatpush2.bf16.msra.mxu1 %v7834_v56 }
 0x3f8   :  { %6465 = vmatprep.subr.bf16.mxu1 %v7839_v61 }
 0x3f9   :  { %6425 = vmatpush2.bf16.msra.mxu0 %v7789_v31  ;;  %v6073_v31 = vrot.slane %v6064_v27, %v8216_v39 }
 0x3fa   :  { %6426 = vmatprep.subr.bf16.mxu0 %v7794_v63  ;;  %v6480_v63 = vld [vmem:[#allocation15] sm:$0x3] }
 0x3fb   :  { %6466 = vmatpush2.bf16.msra.mxu1 %v7837_v48  ;;  %v6485_v56 = vrot.slane %v6480_v63, %v8211_v34 }
 0x3fc   :  { %6467 = vmatprep.subr.bf16.mxu1 %v7842_v6 }
 0x3fd   :  { %6427 = vmatpush2.bf16.msra.mxu0 %v7792_v51 }
 0x3ff   :  { %6468 = vmatpush2.bf16.msra.mxu1 %v7840_v9 }
 0x400   :  { %v5780_v43 = vpop.f32.mrf.mxu0 }
 0x401   :  { %v5781_v23 = vadd.f32 %v5780_v43, %v8312_v59 }
 0x402   :  { %v5782_v45 = vpop.f32.mrf.mxu0  ;;  %v5821_v46 = vpop.f32.mrf.mxu1 }
 0x403   :  { %v5783_v52 = vadd.f32 %v5782_v45, %v8314_v4  ;;  %v5822_v38 = vadd.f32 %v5821_v46, %v5781_v23 }
 0x404   :  { %v5784_v47 = vpop.f32.mrf.mxu0  ;;  %v5823_v21 = vpop.f32.mrf.mxu1 }
 0x405   :  { %v5824_v60 = vadd.f32 %v5823_v21, %v5783_v52  ;;  %v5992_v49 = vmax.f32 %v5822_v38, 0.0  ;;  %v6489_v52 = vrot.slane %v6480_v63, %v8216_v39 }
 0x406   :  { %v5785_v62 = vpop.f32.mrf.mxu0  ;;  %v5825_v0 = vpop.f32.mrf.mxu1 }
 0x407   :  { %v5993_v1 = vmax.f32 %v5824_v60, 0.0  ;;  %v5996_v55 = vpack.c.bf16 %v5992_v49, %v5992_v49  ;;  %v6501_v0 = vstv %s8348_s8 }
 0x408   :  { %v5826_v59 = vpop.f32.mrf.mxu1 }
 0x409   :  { %v5997_v54 = vpack.c.bf16 %v5993_v1, %v5993_v1 }
 0x40b   :  { %6428 = vmatprep.mubr.bf16.mxu0 %v5997_v54 }
 0x40c   :  { %6429 = vmatmul.mubr.bf16.vlgmr.msra.gmra.mxu0 %v5996_v55 }
 0x440   :  { %v5862_v4 = vpop.f32.mrf.mxu0 }
 0x441   :  { %v5863_v10 = vadd.f32 %v5862_v4, %v4375_v7 }
 0x442   :  { %v5864_v57 = vpop.f32.mrf.mxu0  ;;  %v5903_v3 = vpop.f32.mrf.mxu1 }
 0x443   :  { %v5865_v11 = vadd.f32 %v5864_v57, %v4379_v8  ;;  %v5904_v35 = vadd.f32 %v5903_v3, %v5863_v10 }
 0x444   :  { %v5866_v33 = vpop.f32.mrf.mxu0  ;;  %v5905_v53 = vpop.f32.mrf.mxu1 }
 0x445   :  { %v5906_v29 = vadd.f32 %v5905_v53, %v5865_v11 }
 0x446   :  { %v5867_v28 = vpop.f32.mrf.mxu0  ;;  %v5907_v2 = vpop.f32.mrf.mxu1 }
 0x448   :  { %v5908_v5 = vpop.f32.mrf.mxu1 }
 0x480   :  { %v5944_v19 = vpop.f32.mrf.mxu0 }
 0x481   :  { %v5945_v12 = vadd.f32 %v5944_v19, %v5904_v35 }
 0x482   :  { %v5946_v15 = vpop.f32.mrf.mxu0  ;;  %v5985_v14 = vpop.f32.mrf.mxu1 }
 0x483   :  { %v5947_v16 = vadd.f32 %v5946_v15, %v5906_v29  ;;  %v5986_v17 = vadd.f32 %v5985_v14, %v5945_v12 }
 0x484   :  { %v5948_v18 = vpop.f32.mrf.mxu0  ;;  %v5987_v20 = vpop.f32.mrf.mxu1 }
 0x485   :  { %v5988_v32 = vadd.f32 %v5987_v20, %v5947_v16  ;;  %v5994_v13 = vmax.f32 %v5986_v17, 0.0 }
 0x486   :  { %v5949_v50 = vpop.f32.mrf.mxu0  ;;  %v5989_v40 = vpop.f32.mrf.mxu1 }
 0x487   :  { %v5995_v22 = vmax.f32 %v5988_v32, 0.0  ;;  %v5998_v42 = vpack.c.bf16 %v5994_v13, %v5994_v13 }
 0x488   :  { %v5990_v44 = vpop.f32.mrf.mxu1 }
 0x489   :  { %v5999_v24 = vpack.c.bf16 %v5995_v22, %v5995_v22 }
 0x48b   :  { %6469 = vmatprep.mubr.bf16.mxu1 %v5999_v24 }
 0x48c   :  { %6470 = vmatmul.mubr.bf16.vlgmr.msra.gmra.mxu1 %v5998_v42 }
 0x4cc   :  { %v6430_v58 = vpop.f32.mrf.mxu0 }
 0x4cd   :  { %v6431_v36 = vadd.f32 %v6430_v58, %v6069_v30 }
 0x4ce   :  { %v6432_v25 = vpop.f32.mrf.mxu0 }
 0x4cf   :  { %v6433_v37 = vadd.f32 %v6432_v25, %v6073_v31 }
 0x4d0   :  { %v6434_v41 = vpop.f32.mrf.mxu0 }
 0x4d2   :  { %v6435_v26 = vpop.f32.mrf.mxu0 }
 0x54c   :  { %v6471_v51 = vpop.f32.mrf.mxu1 }
 0x54d   :  { %v6472_v43 = vadd.f32 %v6471_v51, %v6431_v36 }
 0x54e   :  { %v6473_v23 = vpop.f32.mrf.mxu1 }
 0x54f   :  { %v6478_v45 = vmax.f32 %v6472_v43, 0.0  ;;  %v6474_v46 = vadd.f32 %v6473_v23, %v6433_v37 }
 0x550   :  { %v6475_v38 = vpop.f32.mrf.mxu1 }
 0x551   :  { %v6479_v61 = vmax.f32 %v6474_v46, 0.0  ;;  %v6492_v47 = vmul.f32 %v6485_v56, %v6478_v45 }
 0x552   :  { %v6476_v21 = vpop.f32.mrf.mxu1 }
 0x553   :  { %v6493_v48 = vmul.f32 %v6489_v52, %v6479_v61  ;;  %v6495_v60 = vsel %vm6494_vm0, %v6492_v47, 0.0 }
 0x555   :  { %v6496_v49 = vsel %vm6494_vm0, %v6493_v48, 0.0 }
 0x556   :  { %v6497_v62 = vadd.f32 %v6496_v49, %v6495_v60 }
 0x558   :  { %6498 = vadd.xlane.f32.xlu0 %v6497_v62 }
 0x5e1   :  { %v6499_v34 = vpop.xlane.xlu0 %6498 }
 0x5e2   :  { %v6502_v1 = vadd.f32 %v6501_v0, %v6499_v34 }
 0x5e4   :  { %6504 = vst.msk [vmem:[%s8349_s9] sm:$0x3] %vm6503_vm1, %v6502_v1 }
 0x5e5   :  { %6509 = vsyncpa [#allocation5], 1 }
 0x5e6   :  { %6510 = vsyncpa [#allocation7], 1 }
 0x5e7   :  { %6511 = vsyncpa [#allocation10], 1 }
 0x5e8   :  { %6512 = vsyncpa [#allocation13], 1 }
 0x5e9   :  { %6513 = vsyncpa [#allocation16], 1 }

</bundles_post_ra>
